<compile_context>
chip_gen: v5e
topology: v5e:2x2
jax: 0.10.0
libtpu: 0.0.40
codegen_flags: <defaults>
</compile_context>

<pallas_src>
import jax
import jax.numpy as jnp
import numpy as np
from jax.experimental import pallas as pl
from jax.experimental.pallas import tpu as pltpu

EPS = 1e-5

# (cin, cout, kernel, stride, padding, output_padding) for the ConvTranspose2d blocks
CT_CFG = [
    (128, 128, 4, 2, 0, 1),
    (128, 64, 3, 1, 1, 0),
    (64, 64, 4, 2, 0, 1),
    (64, 32, 3, 1, 1, 0),
    (32, 32, 4, 2, 0, 0),
]

_VMEM = pl.BlockSpec(memory_space=pltpu.MemorySpace.VMEM)


def _round_up(x, m):
    return (x + m - 1) // m * m


# ---------------------------------------------------------------------------
# Pallas kernels (single shot, whole operands in VMEM, bf16 MXU / f32 accum)
# ---------------------------------------------------------------------------
def _matmul_kernel(w_ref, x_ref, o_ref):
    # Layer 1 (no preceding BN): cols = W_col @ x,  (k*k*Cout, Cin) @ (Cin, Mp).
    acc = jnp.dot(w_ref[...], x_ref[...].astype(jnp.bfloat16),
                  preferred_element_type=jnp.float32)
    o_ref[...] = acc.astype(o_ref.dtype)


def _make_bn_relu_matmul_kernel(m_real, eps):
    inv_m = 1.0 / float(m_real)

    def kernel(y_ref, gamma_ref, beta_ref, w_ref, o_ref):
        y = y_ref[...]                                   # (Cin, Mp) f32, pad cols are 0
        # One-pass train-mode BatchNorm stats over the real M columns (pads add 0).
        s1 = jnp.sum(y, axis=1, keepdims=True)
        s2 = jnp.sum(y * y, axis=1, keepdims=True)
        mean = s1 * inv_m
        var = jnp.maximum(s2 * inv_m - mean * mean, 0.0)
        scale = jax.lax.rsqrt(var + eps) * gamma_ref[...]        # (Cin, 1)
        shift = beta_ref[...] - mean * scale
        a = jnp.maximum(y * scale + shift, 0.0).astype(jnp.bfloat16)
        acc = jnp.dot(w_ref[...], a, preferred_element_type=jnp.float32)
        o_ref[...] = acc.astype(o_ref.dtype)

    return kernel


def _l1_matmul(w, x):
    rows = w.shape[0]
    mp = x.shape[1]
    return pl.pallas_call(
        _matmul_kernel,
        out_shape=jax.ShapeDtypeStruct((rows, mp), jnp.bfloat16),
        in_specs=[_VMEM, _VMEM],
        out_specs=_VMEM,
    )(w, x)


def _bn_relu_matmul(y, gamma, beta, w, m_real, out_dtype=jnp.bfloat16):
    rows = w.shape[0]
    mp = y.shape[1]
    return pl.pallas_call(
        _make_bn_relu_matmul_kernel(m_real, EPS),
        out_shape=jax.ShapeDtypeStruct((rows, mp), out_dtype),
        in_specs=[_VMEM, _VMEM, _VMEM, _VMEM],
        out_specs=_VMEM,
    )(y, gamma, beta, w)


# ---------------------------------------------------------------------------
# Thin XLA glue: col2im scatter-add and lane padding
# ---------------------------------------------------------------------------
def _col2im(cols, cout, n, hin, win, k, s, p, op):
    """Scatter-add tap cols (k*k*cout, >= n*hin*win) into (cout, n, hout, wout)."""
    hout = (hin - 1) * s - 2 * p + k + op
    wout = (win - 1) * s - 2 * p + k + op
    m = n * hin * win
    taps = cols[:, :m].astype(jnp.float32).reshape(k, k, cout, n, hin, win)
    out = jnp.zeros((cout, n, hout, wout), jnp.float32)
    zero = jnp.zeros((), jnp.float32)
    for kh in range(k):
        for kw in range(k):
            # Valid input rows/cols: 0 <= i*s + k_off - p < out_size.
            ih_lo = max(0, (p - kh + s - 1) // s)
            ih_hi = min(hin - 1, (hout - 1 - kh + p) // s)
            iw_lo = max(0, (p - kw + s - 1) // s)
            iw_hi = min(win - 1, (wout - 1 - kw + p) // s)
            if ih_lo > ih_hi or iw_lo > iw_hi:
                continue
            slab = taps[kh, kw, :, :, ih_lo:ih_hi + 1, iw_lo:iw_hi + 1]
            oh0, ohN = ih_lo * s + kh - p, ih_hi * s + kh - p
            ow0, owN = iw_lo * s + kw - p, iw_hi * s + kw - p
            cfg = [(0, 0, 0), (0, 0, 0),
                   (oh0, hout - 1 - ohN, s - 1),
                   (ow0, wout - 1 - owN, s - 1)]
            out = out + jax.lax.pad(slab, zero, cfg)
    return out


def _flatten_pad(y):
    """(C, N, H, W) f32 -> (C, Mp) with M padded to a multiple of 128 (zero columns)."""
    c = y.shape[0]
    m = y.shape[1] * y.shape[2] * y.shape[3]
    mp = _round_up(m, 128)
    y_flat = y.reshape(c, m)
    return jnp.pad(y_flat, ((0, 0), (0, mp - m))), m


# ---------------------------------------------------------------------------
# Parameters: raw (PyTorch layouts) + one-time kernel-layout preparation
# ---------------------------------------------------------------------------
def init_params(key):
    raw = {"ct": [], "final": {}}
    for (cin, cout, k, _s, _p, _op) in CT_CFG:
        key, kw_, kg, kb = jax.random.split(key, 4)
        raw["ct"].append({
            # PyTorch ConvTranspose2d weight layout: (Cin, Cout, kH, kW)
            "w": 0.05 * jax.random.normal(kw_, (cin, cout, k, k), jnp.float32),
            "gamma": 1.0 + 0.1 * jax.random.normal(kg, (cout,), jnp.float32),
            "beta": 0.1 * jax.random.normal(kb, (cout,), jnp.float32),
        })
    key, kw_, kb_ = jax.random.split(key, 3)
    # PyTorch Conv2d weight layout: (Cout, Cin, kH, kW)
    raw["final"]["w"] = 0.05 * jax.random.normal(kw_, (1, 32, 3, 3), jnp.float32)
    raw["final"]["b"] = 0.1 * jax.random.normal(kb_, (1,), jnp.float32)
    return raw


def prepare_params(raw):
    """One-time weight prep (outside the jitted forward): deconv weights ->
    tap-major (k*k*Cout, Cin) bf16; final conv weights spatially flipped ->
    (9, 32) bf16 so the same col2im scatter reproduces a stride-1 'same' conv."""
    prepped = {"ct": [], "final": {}}
    for (cin, cout, k, *_), p in zip(CT_CFG, raw["ct"]):
        w_col = p["w"].transpose(2, 3, 1, 0).reshape(k * k * cout, cin)
        prepped["ct"].append({
            "w": w_col.astype(jnp.bfloat16),
            "gamma": p["gamma"].reshape(cout, 1),
            "beta": p["beta"].reshape(cout, 1),
        })
    wf = jnp.flip(raw["final"]["w"], axis=(2, 3)).transpose(2, 3, 0, 1).reshape(9, 32)
    prepped["final"]["w"] = wf.astype(jnp.bfloat16)
    prepped["final"]["b"] = raw["final"]["b"]
    return prepped


# ---------------------------------------------------------------------------
# Forward pass (Pallas) and pure-JAX reference
# ---------------------------------------------------------------------------
@jax.jit
def omniglot_decoder(x_nchw, prepped):
    n = x_nchw.shape[0]
    hin = win = 1
    act, m = _flatten_pad(jnp.transpose(x_nchw.astype(jnp.float32), (1, 0, 2, 3)))
    gamma = beta = None
    for cfg, p in zip(CT_CFG, prepped["ct"]):
        _cin, cout, k, s, pad, opad = cfg
        if gamma is None:
            cols = _l1_matmul(p["w"], act)                       # ConvT1
        else:
            cols = _bn_relu_matmul(act, gamma, beta, p["w"], m)  # BN+ReLU+ConvT_i
        y = _col2im(cols, cout, n, hin, win, k, s, pad, opad)    # (Cout, N, Ho, Wo) f32
        hin, win = y.shape[2], y.shape[3]
        act, m = _flatten_pad(y)
        gamma, beta = p["gamma"], p["beta"]
    # Final Conv2d(32,1,3,p=1): BN5+ReLU + per-tap matmul in Pallas -> (9, Mp) cols.
    cols = _bn_relu_matmul(act, gamma, beta, prepped["final"]["w"], m,
                           out_dtype=jnp.float32)
    # TODO(synk): the col2im spatial scatter-add and this trailing bias+ReLU run as fused
    # XLA glue between Pallas calls; unaligned 5/13/28-wide spatial reshapes inside a
    # Mosaic kernel do not lower reliably, so the assembly stays outside the kernels.
    z = _col2im(cols, 1, n, hin, win, 3, 1, 1, 0)                # (1, N, 28, 28)
    out = jnp.maximum(z + prepped["final"]["b"].reshape(1, 1, 1, 1), 0.0)
    return jnp.transpose(out, (1, 0, 2, 3))                      # NCHW


def reference_decoder(x_nchw, raw):
    x = jnp.transpose(x_nchw, (0, 2, 3, 1)).astype(jnp.float32)
    for cfg, p in zip(CT_CFG, raw["ct"]):
        _cin, _cout, k, s, pad, opad = cfg
        w_hwio = jnp.flip(p["w"], axis=(2, 3)).transpose(2, 3, 0, 1)
        lo, hi = k - 1 - pad, k - 1 - pad + opad
        y = jax.lax.conv_general_dilated(
            x, w_hwio, window_strides=(1, 1), padding=[(lo, hi), (lo, hi)],
            lhs_dilation=(s, s), dimension_numbers=("NHWC", "HWIO", "NHWC"),
            precision=jax.lax.Precision.HIGHEST)
        mean = jnp.mean(y, axis=(0, 1, 2), keepdims=True)
        var = jnp.mean(jnp.square(y - mean), axis=(0, 1, 2), keepdims=True)
        y = (y - mean) * jax.lax.rsqrt(var + EPS)
        y = y * p["gamma"].reshape(1, 1, 1, -1) + p["beta"].reshape(1, 1, 1, -1)
        x = jnp.maximum(y, 0.0)
    w_hwio = raw["final"]["w"].transpose(2, 3, 1, 0)
    y = jax.lax.conv_general_dilated(
        x, w_hwio, window_strides=(1, 1), padding=[(1, 1), (1, 1)],
        dimension_numbers=("NHWC", "HWIO", "NHWC"),
        precision=jax.lax.Precision.HIGHEST)
    y = jnp.maximum(y + raw["final"]["b"].reshape(1, 1, 1, -1), 0.0)
    return jnp.transpose(y, (0, 3, 1, 2))


if __name__ == "__main__":
    key = jax.random.PRNGKey(0)
    key, kx = jax.random.split(key)
    # Omniglot latent: (B, 128, 1, 1) -> decoder output (B, 1, 28, 28)
    x = jax.random.normal(kx, (2, 128, 1, 1), jnp.float32)
    raw_params = init_params(key)
    prepped_params = prepare_params(raw_params)   # one-time, outside the forward

    out = jax.block_until_ready(omniglot_decoder(x, prepped_params))
    assert out.shape == (2, 1, 28, 28), out.shape
    assert bool(jnp.all(jnp.isfinite(out)))
    assert bool(jnp.all(out >= 0.0))  # final ReLU

    ref = reference_decoder(x, raw_params)
    # bf16 MXU inputs with f32 accumulation -> tolerance set for bf16 end-to-end.
    np.testing.assert_allclose(np.asarray(out), np.asarray(ref), rtol=2e-2, atol=2e-2)
    print("KERNEL_OK")
</pallas_src>

<mosaic_0001>
module attributes {stable_mosaic.version = 11 : i64} {
  func.func @_matmul_kernel(%arg0: memref<2048x128xbf16, #tpu.memory_space<vmem>>, %arg1: memref<128x128xf32, #tpu.memory_space<vmem>>, %arg2: memref<2048x128xbf16, #tpu.memory_space<vmem>>) attributes {dimension_semantics = [], scalar_prefetch = 0 : i64, scratch_operands = 0 : i64, tpu.core_type = #tpu.core_type<tc>} {
    %c0 = arith.constant 0 : index
    %c0_0 = arith.constant 0 : index
    %0 = vector.load %arg0[%c0, %c0_0] : memref<2048x128xbf16, #tpu.memory_space<vmem>>, vector<2048x128xbf16>
    %c0_1 = arith.constant 0 : index
    %c0_2 = arith.constant 0 : index
    %1 = vector.load %arg1[%c0_1, %c0_2] : memref<128x128xf32, #tpu.memory_space<vmem>>, vector<128x128xf32>
    %2 = arith.truncf %1 : vector<128x128xf32> to vector<128x128xbf16>
    %cst = arith.constant dense<0.000000e+00> : vector<2048x128xf32>
    %3 = tpu.matmul %0, %2, %cst {dimension_numbers = #tpu.dot_dimension_numbers<[1], [0], [0], [1], [0, 0, 1, 1], [], []>} : vector<2048x128xbf16>, vector<128x128xbf16>, vector<2048x128xf32> -> vector<2048x128xf32>
    %4 = arith.truncf %3 : vector<2048x128xf32> to vector<2048x128xbf16>
    %c0_3 = arith.constant 0 : index
    %c0_4 = arith.constant 0 : index
    %5 = vector.load %arg2[%c0_3, %c0_4] : memref<2048x128xbf16, #tpu.memory_space<vmem>>, vector<2048x128xbf16>
    tpu.vector_store %arg2[%c0_3, %c0_4], %4 {strides = array<i32>} : memref<2048x128xbf16, #tpu.memory_space<vmem>>, vector<2048x128xbf16>,
    return
  }
}

module attributes {stable_mosaic.version = 11 : i64} {
  func.func @kernel(%arg0: memref<128x128xf32, #tpu.memory_space<vmem>>, %arg1: memref<128x1xf32, #tpu.memory_space<vmem>>, %arg2: memref<128x1xf32, #tpu.memory_space<vmem>>, %arg3: memref<576x128xbf16, #tpu.memory_space<vmem>>, %arg4: memref<576x128xbf16, #tpu.memory_space<vmem>>) attributes {dimension_semantics = [], scalar_prefetch = 0 : i64, scratch_operands = 0 : i64, tpu.core_type = #tpu.core_type<tc>} {
    %c0 = arith.constant 0 : index
    %c0_0 = arith.constant 0 : index
    %0 = vector.load %arg0[%c0, %c0_0] : memref<128x128xf32, #tpu.memory_space<vmem>>, vector<128x128xf32>
    %cst = arith.constant dense<0.000000e+00> : vector<128xf32>
    %1 = vector.multi_reduction <add>, %0, %cst [1] : vector<128x128xf32> to vector<128xf32>
    %2 = vector.shape_cast %1 : vector<128xf32> to vector<128x1xf32>
    %3 = arith.mulf %0, %0 : vector<128x128xf32>
    %cst_1 = arith.constant dense<0.000000e+00> : vector<128xf32>
    %4 = vector.multi_reduction <add>, %3, %cst_1 [1] : vector<128x128xf32> to vector<128xf32>
    %5 = vector.shape_cast %4 : vector<128xf32> to vector<128x1xf32>
    %cst_2 = arith.constant 2.000000e-02 : f32
    %6 = vector.broadcast %cst_2 : f32 to vector<128x1xf32>
    %7 = arith.mulf %2, %6 : vector<128x1xf32>
    %cst_3 = arith.constant 2.000000e-02 : f32
    %8 = vector.broadcast %cst_3 : f32 to vector<128x1xf32>
    %9 = arith.mulf %5, %8 : vector<128x1xf32>
    %10 = arith.mulf %7, %7 : vector<128x1xf32>
    %11 = arith.subf %9, %10 : vector<128x1xf32>
    %cst_4 = arith.constant 0.000000e+00 : f32
    %12 = vector.broadcast %cst_4 : f32 to vector<128x1xf32>
    %13 = arith.maximumf %11, %12 : vector<128x1xf32>
    %cst_5 = arith.constant 9.99999974E-6 : f32
    %14 = vector.broadcast %cst_5 : f32 to vector<128x1xf32>
    %15 = arith.addf %13, %14 : vector<128x1xf32>
    %16 = math.rsqrt %15 : vector<128x1xf32>
    %c0_6 = arith.constant 0 : index
    %c0_7 = arith.constant 0 : index
    %17 = vector.load %arg1[%c0_6, %c0_7] : memref<128x1xf32, #tpu.memory_space<vmem>>, vector<128x1xf32>
    %18 = arith.mulf %16, %17 : vector<128x1xf32>
    %c0_8 = arith.constant 0 : index
    %c0_9 = arith.constant 0 : index
    %19 = vector.load %arg2[%c0_8, %c0_9] : memref<128x1xf32, #tpu.memory_space<vmem>>, vector<128x1xf32>
    %20 = arith.mulf %7, %18 : vector<128x1xf32>
    %21 = arith.subf %19, %20 : vector<128x1xf32>
    %22 = vector.broadcast %18 : vector<128x1xf32> to vector<128x128xf32>
    %23 = arith.mulf %0, %22 : vector<128x128xf32>
    %24 = vector.broadcast %21 : vector<128x1xf32> to vector<128x128xf32>
    %25 = arith.addf %23, %24 : vector<128x128xf32>
    %cst_10 = arith.constant 0.000000e+00 : f32
    %26 = vector.broadcast %cst_10 : f32 to vector<128x128xf32>
    %27 = arith.maximumf %25, %26 : vector<128x128xf32>
    %28 = arith.truncf %27 : vector<128x128xf32> to vector<128x128xbf16>
    %c0_11 = arith.constant 0 : index
    %c0_12 = arith.constant 0 : index
    %29 = vector.load %arg3[%c0_11, %c0_12] : memref<576x128xbf16, #tpu.memory_space<vmem>>, vector<576x128xbf16>
    %cst_13 = arith.constant dense<0.000000e+00> : vector<576x128xf32>
    %30 = tpu.matmul %29, %28, %cst_13 {dimension_numbers = #tpu.dot_dimension_numbers<[1], [0], [0], [1], [0, 0, 1, 1], [], []>} : vector<576x128xbf16>, vector<128x128xbf16>, vector<576x128xf32> -> vector<576x128xf32>
    %31 = arith.truncf %30 : vector<576x128xf32> to vector<576x128xbf16>
    %c0_14 = arith.constant 0 : index
    %c0_15 = arith.constant 0 : index
    %32 = vector.load %arg4[%c0_14, %c0_15] : memref<576x128xbf16, #tpu.memory_space<vmem>>, vector<576x128xbf16>
    tpu.vector_store %arg4[%c0_14, %c0_15], %31 {strides = array<i32>} : memref<576x128xbf16, #tpu.memory_space<vmem>>, vector<576x128xbf16>,
    return
  }
}

module attributes {stable_mosaic.version = 11 : i64} {
  func.func @kernel(%arg0: memref<64x128xf32, #tpu.memory_space<vmem>>, %arg1: memref<64x1xf32, #tpu.memory_space<vmem>>, %arg2: memref<64x1xf32, #tpu.memory_space<vmem>>, %arg3: memref<1024x64xbf16, #tpu.memory_space<vmem>>, %arg4: memref<1024x128xbf16, #tpu.memory_space<vmem>>) attributes {dimension_semantics = [], scalar_prefetch = 0 : i64, scratch_operands = 0 : i64, tpu.core_type = #tpu.core_type<tc>} {
    %c0 = arith.constant 0 : index
    %c0_0 = arith.constant 0 : index
    %0 = vector.load %arg0[%c0, %c0_0] : memref<64x128xf32, #tpu.memory_space<vmem>>, vector<64x128xf32>
    %cst = arith.constant dense<0.000000e+00> : vector<64xf32>
    %1 = vector.multi_reduction <add>, %0, %cst [1] : vector<64x128xf32> to vector<64xf32>
    %2 = vector.shape_cast %1 : vector<64xf32> to vector<64x1xf32>
    %3 = arith.mulf %0, %0 : vector<64x128xf32>
    %cst_1 = arith.constant dense<0.000000e+00> : vector<64xf32>
    %4 = vector.multi_reduction <add>, %3, %cst_1 [1] : vector<64x128xf32> to vector<64xf32>
    %5 = vector.shape_cast %4 : vector<64xf32> to vector<64x1xf32>
    %cst_2 = arith.constant 2.000000e-02 : f32
    %6 = vector.broadcast %cst_2 : f32 to vector<64x1xf32>
    %7 = arith.mulf %2, %6 : vector<64x1xf32>
    %cst_3 = arith.constant 2.000000e-02 : f32
    %8 = vector.broadcast %cst_3 : f32 to vector<64x1xf32>
    %9 = arith.mulf %5, %8 : vector<64x1xf32>
    %10 = arith.mulf %7, %7 : vector<64x1xf32>
    %11 = arith.subf %9, %10 : vector<64x1xf32>
    %cst_4 = arith.constant 0.000000e+00 : f32
    %12 = vector.broadcast %cst_4 : f32 to vector<64x1xf32>
    %13 = arith.maximumf %11, %12 : vector<64x1xf32>
    %cst_5 = arith.constant 9.99999974E-6 : f32
    %14 = vector.broadcast %cst_5 : f32 to vector<64x1xf32>
    %15 = arith.addf %13, %14 : vector<64x1xf32>
    %16 = math.rsqrt %15 : vector<64x1xf32>
    %c0_6 = arith.constant 0 : index
    %c0_7 = arith.constant 0 : index
    %17 = vector.load %arg1[%c0_6, %c0_7] : memref<64x1xf32, #tpu.memory_space<vmem>>, vector<64x1xf32>
    %18 = arith.mulf %16, %17 : vector<64x1xf32>
    %c0_8 = arith.constant 0 : index
    %c0_9 = arith.constant 0 : index
    %19 = vector.load %arg2[%c0_8, %c0_9] : memref<64x1xf32, #tpu.memory_space<vmem>>, vector<64x1xf32>
    %20 = arith.mulf %7, %18 : vector<64x1xf32>
    %21 = arith.subf %19, %20 : vector<64x1xf32>
    %22 = vector.broadcast %18 : vector<64x1xf32> to vector<64x128xf32>
    %23 = arith.mulf %0, %22 : vector<64x128xf32>
    %24 = vector.broadcast %21 : vector<64x1xf32> to vector<64x128xf32>
    %25 = arith.addf %23, %24 : vector<64x128xf32>
    %cst_10 = arith.constant 0.000000e+00 : f32
    %26 = vector.broadcast %cst_10 : f32 to vector<64x128xf32>
    %27 = arith.maximumf %25, %26 : vector<64x128xf32>
    %28 = arith.truncf %27 : vector<64x128xf32> to vector<64x128xbf16>
    %c0_11 = arith.constant 0 : index
    %c0_12 = arith.constant 0 : index
    %29 = vector.load %arg3[%c0_11, %c0_12] : memref<1024x64xbf16, #tpu.memory_space<vmem>>, vector<1024x64xbf16>
    %cst_13 = arith.constant dense<0.000000e+00> : vector<1024x128xf32>
    %30 = tpu.matmul %29, %28, %cst_13 {dimension_numbers = #tpu.dot_dimension_numbers<[1], [0], [0], [1], [0, 0, 1, 1], [], []>} : vector<1024x64xbf16>, vector<64x128xbf16>, vector<1024x128xf32> -> vector<1024x128xf32>
    %31 = arith.truncf %30 : vector<1024x128xf32> to vector<1024x128xbf16>
    %c0_14 = arith.constant 0 : index
    %c0_15 = arith.constant 0 : index
    %32 = vector.load %arg4[%c0_14, %c0_15] : memref<1024x128xbf16, #tpu.memory_space<vmem>>, vector<1024x128xbf16>
    tpu.vector_store %arg4[%c0_14, %c0_15], %31 {strides = array<i32>} : memref<1024x128xbf16, #tpu.memory_space<vmem>>, vector<1024x128xbf16>,
    return
  }
}

module attributes {stable_mosaic.version = 11 : i64} {
  func.func @kernel(%arg0: memref<64x384xf32, #tpu.memory_space<vmem>>, %arg1: memref<64x1xf32, #tpu.memory_space<vmem>>, %arg2: memref<64x1xf32, #tpu.memory_space<vmem>>, %arg3: memref<288x64xbf16, #tpu.memory_space<vmem>>, %arg4: memref<288x384xbf16, #tpu.memory_space<vmem>>) attributes {dimension_semantics = [], scalar_prefetch = 0 : i64, scratch_operands = 0 : i64, tpu.core_type = #tpu.core_type<tc>} {
    %c0 = arith.constant 0 : index
    %c0_0 = arith.constant 0 : index
    %0 = vector.load %arg0[%c0, %c0_0] : memref<64x384xf32, #tpu.memory_space<vmem>>, vector<64x384xf32>
    %cst = arith.constant dense<0.000000e+00> : vector<64xf32>
    %1 = vector.multi_reduction <add>, %0, %cst [1] : vector<64x384xf32> to vector<64xf32>
    %2 = vector.shape_cast %1 : vector<64xf32> to vector<64x1xf32>
    %3 = arith.mulf %0, %0 : vector<64x384xf32>
    %cst_1 = arith.constant dense<0.000000e+00> : vector<64xf32>
    %4 = vector.multi_reduction <add>, %3, %cst_1 [1] : vector<64x384xf32> to vector<64xf32>
    %5 = vector.shape_cast %4 : vector<64xf32> to vector<64x1xf32>
    %cst_2 = arith.constant 2.958580e-03 : f32
    %6 = vector.broadcast %cst_2 : f32 to vector<64x1xf32>
    %7 = arith.mulf %2, %6 : vector<64x1xf32>
    %cst_3 = arith.constant 2.958580e-03 : f32
    %8 = vector.broadcast %cst_3 : f32 to vector<64x1xf32>
    %9 = arith.mulf %5, %8 : vector<64x1xf32>
    %10 = arith.mulf %7, %7 : vector<64x1xf32>
    %11 = arith.subf %9, %10 : vector<64x1xf32>
    %cst_4 = arith.constant 0.000000e+00 : f32
    %12 = vector.broadcast %cst_4 : f32 to vector<64x1xf32>
    %13 = arith.maximumf %11, %12 : vector<64x1xf32>
    %cst_5 = arith.constant 9.99999974E-6 : f32
    %14 = vector.broadcast %cst_5 : f32 to vector<64x1xf32>
    %15 = arith.addf %13, %14 : vector<64x1xf32>
    %16 = math.rsqrt %15 : vector<64x1xf32>
    %c0_6 = arith.constant 0 : index
    %c0_7 = arith.constant 0 : index
    %17 = vector.load %arg1[%c0_6, %c0_7] : memref<64x1xf32, #tpu.memory_space<vmem>>, vector<64x1xf32>
    %18 = arith.mulf %16, %17 : vector<64x1xf32>
    %c0_8 = arith.constant 0 : index
    %c0_9 = arith.constant 0 : index
    %19 = vector.load %arg2[%c0_8, %c0_9] : memref<64x1xf32, #tpu.memory_space<vmem>>, vector<64x1xf32>
    %20 = arith.mulf %7, %18 : vector<64x1xf32>
    %21 = arith.subf %19, %20 : vector<64x1xf32>
    %22 = vector.broadcast %18 : vector<64x1xf32> to vector<64x384xf32>
    %23 = arith.mulf %0, %22 : vector<64x384xf32>
    %24 = vector.broadcast %21 : vector<64x1xf32> to vector<64x384xf32>
    %25 = arith.addf %23, %24 : vector<64x384xf32>
    %cst_10 = arith.constant 0.000000e+00 : f32
    %26 = vector.broadcast %cst_10 : f32 to vector<64x384xf32>
    %27 = arith.maximumf %25, %26 : vector<64x384xf32>
    %28 = arith.truncf %27 : vector<64x384xf32> to vector<64x384xbf16>
    %c0_11 = arith.constant 0 : index
    %c0_12 = arith.constant 0 : index
    %29 = vector.load %arg3[%c0_11, %c0_12] : memref<288x64xbf16, #tpu.memory_space<vmem>>, vector<288x64xbf16>
    %cst_13 = arith.constant dense<0.000000e+00> : vector<288x384xf32>
    %30 = tpu.matmul %29, %28, %cst_13 {dimension_numbers = #tpu.dot_dimension_numbers<[1], [0], [0], [1], [0, 0, 1, 1], [], []>} : vector<288x64xbf16>, vector<64x384xbf16>, vector<288x384xf32> -> vector<288x384xf32>
    %31 = arith.truncf %30 : vector<288x384xf32> to vector<288x384xbf16>
    %c0_14 = arith.constant 0 : index
    %c0_15 = arith.constant 0 : index
    %32 = vector.load %arg4[%c0_14, %c0_15] : memref<288x384xbf16, #tpu.memory_space<vmem>>, vector<288x384xbf16>
    tpu.vector_store %arg4[%c0_14, %c0_15], %31 {strides = array<i32>} : memref<288x384xbf16, #tpu.memory_space<vmem>>, vector<288x384xbf16>,
    return
  }
}

module attributes {stable_mosaic.version = 11 : i64} {
  func.func @kernel(%arg0: memref<32x384xf32, #tpu.memory_space<vmem>>, %arg1: memref<32x1xf32, #tpu.memory_space<vmem>>, %arg2: memref<32x1xf32, #tpu.memory_space<vmem>>, %arg3: memref<512x32xbf16, #tpu.memory_space<vmem>>, %arg4: memref<512x384xbf16, #tpu.memory_space<vmem>>) attributes {dimension_semantics = [], scalar_prefetch = 0 : i64, scratch_operands = 0 : i64, tpu.core_type = #tpu.core_type<tc>} {
    %c0 = arith.constant 0 : index
    %c0_0 = arith.constant 0 : index
    %0 = vector.load %arg0[%c0, %c0_0] : memref<32x384xf32, #tpu.memory_space<vmem>>, vector<32x384xf32>
    %cst = arith.constant dense<0.000000e+00> : vector<32xf32>
    %1 = vector.multi_reduction <add>, %0, %cst [1] : vector<32x384xf32> to vector<32xf32>
    %2 = vector.shape_cast %1 : vector<32xf32> to vector<32x1xf32>
    %3 = arith.mulf %0, %0 : vector<32x384xf32>
    %cst_1 = arith.constant dense<0.000000e+00> : vector<32xf32>
    %4 = vector.multi_reduction <add>, %3, %cst_1 [1] : vector<32x384xf32> to vector<32xf32>
    %5 = vector.shape_cast %4 : vector<32xf32> to vector<32x1xf32>
    %cst_2 = arith.constant 2.958580e-03 : f32
    %6 = vector.broadcast %cst_2 : f32 to vector<32x1xf32>
    %7 = arith.mulf %2, %6 : vector<32x1xf32>
    %cst_3 = arith.constant 2.958580e-03 : f32
    %8 = vector.broadcast %cst_3 : f32 to vector<32x1xf32>
    %9 = arith.mulf %5, %8 : vector<32x1xf32>
    %10 = arith.mulf %7, %7 : vector<32x1xf32>
    %11 = arith.subf %9, %10 : vector<32x1xf32>
    %cst_4 = arith.constant 0.000000e+00 : f32
    %12 = vector.broadcast %cst_4 : f32 to vector<32x1xf32>
    %13 = arith.maximumf %11, %12 : vector<32x1xf32>
    %cst_5 = arith.constant 9.99999974E-6 : f32
    %14 = vector.broadcast %cst_5 : f32 to vector<32x1xf32>
    %15 = arith.addf %13, %14 : vector<32x1xf32>
    %16 = math.rsqrt %15 : vector<32x1xf32>
    %c0_6 = arith.constant 0 : index
    %c0_7 = arith.constant 0 : index
    %17 = vector.load %arg1[%c0_6, %c0_7] : memref<32x1xf32, #tpu.memory_space<vmem>>, vector<32x1xf32>
    %18 = arith.mulf %16, %17 : vector<32x1xf32>
    %c0_8 = arith.constant 0 : index
    %c0_9 = arith.constant 0 : index
    %19 = vector.load %arg2[%c0_8, %c0_9] : memref<32x1xf32, #tpu.memory_space<vmem>>, vector<32x1xf32>
    %20 = arith.mulf %7, %18 : vector<32x1xf32>
    %21 = arith.subf %19, %20 : vector<32x1xf32>
    %22 = vector.broadcast %18 : vector<32x1xf32> to vector<32x384xf32>
    %23 = arith.mulf %0, %22 : vector<32x384xf32>
    %24 = vector.broadcast %21 : vector<32x1xf32> to vector<32x384xf32>
    %25 = arith.addf %23, %24 : vector<32x384xf32>
    %cst_10 = arith.constant 0.000000e+00 : f32
    %26 = vector.broadcast %cst_10 : f32 to vector<32x384xf32>
    %27 = arith.maximumf %25, %26 : vector<32x384xf32>
    %28 = arith.truncf %27 : vector<32x384xf32> to vector<32x384xbf16>
    %c0_11 = arith.constant 0 : index
    %c0_12 = arith.constant 0 : index
    %29 = vector.load %arg3[%c0_11, %c0_12] : memref<512x32xbf16, #tpu.memory_space<vmem>>, vector<512x32xbf16>
    %cst_13 = arith.constant dense<0.000000e+00> : vector<512x384xf32>
    %30 = tpu.matmul %29, %28, %cst_13 {dimension_numbers = #tpu.dot_dimension_numbers<[1], [0], [0], [1], [0, 0, 1, 1], [], []>} : vector<512x32xbf16>, vector<32x384xbf16>, vector<512x384xf32> -> vector<512x384xf32>
    %31 = arith.truncf %30 : vector<512x384xf32> to vector<512x384xbf16>
    %c0_14 = arith.constant 0 : index
    %c0_15 = arith.constant 0 : index
    %32 = vector.load %arg4[%c0_14, %c0_15] : memref<512x384xbf16, #tpu.memory_space<vmem>>, vector<512x384xbf16>
    tpu.vector_store %arg4[%c0_14, %c0_15], %31 {strides = array<i32>} : memref<512x384xbf16, #tpu.memory_space<vmem>>, vector<512x384xbf16>,
    return
  }
}

module attributes {stable_mosaic.version = 11 : i64} {
  func.func @kernel(%arg0: memref<32x1664xf32, #tpu.memory_space<vmem>>, %arg1: memref<32x1xf32, #tpu.memory_space<vmem>>, %arg2: memref<32x1xf32, #tpu.memory_space<vmem>>, %arg3: memref<9x32xbf16, #tpu.memory_space<vmem>>, %arg4: memref<9x1664xf32, #tpu.memory_space<vmem>>) attributes {dimension_semantics = [], scalar_prefetch = 0 : i64, scratch_operands = 0 : i64, tpu.core_type = #tpu.core_type<tc>} {
    %c0 = arith.constant 0 : index
    %c0_0 = arith.constant 0 : index
    %0 = vector.load %arg0[%c0, %c0_0] : memref<32x1664xf32, #tpu.memory_space<vmem>>, vector<32x1664xf32>
    %cst = arith.constant dense<0.000000e+00> : vector<32xf32>
    %1 = vector.multi_reduction <add>, %0, %cst [1] : vector<32x1664xf32> to vector<32xf32>
    %2 = vector.shape_cast %1 : vector<32xf32> to vector<32x1xf32>
    %3 = arith.mulf %0, %0 : vector<32x1664xf32>
    %cst_1 = arith.constant dense<0.000000e+00> : vector<32xf32>
    %4 = vector.multi_reduction <add>, %3, %cst_1 [1] : vector<32x1664xf32> to vector<32xf32>
    %5 = vector.shape_cast %4 : vector<32xf32> to vector<32x1xf32>
    %cst_2 = arith.constant 6.37755089E-4 : f32
    %6 = vector.broadcast %cst_2 : f32 to vector<32x1xf32>
    %7 = arith.mulf %2, %6 : vector<32x1xf32>
    %cst_3 = arith.constant 6.37755089E-4 : f32
    %8 = vector.broadcast %cst_3 : f32 to vector<32x1xf32>
    %9 = arith.mulf %5, %8 : vector<32x1xf32>
    %10 = arith.mulf %7, %7 : vector<32x1xf32>
    %11 = arith.subf %9, %10 : vector<32x1xf32>
    %cst_4 = arith.constant 0.000000e+00 : f32
    %12 = vector.broadcast %cst_4 : f32 to vector<32x1xf32>
    %13 = arith.maximumf %11, %12 : vector<32x1xf32>
    %cst_5 = arith.constant 9.99999974E-6 : f32
    %14 = vector.broadcast %cst_5 : f32 to vector<32x1xf32>
    %15 = arith.addf %13, %14 : vector<32x1xf32>
    %16 = math.rsqrt %15 : vector<32x1xf32>
    %c0_6 = arith.constant 0 : index
    %c0_7 = arith.constant 0 : index
    %17 = vector.load %arg1[%c0_6, %c0_7] : memref<32x1xf32, #tpu.memory_space<vmem>>, vector<32x1xf32>
    %18 = arith.mulf %16, %17 : vector<32x1xf32>
    %c0_8 = arith.constant 0 : index
    %c0_9 = arith.constant 0 : index
    %19 = vector.load %arg2[%c0_8, %c0_9] : memref<32x1xf32, #tpu.memory_space<vmem>>, vector<32x1xf32>
    %20 = arith.mulf %7, %18 : vector<32x1xf32>
    %21 = arith.subf %19, %20 : vector<32x1xf32>
    %22 = vector.broadcast %18 : vector<32x1xf32> to vector<32x1664xf32>
    %23 = arith.mulf %0, %22 : vector<32x1664xf32>
    %24 = vector.broadcast %21 : vector<32x1xf32> to vector<32x1664xf32>
    %25 = arith.addf %23, %24 : vector<32x1664xf32>
    %cst_10 = arith.constant 0.000000e+00 : f32
    %26 = vector.broadcast %cst_10 : f32 to vector<32x1664xf32>
    %27 = arith.maximumf %25, %26 : vector<32x1664xf32>
    %28 = arith.truncf %27 : vector<32x1664xf32> to vector<32x1664xbf16>
    %c0_11 = arith.constant 0 : index
    %c0_12 = arith.constant 0 : index
    %29 = vector.load %arg3[%c0_11, %c0_12] : memref<9x32xbf16, #tpu.memory_space<vmem>>, vector<9x32xbf16>
    %cst_13 = arith.constant dense<0.000000e+00> : vector<9x1664xf32>
    %30 = tpu.matmul %29, %28, %cst_13 {dimension_numbers = #tpu.dot_dimension_numbers<[1], [0], [0], [1], [0, 0, 1, 1], [], []>} : vector<9x32xbf16>, vector<32x1664xbf16>, vector<9x1664xf32> -> vector<9x1664xf32>
    %c0_14 = arith.constant 0 : index
    %c0_15 = arith.constant 0 : index
    %31 = vector.load %arg4[%c0_14, %c0_15] : memref<9x1664xf32, #tpu.memory_space<vmem>>, vector<9x1664xf32>
    tpu.vector_store %arg4[%c0_14, %c0_15], %30 {strides = array<i32>} : memref<9x1664xf32, #tpu.memory_space<vmem>>, vector<9x1664xf32>,
    return
  }
}

</mosaic_0001>

<bundles_post_ra>
// kernel: omniglot_decoder.7
= control target key start
LH: loop header
LB: loop body
LE: loop exit
PB: predicated region body
PF: predicated region fallthrough
CT: control target
= control target key end

     0   :  { %v1752_v32 = vmov 0   ;;  %s2491_s0 = inlined_call_operand.vmem [shape: f32[128,128], index: 0, kind: input, shape index: {}]   ;;  %s2492_s1 = inlined_call_operand.vmem [shape: f32[128,1], index: 1, kind: input, shape index: {}]   ;;  %s2493_s2 = inlined_call_operand.vmem [shape: f32[128,1], index: 2, kind: input, shape index: {}]   ;;  %s2494_s3 = inlined_call_operand.vmem [shape: bf16[576,128], index: 3, kind: input, shape index: {}]   ;;  %s2495_s4 = inlined_call_operand.vmem [shape: bf16[576,128], index: 4, kind: output, shape index: {}]  }
   0x1   :  { %v1781_v0 = vld [vmem:[%s2491_s0 + $0x70] sm:$0xff]  ;;  %v1786_v1 = vld [vmem:[%s2491_s0 + $0x60] sm:$0xff]  ;;  %v1795_v3 = vld [vmem:[%s2491_s0 + $0x78] sm:$0xff]  ;;  %1710 = vset.pattern.permute.xlu2 %v1752_v32  ;;  %1711 = vset.pattern.permute.xlu0 %v1752_v32 }
   0x2   :  { %61 = vadd.xlane.f32.xlu0 %v1781_v0  ;;  %v79_v2 = vmul.f32 %v1781_v0, %v1781_v0  ;;  %57 = vadd.xlane.f32.xlu2 %v1786_v1  ;;  %v1800_v4 = vld [vmem:[%s2491_s0 + $0x68] sm:$0xff]  ;;  %v80_v5 = vmul.f32 %v1795_v3, %v1795_v3  ;;  %v77_v6 = vmul.f32 %v1786_v1, %v1786_v1  ;;  %v1811_v7 = vld [vmem:[%s2491_s0 + $0x50] sm:$0xff]  ;;  %v1819_v9 = vld [vmem:[%s2491_s0 + $0x58] sm:$0xff] }
   0x3   :  { %v78_v8 = vmul.f32 %v1800_v4, %v1800_v4  ;;  %v76_v10 = vmul.f32 %v1819_v9, %v1819_v9  ;;  %v75_v11 = vmul.f32 %v1811_v7, %v1811_v7  ;;  %v1829_v12 = vld [vmem:[%s2491_s0 + $0x40] sm:$0xff]  ;;  %v1836_v14 = vld [vmem:[%s2491_s0 + $0x48] sm:$0xff]  ;;  %v24_v16 = vld [vmem:[%s2491_s0 + $0x38] sm:$0xff]  ;;  %1712 = vset.pattern.permute.xlu1 %v1752_v32 }
   0x4   :  { %109 = vadd.xlane.f32.xlu1 %v79_v2  ;;  %v73_v13 = vmul.f32 %v1829_v12, %v1829_v12  ;;  %v74_v15 = vmul.f32 %v1836_v14, %v1836_v14  ;;  %v1848_v17 = vld [vmem:[%s2491_s0 + $0x30] sm:$0xff]  ;;  %v21_v19 = vld [vmem:[%s2491_s0 + $0x20] sm:$0xff]  ;;  %v72_v20 = vmul.f32 %v24_v16, %v24_v16  ;;  %v22_v21 = vld [vmem:[%s2491_s0 + $0x28] sm:$0xff] }
   0x5   :  { %v71_v18 = vmul.f32 %v1848_v17, %v1848_v17  ;;  %v70_v22 = vmul.f32 %v22_v21, %v22_v21  ;;  %v69_v23 = vmul.f32 %v21_v19, %v21_v19  ;;  %v19_v24 = vld [vmem:[%s2491_s0 + $0x10] sm:$0xff]  ;;  %v20_v26 = vld [vmem:[%s2491_s0 + $0x18] sm:$0xff]  ;;  %v18_v28 = vld [vmem:[%s2491_s0 + $0x8] sm:$0xff] }
   0x6   :  { %v67_v25 = vmul.f32 %v19_v24, %v19_v24  ;;  %v68_v27 = vmul.f32 %v20_v26, %v20_v26  ;;  %v17_v29 = vld [vmem:[%s2491_s0] sm:$0xff]  ;;  %v66_v31 = vmul.f32 %v18_v28, %v18_v28 }
   0x7   :  { %v65_v30 = vmul.f32 %v17_v29, %v17_v29 }
   0xa   :  { %63 = vadd.xlane.f32.xlu0 %v1795_v3  ;;  %59 = vadd.xlane.f32.xlu2 %v1800_v4 }
   0xc   :  { %111 = vadd.xlane.f32.xlu1 %v80_v5 }
  0x12   :  { %105 = vadd.xlane.f32.xlu0 %v77_v6  ;;  %53 = vadd.xlane.f32.xlu2 %v1811_v7 }
  0x14   :  { %107 = vadd.xlane.f32.xlu1 %v78_v8 }
  0x1a   :  { %55 = vadd.xlane.f32.xlu0 %v1819_v9  ;;  %103 = vadd.xlane.f32.xlu2 %v76_v10 }
  0x1c   :  { %101 = vadd.xlane.f32.xlu1 %v75_v11 }
  0x22   :  { %49 = vadd.xlane.f32.xlu0 %v1829_v12  ;;  %97 = vadd.xlane.f32.xlu2 %v73_v13 }
  0x24   :  { %51 = vadd.xlane.f32.xlu1 %v1836_v14 }
  0x2a   :  { %99 = vadd.xlane.f32.xlu0 %v74_v15  ;;  %47 = vadd.xlane.f32.xlu2 %v24_v16 }
  0x2c   :  { %45 = vadd.xlane.f32.xlu1 %v1848_v17 }
  0x32   :  { %93 = vadd.xlane.f32.xlu0 %v71_v18  ;;  %41 = vadd.xlane.f32.xlu2 %v21_v19 }
  0x34   :  { %95 = vadd.xlane.f32.xlu1 %v72_v20 }
  0x3a   :  { %43 = vadd.xlane.f32.xlu0 %v22_v21  ;;  %91 = vadd.xlane.f32.xlu2 %v70_v22 }
  0x3c   :  { %89 = vadd.xlane.f32.xlu1 %v69_v23 }
  0x42   :  { %37 = vadd.xlane.f32.xlu0 %v19_v24  ;;  %85 = vadd.xlane.f32.xlu2 %v67_v25 }
  0x44   :  { %39 = vadd.xlane.f32.xlu1 %v20_v26  ;;  %v383_v26 = vld [vmem:[%s2492_s1 + $0x70] sm:$0xff] }
  0x4a   :  { %87 = vadd.xlane.f32.xlu0 %v68_v27  ;;  %35 = vadd.xlane.f32.xlu2 %v18_v28 }
  0x4c   :  { %33 = vadd.xlane.f32.xlu1 %v17_v29 }
  0x52   :  { %81 = vadd.xlane.f32.xlu0 %v65_v30 }
  0x54   :  { %83 = vadd.xlane.f32.xlu1 %v66_v31 }
  0x75   :  { %v62_v33 = vpop.xlane.xlu0 %61  ;;  %v58_v34 = vpop.xlane.xlu2 %57 }
  0x76   :  { %v1871_v35 = vmul.f32 0.02, %v62_v33  ;;  %v1877_v46 = vmul.f32 0.02, %v58_v34 }
  0x77   :  { %v110_v36 = vpop.xlane.xlu1 %109 }
  0x78   :  { %v159_v37 = vmul.f32 %v1871_v35, %v1871_v35  ;;  %v143_v38 = vmul.f32 0.02, %v110_v36  ;;  %v157_v51 = vmul.f32 %v1877_v46, %v1877_v46 }
  0x7a   :  { %v175_v39 = vsub.f32 %v143_v38, %v159_v37 }
  0x7c   :  { %v191_v40 = vmax.f32 %v175_v39, 0.0 }
  0x7d   :  { %v64_v41 = vpop.xlane.xlu0 %63  ;;  %v60_v42 = vpop.xlane.xlu2 %59 }
  0x7e   :  { %v207_v43 = vadd.f32 1e-05, %v191_v40  ;;  %v1875_v44 = vmul.f32 0.02, %v64_v41  ;;  %v1881_v50 = vmul.f32 0.02, %v60_v42 }
  0x7f   :  { %v112_v45 = vpop.xlane.xlu1 %111 }
  0x80   :  { %1713 = vrsqrt.f32 %v207_v43  ;;  %v160_v47 = vmul.f32 %v1875_v44, %v1875_v44  ;;  %v144_v48 = vmul.f32 0.02, %v112_v45  ;;  %v158_v57 = vmul.f32 %v1881_v50, %v1881_v50 }
  0x81   :  { %vm355_vm1 = vweird.f32 %v207_v43 }
  0x82   :  { %v176_v49 = vsub.f32 %v144_v48, %v160_v47 }
  0x84   :  { %v192_v52 = vmax.f32 %v176_v49, 0.0 }
  0x85   :  { %v106_v53 = vpop.xlane.xlu0 %105  ;;  %v54_v54 = vpop.xlane.xlu2 %53 }
  0x86   :  { %v1714_v55 = vpop.eup %1713  ;;  %v1885_v56 = vadd.f32 1e-05, %v192_v52  ;;  %v141_v58 = vmul.f32 0.02, %v106_v53  ;;  %v1890_v6 = vmul.f32 0.02, %v54_v54 }
  0x87   :  { %v350_v59 = vmul.f32 %v1714_v55, %v207_v43  ;;  %v108_v60 = vpop.xlane.xlu1 %107  ;;  %vm356_vm0 = vweird.f32 %v1714_v55 }
  0x88   :  { %1715 = vrsqrt.f32 %v1885_v56  ;;  %v173_v61 = vsub.f32 %v141_v58, %v157_v51  ;;  %v142_v62 = vmul.f32 0.02, %v108_v60  ;;  %v155_v20 = vmul.f32 %v1890_v6, %v1890_v6  ;;  %vm357_vm2 = vmor %vm355_vm1, %vm356_vm0 }
  0x89   :  { %v351_v63 = vmul.f32 %v1714_v55, %v350_v59  ;;  %vm365_vm4 = vweird.f32 %v1885_v56 }
  0x8a   :  { %v189_v2 = vmax.f32 %v173_v61, 0.0  ;;  %v174_v5 = vsub.f32 %v142_v62, %v158_v57  ;;  %v384_v57 = vld [vmem:[%s2492_s1 + $0x78] sm:$0xff] }
  0x8b   :  { %v352_v8 = vmul.f32 0.5, %v351_v63 }
  0x8c   :  { %v1892_v10 = vadd.f32 1e-05, %v189_v2  ;;  %v190_v11 = vmax.f32 %v174_v5, 0.0 }
  0x8d   :  { %v353_v13 = vsub.f32 1.5, %v352_v8  ;;  %v56_v15 = vpop.xlane.xlu0 %55  ;;  %v104_v16 = vpop.xlane.xlu2 %103 }
  0x8e   :  { %v1716_v18 = vpop.eup %1715  ;;  %1717 = vrsqrt.f32 %v1892_v10  ;;  %v1895_v19 = vadd.f32 1e-05, %v190_v11  ;;  %v1899_v21 = vmul.f32 0.02, %v56_v15  ;;  %v140_v23 = vmul.f32 0.02, %v104_v16 }
  0x8f   :  { %v360_v22 = vmul.f32 %v1716_v18, %v1885_v56  ;;  %v102_v24 = vpop.xlane.xlu1 %101  ;;  %v354_v25 = vmul.f32 %v1714_v55, %v353_v13  ;;  %vm366_vm3 = vweird.f32 %v1716_v18  ;;  %vm335_vm7 = vweird.f32 %v1892_v10 }
  0x90   :  { %1719 = vrsqrt.f32 %v1895_v19  ;;  %v156_v27 = vmul.f32 %v1899_v21, %v1899_v21  ;;  %v139_v28 = vmul.f32 0.02, %v102_v24  ;;  %vm367_vm5 = vmor %vm365_vm4, %vm366_vm3  ;;  %v381_v24 = vld [vmem:[%s2492_s1 + $0x60] sm:$0xff]  ;;  %vm345_vm10 = vweird.f32 %v1895_v19 }
  0x91   :  { %v361_v29 = vmul.f32 %v1716_v18, %v360_v22  ;;  %v358_v30 = vsel %vm357_vm2, %v1714_v55, %v354_v25 }
  0x92   :  { %v172_v31 = vsub.f32 %v140_v23, %v156_v27  ;;  %v171_v32 = vsub.f32 %v139_v28, %v155_v20  ;;  %v1909_v33 = vmul.f32 %v383_v26, %v358_v30 }
  0x93   :  { %v362_v34 = vmul.f32 0.5, %v361_v29 }
  0x94   :  { %v1718_v36 = vpop.eup %1717  ;;  %v188_v37 = vmax.f32 %v172_v31, 0.0  ;;  %v187_v38 = vmax.f32 %v171_v32, 0.0  ;;  %521 = vperm.xlu2 %1710, %v1909_v33   ;;  %v382_v31 = vld [vmem:[%s2492_s1 + $0x68] sm:$0xff] }
  0x95   :  { %v363_v39 = vsub.f32 1.5, %v362_v34  ;;  %v330_v40 = vmul.f32 %v1718_v36, %v1892_v10  ;;  %v50_v41 = vpop.xlane.xlu0 %49  ;;  %v98_v42 = vpop.xlane.xlu2 %97  ;;  %vm336_vm6 = vweird.f32 %v1718_v36 }
  0x96   :  { %v1720_v43 = vpop.eup %1719  ;;  %v1913_v45 = vadd.f32 1e-05, %v188_v37  ;;  %v1915_v47 = vadd.f32 1e-05, %v187_v38  ;;  %v1917_v48 = vmul.f32 0.02, %v50_v41  ;;  %vm1938_vm8 = vmor %vm335_vm7, %vm336_vm6 }
  0x97   :  { %v331_v49 = vmul.f32 %v1718_v36, %v330_v40  ;;  %v340_v51 = vmul.f32 %v1720_v43, %v1895_v19  ;;  %v52_v52 = vpop.xlane.xlu1 %51  ;;  %v137_v53 = vmul.f32 0.02, %v98_v42  ;;  %v364_v54 = vmul.f32 %v1716_v18, %v363_v39 }
  0x98   :  { %1721 = vrsqrt.f32 %v1913_v45  ;;  %v153_v55 = vmul.f32 %v1917_v48, %v1917_v48  ;;  %v1928_v60 = vmul.f32 0.02, %v52_v52  ;;  %vm346_vm9 = vweird.f32 %v1720_v43 }
  0x99   :  { %v332_v58 = vmul.f32 0.5, %v331_v49  ;;  %v341_v59 = vmul.f32 %v1720_v43, %v340_v51  ;;  %1723 = vrsqrt.f32 %v1915_v47  ;;  %v368_v62 = vsel %vm367_vm5, %v1716_v18, %v364_v54  ;;  %vm347_vm11 = vmor %vm345_vm10, %vm346_vm9 }
  0x9a   :  { %v169_v61 = vsub.f32 %v137_v53, %v153_v55  ;;  %v1930_v2 = vmul.f32 %v384_v57, %v368_v62  ;;  %v154_v5 = vmul.f32 %v1928_v60, %v1928_v60  ;;  %vm325_vm14 = vweird.f32 %v1913_v45 }
  0x9b   :  { %v333_v63 = vsub.f32 1.5, %v332_v58  ;;  %v342_v56 = vmul.f32 0.5, %v341_v59  ;;  %vm315_vm15 = vweird.f32 %v1915_v47 }
  0x9c   :  { %v185_v8 = vmax.f32 %v169_v61, 0.0  ;;  %526 = vperm.xlu0 %1711, %v1930_v2  }
  0x9d   :  { %v343_v11 = vsub.f32 1.5, %v342_v56  ;;  %v100_v13 = vpop.xlane.xlu0 %99  ;;  %v48_v15 = vpop.xlane.xlu2 %47  ;;  %v334_v16 = vmul.f32 %v1718_v36, %v333_v63  ;;  %v380_v63 = vld [vmem:[%s2492_s1 + $0x58] sm:$0xff] }
  0x9e   :  { %v1722_v20 = vpop.eup %1721  ;;  %v1936_v22 = vadd.f32 1e-05, %v185_v8  ;;  %v138_v18 = vmul.f32 0.02, %v100_v13  ;;  %v1954_v34 = vmul.f32 0.02, %v48_v15 }
  0x9f   :  { %v1724_v10 = vpop.eup %1723  ;;  %v320_v25 = vmul.f32 %v1722_v20, %v1913_v45  ;;  %v46_v26 = vpop.xlane.xlu1 %45  ;;  %v338_v27 = vsel %vm1938_vm8, %v1718_v36, %v334_v16  ;;  %v344_v28 = vmul.f32 %v1720_v43, %v343_v11  ;;  %vm326_vm12 = vweird.f32 %v1722_v20  ;;  %v379_v11 = vld [vmem:[%s2492_s1 + $0x50] sm:$0xff] }
  0xa0   :  { %v310_v29 = vmul.f32 %v1724_v10, %v1915_v47  ;;  %1725 = vrsqrt.f32 %v1936_v22  ;;  %v170_v30 = vsub.f32 %v138_v18, %v154_v5  ;;  %v1956_v37 = vmul.f32 0.02, %v46_v26  ;;  %vm327_vm0 = vmor %vm325_vm14, %vm326_vm12 }
  0xa1   :  { %v321_v32 = vmul.f32 %v1722_v20, %v320_v25  ;;  %v1958_v38 = vmul.f32 %v381_v24, %v338_v27  ;;  %v348_v39 = vsel %vm347_vm11, %v1720_v43, %v344_v28  ;;  %v152_v53 = vmul.f32 %v1954_v34, %v1954_v34 }
  0xa2   :  { %v311_v36 = vmul.f32 %v1724_v10, %v310_v29  ;;  %v186_v19 = vmax.f32 %v170_v30, 0.0  ;;  %v1962_v41 = vmul.f32 %v382_v31, %v348_v39  ;;  %v151_v51 = vmul.f32 %v1956_v37, %v1956_v37 }
  0xa3   :  { %v322_v40 = vmul.f32 0.5, %v321_v32  ;;  %511 = vperm.xlu2 %1710, %v1958_v38   ;;  %vm316_vm13 = vweird.f32 %v1724_v10  ;;  %vm295_vm3 = vweird.f32 %v1936_v22 }
  0xa4   :  { %v312_v42 = vmul.f32 0.5, %v311_v36  ;;  %v1964_v49 = vadd.f32 1e-05, %v186_v19  ;;  %516 = vperm.xlu1 %1712, %v1962_v41   ;;  %vm317_vm1 = vmor %vm315_vm15, %vm316_vm13 }
  0xa5   :  { %v323_v52 = vsub.f32 1.5, %v322_v40  ;;  %v94_v54 = vpop.xlane.xlu0 %93  ;;  %v42_v55 = vpop.xlane.xlu2 %41 }
  0xa6   :  { %v1726_v43 = vpop.eup %1725  ;;  %v313_v57 = vsub.f32 1.5, %v312_v42  ;;  %1727 = vrsqrt.f32 %v1964_v49  ;;  %v135_v58 = vmul.f32 0.02, %v94_v54  ;;  %v1981_v45 = vmul.f32 0.02, %v42_v55 }
  0xa7   :  { %v290_v59 = vmul.f32 %v1726_v43, %v1936_v22  ;;  %v96_v61 = vpop.xlane.xlu1 %95  ;;  %v324_v62 = vmul.f32 %v1722_v20, %v323_v52  ;;  %vm296_vm2 = vweird.f32 %v1726_v43  ;;  %vm305_vm6 = vweird.f32 %v1964_v49 }
  0xa8   :  { %v167_v56 = vsub.f32 %v135_v58, %v151_v51  ;;  %v136_v5 = vmul.f32 0.02, %v96_v61  ;;  %v314_v8 = vmul.f32 %v1724_v10, %v313_v57  ;;  %v149_v32 = vmul.f32 %v1981_v45, %v1981_v45  ;;  %v377_v51 = vld [vmem:[%s2492_s1 + $0x40] sm:$0xff]  ;;  %vm297_vm4 = vmor %vm295_vm3, %vm296_vm2 }
  0xa9   :  { %v291_v13 = vmul.f32 %v1726_v43, %v290_v59  ;;  %v328_v15 = vsel %vm327_vm0, %v1722_v20, %v324_v62 }
  0xaa   :  { %v183_v16 = vmax.f32 %v167_v56, 0.0  ;;  %v168_v18 = vsub.f32 %v136_v5, %v152_v53  ;;  %v1984_v23 = vmul.f32 %v380_v63, %v328_v15  ;;  %v318_v24 = vsel %vm317_vm1, %v1724_v10, %v314_v8 }
  0xab   :  { %v292_v47 = vmul.f32 0.5, %v291_v13  ;;  %v1986_v25 = vmul.f32 %v379_v11, %v318_v24  ;;  %v432_v24 = vmul.f32 %v1930_v2, %v1875_v44 }
  0xac   :  { %v1728_v26 = vpop.eup %1727  ;;  %v1988_v27 = vadd.f32 1e-05, %v183_v16  ;;  %v184_v28 = vmax.f32 %v168_v18, 0.0  ;;  %506 = vperm.xlu2 %1710, %v1984_v23  }
  0xad   :  { %v293_v29 = vsub.f32 1.5, %v292_v47  ;;  %v300_v30 = vmul.f32 %v1728_v26, %v1964_v49  ;;  %501 = vperm.xlu0 %1711, %v1986_v25   ;;  %v44_v20 = vpop.xlane.xlu0 %43  ;;  %v92_v31 = vpop.xlane.xlu2 %91  ;;  %vm306_vm5 = vweird.f32 %v1728_v26 }
  0xae   :  { %1729 = vrsqrt.f32 %v1988_v27  ;;  %v1994_v10 = vadd.f32 1e-05, %v184_v28  ;;  %v1998_v36 = vmul.f32 0.02, %v44_v20  ;;  %v134_v39 = vmul.f32 0.02, %v92_v31  ;;  %vm2018_vm7 = vmor %vm305_vm6, %vm306_vm5 }
  0xaf   :  { %v301_v19 = vmul.f32 %v1728_v26, %v300_v30  ;;  %v90_v40 = vpop.xlane.xlu1 %89  ;;  %v294_v42 = vmul.f32 %v1726_v43, %v293_v29  ;;  %v378_v20 = vld [vmem:[%s2492_s1 + $0x48] sm:$0xff]  ;;  %v416_v31 = vld [vmem:[%s2493_s2 + $0x78] sm:$0xff]  ;;  %vm275_vm9 = vweird.f32 %v1988_v27 }
  0xb0   :  { %1731 = vrsqrt.f32 %v1994_v10  ;;  %v150_v52 = vmul.f32 %v1998_v36, %v1998_v36  ;;  %v133_v53 = vmul.f32 0.02, %v90_v40  ;;  %vm285_vm10 = vweird.f32 %v1994_v10 }
  0xb1   :  { %v302_v54 = vmul.f32 0.5, %v301_v19  ;;  %v298_v55 = vsel %vm297_vm4, %v1726_v43, %v294_v42 }
  0xb2   :  { %v166_v57 = vsub.f32 %v134_v39, %v150_v52  ;;  %v165_v58 = vsub.f32 %v133_v53, %v149_v32  ;;  %v2007_v22 = vmul.f32 %v377_v51, %v298_v55 }
  0xb3   :  { %v303_v59 = vsub.f32 1.5, %v302_v54  ;;  %v429_v54 = vmul.f32 %v1958_v38, %v1877_v46 }
  0xb4   :  { %v1730_v61 = vpop.eup %1729  ;;  %v182_v62 = vmax.f32 %v166_v57, 0.0  ;;  %v181_v63 = vmax.f32 %v165_v58, 0.0  ;;  %491 = vperm.xlu2 %1710, %v2007_v22  }
  0xb5   :  { %v270_v56 = vmul.f32 %v1730_v61, %v1988_v27  ;;  %v38_v5 = vpop.xlane.xlu0 %37  ;;  %v86_v8 = vpop.xlane.xlu2 %85  ;;  %v304_v11 = vmul.f32 %v1728_v26, %v303_v59  ;;  %vm276_vm8 = vweird.f32 %v1730_v61  ;;  %v375_v27 = vld [vmem:[%s2492_s1 + $0x30] sm:$0xff] }
  0xb6   :  { %v1732_v13 = vpop.eup %1731  ;;  %v2012_v43 = vadd.f32 1e-05, %v182_v62  ;;  %v2014_v15 = vadd.f32 1e-05, %v181_v63  ;;  %v2016_v16 = vmul.f32 0.02, %v38_v5  ;;  %vm277_vm12 = vmor %vm275_vm9, %vm276_vm8 }
  0xb7   :  { %v271_v49 = vmul.f32 %v1730_v61, %v270_v56  ;;  %v280_v47 = vmul.f32 %v1732_v13, %v1994_v10  ;;  %v40_v28 = vpop.xlane.xlu1 %39  ;;  %v131_v29 = vmul.f32 0.02, %v86_v8  ;;  %v308_v30 = vsel %vm2018_vm7, %v1728_v26, %v304_v11  ;;  %v413_v63 = vld [vmem:[%s2493_s2 + $0x60] sm:$0xff]  ;;  %v376_v5 = vld [vmem:[%s2492_s1 + $0x38] sm:$0xff] }
  0xb8   :  { %v147_v32 = vmul.f32 %v2016_v16, %v2016_v16  ;;  %v2035_v19 = vmul.f32 0.02, %v40_v28  ;;  %1733 = vrsqrt.f32 %v2012_v43  ;;  %v394_v40 = vmul.f32 %v378_v20, %v308_v30 }
  0xb9   :  { %v272_v44 = vmul.f32 0.5, %v271_v49  ;;  %v281_v2 = vmul.f32 %v1732_v13, %v280_v47  ;;  %v448_v26 = vsub.f32 %v416_v31, %v432_v24  ;;  %1735 = vrsqrt.f32 %v2014_v15 }
  0xba   :  { %v163_v39 = vsub.f32 %v131_v29, %v147_v32  ;;  %v148_v52 = vmul.f32 %v2035_v19, %v2035_v19  ;;  %496 = vperm.xlu1 %1712, %v394_v40   ;;  %vm286_vm11 = vweird.f32 %v1732_v13  ;;  %v445_v28 = vsub.f32 %v413_v63, %v429_v54  ;;  %v410_v54 = vld [vmem:[%s2493_s2 + $0x48] sm:$0xff] }
  0xbb   :  { %v273_v42 = vsub.f32 1.5, %v272_v44  ;;  %v282_v51 = vmul.f32 0.5, %v281_v2  ;;  %vm287_vm13 = vmor %vm285_vm10, %vm286_vm11  ;;  %v431_v2 = vmul.f32 %v1909_v33, %v1871_v35  ;;  %v428_v35 = vmul.f32 %v1984_v23, %v1899_v21 }
  0xbc   :  { %v179_v53 = vmax.f32 %v163_v39, 0.0  ;;  %622 = vperm.xlu2 %1710, %v448_v26   ;;  %vm265_vm14 = vweird.f32 %v2012_v43  ;;  %vm255_vm0 = vweird.f32 %v2014_v15 }
  0xbd   :  { %v283_v55 = vsub.f32 1.5, %v282_v51  ;;  %v88_v57 = vpop.xlane.xlu0 %87  ;;  %v274_v58 = vmul.f32 %v1730_v61, %v273_v42  ;;  %v36_v8 = vpop.xlane.xlu2 %35  ;;  %v426_v42 = vmul.f32 %v394_v40, %v1928_v60  ;;  %v412_v40 = vld [vmem:[%s2493_s2 + $0x58] sm:$0xff] }
  0xbe   :  { %v2045_v59 = vadd.f32 1e-05, %v179_v53  ;;  %v132_v62 = vmul.f32 0.02, %v88_v57  ;;  %v2056_v11 = vpop.eup %1733  ;;  %v2067_v20 = vmul.f32 0.02, %v36_v8 }
  0xbf   :  { %v34_v56 = vpop.xlane.xlu1 %33  ;;  %v278_v46 = vsel %vm277_vm12, %v1730_v61, %v274_v58  ;;  %v284_v38 = vmul.f32 %v1732_v13, %v283_v55  ;;  %v2060_v24 = vpop.eup %1735  ;;  %v260_v31 = vmul.f32 %v2056_v11, %v2012_v43  ;;  %v415_v53 = vld [vmem:[%s2493_s2 + $0x70] sm:$0xff]  ;;  %v442_v63 = vsub.f32 %v410_v54, %v426_v42  ;;  %v401_v54 = vld [vmem:[%s2493_s2] sm:$0xff] }
  0xc0   :  { %v164_v18 = vsub.f32 %v132_v62, %v148_v52  ;;  %v2062_v49 = vmul.f32 0.02, %v34_v56  ;;  %v391_v47 = vmul.f32 %v375_v27, %v278_v46  ;;  %1737 = vrsqrt.f32 %v2045_v59 }
  0xc1   :  { %v288_v29 = vsel %vm287_vm13, %v1732_v13, %v284_v38  ;;  %v250_v10 = vmul.f32 %v2060_v24, %v2014_v15  ;;  %v146_v39 = vmul.f32 %v2067_v20, %v2067_v20  ;;  %v261_v51 = vmul.f32 %v2056_v11, %v260_v31  ;;  %v374_v15 = vld [vmem:[%s2492_s1 + $0x28] sm:$0xff] }
  0xc2   :  { %v180_v61 = vmax.f32 %v164_v18, 0.0  ;;  %v2065_v30 = vmul.f32 %v376_v5, %v288_v29  ;;  %v145_v44 = vmul.f32 %v2062_v49, %v2062_v49  ;;  %481 = vperm.xlu1 %1712, %v391_v47   ;;  %v447_v27 = vsub.f32 %v415_v53, %v431_v2  ;;  %v414_v29 = vld [vmem:[%s2493_s2 + $0x68] sm:$0xff] }
  0xc3   :  { %v251_v55 = vmul.f32 %v2060_v24, %v250_v10  ;;  %v262_v56 = vmul.f32 0.5, %v261_v51  ;;  %v444_v38 = vsub.f32 %v412_v40, %v428_v35  ;;  %v425_v31 = vmul.f32 %v2007_v22, %v1917_v48  ;;  %v411_v40 = vld [vmem:[%s2493_s2 + $0x50] sm:$0xff] }
  0xc4   :  { %v2073_v32 = vadd.f32 1e-05, %v180_v61  ;;  %607 = vperm.xlu2 %1710, %v445_v28   ;;  %486 = vperm.xlu0 %1711, %v2065_v30   ;;  %v430_v28 = vmul.f32 %v1962_v41, %v1881_v50  ;;  %v423_v61 = vmul.f32 %v391_v47, %v1956_v37  ;;  %v407_v50 = vld [vmem:[%s2493_s2 + $0x30] sm:$0xff]  ;;  %v409_v41 = vld [vmem:[%s2493_s2 + $0x40] sm:$0xff]  ;;  %vm266_vm15 = vweird.f32 %v2056_v11 }
  0xc5   :  { %v82_v13 = vpop.xlane.xlu0 %81  ;;  %v252_v23 = vmul.f32 0.5, %v251_v55  ;;  %v263_v10 = vsub.f32 1.5, %v262_v56  ;;  %v441_v22 = vsub.f32 %v409_v41, %v425_v31  ;;  %vm256_vm1 = vweird.f32 %v2060_v24  ;;  %vm2134_vm2 = vmor %vm265_vm14, %vm266_vm15 }
  0xc6   :  { %1739 = vrsqrt.f32 %v2073_v32  ;;  %v129_v26 = vmul.f32 0.02, %v82_v13  ;;  %v2093_v33 = vpop.eup %1737  ;;  %v446_v37 = vsub.f32 %v414_v29, %v430_v28  ;;  %v439_v48 = vsub.f32 %v407_v50, %v423_v61  ;;  %vm2143_vm3 = vmor %vm255_vm0, %vm256_vm1  ;;  %v371_v29 = vld [vmem:[%s2492_s1 + $0x10] sm:$0xff] }
  0xc7   :  { %v84_v52 = vpop.xlane.xlu1 %83  ;;  %v230_v46 = vmul.f32 %v2093_v33, %v2045_v59  ;;  %v264_v42 = vmul.f32 %v2056_v11, %v263_v10  ;;  %v427_v35 = vmul.f32 %v1986_v25, %v1890_v6  ;;  %vm235_vm4 = vweird.f32 %v2045_v59  ;;  %v373_v25 = vld [vmem:[%s2492_s1 + $0x20] sm:$0xff] }
  0xc8   :  { %v161_v57 = vsub.f32 %v129_v26, %v145_v44  ;;  %v130_v60 = vmul.f32 0.02, %v84_v52  ;;  %vm236_vm5 = vweird.f32 %v2093_v33  ;;  %vm245_vm6 = vweird.f32 %v2073_v32 }
  0xc9   :  { %v231_v44 = vmul.f32 %v2093_v33, %v230_v46  ;;  %vm2173_vm8 = vmor %vm235_vm4, %vm236_vm5 }
  0xca   :  { %v177_v58 = vmax.f32 %v161_v57, 0.0  ;;  %v162_v62 = vsub.f32 %v130_v60, %v146_v39  ;;  %617 = vperm.xlu1 %1712, %v447_v27   ;;  %v253_v39 = vsub.f32 1.5, %v252_v23  ;;  %v424_v23 = vmul.f32 %v2065_v30, %v1954_v34  ;;  %v372_v34 = vld [vmem:[%s2492_s1 + $0x18] sm:$0xff] }
  0xcb   :  { %v232_v47 = vmul.f32 0.5, %v231_v44 }
  0xcc   :  { %v2101_v21 = vpop.eup %1739  ;;  %v2103_v5 = vadd.f32 1e-05, %v177_v58  ;;  %v178_v8 = vmax.f32 %v162_v62, 0.0  ;;  %592 = vperm.xlu2 %1710, %v442_v63   ;;  %602 = vperm.xlu0 %1711, %v444_v38   ;;  %v254_v52 = vmul.f32 %v2060_v24, %v253_v39  ;;  %v268_v58 = vsel %vm2134_vm2, %v2056_v11, %v264_v42  ;;  %v403_v42 = vld [vmem:[%s2493_s2 + $0x10] sm:$0xff] }
  0xcd   :  { %v240_v18 = vmul.f32 %v2101_v21, %v2073_v32  ;;  %v233_v55 = vsub.f32 1.5, %v232_v47  ;;  %vm246_vm7 = vweird.f32 %v2101_v21  ;;  %v443_v11 = vsub.f32 %v411_v40, %v427_v35 }
  0xce   :  { %1741 = vrsqrt.f32 %v2103_v5  ;;  %v2118_v2 = vadd.f32 1e-05, %v178_v8  ;;  %v258_v6 = vsel %vm2143_vm3, %v2060_v24, %v254_v52  ;;  %v390_v27 = vmul.f32 %v374_v15, %v268_v58  ;;  %vm2177_vm9 = vmor %vm245_vm6, %vm246_vm7 }
  0xcf   :  { %v241_v13 = vmul.f32 %v2101_v21, %v240_v18  ;;  %v389_v56 = vmul.f32 %v373_v25, %v258_v6  ;;  %v234_v24 = vmul.f32 %v2093_v33, %v233_v55  ;;  %v408_v18 = vld [vmem:[%s2493_s2 + $0x38] sm:$0xff]  ;;  %vm215_vm10 = vweird.f32 %v2103_v5 }
  0xd0   :  { %1743 = vrsqrt.f32 %v2118_v2  ;;  %v422_v61 = vmul.f32 %v390_v27, %v1998_v36  ;;  %v440_v10 = vsub.f32 %v408_v18, %v424_v23  ;;  %vm225_vm13 = vweird.f32 %v2118_v2 }
  0xd1   :  { %v242_v26 = vmul.f32 0.5, %v241_v13  ;;  %v238_v28 = vsel %vm2173_vm8, %v2093_v33, %v234_v24  ;;  %v406_v33 = vld [vmem:[%s2493_s2 + $0x28] sm:$0xff]  ;;  %v421_v39 = vmul.f32 %v389_v56, %v1981_v45  ;;  %v369_v45 = vld [vmem:[%s2492_s1] sm:$0xff] }
  0xd2   :  { %612 = vperm.xlu1 %1712, %v446_v37   ;;  %v387_v36 = vmul.f32 %v371_v29, %v238_v28 }
  0xd3   :  { %v243_v57 = vsub.f32 1.5, %v242_v26 }
  0xd4   :  { %v2132_v51 = vpop.eup %1741  ;;  %577 = vperm.xlu2 %1710, %v439_v48   ;;  %587 = vperm.xlu0 %1711, %v441_v22   ;;  %v404_v48 = vld [vmem:[%s2493_s2 + $0x18] sm:$0xff]  ;;  %v419_v22 = vmul.f32 %v387_v36, %v2016_v16 }
  0xd5   :  { %v210_v53 = vmul.f32 %v2132_v51, %v2103_v5  ;;  %v244_v59 = vmul.f32 %v2101_v21, %v243_v57  ;;  %vm216_vm11 = vweird.f32 %v2132_v51  ;;  %v405_v5 = vld [vmem:[%s2493_s2 + $0x20] sm:$0xff] }
  0xd6   :  { %v2167_v62 = vpop.eup %1743  ;;  %vm2208_vm12 = vmor %vm215_vm10, %vm216_vm11  ;;  %v435_v52 = vsub.f32 %v403_v42, %v419_v22 }
  0xd7   :  { %v211_v60 = vmul.f32 %v2132_v51, %v210_v53  ;;  %v220_v32 = vmul.f32 %v2167_v62, %v2118_v2  ;;  %v248_v31 = vsel %vm2177_vm9, %v2101_v21, %v244_v59  ;;  %v438_v21 = vsub.f32 %v406_v33, %v422_v61  ;;  %v370_v2 = vld [vmem:[%s2492_s1 + $0x8] sm:$0xff] }
  0xd8   :  { %v388_v44 = vmul.f32 %v372_v34, %v248_v31  ;;  %vm226_vm14 = vweird.f32 %v2167_v62 }
  0xd9   :  { %v212_v63 = vmul.f32 0.5, %v211_v60  ;;  %v221_v30 = vmul.f32 %v2167_v62, %v220_v32  ;;  %vm227_vm15 = vmor %vm225_vm13, %vm226_vm14 }
  0xda   :  { %597 = vperm.xlu1 %1712, %v443_v11   ;;  %v420_v37 = vmul.f32 %v388_v44, %v2035_v19  ;;  %v437_v19 = vsub.f32 %v405_v5, %v421_v39 }
  0xdb   :  { %v213_v8 = vsub.f32 1.5, %v212_v63  ;;  %v222_v41 = vmul.f32 0.5, %v221_v30 }
  0xdc   :  { %476 = vperm.xlu2 %1710, %v390_v27   ;;  %471 = vperm.xlu0 %1711, %v389_v56   ;;  %v436_v43 = vsub.f32 %v404_v48, %v420_v37 }
  0xdd   :  { %v214_v13 = vmul.f32 %v2132_v51, %v213_v8  ;;  %v223_v26 = vsub.f32 1.5, %v222_v41 }
  0xdf   :  { %v218_v47 = vsel %vm2208_vm12, %v2132_v51, %v214_v13  ;;  %v224_v51 = vmul.f32 %v2167_v62, %v223_v26 }
  0xe0   :  { %v385_v16 = vmul.f32 %v369_v45, %v218_v47 }
  0xe1   :  { %v228_v35 = vsel %vm227_vm15, %v2167_v62, %v224_v51 }
  0xe2   :  { %582 = vperm.xlu1 %1712, %v440_v10   ;;  %v417_v53 = vmul.f32 %v385_v16, %v2062_v49  ;;  %v386_v57 = vmul.f32 %v370_v2, %v228_v35  ;;  %v402_v49 = vld [vmem:[%s2493_s2 + $0x8] sm:$0xff] }
  0xe3   :  { %v1746_v2 = vld [vmem:[%s2491_s0 + $0x28] sm:$0xff] }
  0xe4   :  { %461 = vperm.xlu2 %1710, %v387_v36   ;;  %572 = vperm.xlu0 %1711, %v438_v21   ;;  %v433_v55 = vsub.f32 %v401_v54, %v417_v53  ;;  %v418_v60 = vmul.f32 %v386_v57, %v2067_v20 }
  0xe6   :  { %v434_v40 = vsub.f32 %v402_v49, %v418_v60  ;;  %v1747_v60 = vld [vmem:[%s2491_s0 + $0x20] sm:$0xff] }
  0xea   :  { %567 = vperm.xlu1 %1712, %v437_v19  }
  0xec   :  { %562 = vperm.xlu2 %1710, %v436_v43   ;;  %557 = vperm.xlu0 %1711, %v435_v52  }
  0xee   :  { %v522_v58 = vpop.permute.xlu2 %521 }
  0xef   :  { %v543_v38 = vmul.f32 %v522_v58, %v1781_v0 }
  0xf2   :  { %466 = vperm.xlu1 %1712, %v388_v44  }
  0xf4   :  { %547 = vperm.xlu2 %1710, %v433_v55   ;;  %456 = vperm.xlu0 %1711, %v386_v57  }
  0xfa   :  { %451 = vperm.xlu1 %1712, %v385_v16  }
  0xfd   :  { %v512_v15 = vpop.permute.xlu2 %511 }
  0xfe   :  { %v541_v31 = vmul.f32 %v512_v15, %v1786_v1 }
 0x102   :  { %552 = vperm.xlu1 %1712, %v434_v40  }
 0x106   :  { %v507_v6 = vpop.permute.xlu2 %506 }
 0x107   :  { %v540_v21 = vmul.f32 %v507_v6, %v1819_v9 }
 0x10e   :  { %v492_v25 = vpop.permute.xlu2 %491  ;;  %v527_v11 = vpop.permute.xlu0 %526 }
 0x10f   :  { %v544_v20 = vmul.f32 %v527_v11, %v1795_v3  ;;  %v537_v41 = vmul.f32 %v492_v25, %v1829_v12 }
 0x116   :  { %v517_v62 = vpop.permute.xlu1 %516  ;;  %v623_v27 = vpop.permute.xlu2 %622 }
 0x117   :  { %v640_v32 = vadd.f32 %v623_v27, %v544_v20  ;;  %v542_v30 = vmul.f32 %v517_v62, %v1800_v4 }
 0x119   :  { %v656_v29 = vmax.f32 %v640_v32, 0.0 }
 0x11e   :  { %v608_v56 = vpop.permute.xlu2 %607 }
 0x11f   :  { %v502_v63 = vpop.permute.xlu0 %501  ;;  %v637_v33 = vadd.f32 %v608_v56, %v541_v31 }
 0x120   :  { %v539_v1 = vmul.f32 %v502_v63, %v1811_v7 }
 0x121   :  { %v653_v36 = vmax.f32 %v637_v33, 0.0 }
 0x126   :  { %v593_v28 = vpop.permute.xlu2 %592 }
 0x12c   :  { %v497_v59 = vpop.permute.xlu1 %496 }
 0x12d   :  { %v538_v4 = vmul.f32 %v497_v59, %v1836_v14  ;;  %v1745_v14 = vld [vmem:[%s2491_s0 + $0x38] sm:$0xff]  ;;  %v1748_v59 = vld [vmem:[%s2491_s0 + $0x10] sm:$0xff] }
 0x12e   :  { %v578_v13 = vpop.permute.xlu2 %577 }
 0x12f   :  { %v634_v47 = vadd.f32 %v593_v28, %v538_v4  ;;  %v1435_v4 = vld [vmem:[%s2494_s3 + $0x8] sm:$0xff] }
 0x131   :  { %v650_v7 = vmax.f32 %v634_v47, 0.0  ;;  %v1454_v47 = vld [vmem:[%s2494_s3 + $0xa0] sm:$0xff] }
 0x134   :  { %v482_v24 = vpop.permute.xlu1 %481 }
 0x135   :  { %v535_v45 = vmul.f32 %v482_v24, %v1848_v17 }
 0x136   :  { %v487_v46 = vpop.permute.xlu0 %486  ;;  %v477_v19 = vpop.permute.xlu2 %476 }
 0x137   :  { %v631_v43 = vadd.f32 %v578_v13, %v535_v45  ;;  %v536_v16 = vmul.f32 %v1745_v14, %v487_v46  ;;  %v534_v55 = vmul.f32 %v1746_v2, %v477_v19  ;;  %v1749_v46 = vld [vmem:[%s2491_s0 + $0x18] sm:$0xff]  ;;  %v1463_v45 = vld [vmem:[%s2494_s3 + $0xe8] sm:$0xff]  ;;  %v1438_v19 = vld [vmem:[%s2494_s3 + $0x20] sm:$0xff] }
 0x138   :  { %v1465_v14 = vld [vmem:[%s2494_s3 + $0xf8] sm:$0xff]  ;;  %v1467_v2 = vld [vmem:[%s2494_s3 + $0x108] sm:$0xff] }
 0x139   :  { %v647_v17 = vmax.f32 %v631_v43, 0.0  ;;  %v1456_v43 = vld [vmem:[%s2494_s3 + $0xb0] sm:$0xff] }
 0x13c   :  { %v618_v23 = vpop.permute.xlu1 %617 }
 0x13d   :  { %v639_v8 = vadd.f32 %v618_v23, %v543_v38 }
 0x13e   :  { %v603_v18 = vpop.permute.xlu0 %602  ;;  %v462_v58 = vpop.permute.xlu2 %461 }
 0x13f   :  { %v655_v61 = vmax.f32 %v639_v8, 0.0  ;;  %v636_v39 = vadd.f32 %v603_v18, %v540_v21  ;;  %v531_v63 = vmul.f32 %v1748_v59, %v462_v58  ;;  %v1434_v21 = vld [vmem:[%s2494_s3] sm:$0xff]  ;;  %v1451_v58 = vld [vmem:[%s2494_s3 + $0x88] sm:$0xff] }
 0x141   :  { %v664_v34 = vpack.c.bf16 %v656_v29, %v655_v61  ;;  %v652_v9 = vmax.f32 %v636_v39, 0.0  ;;  %v1750_v29 = vld [vmem:[%s2491_s0] sm:$0xff]  ;;  %v1444_v39 = vld [vmem:[%s2494_s3 + $0x50] sm:$0xff] }
 0x143   :  { %953 = vmatpush.bf16.msra.mxu0 %v664_v34  ;;  %1685 = vmatpush.bf16.msra.mxu1 %v664_v34 }
 0x144   :  { %1686 = vmatpush.bf16.msra.mxu2 %v664_v34  ;;  %1687 = vmatpush.bf16.msra.mxu3 %v664_v34  ;;  %v613_v3 = vpop.permute.xlu1 %612 }
 0x145   :  { %v638_v10 = vadd.f32 %v613_v3, %v542_v30  ;;  %v1751_v30 = vld [vmem:[%s2491_s0 + $0x8] sm:$0xff] }
 0x146   :  { %v588_v0 = vpop.permute.xlu0 %587  ;;  %v563_v38 = vpop.permute.xlu2 %562 }
 0x147   :  { %v654_v44 = vmax.f32 %v638_v10, 0.0  ;;  %v633_v37 = vadd.f32 %v588_v0, %v537_v41  ;;  %v1452_v41 = vld [vmem:[%s2494_s3 + $0x90] sm:$0xff] }
 0x149   :  { %v663_v50 = vpack.c.bf16 %v654_v44, %v653_v36  ;;  %v649_v42 = vmax.f32 %v633_v37, 0.0  ;;  %v1462_v37 = vld [vmem:[%s2494_s3 + $0xe0] sm:$0xff] }
 0x14b   :  { %954 = vmatpush.bf16.msra.mxu0 %v663_v50  ;;  %1688 = vmatpush.bf16.msra.mxu1 %v663_v50  ;;  %v661_v51 = vpack.c.bf16 %v650_v7, %v649_v42  ;;  %v1455_v42 = vld [vmem:[%s2494_s3 + $0xa8] sm:$0xff] }
 0x14c   :  { %1689 = vmatpush.bf16.msra.mxu2 %v663_v50  ;;  %1690 = vmatpush.bf16.msra.mxu3 %v663_v50  ;;  %v598_v5 = vpop.permute.xlu1 %597  ;;  %v1443_v50 = vld [vmem:[%s2494_s3 + $0x48] sm:$0xff] }
 0x14d   :  { %v635_v48 = vadd.f32 %v598_v5, %v539_v1  ;;  %v1461_v1 = vld [vmem:[%s2494_s3 + $0xd8] sm:$0xff]  ;;  %v1447_v7 = vld [vmem:[%s2494_s3 + $0x68] sm:$0xff] }
 0x14e   :  { %v472_v22 = vpop.permute.xlu0 %471  ;;  %v548_v34 = vpop.permute.xlu2 %547  ;;  %v1453_v5 = vld [vmem:[%s2494_s3 + $0x98] sm:$0xff] }
 0x14f   :  { %v651_v26 = vmax.f32 %v635_v48, 0.0  ;;  %v533_v49 = vmul.f32 %v1747_v60, %v472_v22  ;;  %v1436_v48 = vld [vmem:[%s2494_s3 + $0x10] sm:$0xff]  ;;  %v1445_v22 = vld [vmem:[%s2494_s3 + $0x58] sm:$0xff]  ;;  %v1459_v60 = vld [vmem:[%s2494_s3 + $0xc8] sm:$0xff] }
 0x151   :  { %v662_v12 = vpack.c.bf16 %v652_v9, %v651_v26  ;;  %v1437_v9 = vld [vmem:[%s2494_s3 + $0x18] sm:$0xff]  ;;  %v1446_v26 = vld [vmem:[%s2494_s3 + $0x60] sm:$0xff] }
 0x153   :  { %955 = vmatpush.bf16.msra.mxu0 %v662_v12  ;;  %1691 = vmatpush.bf16.msra.mxu1 %v662_v12 }
 0x154   :  { %1692 = vmatpush.bf16.msra.mxu2 %v662_v12  ;;  %1693 = vmatpush.bf16.msra.mxu3 %v662_v12  ;;  %v583_v52 = vpop.permute.xlu1 %582  ;;  %v1464_v12 = vld [vmem:[%s2494_s3 + $0xf0] sm:$0xff] }
 0x155   :  { %v632_v53 = vadd.f32 %v583_v52, %v536_v16  ;;  %v1439_v16 = vld [vmem:[%s2494_s3 + $0x28] sm:$0xff]  ;;  %v1448_v52 = vld [vmem:[%s2494_s3 + $0x70] sm:$0xff] }
 0x156   :  { %v573_v35 = vpop.permute.xlu0 %572 }
 0x157   :  { %v648_v54 = vmax.f32 %v632_v53, 0.0  ;;  %956 = vmatpush.bf16.msra.mxu0 %v661_v51  ;;  %1694 = vmatpush.bf16.msra.mxu1 %v661_v51  ;;  %v630_v40 = vadd.f32 %v573_v35, %v534_v55  ;;  %v1466_v53 = vld [vmem:[%s2494_s3 + $0x100] sm:$0xff]  ;;  %v1441_v55 = vld [vmem:[%s2494_s3 + $0x38] sm:$0xff] }
 0x158   :  { %1695 = vmatpush.bf16.msra.mxu2 %v661_v51  ;;  %1696 = vmatpush.bf16.msra.mxu3 %v661_v51  ;;  %v1457_v51 = vld [vmem:[%s2494_s3 + $0xb8] sm:$0xff]  ;;  %v1458_v35 = vld [vmem:[%s2494_s3 + $0xc0] sm:$0xff] }
 0x159   :  { %v660_v57 = vpack.c.bf16 %v648_v54, %v647_v17  ;;  %v646_v25 = vmax.f32 %v630_v40, 0.0  ;;  %v1440_v17 = vld [vmem:[%s2494_s3 + $0x30] sm:$0xff]  ;;  %v1449_v54 = vld [vmem:[%s2494_s3 + $0x78] sm:$0xff]  ;;  %v1442_v40 = vld [vmem:[%s2494_s3 + $0x40] sm:$0xff] }
 0x15b   :  { %957 = vmatpush.bf16.msra.mxu0 %v660_v57  ;;  %1697 = vmatpush.bf16.msra.mxu1 %v660_v57 }
 0x15c   :  { %1698 = vmatpush.bf16.msra.mxu2 %v660_v57  ;;  %1699 = vmatpush.bf16.msra.mxu3 %v660_v57  ;;  %v568_v15 = vpop.permute.xlu1 %567  ;;  %v1450_v57 = vld [vmem:[%s2494_s3 + $0x80] sm:$0xff] }
 0x15d   :  { %v629_v6 = vadd.f32 %v568_v15, %v533_v49  ;;  %v1468_v49 = vld [vmem:[%s2494_s3 + $0x110] sm:$0xff] }
 0x15e   :  { %v558_v27 = vpop.permute.xlu0 %557 }
 0x15f   :  { %v645_v62 = vmax.f32 %v629_v6, 0.0  ;;  %v627_v24 = vadd.f32 %v558_v27, %v531_v63 }
 0x161   :  { %v659_v11 = vpack.c.bf16 %v646_v25, %v645_v62  ;;  %v643_v23 = vmax.f32 %v627_v24, 0.0  ;;  %v1460_v25 = vld [vmem:[%s2494_s3 + $0xd0] sm:$0xff]  ;;  %v1469_v62 = vld [vmem:[%s2494_s3 + $0x118] sm:$0xff] }
 0x163   :  { %958 = vmatpush.bf16.msra.mxu0 %v659_v11  ;;  %1700 = vmatpush.bf16.msra.mxu1 %v659_v11 }
 0x164   :  { %1701 = vmatpush.bf16.msra.mxu2 %v659_v11  ;;  %1702 = vmatpush.bf16.msra.mxu3 %v659_v11  ;;  %v467_v56 = vpop.permute.xlu1 %466 }
 0x165   :  { %v532_v20 = vmul.f32 %v1749_v46, %v467_v56 }
 0x166   :  { %v457_v31 = vpop.permute.xlu0 %456 }
 0x167   :  { %v628_v32 = vadd.f32 %v563_v38, %v532_v20  ;;  %v530_v33 = vmul.f32 %v1751_v30, %v457_v31 }
 0x169   :  { %v644_v8 = vmax.f32 %v628_v32, 0.0 }
 0x16b   :  { %v658_v18 = vpack.c.bf16 %v644_v8, %v643_v23 }
 0x16c   :  { %v452_v28 = vpop.permute.xlu1 %451 }
 0x16d   :  { %959 = vmatpush.bf16.msra.mxu0 %v658_v18  ;;  %1703 = vmatpush.bf16.msra.mxu1 %v658_v18  ;;  %v529_v61 = vmul.f32 %v1750_v29, %v452_v28 }
 0x16e   :  { %1704 = vmatpush.bf16.msra.mxu2 %v658_v18  ;;  %1705 = vmatpush.bf16.msra.mxu3 %v658_v18 }
 0x16f   :  { %v625_v3 = vadd.f32 %v548_v34, %v529_v61 }
 0x171   :  { %v641_v36 = vmax.f32 %v625_v3, 0.0 }
 0x174   :  { %v553_v10 = vpop.permute.xlu1 %552 }
 0x175   :  { %v626_v0 = vadd.f32 %v553_v10, %v530_v33 }
 0x177   :  { %v642_v44 = vmax.f32 %v626_v0, 0.0 }
 0x179   :  { %v657_v13 = vpack.c.bf16 %v642_v44, %v641_v36 }
 0x17b   :  { %960 = vmatpush.bf16.msra.mxu0 %v657_v13  ;;  %1706 = vmatpush.bf16.msra.mxu1 %v657_v13 }
 0x17c   :  { %1707 = vmatpush.bf16.msra.mxu2 %v657_v13  ;;  %1708 = vmatpush.bf16.msra.mxu3 %v657_v13 }
 0x17e   :  { %961 = vmatmul.bf16.vlgmr.msra.gmra.mxu0 %v1434_v21  ;;  %1006 = vmatmul.bf16.vlgmr.msra.gmra.mxu1 %v1443_v50 }
 0x17f   :  { %1051 = vmatmul.bf16.vlgmr.msra.gmra.mxu2 %v1452_v41  ;;  %1096 = vmatmul.bf16.vlgmr.msra.gmra.mxu3 %v1461_v1 }
 0x18e   :  { %966 = vmatmul.bf16.gmra.mxu0 %v1435_v4  ;;  %1011 = vmatmul.bf16.gmra.mxu1 %v1444_v39 }
 0x18f   :  { %1056 = vmatmul.bf16.gmra.mxu2 %v1453_v5  ;;  %1101 = vmatmul.bf16.gmra.mxu3 %v1462_v37 }
 0x19e   :  { %971 = vmatmul.bf16.gmra.mxu0 %v1436_v48  ;;  %1016 = vmatmul.bf16.gmra.mxu1 %v1445_v22 }
 0x19f   :  { %1061 = vmatmul.bf16.gmra.mxu2 %v1454_v47  ;;  %1106 = vmatmul.bf16.gmra.mxu3 %v1463_v45 }
 0x1ae   :  { %976 = vmatmul.bf16.gmra.mxu0 %v1437_v9  ;;  %1021 = vmatmul.bf16.gmra.mxu1 %v1446_v26 }
 0x1af   :  { %1066 = vmatmul.bf16.gmra.mxu2 %v1455_v42  ;;  %1111 = vmatmul.bf16.gmra.mxu3 %v1464_v12 }
 0x1be   :  { %981 = vmatmul.bf16.gmra.mxu0 %v1438_v19  ;;  %1026 = vmatmul.bf16.gmra.mxu1 %v1447_v7 }
 0x1bf   :  { %1071 = vmatmul.bf16.gmra.mxu2 %v1456_v43  ;;  %1116 = vmatmul.bf16.gmra.mxu3 %v1465_v14 }
 0x1ce   :  { %986 = vmatmul.bf16.gmra.mxu0 %v1439_v16  ;;  %1031 = vmatmul.bf16.gmra.mxu1 %v1448_v52 }
 0x1cf   :  { %1076 = vmatmul.bf16.gmra.mxu2 %v1457_v51  ;;  %1121 = vmatmul.bf16.gmra.mxu3 %v1466_v53 }
 0x1de   :  { %991 = vmatmul.bf16.gmra.mxu0 %v1440_v17  ;;  %1036 = vmatmul.bf16.gmra.mxu1 %v1449_v54 }
 0x1df   :  { %1081 = vmatmul.bf16.gmra.mxu2 %v1458_v35  ;;  %1126 = vmatmul.bf16.gmra.mxu3 %v1467_v2 }
 0x1ee   :  { %996 = vmatmul.bf16.gmra.mxu0 %v1441_v55  ;;  %1041 = vmatmul.bf16.gmra.mxu1 %v1450_v57 }
 0x1ef   :  { %1086 = vmatmul.bf16.gmra.mxu2 %v1459_v60  ;;  %1131 = vmatmul.bf16.gmra.mxu3 %v1468_v49 }
 0x1fb   :  { %v962_v15 = vpop.f32.mrf.mxu0  ;;  %v1007_v6 = vpop.f32.mrf.mxu1 }
 0x1fe   :  { %1001 = vmatmul.bf16.gmra.mxu0 %v1442_v40  ;;  %1046 = vmatmul.bf16.gmra.mxu1 %v1451_v58 }
 0x1ff   :  { %1091 = vmatmul.bf16.gmra.mxu2 %v1460_v25  ;;  %1136 = vmatmul.bf16.gmra.mxu3 %v1469_v62 }
 0x202   :  { %v1052_v11 = vpop.f32.mrf.mxu2  ;;  %v1097_v27 = vpop.f32.mrf.mxu3 }
 0x203   :  { %v964_v59 = vpop.f32.mrf.mxu0  ;;  %v1009_v63 = vpop.f32.mrf.mxu1 }
 0x204   :  { %v1473_v56 = vpack.c.bf16 %v964_v59, %v962_v15  ;;  %v1518_v24 = vpack.c.bf16 %v1009_v63, %v1007_v6 }
 0x206   :  { %1474 = vst [vmem:[%s2495_s4] sm:$0xff] %v1473_v56  }
 0x207   :  { %1658 = vst [vmem:[%s2495_s4 + $0x48] sm:$0xff] %v1518_v24  }
 0x20a   :  { %v1054_v46 = vpop.f32.mrf.mxu2  ;;  %v1099_v20 = vpop.f32.mrf.mxu3 }
 0x20b   :  { %v1563_v38 = vpack.c.bf16 %v1054_v46, %v1052_v11  ;;  %v1608_v32 = vpack.c.bf16 %v1099_v20, %v1097_v27  ;;  %v967_v23 = vpop.f32.mrf.mxu0  ;;  %v1012_v8 = vpop.f32.mrf.mxu1 }
 0x20d   :  { %1667 = vst [vmem:[%s2495_s4 + $0x90] sm:$0xff] %v1563_v38  }
 0x20e   :  { %1676 = vst [vmem:[%s2495_s4 + $0xd8] sm:$0xff] %v1608_v32  }
 0x212   :  { %v1057_v18 = vpop.f32.mrf.mxu2  ;;  %v1102_v28 = vpop.f32.mrf.mxu3 }
 0x213   :  { %v969_v29 = vpop.f32.mrf.mxu0  ;;  %v1014_v61 = vpop.f32.mrf.mxu1 }
 0x214   :  { %v1478_v31 = vpack.c.bf16 %v969_v29, %v967_v23  ;;  %v1523_v34 = vpack.c.bf16 %v1014_v61, %v1012_v8 }
 0x216   :  { %1650 = vst [vmem:[%s2495_s4 + $0x8] sm:$0xff] %v1478_v31  }
 0x217   :  { %1659 = vst [vmem:[%s2495_s4 + $0x50] sm:$0xff] %v1523_v34  }
 0x21a   :  { %v1059_v30 = vpop.f32.mrf.mxu2  ;;  %v1104_v33 = vpop.f32.mrf.mxu3 }
 0x21b   :  { %v1568_v3 = vpack.c.bf16 %v1059_v30, %v1057_v18  ;;  %v1613_v10 = vpack.c.bf16 %v1104_v33, %v1102_v28  ;;  %v972_v0 = vpop.f32.mrf.mxu0  ;;  %v1017_v36 = vpop.f32.mrf.mxu1 }
 0x21d   :  { %1668 = vst [vmem:[%s2495_s4 + $0x98] sm:$0xff] %v1568_v3  }
 0x21e   :  { %1677 = vst [vmem:[%s2495_s4 + $0xe0] sm:$0xff] %v1613_v10  }
 0x222   :  { %v1062_v44 = vpop.f32.mrf.mxu2  ;;  %v1107_v13 = vpop.f32.mrf.mxu3 }
 0x223   :  { %v974_v21 = vpop.f32.mrf.mxu0  ;;  %v1019_v50 = vpop.f32.mrf.mxu1 }
 0x224   :  { %v1483_v41 = vpack.c.bf16 %v974_v21, %v972_v0  ;;  %v1528_v1 = vpack.c.bf16 %v1019_v50, %v1017_v36 }
 0x226   :  { %1651 = vst [vmem:[%s2495_s4 + $0x10] sm:$0xff] %v1483_v41  }
 0x227   :  { %1660 = vst [vmem:[%s2495_s4 + $0x58] sm:$0xff] %v1528_v1  }
 0x22a   :  { %v1064_v4 = vpop.f32.mrf.mxu2  ;;  %v1109_v39 = vpop.f32.mrf.mxu3 }
 0x22b   :  { %v1573_v5 = vpack.c.bf16 %v1064_v4, %v1062_v44  ;;  %v1618_v37 = vpack.c.bf16 %v1109_v39, %v1107_v13  ;;  %v977_v48 = vpop.f32.mrf.mxu0  ;;  %v1022_v22 = vpop.f32.mrf.mxu1 }
 0x22d   :  { %1669 = vst [vmem:[%s2495_s4 + $0xa0] sm:$0xff] %v1573_v5  }
 0x22e   :  { %1678 = vst [vmem:[%s2495_s4 + $0xe8] sm:$0xff] %v1618_v37  }
 0x232   :  { %v1067_v47 = vpop.f32.mrf.mxu2  ;;  %v1112_v45 = vpop.f32.mrf.mxu3 }
 0x233   :  { %v979_v9 = vpop.f32.mrf.mxu0  ;;  %v1024_v26 = vpop.f32.mrf.mxu1 }
 0x234   :  { %v1488_v42 = vpack.c.bf16 %v979_v9, %v977_v48  ;;  %v1533_v12 = vpack.c.bf16 %v1024_v26, %v1022_v22 }
 0x236   :  { %1652 = vst [vmem:[%s2495_s4 + $0x18] sm:$0xff] %v1488_v42  }
 0x237   :  { %1661 = vst [vmem:[%s2495_s4 + $0x60] sm:$0xff] %v1533_v12  }
 0x23a   :  { %v1069_v19 = vpop.f32.mrf.mxu2  ;;  %v1114_v7 = vpop.f32.mrf.mxu3 }
 0x23b   :  { %v1578_v43 = vpack.c.bf16 %v1069_v19, %v1067_v47  ;;  %v1623_v14 = vpack.c.bf16 %v1114_v7, %v1112_v45  ;;  %v982_v16 = vpop.f32.mrf.mxu0  ;;  %v1027_v52 = vpop.f32.mrf.mxu1 }
 0x23d   :  { %1670 = vst [vmem:[%s2495_s4 + $0xa8] sm:$0xff] %v1578_v43  }
 0x23e   :  { %1679 = vst [vmem:[%s2495_s4 + $0xf0] sm:$0xff] %v1623_v14  }
 0x242   :  { %v1072_v51 = vpop.f32.mrf.mxu2  ;;  %v1117_v53 = vpop.f32.mrf.mxu3 }
 0x243   :  { %v984_v17 = vpop.f32.mrf.mxu0  ;;  %v1029_v54 = vpop.f32.mrf.mxu1 }
 0x244   :  { %v1493_v35 = vpack.c.bf16 %v984_v17, %v982_v16  ;;  %v1538_v2 = vpack.c.bf16 %v1029_v54, %v1027_v52 }
 0x246   :  { %1653 = vst [vmem:[%s2495_s4 + $0x20] sm:$0xff] %v1493_v35  }
 0x247   :  { %1662 = vst [vmem:[%s2495_s4 + $0x68] sm:$0xff] %v1538_v2  }
 0x24a   :  { %v1074_v55 = vpop.f32.mrf.mxu2  ;;  %v1119_v57 = vpop.f32.mrf.mxu3 }
 0x24b   :  { %v1583_v60 = vpack.c.bf16 %v1074_v55, %v1072_v51  ;;  %v1628_v49 = vpack.c.bf16 %v1119_v57, %v1117_v53  ;;  %v987_v40 = vpop.f32.mrf.mxu0  ;;  %v1032_v58 = vpop.f32.mrf.mxu1 }
 0x24d   :  { %1671 = vst [vmem:[%s2495_s4 + $0xb0] sm:$0xff] %v1583_v60  }
 0x24e   :  { %1680 = vst [vmem:[%s2495_s4 + $0xf8] sm:$0xff] %v1628_v49  }
 0x252   :  { %v1077_v15 = vpop.f32.mrf.mxu2  ;;  %v1122_v6 = vpop.f32.mrf.mxu3 }
 0x253   :  { %v989_v25 = vpop.f32.mrf.mxu0  ;;  %v1034_v62 = vpop.f32.mrf.mxu1 }
 0x254   :  { %v1498_v11 = vpack.c.bf16 %v989_v25, %v987_v40  ;;  %v1543_v27 = vpack.c.bf16 %v1034_v62, %v1032_v58 }
 0x256   :  { %1654 = vst [vmem:[%s2495_s4 + $0x28] sm:$0xff] %v1498_v11  }
 0x257   :  { %1663 = vst [vmem:[%s2495_s4 + $0x70] sm:$0xff] %v1543_v27  }
 0x25a   :  { %v1079_v59 = vpop.f32.mrf.mxu2  ;;  %v1124_v63 = vpop.f32.mrf.mxu3 }
 0x25b   :  { %v1588_v56 = vpack.c.bf16 %v1079_v59, %v1077_v15  ;;  %v1633_v24 = vpack.c.bf16 %v1124_v63, %v1122_v6  ;;  %v992_v46 = vpop.f32.mrf.mxu0  ;;  %v1037_v20 = vpop.f32.mrf.mxu1 }
 0x25d   :  { %1672 = vst [vmem:[%s2495_s4 + $0xb8] sm:$0xff] %v1588_v56  }
 0x25e   :  { %1681 = vst [vmem:[%s2495_s4 + $0x100] sm:$0xff] %v1633_v24  }
 0x262   :  { %v1082_v38 = vpop.f32.mrf.mxu2  ;;  %v1127_v32 = vpop.f32.mrf.mxu3 }
 0x263   :  { %v994_v23 = vpop.f32.mrf.mxu0  ;;  %v1039_v8 = vpop.f32.mrf.mxu1 }
 0x264   :  { %v1503_v18 = vpack.c.bf16 %v994_v23, %v992_v46  ;;  %v1548_v28 = vpack.c.bf16 %v1039_v8, %v1037_v20 }
 0x266   :  { %1655 = vst [vmem:[%s2495_s4 + $0x30] sm:$0xff] %v1503_v18  }
 0x267   :  { %1664 = vst [vmem:[%s2495_s4 + $0x78] sm:$0xff] %v1548_v28  }
 0x26a   :  { %v1084_v29 = vpop.f32.mrf.mxu2  ;;  %v1129_v61 = vpop.f32.mrf.mxu3 }
 0x26b   :  { %v1593_v31 = vpack.c.bf16 %v1084_v29, %v1082_v38  ;;  %v1638_v34 = vpack.c.bf16 %v1129_v61, %v1127_v32  ;;  %v997_v30 = vpop.f32.mrf.mxu0  ;;  %v1042_v33 = vpop.f32.mrf.mxu1 }
 0x26d   :  { %1673 = vst [vmem:[%s2495_s4 + $0xc0] sm:$0xff] %v1593_v31  }
 0x26e   :  { %1682 = vst [vmem:[%s2495_s4 + $0x108] sm:$0xff] %v1638_v34  }
 0x272   :  { %v1087_v3 = vpop.f32.mrf.mxu2  ;;  %v1132_v10 = vpop.f32.mrf.mxu3 }
 0x273   :  { %v999_v0 = vpop.f32.mrf.mxu0  ;;  %v1044_v36 = vpop.f32.mrf.mxu1 }
 0x274   :  { %v1508_v44 = vpack.c.bf16 %v999_v0, %v997_v30  ;;  %v1553_v13 = vpack.c.bf16 %v1044_v36, %v1042_v33 }
 0x276   :  { %1656 = vst [vmem:[%s2495_s4 + $0x38] sm:$0xff] %v1508_v44  }
 0x277   :  { %1665 = vst [vmem:[%s2495_s4 + $0x80] sm:$0xff] %v1553_v13  }
 0x27a   :  { %v1089_v21 = vpop.f32.mrf.mxu2  ;;  %v1134_v50 = vpop.f32.mrf.mxu3 }
 0x27b   :  { %v1598_v41 = vpack.c.bf16 %v1089_v21, %v1087_v3  ;;  %v1643_v1 = vpack.c.bf16 %v1134_v50, %v1132_v10  ;;  %v1002_v4 = vpop.f32.mrf.mxu0  ;;  %v1047_v39 = vpop.f32.mrf.mxu1 }
 0x27d   :  { %1674 = vst [vmem:[%s2495_s4 + $0xc8] sm:$0xff] %v1598_v41  }
 0x27e   :  { %1683 = vst [vmem:[%s2495_s4 + $0x110] sm:$0xff] %v1643_v1  }
 0x282   :  { %v1092_v5 = vpop.f32.mrf.mxu2  ;;  %v1137_v37 = vpop.f32.mrf.mxu3 }
 0x283   :  { %v1004_v48 = vpop.f32.mrf.mxu0  ;;  %v1049_v22 = vpop.f32.mrf.mxu1 }
 0x284   :  { %v1513_v47 = vpack.c.bf16 %v1004_v48, %v1002_v4  ;;  %v1558_v45 = vpack.c.bf16 %v1049_v22, %v1047_v39 }
 0x286   :  { %1657 = vst [vmem:[%s2495_s4 + $0x40] sm:$0xff] %v1513_v47  }
 0x287   :  { %1666 = vst [vmem:[%s2495_s4 + $0x88] sm:$0xff] %v1558_v45  }
 0x28a   :  { %v1094_v9 = vpop.f32.mrf.mxu2  ;;  %v1139_v26 = vpop.f32.mrf.mxu3 }
 0x28b   :  { %v1603_v42 = vpack.c.bf16 %v1094_v9, %v1092_v5  ;;  %v1648_v12 = vpack.c.bf16 %v1139_v26, %v1137_v37 }
 0x28d   :  { %1675 = vst [vmem:[%s2495_s4 + $0xd0] sm:$0xff] %v1603_v42  }
 0x28e   :  { %1684 = vst [vmem:[%s2495_s4 + $0x118] sm:$0xff] %v1648_v12  }

// kernel: omniglot_decoder.6
= control target key start
LH: loop header
LB: loop body
LE: loop exit
PB: predicated region body
PF: predicated region fallthrough
CT: control target
= control target key end

     0   :  { %7 = vsyncpa [#allocation3], 0  ;;  %s3701_s12 = smov [#allocation2]   ;;  %s3702_s14 = smov 64   ;;  %s4154_s0 = inlined_call_operand.hbm [shape: bf16[2048,128], index: 0, kind: input, shape index: {}]   ;;  %s4155_s1 = inlined_call_operand.vmem [shape: f32[128,128], index: 1, kind: input, shape index: {}]   ;;  %s4156_s2 = inlined_call_operand.vmem [shape: bf16[2048,128], index: 2, kind: output, shape index: {}]  }
   0x1   :  { %s12_s11 = sshll.u32 %s4154_s0, 4  ;;  %s14_s13 = sshll.u32 %s3701_s12, 4  ;;  %s13_s11 = int_to_ptr.hbm [resolvable:$true] %s12_s11  ;;  %s15_s13 = int_to_ptr.vmem [resolvable:$true] %s14_s13 }
   0x2   :  { %s3703_s15 = smov 4  }
   0x3   :  { %20 = dma.hbm_to_vmem [thread:$0]  %s13_s11, 16384, %s15_s13, [#allocation3], %s3702_s14, %s3702_s14, %s3703_s15  }
   0x4   :  { %3699 = dma.done.wait [#allocation3], 16384  }
   0x5   :  { %3700 = vsyncadd [#allocation3], 4294950912  ;;  %v297_v0 = vld [vmem:[%s4155_s1 + $0x70] sm:$0xff]  ;;  %v298_v1 = vld [vmem:[%s4155_s1 + $0x78] sm:$0xff] }
   0x6   :  { %v295_v2 = vld [vmem:[%s4155_s1 + $0x60] sm:$0xff]  ;;  %v306_v3 = vpack.c.bf16 %v298_v1, %v297_v0  ;;  %v296_v4 = vld [vmem:[%s4155_s1 + $0x68] sm:$0xff]  ;;  %v293_v6 = vld [vmem:[%s4155_s1 + $0x50] sm:$0xff] }
   0x7   :  { %v305_v5 = vpack.c.bf16 %v296_v4, %v295_v2  ;;  %v294_v7 = vld [vmem:[%s4155_s1 + $0x58] sm:$0xff]  ;;  %v291_v9 = vld [vmem:[%s4155_s1 + $0x40] sm:$0xff]  ;;  %v292_v10 = vld [vmem:[%s4155_s1 + $0x48] sm:$0xff] }
   0x8   :  { %1075 = vmatpush.bf16.msra.mxu0 %v306_v3  ;;  %3648 = vmatpush.bf16.msra.mxu1 %v306_v3  ;;  %v304_v8 = vpack.c.bf16 %v294_v7, %v293_v6  ;;  %v303_v11 = vpack.c.bf16 %v292_v10, %v291_v9  ;;  %v289_v12 = vld [vmem:[%s4155_s1 + $0x30] sm:$0xff]  ;;  %v290_v13 = vld [vmem:[%s4155_s1 + $0x38] sm:$0xff]  ;;  %v287_v15 = vld [vmem:[%s4155_s1 + $0x20] sm:$0xff] }
   0x9   :  { %3649 = vmatpush.bf16.msra.mxu2 %v306_v3  ;;  %3650 = vmatpush.bf16.msra.mxu3 %v306_v3  ;;  %v302_v14 = vpack.c.bf16 %v290_v13, %v289_v12  ;;  %v288_v16 = vld [vmem:[%s4155_s1 + $0x28] sm:$0xff]  ;;  %v285_v18 = vld [vmem:[%s4155_s1 + $0x10] sm:$0xff]  ;;  %v286_v19 = vld [vmem:[%s4155_s1 + $0x18] sm:$0xff] }
   0xa   :  { %v301_v17 = vpack.c.bf16 %v288_v16, %v287_v15  ;;  %v300_v20 = vpack.c.bf16 %v286_v19, %v285_v18  ;;  %v283_v21 = vld [vmem:[%s4155_s1] sm:$0xff]  ;;  %v284_v22 = vld [vmem:[%s4155_s1 + $0x8] sm:$0xff]  ;;  %v2755_v32 = vld [vmem:[#allocation2 + $0x10] sm:$0xff] }
   0xb   :  { %v299_v23 = vpack.c.bf16 %v284_v22, %v283_v21  ;;  %v2753_v24 = vld [vmem:[#allocation2] sm:$0xff]  ;;  %v2754_v28 = vld [vmem:[#allocation2 + $0x8] sm:$0xff]  ;;  %v2787_v33 = vld [vmem:[#allocation2 + $0x110] sm:$0xff] }
   0xc   :  { %1076 = vmatpush.bf16.msra.mxu0 %v305_v5  ;;  %3651 = vmatpush.bf16.msra.mxu1 %v305_v5  ;;  %v2785_v25 = vld [vmem:[#allocation2 + $0x100] sm:$0xff]  ;;  %v2786_v29 = vld [vmem:[#allocation2 + $0x108] sm:$0xff]  ;;  %v2819_v34 = vld [vmem:[#allocation2 + $0x210] sm:$0xff] }
   0xd   :  { %3652 = vmatpush.bf16.msra.mxu2 %v305_v5  ;;  %3653 = vmatpush.bf16.msra.mxu3 %v305_v5  ;;  %v2817_v26 = vld [vmem:[#allocation2 + $0x200] sm:$0xff]  ;;  %v2818_v30 = vld [vmem:[#allocation2 + $0x208] sm:$0xff]  ;;  %v2851_v35 = vld [vmem:[#allocation2 + $0x310] sm:$0xff] }
   0xe   :  { %v2849_v27 = vld [vmem:[#allocation2 + $0x300] sm:$0xff]  ;;  %v2850_v31 = vld [vmem:[#allocation2 + $0x308] sm:$0xff]  ;;  %v2756_v36 = vld [vmem:[#allocation2 + $0x18] sm:$0xff] }
   0xf   :  { %v2788_v37 = vld [vmem:[#allocation2 + $0x118] sm:$0xff]  ;;  %v2757_v40 = vld [vmem:[#allocation2 + $0x20] sm:$0xff]  ;;  %v2758_v44 = vld [vmem:[#allocation2 + $0x28] sm:$0xff] }
  0x10   :  { %1077 = vmatpush.bf16.msra.mxu0 %v304_v8  ;;  %3654 = vmatpush.bf16.msra.mxu1 %v304_v8  ;;  %v2820_v38 = vld [vmem:[#allocation2 + $0x218] sm:$0xff]  ;;  %v2789_v41 = vld [vmem:[#allocation2 + $0x120] sm:$0xff]  ;;  %v2790_v45 = vld [vmem:[#allocation2 + $0x128] sm:$0xff] }
  0x11   :  { %3655 = vmatpush.bf16.msra.mxu2 %v304_v8  ;;  %3656 = vmatpush.bf16.msra.mxu3 %v304_v8  ;;  %v2852_v39 = vld [vmem:[#allocation2 + $0x318] sm:$0xff]  ;;  %v2821_v42 = vld [vmem:[#allocation2 + $0x220] sm:$0xff]  ;;  %v2822_v46 = vld [vmem:[#allocation2 + $0x228] sm:$0xff] }
  0x12   :  { %v2853_v43 = vld [vmem:[#allocation2 + $0x320] sm:$0xff]  ;;  %v2854_v47 = vld [vmem:[#allocation2 + $0x328] sm:$0xff]  ;;  %v2759_v48 = vld [vmem:[#allocation2 + $0x30] sm:$0xff] }
  0x13   :  { %v2791_v49 = vld [vmem:[#allocation2 + $0x130] sm:$0xff]  ;;  %v2760_v52 = vld [vmem:[#allocation2 + $0x38] sm:$0xff]  ;;  %v2761_v56 = vld [vmem:[#allocation2 + $0x40] sm:$0xff] }
  0x14   :  { %1078 = vmatpush.bf16.msra.mxu0 %v303_v11  ;;  %3657 = vmatpush.bf16.msra.mxu1 %v303_v11  ;;  %v2823_v50 = vld [vmem:[#allocation2 + $0x230] sm:$0xff]  ;;  %v2792_v53 = vld [vmem:[#allocation2 + $0x138] sm:$0xff]  ;;  %v2793_v57 = vld [vmem:[#allocation2 + $0x140] sm:$0xff] }
  0x15   :  { %3658 = vmatpush.bf16.msra.mxu2 %v303_v11  ;;  %3659 = vmatpush.bf16.msra.mxu3 %v303_v11  ;;  %v2855_v51 = vld [vmem:[#allocation2 + $0x330] sm:$0xff]  ;;  %v2824_v54 = vld [vmem:[#allocation2 + $0x238] sm:$0xff]  ;;  %v2825_v60 = vld [vmem:[#allocation2 + $0x240] sm:$0xff] }
  0x16   :  { %v2856_v55 = vld [vmem:[#allocation2 + $0x338] sm:$0xff]  ;;  %v2857_v61 = vld [vmem:[#allocation2 + $0x340] sm:$0xff]  ;;  %v2762_v6 = vld [vmem:[#allocation2 + $0x48] sm:$0xff] }
  0x17   :  { %v2794_v7 = vld [vmem:[#allocation2 + $0x148] sm:$0xff]  ;;  %v2763_v22 = vld [vmem:[#allocation2 + $0x50] sm:$0xff] }
  0x18   :  { %1079 = vmatpush.bf16.msra.mxu0 %v302_v14  ;;  %3660 = vmatpush.bf16.msra.mxu1 %v302_v14  ;;  %v2826_v12 = vld [vmem:[#allocation2 + $0x248] sm:$0xff] }
  0x19   :  { %3661 = vmatpush.bf16.msra.mxu2 %v302_v14  ;;  %3662 = vmatpush.bf16.msra.mxu3 %v302_v14  ;;  %v2858_v13 = vld [vmem:[#allocation2 + $0x348] sm:$0xff] }
  0x1c   :  { %1080 = vmatpush.bf16.msra.mxu0 %v301_v17  ;;  %3663 = vmatpush.bf16.msra.mxu1 %v301_v17 }
  0x1d   :  { %3664 = vmatpush.bf16.msra.mxu2 %v301_v17  ;;  %3665 = vmatpush.bf16.msra.mxu3 %v301_v17 }
  0x20   :  { %1081 = vmatpush.bf16.msra.mxu0 %v300_v20  ;;  %3666 = vmatpush.bf16.msra.mxu1 %v300_v20 }
  0x21   :  { %3667 = vmatpush.bf16.msra.mxu2 %v300_v20  ;;  %3668 = vmatpush.bf16.msra.mxu3 %v300_v20 }
  0x24   :  { %1082 = vmatpush.bf16.msra.mxu0 %v299_v23  ;;  %3669 = vmatpush.bf16.msra.mxu1 %v299_v23 }
  0x25   :  { %3670 = vmatpush.bf16.msra.mxu2 %v299_v23  ;;  %3671 = vmatpush.bf16.msra.mxu3 %v299_v23  ;;  %v2795_v23 = vld [vmem:[#allocation2 + $0x150] sm:$0xff] }
  0x27   :  { %1083 = vmatmul.bf16.vlgmr.msra.gmra.mxu0 %v2753_v24  ;;  %1243 = vmatmul.bf16.vlgmr.msra.gmra.mxu1 %v2785_v25 }
  0x28   :  { %1403 = vmatmul.bf16.vlgmr.msra.gmra.mxu2 %v2817_v26  ;;  %1563 = vmatmul.bf16.vlgmr.msra.gmra.mxu3 %v2849_v27 }
  0x37   :  { %1088 = vmatmul.bf16.gmra.mxu0 %v2754_v28  ;;  %1248 = vmatmul.bf16.gmra.mxu1 %v2786_v29  ;;  %v2827_v28 = vld [vmem:[#allocation2 + $0x250] sm:$0xff] }
  0x38   :  { %1408 = vmatmul.bf16.gmra.mxu2 %v2818_v30  ;;  %1568 = vmatmul.bf16.gmra.mxu3 %v2850_v31  ;;  %v2859_v29 = vld [vmem:[#allocation2 + $0x350] sm:$0xff] }
  0x47   :  { %1093 = vmatmul.bf16.gmra.mxu0 %v2755_v32  ;;  %1253 = vmatmul.bf16.gmra.mxu1 %v2787_v33 }
  0x48   :  { %1413 = vmatmul.bf16.gmra.mxu2 %v2819_v34  ;;  %1573 = vmatmul.bf16.gmra.mxu3 %v2851_v35 }
  0x57   :  { %1098 = vmatmul.bf16.gmra.mxu0 %v2756_v36  ;;  %1258 = vmatmul.bf16.gmra.mxu1 %v2788_v37 }
  0x58   :  { %1418 = vmatmul.bf16.gmra.mxu2 %v2820_v38  ;;  %1578 = vmatmul.bf16.gmra.mxu3 %v2852_v39  ;;  %v2764_v38 = vld [vmem:[#allocation2 + $0x58] sm:$0xff] }
  0x59   :  { %v2796_v39 = vld [vmem:[#allocation2 + $0x158] sm:$0xff] }
  0x67   :  { %1103 = vmatmul.bf16.gmra.mxu0 %v2757_v40  ;;  %1263 = vmatmul.bf16.gmra.mxu1 %v2789_v41 }
  0x68   :  { %1423 = vmatmul.bf16.gmra.mxu2 %v2821_v42  ;;  %1583 = vmatmul.bf16.gmra.mxu3 %v2853_v43 }
  0x77   :  { %1108 = vmatmul.bf16.gmra.mxu0 %v2758_v44  ;;  %1268 = vmatmul.bf16.gmra.mxu1 %v2790_v45  ;;  %v2828_v44 = vld [vmem:[#allocation2 + $0x258] sm:$0xff] }
  0x78   :  { %1428 = vmatmul.bf16.gmra.mxu2 %v2822_v46  ;;  %1588 = vmatmul.bf16.gmra.mxu3 %v2854_v47  ;;  %v2860_v45 = vld [vmem:[#allocation2 + $0x358] sm:$0xff] }
  0x87   :  { %1113 = vmatmul.bf16.gmra.mxu0 %v2759_v48  ;;  %1273 = vmatmul.bf16.gmra.mxu1 %v2791_v49 }
  0x88   :  { %1433 = vmatmul.bf16.gmra.mxu2 %v2823_v50  ;;  %1593 = vmatmul.bf16.gmra.mxu3 %v2855_v51 }
  0x97   :  { %1118 = vmatmul.bf16.gmra.mxu0 %v2760_v52  ;;  %1278 = vmatmul.bf16.gmra.mxu1 %v2792_v53 }
  0x98   :  { %1438 = vmatmul.bf16.gmra.mxu2 %v2824_v54  ;;  %1598 = vmatmul.bf16.gmra.mxu3 %v2856_v55  ;;  %v2765_v54 = vld [vmem:[#allocation2 + $0x60] sm:$0xff] }
  0x99   :  { %v2797_v55 = vld [vmem:[#allocation2 + $0x160] sm:$0xff] }
  0xa4   :  { %v1084_v58 = vpop.f32.mrf.mxu0  ;;  %v1244_v59 = vpop.f32.mrf.mxu1 }
  0xa7   :  { %1123 = vmatmul.bf16.gmra.mxu0 %v2761_v56  ;;  %1283 = vmatmul.bf16.gmra.mxu1 %v2793_v57 }
  0xa8   :  { %1443 = vmatmul.bf16.gmra.mxu2 %v2825_v60  ;;  %1603 = vmatmul.bf16.gmra.mxu3 %v2857_v61  ;;  %v2829_v60 = vld [vmem:[#allocation2 + $0x260] sm:$0xff] }
  0xa9   :  { %v2861_v61 = vld [vmem:[#allocation2 + $0x360] sm:$0xff] }
  0xab   :  { %v1404_v62 = vpop.f32.mrf.mxu2  ;;  %v1564_v63 = vpop.f32.mrf.mxu3 }
  0xac   :  { %v1086_v0 = vpop.f32.mrf.mxu0  ;;  %v1246_v1 = vpop.f32.mrf.mxu1 }
  0xad   :  { %v2884_v2 = vpack.c.bf16 %v1086_v0, %v1084_v58  ;;  %v3044_v3 = vpack.c.bf16 %v1246_v1, %v1244_v59 }
  0xaf   :  { %2885 = vst [vmem:[%s4156_s2] sm:$0xff] %v2884_v2  }
  0xb0   :  { %3552 = vst [vmem:[%s4156_s2 + $0x100] sm:$0xff] %v3044_v3  }
  0xb3   :  { %v1406_v4 = vpop.f32.mrf.mxu2  ;;  %v1566_v5 = vpop.f32.mrf.mxu3 }
  0xb4   :  { %v3204_v8 = vpack.c.bf16 %v1406_v4, %v1404_v62  ;;  %v3364_v9 = vpack.c.bf16 %v1566_v5, %v1564_v63  ;;  %v1089_v10 = vpop.f32.mrf.mxu0  ;;  %v1249_v11 = vpop.f32.mrf.mxu1 }
  0xb6   :  { %3584 = vst [vmem:[%s4156_s2 + $0x200] sm:$0xff] %v3204_v8  }
  0xb7   :  { %3616 = vst [vmem:[%s4156_s2 + $0x300] sm:$0xff] %v3364_v9   ;;  %1128 = vmatmul.bf16.gmra.mxu0 %v2762_v6  ;;  %1288 = vmatmul.bf16.gmra.mxu1 %v2794_v7  ;;  %v2766_v6 = vld [vmem:[#allocation2 + $0x68] sm:$0xff] }
  0xb8   :  { %1448 = vmatmul.bf16.gmra.mxu2 %v2826_v12  ;;  %1608 = vmatmul.bf16.gmra.mxu3 %v2858_v13  ;;  %v2798_v7 = vld [vmem:[#allocation2 + $0x168] sm:$0xff] }
  0xb9   :  { %v2830_v12 = vld [vmem:[#allocation2 + $0x268] sm:$0xff] }
  0xba   :  { %v2862_v13 = vld [vmem:[#allocation2 + $0x368] sm:$0xff] }
  0xbb   :  { %v1409_v14 = vpop.f32.mrf.mxu2  ;;  %v1569_v15 = vpop.f32.mrf.mxu3 }
  0xbc   :  { %v1091_v16 = vpop.f32.mrf.mxu0  ;;  %v1251_v17 = vpop.f32.mrf.mxu1 }
  0xbd   :  { %v2889_v18 = vpack.c.bf16 %v1091_v16, %v1089_v10  ;;  %v3049_v19 = vpack.c.bf16 %v1251_v17, %v1249_v11 }
  0xbf   :  { %3521 = vst [vmem:[%s4156_s2 + $0x8] sm:$0xff] %v2889_v18  }
  0xc0   :  { %3553 = vst [vmem:[%s4156_s2 + $0x108] sm:$0xff] %v3049_v19  }
  0xc3   :  { %v1411_v20 = vpop.f32.mrf.mxu2  ;;  %v1571_v21 = vpop.f32.mrf.mxu3 }
  0xc4   :  { %v3209_v24 = vpack.c.bf16 %v1411_v20, %v1409_v14  ;;  %v3369_v25 = vpack.c.bf16 %v1571_v21, %v1569_v15  ;;  %v1094_v26 = vpop.f32.mrf.mxu0  ;;  %v1254_v27 = vpop.f32.mrf.mxu1 }
  0xc6   :  { %3585 = vst [vmem:[%s4156_s2 + $0x208] sm:$0xff] %v3209_v24  }
  0xc7   :  { %3617 = vst [vmem:[%s4156_s2 + $0x308] sm:$0xff] %v3369_v25   ;;  %1133 = vmatmul.bf16.gmra.mxu0 %v2763_v22  ;;  %1293 = vmatmul.bf16.gmra.mxu1 %v2795_v23  ;;  %v2767_v22 = vld [vmem:[#allocation2 + $0x70] sm:$0xff] }
  0xc8   :  { %1453 = vmatmul.bf16.gmra.mxu2 %v2827_v28  ;;  %1613 = vmatmul.bf16.gmra.mxu3 %v2859_v29  ;;  %v2799_v23 = vld [vmem:[#allocation2 + $0x170] sm:$0xff] }
  0xc9   :  { %v2831_v28 = vld [vmem:[#allocation2 + $0x270] sm:$0xff] }
  0xca   :  { %v2863_v29 = vld [vmem:[#allocation2 + $0x370] sm:$0xff] }
  0xcb   :  { %v1414_v30 = vpop.f32.mrf.mxu2  ;;  %v1574_v31 = vpop.f32.mrf.mxu3 }
  0xcc   :  { %v1096_v32 = vpop.f32.mrf.mxu0  ;;  %v1256_v33 = vpop.f32.mrf.mxu1 }
  0xcd   :  { %v2894_v34 = vpack.c.bf16 %v1096_v32, %v1094_v26  ;;  %v3054_v35 = vpack.c.bf16 %v1256_v33, %v1254_v27 }
  0xcf   :  { %3522 = vst [vmem:[%s4156_s2 + $0x10] sm:$0xff] %v2894_v34  }
  0xd0   :  { %3554 = vst [vmem:[%s4156_s2 + $0x110] sm:$0xff] %v3054_v35  }
  0xd3   :  { %v1416_v36 = vpop.f32.mrf.mxu2  ;;  %v1576_v37 = vpop.f32.mrf.mxu3 }
  0xd4   :  { %v3214_v40 = vpack.c.bf16 %v1416_v36, %v1414_v30  ;;  %v3374_v41 = vpack.c.bf16 %v1576_v37, %v1574_v31  ;;  %v1099_v42 = vpop.f32.mrf.mxu0  ;;  %v1259_v43 = vpop.f32.mrf.mxu1 }
  0xd6   :  { %3586 = vst [vmem:[%s4156_s2 + $0x210] sm:$0xff] %v3214_v40  }
  0xd7   :  { %3618 = vst [vmem:[%s4156_s2 + $0x310] sm:$0xff] %v3374_v41   ;;  %1138 = vmatmul.bf16.gmra.mxu0 %v2764_v38  ;;  %1298 = vmatmul.bf16.gmra.mxu1 %v2796_v39  ;;  %v2768_v38 = vld [vmem:[#allocation2 + $0x78] sm:$0xff] }
  0xd8   :  { %1458 = vmatmul.bf16.gmra.mxu2 %v2828_v44  ;;  %1618 = vmatmul.bf16.gmra.mxu3 %v2860_v45  ;;  %v2800_v39 = vld [vmem:[#allocation2 + $0x178] sm:$0xff] }
  0xd9   :  { %v2832_v44 = vld [vmem:[#allocation2 + $0x278] sm:$0xff] }
  0xda   :  { %v2864_v45 = vld [vmem:[#allocation2 + $0x378] sm:$0xff] }
  0xdb   :  { %v1419_v46 = vpop.f32.mrf.mxu2  ;;  %v1579_v47 = vpop.f32.mrf.mxu3 }
  0xdc   :  { %v1101_v48 = vpop.f32.mrf.mxu0  ;;  %v1261_v49 = vpop.f32.mrf.mxu1 }
  0xdd   :  { %v2899_v50 = vpack.c.bf16 %v1101_v48, %v1099_v42  ;;  %v3059_v51 = vpack.c.bf16 %v1261_v49, %v1259_v43 }
  0xdf   :  { %3523 = vst [vmem:[%s4156_s2 + $0x18] sm:$0xff] %v2899_v50  }
  0xe0   :  { %3555 = vst [vmem:[%s4156_s2 + $0x118] sm:$0xff] %v3059_v51  }
  0xe3   :  { %v1421_v52 = vpop.f32.mrf.mxu2  ;;  %v1581_v53 = vpop.f32.mrf.mxu3 }
  0xe4   :  { %v3219_v56 = vpack.c.bf16 %v1421_v52, %v1419_v46  ;;  %v3379_v57 = vpack.c.bf16 %v1581_v53, %v1579_v47  ;;  %v1104_v58 = vpop.f32.mrf.mxu0  ;;  %v1264_v59 = vpop.f32.mrf.mxu1 }
  0xe6   :  { %3587 = vst [vmem:[%s4156_s2 + $0x218] sm:$0xff] %v3219_v56  }
  0xe7   :  { %3619 = vst [vmem:[%s4156_s2 + $0x318] sm:$0xff] %v3379_v57   ;;  %1143 = vmatmul.bf16.gmra.mxu0 %v2765_v54  ;;  %1303 = vmatmul.bf16.gmra.mxu1 %v2797_v55  ;;  %v2769_v54 = vld [vmem:[#allocation2 + $0x80] sm:$0xff] }
  0xe8   :  { %1463 = vmatmul.bf16.gmra.mxu2 %v2829_v60  ;;  %1623 = vmatmul.bf16.gmra.mxu3 %v2861_v61  ;;  %v2801_v55 = vld [vmem:[#allocation2 + $0x180] sm:$0xff] }
  0xe9   :  { %v2833_v60 = vld [vmem:[#allocation2 + $0x280] sm:$0xff] }
  0xea   :  { %v2865_v61 = vld [vmem:[#allocation2 + $0x380] sm:$0xff] }
  0xeb   :  { %v1424_v62 = vpop.f32.mrf.mxu2  ;;  %v1584_v63 = vpop.f32.mrf.mxu3 }
  0xec   :  { %v1106_v0 = vpop.f32.mrf.mxu0  ;;  %v1266_v1 = vpop.f32.mrf.mxu1 }
  0xed   :  { %v2904_v2 = vpack.c.bf16 %v1106_v0, %v1104_v58  ;;  %v3064_v3 = vpack.c.bf16 %v1266_v1, %v1264_v59 }
  0xef   :  { %3524 = vst [vmem:[%s4156_s2 + $0x20] sm:$0xff] %v2904_v2  }
  0xf0   :  { %3556 = vst [vmem:[%s4156_s2 + $0x120] sm:$0xff] %v3064_v3  }
  0xf3   :  { %v1426_v4 = vpop.f32.mrf.mxu2  ;;  %v1586_v5 = vpop.f32.mrf.mxu3 }
  0xf4   :  { %v3224_v8 = vpack.c.bf16 %v1426_v4, %v1424_v62  ;;  %v3384_v9 = vpack.c.bf16 %v1586_v5, %v1584_v63  ;;  %v1109_v10 = vpop.f32.mrf.mxu0  ;;  %v1269_v11 = vpop.f32.mrf.mxu1 }
  0xf6   :  { %3588 = vst [vmem:[%s4156_s2 + $0x220] sm:$0xff] %v3224_v8  }
  0xf7   :  { %3620 = vst [vmem:[%s4156_s2 + $0x320] sm:$0xff] %v3384_v9   ;;  %1148 = vmatmul.bf16.gmra.mxu0 %v2766_v6  ;;  %1308 = vmatmul.bf16.gmra.mxu1 %v2798_v7  ;;  %v2770_v6 = vld [vmem:[#allocation2 + $0x88] sm:$0xff] }
  0xf8   :  { %1468 = vmatmul.bf16.gmra.mxu2 %v2830_v12  ;;  %1628 = vmatmul.bf16.gmra.mxu3 %v2862_v13  ;;  %v2802_v7 = vld [vmem:[#allocation2 + $0x188] sm:$0xff] }
  0xf9   :  { %v2834_v12 = vld [vmem:[#allocation2 + $0x288] sm:$0xff] }
  0xfa   :  { %v2866_v13 = vld [vmem:[#allocation2 + $0x388] sm:$0xff] }
  0xfb   :  { %v1429_v14 = vpop.f32.mrf.mxu2  ;;  %v1589_v15 = vpop.f32.mrf.mxu3 }
  0xfc   :  { %v1111_v16 = vpop.f32.mrf.mxu0  ;;  %v1271_v17 = vpop.f32.mrf.mxu1 }
  0xfd   :  { %v2909_v18 = vpack.c.bf16 %v1111_v16, %v1109_v10  ;;  %v3069_v19 = vpack.c.bf16 %v1271_v17, %v1269_v11 }
  0xff   :  { %3525 = vst [vmem:[%s4156_s2 + $0x28] sm:$0xff] %v2909_v18  }
 0x100   :  { %3557 = vst [vmem:[%s4156_s2 + $0x128] sm:$0xff] %v3069_v19  }
 0x103   :  { %v1431_v20 = vpop.f32.mrf.mxu2  ;;  %v1591_v21 = vpop.f32.mrf.mxu3 }
 0x104   :  { %v3229_v24 = vpack.c.bf16 %v1431_v20, %v1429_v14  ;;  %v3389_v25 = vpack.c.bf16 %v1591_v21, %v1589_v15  ;;  %v1114_v26 = vpop.f32.mrf.mxu0  ;;  %v1274_v27 = vpop.f32.mrf.mxu1 }
 0x106   :  { %3589 = vst [vmem:[%s4156_s2 + $0x228] sm:$0xff] %v3229_v24  }
 0x107   :  { %3621 = vst [vmem:[%s4156_s2 + $0x328] sm:$0xff] %v3389_v25   ;;  %1153 = vmatmul.bf16.gmra.mxu0 %v2767_v22  ;;  %1313 = vmatmul.bf16.gmra.mxu1 %v2799_v23  ;;  %v2771_v22 = vld [vmem:[#allocation2 + $0x90] sm:$0xff] }
 0x108   :  { %1473 = vmatmul.bf16.gmra.mxu2 %v2831_v28  ;;  %1633 = vmatmul.bf16.gmra.mxu3 %v2863_v29  ;;  %v2803_v23 = vld [vmem:[#allocation2 + $0x190] sm:$0xff] }
 0x109   :  { %v2835_v28 = vld [vmem:[#allocation2 + $0x290] sm:$0xff] }
 0x10a   :  { %v2867_v29 = vld [vmem:[#allocation2 + $0x390] sm:$0xff] }
 0x10b   :  { %v1434_v30 = vpop.f32.mrf.mxu2  ;;  %v1594_v31 = vpop.f32.mrf.mxu3 }
 0x10c   :  { %v1116_v32 = vpop.f32.mrf.mxu0  ;;  %v1276_v33 = vpop.f32.mrf.mxu1 }
 0x10d   :  { %v2914_v34 = vpack.c.bf16 %v1116_v32, %v1114_v26  ;;  %v3074_v35 = vpack.c.bf16 %v1276_v33, %v1274_v27 }
 0x10f   :  { %3526 = vst [vmem:[%s4156_s2 + $0x30] sm:$0xff] %v2914_v34  }
 0x110   :  { %3558 = vst [vmem:[%s4156_s2 + $0x130] sm:$0xff] %v3074_v35  }
 0x113   :  { %v1436_v36 = vpop.f32.mrf.mxu2  ;;  %v1596_v37 = vpop.f32.mrf.mxu3 }
 0x114   :  { %v3234_v40 = vpack.c.bf16 %v1436_v36, %v1434_v30  ;;  %v3394_v41 = vpack.c.bf16 %v1596_v37, %v1594_v31  ;;  %v1119_v42 = vpop.f32.mrf.mxu0  ;;  %v1279_v43 = vpop.f32.mrf.mxu1 }
 0x116   :  { %3590 = vst [vmem:[%s4156_s2 + $0x230] sm:$0xff] %v3234_v40  }
 0x117   :  { %3622 = vst [vmem:[%s4156_s2 + $0x330] sm:$0xff] %v3394_v41   ;;  %1158 = vmatmul.bf16.gmra.mxu0 %v2768_v38  ;;  %1318 = vmatmul.bf16.gmra.mxu1 %v2800_v39  ;;  %v2772_v38 = vld [vmem:[#allocation2 + $0x98] sm:$0xff] }
 0x118   :  { %1478 = vmatmul.bf16.gmra.mxu2 %v2832_v44  ;;  %1638 = vmatmul.bf16.gmra.mxu3 %v2864_v45  ;;  %v2804_v39 = vld [vmem:[#allocation2 + $0x198] sm:$0xff] }
 0x119   :  { %v2836_v44 = vld [vmem:[#allocation2 + $0x298] sm:$0xff] }
 0x11a   :  { %v2868_v45 = vld [vmem:[#allocation2 + $0x398] sm:$0xff] }
 0x11b   :  { %v1439_v46 = vpop.f32.mrf.mxu2  ;;  %v1599_v47 = vpop.f32.mrf.mxu3 }
 0x11c   :  { %v1121_v48 = vpop.f32.mrf.mxu0  ;;  %v1281_v49 = vpop.f32.mrf.mxu1 }
 0x11d   :  { %v2919_v50 = vpack.c.bf16 %v1121_v48, %v1119_v42  ;;  %v3079_v51 = vpack.c.bf16 %v1281_v49, %v1279_v43 }
 0x11f   :  { %3527 = vst [vmem:[%s4156_s2 + $0x38] sm:$0xff] %v2919_v50  }
 0x120   :  { %3559 = vst [vmem:[%s4156_s2 + $0x138] sm:$0xff] %v3079_v51  }
 0x123   :  { %v1441_v52 = vpop.f32.mrf.mxu2  ;;  %v1601_v53 = vpop.f32.mrf.mxu3 }
 0x124   :  { %v3239_v56 = vpack.c.bf16 %v1441_v52, %v1439_v46  ;;  %v3399_v57 = vpack.c.bf16 %v1601_v53, %v1599_v47  ;;  %v1124_v58 = vpop.f32.mrf.mxu0  ;;  %v1284_v59 = vpop.f32.mrf.mxu1 }
 0x126   :  { %3591 = vst [vmem:[%s4156_s2 + $0x238] sm:$0xff] %v3239_v56  }
 0x127   :  { %3623 = vst [vmem:[%s4156_s2 + $0x338] sm:$0xff] %v3399_v57   ;;  %1163 = vmatmul.bf16.gmra.mxu0 %v2769_v54  ;;  %1323 = vmatmul.bf16.gmra.mxu1 %v2801_v55  ;;  %v2773_v54 = vld [vmem:[#allocation2 + $0xa0] sm:$0xff] }
 0x128   :  { %1483 = vmatmul.bf16.gmra.mxu2 %v2833_v60  ;;  %1643 = vmatmul.bf16.gmra.mxu3 %v2865_v61  ;;  %v2805_v55 = vld [vmem:[#allocation2 + $0x1a0] sm:$0xff] }
 0x129   :  { %v2837_v60 = vld [vmem:[#allocation2 + $0x2a0] sm:$0xff] }
 0x12a   :  { %v2869_v61 = vld [vmem:[#allocation2 + $0x3a0] sm:$0xff] }
 0x12b   :  { %v1444_v62 = vpop.f32.mrf.mxu2  ;;  %v1604_v63 = vpop.f32.mrf.mxu3 }
 0x12c   :  { %v1126_v0 = vpop.f32.mrf.mxu0  ;;  %v1286_v1 = vpop.f32.mrf.mxu1 }
 0x12d   :  { %v2924_v2 = vpack.c.bf16 %v1126_v0, %v1124_v58  ;;  %v3084_v3 = vpack.c.bf16 %v1286_v1, %v1284_v59 }
 0x12f   :  { %3528 = vst [vmem:[%s4156_s2 + $0x40] sm:$0xff] %v2924_v2  }
 0x130   :  { %3560 = vst [vmem:[%s4156_s2 + $0x140] sm:$0xff] %v3084_v3  }
 0x133   :  { %v1446_v4 = vpop.f32.mrf.mxu2  ;;  %v1606_v5 = vpop.f32.mrf.mxu3 }
 0x134   :  { %v3244_v8 = vpack.c.bf16 %v1446_v4, %v1444_v62  ;;  %v3404_v9 = vpack.c.bf16 %v1606_v5, %v1604_v63  ;;  %v1129_v10 = vpop.f32.mrf.mxu0  ;;  %v1289_v11 = vpop.f32.mrf.mxu1 }
 0x136   :  { %3592 = vst [vmem:[%s4156_s2 + $0x240] sm:$0xff] %v3244_v8  }
 0x137   :  { %3624 = vst [vmem:[%s4156_s2 + $0x340] sm:$0xff] %v3404_v9   ;;  %1168 = vmatmul.bf16.gmra.mxu0 %v2770_v6  ;;  %1328 = vmatmul.bf16.gmra.mxu1 %v2802_v7  ;;  %v2774_v6 = vld [vmem:[#allocation2 + $0xa8] sm:$0xff] }
 0x138   :  { %1488 = vmatmul.bf16.gmra.mxu2 %v2834_v12  ;;  %1648 = vmatmul.bf16.gmra.mxu3 %v2866_v13  ;;  %v2806_v7 = vld [vmem:[#allocation2 + $0x1a8] sm:$0xff] }
 0x139   :  { %v2838_v12 = vld [vmem:[#allocation2 + $0x2a8] sm:$0xff] }
 0x13a   :  { %v2870_v13 = vld [vmem:[#allocation2 + $0x3a8] sm:$0xff] }
 0x13b   :  { %v1449_v14 = vpop.f32.mrf.mxu2  ;;  %v1609_v15 = vpop.f32.mrf.mxu3 }
 0x13c   :  { %v1131_v16 = vpop.f32.mrf.mxu0  ;;  %v1291_v17 = vpop.f32.mrf.mxu1 }
 0x13d   :  { %v2929_v18 = vpack.c.bf16 %v1131_v16, %v1129_v10  ;;  %v3089_v19 = vpack.c.bf16 %v1291_v17, %v1289_v11 }
 0x13f   :  { %3529 = vst [vmem:[%s4156_s2 + $0x48] sm:$0xff] %v2929_v18  }
 0x140   :  { %3561 = vst [vmem:[%s4156_s2 + $0x148] sm:$0xff] %v3089_v19  }
 0x143   :  { %v1451_v20 = vpop.f32.mrf.mxu2  ;;  %v1611_v21 = vpop.f32.mrf.mxu3 }
 0x144   :  { %v3249_v24 = vpack.c.bf16 %v1451_v20, %v1449_v14  ;;  %v3409_v25 = vpack.c.bf16 %v1611_v21, %v1609_v15  ;;  %v1134_v26 = vpop.f32.mrf.mxu0  ;;  %v1294_v27 = vpop.f32.mrf.mxu1 }
 0x146   :  { %3593 = vst [vmem:[%s4156_s2 + $0x248] sm:$0xff] %v3249_v24  }
 0x147   :  { %3625 = vst [vmem:[%s4156_s2 + $0x348] sm:$0xff] %v3409_v25   ;;  %1173 = vmatmul.bf16.gmra.mxu0 %v2771_v22  ;;  %1333 = vmatmul.bf16.gmra.mxu1 %v2803_v23  ;;  %v2775_v22 = vld [vmem:[#allocation2 + $0xb0] sm:$0xff] }
 0x148   :  { %1493 = vmatmul.bf16.gmra.mxu2 %v2835_v28  ;;  %1653 = vmatmul.bf16.gmra.mxu3 %v2867_v29  ;;  %v2807_v23 = vld [vmem:[#allocation2 + $0x1b0] sm:$0xff] }
 0x149   :  { %v2839_v28 = vld [vmem:[#allocation2 + $0x2b0] sm:$0xff] }
 0x14a   :  { %v2871_v29 = vld [vmem:[#allocation2 + $0x3b0] sm:$0xff] }
 0x14b   :  { %v1454_v30 = vpop.f32.mrf.mxu2  ;;  %v1614_v31 = vpop.f32.mrf.mxu3 }
 0x14c   :  { %v1136_v32 = vpop.f32.mrf.mxu0  ;;  %v1296_v33 = vpop.f32.mrf.mxu1 }
 0x14d   :  { %v2934_v34 = vpack.c.bf16 %v1136_v32, %v1134_v26  ;;  %v3094_v35 = vpack.c.bf16 %v1296_v33, %v1294_v27 }
 0x14f   :  { %3530 = vst [vmem:[%s4156_s2 + $0x50] sm:$0xff] %v2934_v34  }
 0x150   :  { %3562 = vst [vmem:[%s4156_s2 + $0x150] sm:$0xff] %v3094_v35  }
 0x153   :  { %v1456_v36 = vpop.f32.mrf.mxu2  ;;  %v1616_v37 = vpop.f32.mrf.mxu3 }
 0x154   :  { %v3254_v40 = vpack.c.bf16 %v1456_v36, %v1454_v30  ;;  %v3414_v41 = vpack.c.bf16 %v1616_v37, %v1614_v31  ;;  %v1139_v42 = vpop.f32.mrf.mxu0  ;;  %v1299_v43 = vpop.f32.mrf.mxu1 }
 0x156   :  { %3594 = vst [vmem:[%s4156_s2 + $0x250] sm:$0xff] %v3254_v40  }
 0x157   :  { %3626 = vst [vmem:[%s4156_s2 + $0x350] sm:$0xff] %v3414_v41   ;;  %1178 = vmatmul.bf16.gmra.mxu0 %v2772_v38  ;;  %1338 = vmatmul.bf16.gmra.mxu1 %v2804_v39  ;;  %v2776_v38 = vld [vmem:[#allocation2 + $0xb8] sm:$0xff] }
 0x158   :  { %1498 = vmatmul.bf16.gmra.mxu2 %v2836_v44  ;;  %1658 = vmatmul.bf16.gmra.mxu3 %v2868_v45  ;;  %v2808_v39 = vld [vmem:[#allocation2 + $0x1b8] sm:$0xff] }
 0x159   :  { %v2840_v44 = vld [vmem:[#allocation2 + $0x2b8] sm:$0xff] }
 0x15a   :  { %v2872_v45 = vld [vmem:[#allocation2 + $0x3b8] sm:$0xff] }
 0x15b   :  { %v1459_v46 = vpop.f32.mrf.mxu2  ;;  %v1619_v47 = vpop.f32.mrf.mxu3 }
 0x15c   :  { %v1141_v48 = vpop.f32.mrf.mxu0  ;;  %v1301_v49 = vpop.f32.mrf.mxu1 }
 0x15d   :  { %v2939_v50 = vpack.c.bf16 %v1141_v48, %v1139_v42  ;;  %v3099_v51 = vpack.c.bf16 %v1301_v49, %v1299_v43 }
 0x15f   :  { %3531 = vst [vmem:[%s4156_s2 + $0x58] sm:$0xff] %v2939_v50  }
 0x160   :  { %3563 = vst [vmem:[%s4156_s2 + $0x158] sm:$0xff] %v3099_v51  }
 0x163   :  { %v1461_v52 = vpop.f32.mrf.mxu2  ;;  %v1621_v53 = vpop.f32.mrf.mxu3 }
 0x164   :  { %v3259_v56 = vpack.c.bf16 %v1461_v52, %v1459_v46  ;;  %v3419_v57 = vpack.c.bf16 %v1621_v53, %v1619_v47  ;;  %v1144_v58 = vpop.f32.mrf.mxu0  ;;  %v1304_v59 = vpop.f32.mrf.mxu1 }
 0x166   :  { %3595 = vst [vmem:[%s4156_s2 + $0x258] sm:$0xff] %v3259_v56  }
 0x167   :  { %3627 = vst [vmem:[%s4156_s2 + $0x358] sm:$0xff] %v3419_v57   ;;  %1183 = vmatmul.bf16.gmra.mxu0 %v2773_v54  ;;  %1343 = vmatmul.bf16.gmra.mxu1 %v2805_v55  ;;  %v2777_v54 = vld [vmem:[#allocation2 + $0xc0] sm:$0xff] }
 0x168   :  { %1503 = vmatmul.bf16.gmra.mxu2 %v2837_v60  ;;  %1663 = vmatmul.bf16.gmra.mxu3 %v2869_v61  ;;  %v2809_v55 = vld [vmem:[#allocation2 + $0x1c0] sm:$0xff] }
 0x169   :  { %v2841_v60 = vld [vmem:[#allocation2 + $0x2c0] sm:$0xff] }
 0x16a   :  { %v2873_v61 = vld [vmem:[#allocation2 + $0x3c0] sm:$0xff] }
 0x16b   :  { %v1464_v62 = vpop.f32.mrf.mxu2  ;;  %v1624_v63 = vpop.f32.mrf.mxu3 }
 0x16c   :  { %v1146_v0 = vpop.f32.mrf.mxu0  ;;  %v1306_v1 = vpop.f32.mrf.mxu1 }
 0x16d   :  { %v2944_v2 = vpack.c.bf16 %v1146_v0, %v1144_v58  ;;  %v3104_v3 = vpack.c.bf16 %v1306_v1, %v1304_v59 }
 0x16f   :  { %3532 = vst [vmem:[%s4156_s2 + $0x60] sm:$0xff] %v2944_v2  }
 0x170   :  { %3564 = vst [vmem:[%s4156_s2 + $0x160] sm:$0xff] %v3104_v3  }
 0x173   :  { %v1466_v4 = vpop.f32.mrf.mxu2  ;;  %v1626_v5 = vpop.f32.mrf.mxu3 }
 0x174   :  { %v3264_v8 = vpack.c.bf16 %v1466_v4, %v1464_v62  ;;  %v3424_v9 = vpack.c.bf16 %v1626_v5, %v1624_v63  ;;  %v1149_v10 = vpop.f32.mrf.mxu0  ;;  %v1309_v11 = vpop.f32.mrf.mxu1 }
 0x176   :  { %3596 = vst [vmem:[%s4156_s2 + $0x260] sm:$0xff] %v3264_v8  }
 0x177   :  { %3628 = vst [vmem:[%s4156_s2 + $0x360] sm:$0xff] %v3424_v9   ;;  %1188 = vmatmul.bf16.gmra.mxu0 %v2774_v6  ;;  %1348 = vmatmul.bf16.gmra.mxu1 %v2806_v7  ;;  %v2778_v6 = vld [vmem:[#allocation2 + $0xc8] sm:$0xff] }
 0x178   :  { %1508 = vmatmul.bf16.gmra.mxu2 %v2838_v12  ;;  %1668 = vmatmul.bf16.gmra.mxu3 %v2870_v13  ;;  %v2810_v7 = vld [vmem:[#allocation2 + $0x1c8] sm:$0xff] }
 0x179   :  { %v2842_v12 = vld [vmem:[#allocation2 + $0x2c8] sm:$0xff] }
 0x17a   :  { %v2874_v13 = vld [vmem:[#allocation2 + $0x3c8] sm:$0xff] }
 0x17b   :  { %v1469_v14 = vpop.f32.mrf.mxu2  ;;  %v1629_v15 = vpop.f32.mrf.mxu3 }
 0x17c   :  { %v1151_v16 = vpop.f32.mrf.mxu0  ;;  %v1311_v17 = vpop.f32.mrf.mxu1 }
 0x17d   :  { %v2949_v18 = vpack.c.bf16 %v1151_v16, %v1149_v10  ;;  %v3109_v19 = vpack.c.bf16 %v1311_v17, %v1309_v11 }
 0x17f   :  { %3533 = vst [vmem:[%s4156_s2 + $0x68] sm:$0xff] %v2949_v18  }
 0x180   :  { %3565 = vst [vmem:[%s4156_s2 + $0x168] sm:$0xff] %v3109_v19  }
 0x183   :  { %v1471_v20 = vpop.f32.mrf.mxu2  ;;  %v1631_v21 = vpop.f32.mrf.mxu3 }
 0x184   :  { %v3269_v24 = vpack.c.bf16 %v1471_v20, %v1469_v14  ;;  %v3429_v25 = vpack.c.bf16 %v1631_v21, %v1629_v15  ;;  %v1154_v26 = vpop.f32.mrf.mxu0  ;;  %v1314_v27 = vpop.f32.mrf.mxu1 }
 0x186   :  { %3597 = vst [vmem:[%s4156_s2 + $0x268] sm:$0xff] %v3269_v24  }
 0x187   :  { %3629 = vst [vmem:[%s4156_s2 + $0x368] sm:$0xff] %v3429_v25   ;;  %1193 = vmatmul.bf16.gmra.mxu0 %v2775_v22  ;;  %1353 = vmatmul.bf16.gmra.mxu1 %v2807_v23  ;;  %v2779_v22 = vld [vmem:[#allocation2 + $0xd0] sm:$0xff] }
 0x188   :  { %1513 = vmatmul.bf16.gmra.mxu2 %v2839_v28  ;;  %1673 = vmatmul.bf16.gmra.mxu3 %v2871_v29  ;;  %v2811_v23 = vld [vmem:[#allocation2 + $0x1d0] sm:$0xff] }
 0x189   :  { %v2843_v28 = vld [vmem:[#allocation2 + $0x2d0] sm:$0xff] }
 0x18a   :  { %v2875_v29 = vld [vmem:[#allocation2 + $0x3d0] sm:$0xff] }
 0x18b   :  { %v1474_v30 = vpop.f32.mrf.mxu2  ;;  %v1634_v31 = vpop.f32.mrf.mxu3 }
 0x18c   :  { %v1156_v32 = vpop.f32.mrf.mxu0  ;;  %v1316_v33 = vpop.f32.mrf.mxu1 }
 0x18d   :  { %v2954_v34 = vpack.c.bf16 %v1156_v32, %v1154_v26  ;;  %v3114_v35 = vpack.c.bf16 %v1316_v33, %v1314_v27 }
 0x18f   :  { %3534 = vst [vmem:[%s4156_s2 + $0x70] sm:$0xff] %v2954_v34  }
 0x190   :  { %3566 = vst [vmem:[%s4156_s2 + $0x170] sm:$0xff] %v3114_v35  }
 0x193   :  { %v1476_v36 = vpop.f32.mrf.mxu2  ;;  %v1636_v37 = vpop.f32.mrf.mxu3 }
 0x194   :  { %v3274_v40 = vpack.c.bf16 %v1476_v36, %v1474_v30  ;;  %v3434_v41 = vpack.c.bf16 %v1636_v37, %v1634_v31  ;;  %v1159_v42 = vpop.f32.mrf.mxu0  ;;  %v1319_v43 = vpop.f32.mrf.mxu1 }
 0x196   :  { %3598 = vst [vmem:[%s4156_s2 + $0x270] sm:$0xff] %v3274_v40  }
 0x197   :  { %3630 = vst [vmem:[%s4156_s2 + $0x370] sm:$0xff] %v3434_v41   ;;  %1198 = vmatmul.bf16.gmra.mxu0 %v2776_v38  ;;  %1358 = vmatmul.bf16.gmra.mxu1 %v2808_v39  ;;  %v2780_v38 = vld [vmem:[#allocation2 + $0xd8] sm:$0xff] }
 0x198   :  { %1518 = vmatmul.bf16.gmra.mxu2 %v2840_v44  ;;  %1678 = vmatmul.bf16.gmra.mxu3 %v2872_v45  ;;  %v2812_v39 = vld [vmem:[#allocation2 + $0x1d8] sm:$0xff] }
 0x199   :  { %v2844_v44 = vld [vmem:[#allocation2 + $0x2d8] sm:$0xff] }
 0x19a   :  { %v2876_v45 = vld [vmem:[#allocation2 + $0x3d8] sm:$0xff] }
 0x19b   :  { %v1479_v46 = vpop.f32.mrf.mxu2  ;;  %v1639_v47 = vpop.f32.mrf.mxu3 }
 0x19c   :  { %v1161_v48 = vpop.f32.mrf.mxu0  ;;  %v1321_v49 = vpop.f32.mrf.mxu1 }
 0x19d   :  { %v2959_v50 = vpack.c.bf16 %v1161_v48, %v1159_v42  ;;  %v3119_v51 = vpack.c.bf16 %v1321_v49, %v1319_v43 }
 0x19f   :  { %3535 = vst [vmem:[%s4156_s2 + $0x78] sm:$0xff] %v2959_v50  }
 0x1a0   :  { %3567 = vst [vmem:[%s4156_s2 + $0x178] sm:$0xff] %v3119_v51  }
 0x1a3   :  { %v1481_v52 = vpop.f32.mrf.mxu2  ;;  %v1641_v53 = vpop.f32.mrf.mxu3 }
 0x1a4   :  { %v3279_v56 = vpack.c.bf16 %v1481_v52, %v1479_v46  ;;  %v3439_v57 = vpack.c.bf16 %v1641_v53, %v1639_v47  ;;  %v1164_v58 = vpop.f32.mrf.mxu0  ;;  %v1324_v59 = vpop.f32.mrf.mxu1 }
 0x1a6   :  { %3599 = vst [vmem:[%s4156_s2 + $0x278] sm:$0xff] %v3279_v56  }
 0x1a7   :  { %3631 = vst [vmem:[%s4156_s2 + $0x378] sm:$0xff] %v3439_v57   ;;  %1203 = vmatmul.bf16.gmra.mxu0 %v2777_v54  ;;  %1363 = vmatmul.bf16.gmra.mxu1 %v2809_v55  ;;  %v2781_v54 = vld [vmem:[#allocation2 + $0xe0] sm:$0xff] }
 0x1a8   :  { %1523 = vmatmul.bf16.gmra.mxu2 %v2841_v60  ;;  %1683 = vmatmul.bf16.gmra.mxu3 %v2873_v61  ;;  %v2813_v55 = vld [vmem:[#allocation2 + $0x1e0] sm:$0xff] }
 0x1a9   :  { %v2845_v60 = vld [vmem:[#allocation2 + $0x2e0] sm:$0xff] }
 0x1aa   :  { %v2877_v61 = vld [vmem:[#allocation2 + $0x3e0] sm:$0xff] }
 0x1ab   :  { %v1484_v62 = vpop.f32.mrf.mxu2  ;;  %v1644_v63 = vpop.f32.mrf.mxu3 }
 0x1ac   :  { %v1166_v0 = vpop.f32.mrf.mxu0  ;;  %v1326_v1 = vpop.f32.mrf.mxu1 }
 0x1ad   :  { %v2964_v2 = vpack.c.bf16 %v1166_v0, %v1164_v58  ;;  %v3124_v3 = vpack.c.bf16 %v1326_v1, %v1324_v59 }
 0x1af   :  { %3536 = vst [vmem:[%s4156_s2 + $0x80] sm:$0xff] %v2964_v2  }
 0x1b0   :  { %3568 = vst [vmem:[%s4156_s2 + $0x180] sm:$0xff] %v3124_v3  }
 0x1b3   :  { %v1486_v4 = vpop.f32.mrf.mxu2  ;;  %v1646_v5 = vpop.f32.mrf.mxu3 }
 0x1b4   :  { %v3284_v8 = vpack.c.bf16 %v1486_v4, %v1484_v62  ;;  %v3444_v9 = vpack.c.bf16 %v1646_v5, %v1644_v63  ;;  %v1169_v10 = vpop.f32.mrf.mxu0  ;;  %v1329_v11 = vpop.f32.mrf.mxu1 }
 0x1b6   :  { %3600 = vst [vmem:[%s4156_s2 + $0x280] sm:$0xff] %v3284_v8  }
 0x1b7   :  { %3632 = vst [vmem:[%s4156_s2 + $0x380] sm:$0xff] %v3444_v9   ;;  %1208 = vmatmul.bf16.gmra.mxu0 %v2778_v6  ;;  %1368 = vmatmul.bf16.gmra.mxu1 %v2810_v7  ;;  %v2782_v6 = vld [vmem:[#allocation2 + $0xe8] sm:$0xff] }
 0x1b8   :  { %1528 = vmatmul.bf16.gmra.mxu2 %v2842_v12  ;;  %1688 = vmatmul.bf16.gmra.mxu3 %v2874_v13  ;;  %v2814_v7 = vld [vmem:[#allocation2 + $0x1e8] sm:$0xff] }
 0x1b9   :  { %v2846_v12 = vld [vmem:[#allocation2 + $0x2e8] sm:$0xff] }
 0x1ba   :  { %v2878_v13 = vld [vmem:[#allocation2 + $0x3e8] sm:$0xff] }
 0x1bb   :  { %v1489_v14 = vpop.f32.mrf.mxu2  ;;  %v1649_v15 = vpop.f32.mrf.mxu3 }
 0x1bc   :  { %v1171_v16 = vpop.f32.mrf.mxu0  ;;  %v1331_v17 = vpop.f32.mrf.mxu1 }
 0x1bd   :  { %v2969_v18 = vpack.c.bf16 %v1171_v16, %v1169_v10  ;;  %v3129_v19 = vpack.c.bf16 %v1331_v17, %v1329_v11 }
 0x1bf   :  { %3537 = vst [vmem:[%s4156_s2 + $0x88] sm:$0xff] %v2969_v18  }
 0x1c0   :  { %3569 = vst [vmem:[%s4156_s2 + $0x188] sm:$0xff] %v3129_v19  }
 0x1c3   :  { %v1491_v20 = vpop.f32.mrf.mxu2  ;;  %v1651_v21 = vpop.f32.mrf.mxu3 }
 0x1c4   :  { %v3289_v24 = vpack.c.bf16 %v1491_v20, %v1489_v14  ;;  %v3449_v25 = vpack.c.bf16 %v1651_v21, %v1649_v15  ;;  %v1174_v26 = vpop.f32.mrf.mxu0  ;;  %v1334_v27 = vpop.f32.mrf.mxu1 }
 0x1c6   :  { %3601 = vst [vmem:[%s4156_s2 + $0x288] sm:$0xff] %v3289_v24  }
 0x1c7   :  { %3633 = vst [vmem:[%s4156_s2 + $0x388] sm:$0xff] %v3449_v25   ;;  %1213 = vmatmul.bf16.gmra.mxu0 %v2779_v22  ;;  %1373 = vmatmul.bf16.gmra.mxu1 %v2811_v23  ;;  %v2783_v22 = vld [vmem:[#allocation2 + $0xf0] sm:$0xff] }
 0x1c8   :  { %1533 = vmatmul.bf16.gmra.mxu2 %v2843_v28  ;;  %1693 = vmatmul.bf16.gmra.mxu3 %v2875_v29  ;;  %v2815_v23 = vld [vmem:[#allocation2 + $0x1f0] sm:$0xff] }
 0x1c9   :  { %v2847_v28 = vld [vmem:[#allocation2 + $0x2f0] sm:$0xff] }
 0x1ca   :  { %v2879_v29 = vld [vmem:[#allocation2 + $0x3f0] sm:$0xff] }
 0x1cb   :  { %v1494_v30 = vpop.f32.mrf.mxu2  ;;  %v1654_v31 = vpop.f32.mrf.mxu3 }
 0x1cc   :  { %v1176_v32 = vpop.f32.mrf.mxu0  ;;  %v1336_v33 = vpop.f32.mrf.mxu1 }
 0x1cd   :  { %v2974_v34 = vpack.c.bf16 %v1176_v32, %v1174_v26  ;;  %v3134_v35 = vpack.c.bf16 %v1336_v33, %v1334_v27 }
 0x1cf   :  { %3538 = vst [vmem:[%s4156_s2 + $0x90] sm:$0xff] %v2974_v34  }
 0x1d0   :  { %3570 = vst [vmem:[%s4156_s2 + $0x190] sm:$0xff] %v3134_v35  }
 0x1d3   :  { %v1496_v36 = vpop.f32.mrf.mxu2  ;;  %v1656_v37 = vpop.f32.mrf.mxu3 }
 0x1d4   :  { %v3294_v40 = vpack.c.bf16 %v1496_v36, %v1494_v30  ;;  %v3454_v41 = vpack.c.bf16 %v1656_v37, %v1654_v31  ;;  %v1179_v42 = vpop.f32.mrf.mxu0  ;;  %v1339_v43 = vpop.f32.mrf.mxu1 }
 0x1d6   :  { %3602 = vst [vmem:[%s4156_s2 + $0x290] sm:$0xff] %v3294_v40  }
 0x1d7   :  { %3634 = vst [vmem:[%s4156_s2 + $0x390] sm:$0xff] %v3454_v41   ;;  %1218 = vmatmul.bf16.gmra.mxu0 %v2780_v38  ;;  %1378 = vmatmul.bf16.gmra.mxu1 %v2812_v39  ;;  %v2784_v38 = vld [vmem:[#allocation2 + $0xf8] sm:$0xff] }
 0x1d8   :  { %1538 = vmatmul.bf16.gmra.mxu2 %v2844_v44  ;;  %1698 = vmatmul.bf16.gmra.mxu3 %v2876_v45  ;;  %v2816_v39 = vld [vmem:[#allocation2 + $0x1f8] sm:$0xff] }
 0x1d9   :  { %v2848_v44 = vld [vmem:[#allocation2 + $0x2f8] sm:$0xff] }
 0x1da   :  { %v2880_v45 = vld [vmem:[#allocation2 + $0x3f8] sm:$0xff] }
 0x1db   :  { %v1499_v46 = vpop.f32.mrf.mxu2  ;;  %v1659_v47 = vpop.f32.mrf.mxu3 }
 0x1dc   :  { %v1181_v48 = vpop.f32.mrf.mxu0  ;;  %v1341_v49 = vpop.f32.mrf.mxu1 }
 0x1dd   :  { %v2979_v50 = vpack.c.bf16 %v1181_v48, %v1179_v42  ;;  %v3139_v51 = vpack.c.bf16 %v1341_v49, %v1339_v43 }
 0x1df   :  { %3539 = vst [vmem:[%s4156_s2 + $0x98] sm:$0xff] %v2979_v50  }
 0x1e0   :  { %3571 = vst [vmem:[%s4156_s2 + $0x198] sm:$0xff] %v3139_v51  }
 0x1e3   :  { %v1501_v52 = vpop.f32.mrf.mxu2  ;;  %v1661_v53 = vpop.f32.mrf.mxu3 }
 0x1e4   :  { %v3299_v56 = vpack.c.bf16 %v1501_v52, %v1499_v46  ;;  %v3459_v57 = vpack.c.bf16 %v1661_v53, %v1659_v47  ;;  %v1184_v58 = vpop.f32.mrf.mxu0  ;;  %v1344_v59 = vpop.f32.mrf.mxu1 }
 0x1e6   :  { %3603 = vst [vmem:[%s4156_s2 + $0x298] sm:$0xff] %v3299_v56  }
 0x1e7   :  { %3635 = vst [vmem:[%s4156_s2 + $0x398] sm:$0xff] %v3459_v57   ;;  %1223 = vmatmul.bf16.gmra.mxu0 %v2781_v54  ;;  %1383 = vmatmul.bf16.gmra.mxu1 %v2813_v55 }
 0x1e8   :  { %1543 = vmatmul.bf16.gmra.mxu2 %v2845_v60  ;;  %1703 = vmatmul.bf16.gmra.mxu3 %v2877_v61 }
 0x1eb   :  { %v1504_v62 = vpop.f32.mrf.mxu2  ;;  %v1664_v63 = vpop.f32.mrf.mxu3 }
 0x1ec   :  { %v1186_v0 = vpop.f32.mrf.mxu0  ;;  %v1346_v1 = vpop.f32.mrf.mxu1 }
 0x1ed   :  { %v2984_v2 = vpack.c.bf16 %v1186_v0, %v1184_v58  ;;  %v3144_v3 = vpack.c.bf16 %v1346_v1, %v1344_v59 }
 0x1ef   :  { %3540 = vst [vmem:[%s4156_s2 + $0xa0] sm:$0xff] %v2984_v2  }
 0x1f0   :  { %3572 = vst [vmem:[%s4156_s2 + $0x1a0] sm:$0xff] %v3144_v3  }
 0x1f3   :  { %v1506_v4 = vpop.f32.mrf.mxu2  ;;  %v1666_v5 = vpop.f32.mrf.mxu3 }
 0x1f4   :  { %v3304_v8 = vpack.c.bf16 %v1506_v4, %v1504_v62  ;;  %v3464_v9 = vpack.c.bf16 %v1666_v5, %v1664_v63  ;;  %v1189_v10 = vpop.f32.mrf.mxu0  ;;  %v1349_v11 = vpop.f32.mrf.mxu1 }
 0x1f6   :  { %3604 = vst [vmem:[%s4156_s2 + $0x2a0] sm:$0xff] %v3304_v8  }
 0x1f7   :  { %3636 = vst [vmem:[%s4156_s2 + $0x3a0] sm:$0xff] %v3464_v9   ;;  %1228 = vmatmul.bf16.gmra.mxu0 %v2782_v6  ;;  %1388 = vmatmul.bf16.gmra.mxu1 %v2814_v7 }
 0x1f8   :  { %1548 = vmatmul.bf16.gmra.mxu2 %v2846_v12  ;;  %1708 = vmatmul.bf16.gmra.mxu3 %v2878_v13 }
 0x1fb   :  { %v1509_v14 = vpop.f32.mrf.mxu2  ;;  %v1669_v15 = vpop.f32.mrf.mxu3 }
 0x1fc   :  { %v1191_v16 = vpop.f32.mrf.mxu0  ;;  %v1351_v17 = vpop.f32.mrf.mxu1 }
 0x1fd   :  { %v2989_v18 = vpack.c.bf16 %v1191_v16, %v1189_v10  ;;  %v3149_v19 = vpack.c.bf16 %v1351_v17, %v1349_v11 }
 0x1ff   :  { %3541 = vst [vmem:[%s4156_s2 + $0xa8] sm:$0xff] %v2989_v18  }
 0x200   :  { %3573 = vst [vmem:[%s4156_s2 + $0x1a8] sm:$0xff] %v3149_v19  }
 0x203   :  { %v1511_v20 = vpop.f32.mrf.mxu2  ;;  %v1671_v21 = vpop.f32.mrf.mxu3 }
 0x204   :  { %v3309_v24 = vpack.c.bf16 %v1511_v20, %v1509_v14  ;;  %v3469_v25 = vpack.c.bf16 %v1671_v21, %v1669_v15  ;;  %v1194_v26 = vpop.f32.mrf.mxu0  ;;  %v1354_v27 = vpop.f32.mrf.mxu1 }
 0x206   :  { %3605 = vst [vmem:[%s4156_s2 + $0x2a8] sm:$0xff] %v3309_v24  }
 0x207   :  { %3637 = vst [vmem:[%s4156_s2 + $0x3a8] sm:$0xff] %v3469_v25   ;;  %1233 = vmatmul.bf16.gmra.mxu0 %v2783_v22  ;;  %1393 = vmatmul.bf16.gmra.mxu1 %v2815_v23 }
 0x208   :  { %1553 = vmatmul.bf16.gmra.mxu2 %v2847_v28  ;;  %1713 = vmatmul.bf16.gmra.mxu3 %v2879_v29 }
 0x20b   :  { %v1514_v30 = vpop.f32.mrf.mxu2  ;;  %v1674_v31 = vpop.f32.mrf.mxu3 }
 0x20c   :  { %v1196_v32 = vpop.f32.mrf.mxu0  ;;  %v1356_v33 = vpop.f32.mrf.mxu1 }
 0x20d   :  { %v2994_v34 = vpack.c.bf16 %v1196_v32, %v1194_v26  ;;  %v3154_v35 = vpack.c.bf16 %v1356_v33, %v1354_v27 }
 0x20f   :  { %3542 = vst [vmem:[%s4156_s2 + $0xb0] sm:$0xff] %v2994_v34  }
 0x210   :  { %3574 = vst [vmem:[%s4156_s2 + $0x1b0] sm:$0xff] %v3154_v35  }
 0x213   :  { %v1516_v36 = vpop.f32.mrf.mxu2  ;;  %v1676_v37 = vpop.f32.mrf.mxu3 }
 0x214   :  { %v3314_v40 = vpack.c.bf16 %v1516_v36, %v1514_v30  ;;  %v3474_v41 = vpack.c.bf16 %v1676_v37, %v1674_v31  ;;  %v1199_v42 = vpop.f32.mrf.mxu0  ;;  %v1359_v43 = vpop.f32.mrf.mxu1 }
 0x216   :  { %3606 = vst [vmem:[%s4156_s2 + $0x2b0] sm:$0xff] %v3314_v40  }
 0x217   :  { %3638 = vst [vmem:[%s4156_s2 + $0x3b0] sm:$0xff] %v3474_v41   ;;  %1238 = vmatmul.bf16.gmra.mxu0 %v2784_v38  ;;  %1398 = vmatmul.bf16.gmra.mxu1 %v2816_v39 }
 0x218   :  { %1558 = vmatmul.bf16.gmra.mxu2 %v2848_v44  ;;  %1718 = vmatmul.bf16.gmra.mxu3 %v2880_v45 }
 0x21b   :  { %v1519_v46 = vpop.f32.mrf.mxu2  ;;  %v1679_v47 = vpop.f32.mrf.mxu3 }
 0x21c   :  { %v1201_v48 = vpop.f32.mrf.mxu0  ;;  %v1361_v49 = vpop.f32.mrf.mxu1 }
 0x21d   :  { %v2999_v50 = vpack.c.bf16 %v1201_v48, %v1199_v42  ;;  %v3159_v51 = vpack.c.bf16 %v1361_v49, %v1359_v43 }
 0x21f   :  { %3543 = vst [vmem:[%s4156_s2 + $0xb8] sm:$0xff] %v2999_v50  }
 0x220   :  { %3575 = vst [vmem:[%s4156_s2 + $0x1b8] sm:$0xff] %v3159_v51  }
 0x223   :  { %v1521_v52 = vpop.f32.mrf.mxu2  ;;  %v1681_v53 = vpop.f32.mrf.mxu3 }
 0x224   :  { %v3319_v54 = vpack.c.bf16 %v1521_v52, %v1519_v46  ;;  %v3479_v55 = vpack.c.bf16 %v1681_v53, %v1679_v47  ;;  %v1204_v56 = vpop.f32.mrf.mxu0  ;;  %v1364_v57 = vpop.f32.mrf.mxu1 }
 0x226   :  { %3607 = vst [vmem:[%s4156_s2 + $0x2b8] sm:$0xff] %v3319_v54  }
 0x227   :  { %3639 = vst [vmem:[%s4156_s2 + $0x3b8] sm:$0xff] %v3479_v55  }
 0x22b   :  { %v1524_v58 = vpop.f32.mrf.mxu2  ;;  %v1684_v59 = vpop.f32.mrf.mxu3 }
 0x22c   :  { %v1206_v60 = vpop.f32.mrf.mxu0  ;;  %v1366_v61 = vpop.f32.mrf.mxu1 }
 0x22d   :  { %v3004_v62 = vpack.c.bf16 %v1206_v60, %v1204_v56  ;;  %v3164_v63 = vpack.c.bf16 %v1366_v61, %v1364_v57 }
 0x22f   :  { %3544 = vst [vmem:[%s4156_s2 + $0xc0] sm:$0xff] %v3004_v62  }
 0x230   :  { %3576 = vst [vmem:[%s4156_s2 + $0x1c0] sm:$0xff] %v3164_v63  }
 0x233   :  { %v1526_v0 = vpop.f32.mrf.mxu2  ;;  %v1686_v1 = vpop.f32.mrf.mxu3 }
 0x234   :  { %v3324_v2 = vpack.c.bf16 %v1526_v0, %v1524_v58  ;;  %v3484_v3 = vpack.c.bf16 %v1686_v1, %v1684_v59  ;;  %v1209_v4 = vpop.f32.mrf.mxu0  ;;  %v1369_v5 = vpop.f32.mrf.mxu1 }
 0x236   :  { %3608 = vst [vmem:[%s4156_s2 + $0x2c0] sm:$0xff] %v3324_v2  }
 0x237   :  { %3640 = vst [vmem:[%s4156_s2 + $0x3c0] sm:$0xff] %v3484_v3  }
 0x23b   :  { %v1529_v6 = vpop.f32.mrf.mxu2  ;;  %v1689_v7 = vpop.f32.mrf.mxu3 }
 0x23c   :  { %v1211_v8 = vpop.f32.mrf.mxu0  ;;  %v1371_v9 = vpop.f32.mrf.mxu1 }
 0x23d   :  { %v3009_v10 = vpack.c.bf16 %v1211_v8, %v1209_v4  ;;  %v3169_v11 = vpack.c.bf16 %v1371_v9, %v1369_v5 }
 0x23f   :  { %3545 = vst [vmem:[%s4156_s2 + $0xc8] sm:$0xff] %v3009_v10  }
 0x240   :  { %3577 = vst [vmem:[%s4156_s2 + $0x1c8] sm:$0xff] %v3169_v11  }
 0x243   :  { %v1531_v12 = vpop.f32.mrf.mxu2  ;;  %v1691_v13 = vpop.f32.mrf.mxu3 }
 0x244   :  { %v3329_v14 = vpack.c.bf16 %v1531_v12, %v1529_v6  ;;  %v3489_v15 = vpack.c.bf16 %v1691_v13, %v1689_v7  ;;  %v1214_v16 = vpop.f32.mrf.mxu0  ;;  %v1374_v17 = vpop.f32.mrf.mxu1 }
 0x246   :  { %3609 = vst [vmem:[%s4156_s2 + $0x2c8] sm:$0xff] %v3329_v14  }
 0x247   :  { %3641 = vst [vmem:[%s4156_s2 + $0x3c8] sm:$0xff] %v3489_v15  }
 0x24b   :  { %v1534_v18 = vpop.f32.mrf.mxu2  ;;  %v1694_v19 = vpop.f32.mrf.mxu3 }
 0x24c   :  { %v1216_v20 = vpop.f32.mrf.mxu0  ;;  %v1376_v21 = vpop.f32.mrf.mxu1 }
 0x24d   :  { %v3014_v22 = vpack.c.bf16 %v1216_v20, %v1214_v16  ;;  %v3174_v23 = vpack.c.bf16 %v1376_v21, %v1374_v17 }
 0x24f   :  { %3546 = vst [vmem:[%s4156_s2 + $0xd0] sm:$0xff] %v3014_v22  }
 0x250   :  { %3578 = vst [vmem:[%s4156_s2 + $0x1d0] sm:$0xff] %v3174_v23  }
 0x253   :  { %v1536_v24 = vpop.f32.mrf.mxu2  ;;  %v1696_v25 = vpop.f32.mrf.mxu3 }
 0x254   :  { %v3334_v26 = vpack.c.bf16 %v1536_v24, %v1534_v18  ;;  %v3494_v27 = vpack.c.bf16 %v1696_v25, %v1694_v19  ;;  %v1219_v28 = vpop.f32.mrf.mxu0  ;;  %v1379_v29 = vpop.f32.mrf.mxu1 }
 0x256   :  { %3610 = vst [vmem:[%s4156_s2 + $0x2d0] sm:$0xff] %v3334_v26  }
 0x257   :  { %3642 = vst [vmem:[%s4156_s2 + $0x3d0] sm:$0xff] %v3494_v27  }
 0x25b   :  { %v1539_v30 = vpop.f32.mrf.mxu2  ;;  %v1699_v31 = vpop.f32.mrf.mxu3 }
 0x25c   :  { %v1221_v32 = vpop.f32.mrf.mxu0  ;;  %v1381_v33 = vpop.f32.mrf.mxu1 }
 0x25d   :  { %v3019_v34 = vpack.c.bf16 %v1221_v32, %v1219_v28  ;;  %v3179_v35 = vpack.c.bf16 %v1381_v33, %v1379_v29 }
 0x25f   :  { %3547 = vst [vmem:[%s4156_s2 + $0xd8] sm:$0xff] %v3019_v34  }
 0x260   :  { %3579 = vst [vmem:[%s4156_s2 + $0x1d8] sm:$0xff] %v3179_v35  }
 0x263   :  { %v1541_v36 = vpop.f32.mrf.mxu2  ;;  %v1701_v37 = vpop.f32.mrf.mxu3 }
 0x264   :  { %v3339_v38 = vpack.c.bf16 %v1541_v36, %v1539_v30  ;;  %v3499_v39 = vpack.c.bf16 %v1701_v37, %v1699_v31  ;;  %v1224_v40 = vpop.f32.mrf.mxu0  ;;  %v1384_v41 = vpop.f32.mrf.mxu1 }
 0x266   :  { %3611 = vst [vmem:[%s4156_s2 + $0x2d8] sm:$0xff] %v3339_v38  }
 0x267   :  { %3643 = vst [vmem:[%s4156_s2 + $0x3d8] sm:$0xff] %v3499_v39  }
 0x26b   :  { %v1544_v42 = vpop.f32.mrf.mxu2  ;;  %v1704_v43 = vpop.f32.mrf.mxu3 }
 0x26c   :  { %v1226_v44 = vpop.f32.mrf.mxu0  ;;  %v1386_v45 = vpop.f32.mrf.mxu1 }
 0x26d   :  { %v3024_v46 = vpack.c.bf16 %v1226_v44, %v1224_v40  ;;  %v3184_v47 = vpack.c.bf16 %v1386_v45, %v1384_v41 }
 0x26f   :  { %3548 = vst [vmem:[%s4156_s2 + $0xe0] sm:$0xff] %v3024_v46  }
 0x270   :  { %3580 = vst [vmem:[%s4156_s2 + $0x1e0] sm:$0xff] %v3184_v47  }
 0x273   :  { %v1546_v48 = vpop.f32.mrf.mxu2  ;;  %v1706_v49 = vpop.f32.mrf.mxu3 }
 0x274   :  { %v3344_v50 = vpack.c.bf16 %v1546_v48, %v1544_v42  ;;  %v3504_v51 = vpack.c.bf16 %v1706_v49, %v1704_v43  ;;  %v1229_v52 = vpop.f32.mrf.mxu0  ;;  %v1389_v53 = vpop.f32.mrf.mxu1 }
 0x276   :  { %3612 = vst [vmem:[%s4156_s2 + $0x2e0] sm:$0xff] %v3344_v50  }
 0x277   :  { %3644 = vst [vmem:[%s4156_s2 + $0x3e0] sm:$0xff] %v3504_v51  }
 0x27b   :  { %v1549_v54 = vpop.f32.mrf.mxu2  ;;  %v1709_v55 = vpop.f32.mrf.mxu3 }
 0x27c   :  { %v1231_v56 = vpop.f32.mrf.mxu0  ;;  %v1391_v57 = vpop.f32.mrf.mxu1 }
 0x27d   :  { %v3029_v58 = vpack.c.bf16 %v1231_v56, %v1229_v52  ;;  %v3189_v59 = vpack.c.bf16 %v1391_v57, %v1389_v53 }
 0x27f   :  { %3549 = vst [vmem:[%s4156_s2 + $0xe8] sm:$0xff] %v3029_v58  }
 0x280   :  { %3581 = vst [vmem:[%s4156_s2 + $0x1e8] sm:$0xff] %v3189_v59  }
 0x283   :  { %v1551_v60 = vpop.f32.mrf.mxu2  ;;  %v1711_v61 = vpop.f32.mrf.mxu3 }
 0x284   :  { %v3349_v62 = vpack.c.bf16 %v1551_v60, %v1549_v54  ;;  %v3509_v63 = vpack.c.bf16 %v1711_v61, %v1709_v55  ;;  %v1234_v0 = vpop.f32.mrf.mxu0  ;;  %v1394_v1 = vpop.f32.mrf.mxu1 }
 0x286   :  { %3613 = vst [vmem:[%s4156_s2 + $0x2e8] sm:$0xff] %v3349_v62  }
 0x287   :  { %3645 = vst [vmem:[%s4156_s2 + $0x3e8] sm:$0xff] %v3509_v63  }
 0x28b   :  { %v1554_v2 = vpop.f32.mrf.mxu2  ;;  %v1714_v3 = vpop.f32.mrf.mxu3 }
 0x28c   :  { %v1236_v4 = vpop.f32.mrf.mxu0  ;;  %v1396_v5 = vpop.f32.mrf.mxu1 }
 0x28d   :  { %v3034_v6 = vpack.c.bf16 %v1236_v4, %v1234_v0  ;;  %v3194_v7 = vpack.c.bf16 %v1396_v5, %v1394_v1 }
 0x28f   :  { %3550 = vst [vmem:[%s4156_s2 + $0xf0] sm:$0xff] %v3034_v6  }
 0x290   :  { %3582 = vst [vmem:[%s4156_s2 + $0x1f0] sm:$0xff] %v3194_v7  }
 0x293   :  { %v1556_v8 = vpop.f32.mrf.mxu2  ;;  %v1716_v9 = vpop.f32.mrf.mxu3 }
 0x294   :  { %v3354_v10 = vpack.c.bf16 %v1556_v8, %v1554_v2  ;;  %v3514_v11 = vpack.c.bf16 %v1716_v9, %v1714_v3  ;;  %v1239_v12 = vpop.f32.mrf.mxu0  ;;  %v1399_v13 = vpop.f32.mrf.mxu1 }
 0x296   :  { %3614 = vst [vmem:[%s4156_s2 + $0x2f0] sm:$0xff] %v3354_v10  }
 0x297   :  { %3646 = vst [vmem:[%s4156_s2 + $0x3f0] sm:$0xff] %v3514_v11  }
 0x29b   :  { %v1559_v14 = vpop.f32.mrf.mxu2  ;;  %v1719_v15 = vpop.f32.mrf.mxu3 }
 0x29c   :  { %v1241_v16 = vpop.f32.mrf.mxu0  ;;  %v1401_v17 = vpop.f32.mrf.mxu1 }
 0x29d   :  { %v3039_v18 = vpack.c.bf16 %v1241_v16, %v1239_v12  ;;  %v3199_v19 = vpack.c.bf16 %v1401_v17, %v1399_v13 }
 0x29f   :  { %3551 = vst [vmem:[%s4156_s2 + $0xf8] sm:$0xff] %v3039_v18  }
 0x2a0   :  { %3583 = vst [vmem:[%s4156_s2 + $0x1f8] sm:$0xff] %v3199_v19  }
 0x2a3   :  { %v1561_v20 = vpop.f32.mrf.mxu2  ;;  %v1721_v21 = vpop.f32.mrf.mxu3 }
 0x2a4   :  { %v3359_v22 = vpack.c.bf16 %v1561_v20, %v1559_v14  ;;  %v3519_v23 = vpack.c.bf16 %v1721_v21, %v1719_v15 }
 0x2a6   :  { %3615 = vst [vmem:[%s4156_s2 + $0x2f8] sm:$0xff] %v3359_v22  }
 0x2a7   :  { %3647 = vst [vmem:[%s4156_s2 + $0x3f8] sm:$0xff] %v3519_v23  }
 0x2a8   :  { %2240 = vsyncpa [#allocation3], 1 }

// kernel: omniglot_decoder.8
= control target key start
LH: loop header
LB: loop body
LE: loop exit
PB: predicated region body
PF: predicated region fallthrough
CT: control target
= control target key end

     0   :  { %v2371_v16 = vmov 0   ;;  %s3041_s0 = inlined_call_operand.vmem [shape: f32[64,128], index: 0, kind: input, shape index: {}]   ;;  %s3042_s1 = inlined_call_operand.vmem [shape: f32[64,1], index: 1, kind: input, shape index: {}]   ;;  %s3043_s2 = inlined_call_operand.vmem [shape: f32[64,1], index: 2, kind: input, shape index: {}]   ;;  %s3044_s3 = inlined_call_operand.vmem [shape: bf16[1024,64], index: 3, kind: input, shape index: {}]   ;;  %s3045_s4 = inlined_call_operand.vmem [shape: bf16[1024,128], index: 4, kind: output, shape index: {}]  }
   0x1   :  { %v2400_v0 = vld [vmem:[%s3041_s0 + $0x30] sm:$0xff]  ;;  %v2405_v1 = vld [vmem:[%s3041_s0 + $0x20] sm:$0xff]  ;;  %v2414_v3 = vld [vmem:[%s3041_s0 + $0x38] sm:$0xff]  ;;  %2352 = vset.pattern.permute.xlu1 %v2371_v16  ;;  %2353 = vset.pattern.permute.xlu2 %v2371_v16 }
   0x2   :  { %38 = vadd.xlane.f32.xlu0 %v2400_v0  ;;  %v48_v2 = vmul.f32 %v2400_v0, %v2400_v0  ;;  %34 = vadd.xlane.f32.xlu2 %v2405_v1  ;;  %v2419_v4 = vld [vmem:[%s3041_s0 + $0x28] sm:$0xff]  ;;  %v49_v5 = vmul.f32 %v2414_v3, %v2414_v3  ;;  %v46_v6 = vmul.f32 %v2405_v1, %v2405_v1  ;;  %v2430_v7 = vld [vmem:[%s3041_s0 + $0x10] sm:$0xff]  ;;  %v2438_v9 = vld [vmem:[%s3041_s0 + $0x18] sm:$0xff] }
   0x3   :  { %v47_v8 = vmul.f32 %v2419_v4, %v2419_v4  ;;  %v45_v10 = vmul.f32 %v2438_v9, %v2438_v9  ;;  %v44_v11 = vmul.f32 %v2430_v7, %v2430_v7  ;;  %v2448_v12 = vld [vmem:[%s3041_s0] sm:$0xff]  ;;  %v2455_v14 = vld [vmem:[%s3041_s0 + $0x8] sm:$0xff]  ;;  %2354 = vset.pattern.permute.xlu0 %v2371_v16 }
   0x4   :  { %62 = vadd.xlane.f32.xlu1 %v48_v2  ;;  %v42_v13 = vmul.f32 %v2448_v12, %v2448_v12  ;;  %v43_v15 = vmul.f32 %v2455_v14, %v2455_v14  ;;  %v200_v2 = vld [vmem:[%s3042_s1 + $0x30] sm:$0xff] }
   0xa   :  { %40 = vadd.xlane.f32.xlu0 %v2414_v3  ;;  %36 = vadd.xlane.f32.xlu2 %v2419_v4 }
   0xc   :  { %64 = vadd.xlane.f32.xlu1 %v49_v5 }
  0x12   :  { %58 = vadd.xlane.f32.xlu0 %v46_v6  ;;  %30 = vadd.xlane.f32.xlu2 %v2430_v7 }
  0x14   :  { %60 = vadd.xlane.f32.xlu1 %v47_v8 }
  0x1a   :  { %32 = vadd.xlane.f32.xlu0 %v2438_v9  ;;  %56 = vadd.xlane.f32.xlu2 %v45_v10 }
  0x1c   :  { %54 = vadd.xlane.f32.xlu1 %v44_v11 }
  0x22   :  { %26 = vadd.xlane.f32.xlu0 %v2448_v12  ;;  %50 = vadd.xlane.f32.xlu2 %v42_v13 }
  0x24   :  { %28 = vadd.xlane.f32.xlu1 %v2455_v14 }
  0x2a   :  { %52 = vadd.xlane.f32.xlu0 %v43_v15 }
  0x75   :  { %v39_v17 = vpop.xlane.xlu0 %38  ;;  %v35_v18 = vpop.xlane.xlu2 %34 }
  0x76   :  { %v2461_v19 = vmul.f32 0.02, %v39_v17  ;;  %v2469_v32 = vmul.f32 0.02, %v35_v18 }
  0x77   :  { %v63_v20 = vpop.xlane.xlu1 %62 }
  0x78   :  { %v88_v21 = vmul.f32 %v2461_v19, %v2461_v19  ;;  %v80_v22 = vmul.f32 0.02, %v63_v20  ;;  %v86_v39 = vmul.f32 %v2469_v32, %v2469_v32 }
  0x7a   :  { %v96_v23 = vsub.f32 %v80_v22, %v88_v21 }
  0x7c   :  { %v104_v24 = vmax.f32 %v96_v23, 0.0 }
  0x7d   :  { %v41_v25 = vpop.xlane.xlu0 %40  ;;  %v37_v26 = vpop.xlane.xlu2 %36 }
  0x7e   :  { %v112_v27 = vadd.f32 1e-05, %v104_v24  ;;  %v2465_v28 = vmul.f32 0.02, %v41_v25  ;;  %v2471_v35 = vmul.f32 0.02, %v37_v26 }
  0x7f   :  { %v65_v29 = vpop.xlane.xlu1 %64 }
  0x80   :  { %2355 = vrsqrt.f32 %v112_v27  ;;  %v89_v30 = vmul.f32 %v2465_v28, %v2465_v28  ;;  %v81_v31 = vmul.f32 0.02, %v65_v29  ;;  %v87_v44 = vmul.f32 %v2471_v35, %v2471_v35 }
  0x81   :  { %vm180_vm1 = vweird.f32 %v112_v27 }
  0x82   :  { %v97_v33 = vsub.f32 %v81_v31, %v89_v30 }
  0x84   :  { %v105_v34 = vmax.f32 %v97_v33, 0.0 }
  0x85   :  { %v59_v36 = vpop.xlane.xlu0 %58  ;;  %v31_v37 = vpop.xlane.xlu2 %30 }
  0x86   :  { %v2356_v38 = vpop.eup %2355  ;;  %v2475_v40 = vadd.f32 1e-05, %v105_v34  ;;  %v78_v41 = vmul.f32 0.02, %v59_v36  ;;  %v2482_v53 = vmul.f32 0.02, %v31_v37 }
  0x87   :  { %v175_v42 = vmul.f32 %v2356_v38, %v112_v27  ;;  %v61_v43 = vpop.xlane.xlu1 %60  ;;  %vm181_vm0 = vweird.f32 %v2356_v38 }
  0x88   :  { %2357 = vrsqrt.f32 %v2475_v40  ;;  %v94_v45 = vsub.f32 %v78_v41, %v86_v39  ;;  %v79_v46 = vmul.f32 0.02, %v61_v43  ;;  %v84_v5 = vmul.f32 %v2482_v53, %v2482_v53  ;;  %vm182_vm2 = vmor %vm180_vm1, %vm181_vm0  ;;  %v201_v39 = vld [vmem:[%s3042_s1 + $0x38] sm:$0xff] }
  0x89   :  { %v176_v47 = vmul.f32 %v2356_v38, %v175_v42  ;;  %vm190_vm4 = vweird.f32 %v2475_v40 }
  0x8a   :  { %v102_v48 = vmax.f32 %v94_v45, 0.0  ;;  %v95_v49 = vsub.f32 %v79_v46, %v87_v44 }
  0x8b   :  { %v177_v50 = vmul.f32 0.5, %v176_v47 }
  0x8c   :  { %v2480_v51 = vadd.f32 1e-05, %v102_v48  ;;  %v103_v52 = vmax.f32 %v95_v49, 0.0 }
  0x8d   :  { %v178_v54 = vsub.f32 1.5, %v177_v50  ;;  %v33_v55 = vpop.xlane.xlu0 %32  ;;  %v57_v56 = vpop.xlane.xlu2 %56 }
  0x8e   :  { %v2358_v57 = vpop.eup %2357  ;;  %2359 = vrsqrt.f32 %v2480_v51  ;;  %v2485_v58 = vadd.f32 1e-05, %v103_v52  ;;  %v2487_v59 = vmul.f32 0.02, %v33_v55  ;;  %v77_v61 = vmul.f32 0.02, %v57_v56 }
  0x8f   :  { %v185_v60 = vmul.f32 %v2358_v57, %v2475_v40  ;;  %v55_v62 = vpop.xlane.xlu1 %54  ;;  %v179_v63 = vmul.f32 %v2356_v38, %v178_v54  ;;  %vm191_vm3 = vweird.f32 %v2358_v57  ;;  %vm160_vm7 = vweird.f32 %v2480_v51 }
  0x90   :  { %2361 = vrsqrt.f32 %v2485_v58  ;;  %v85_v6 = vmul.f32 %v2487_v59, %v2487_v59  ;;  %v76_v8 = vmul.f32 0.02, %v55_v62  ;;  %vm192_vm5 = vmor %vm190_vm4, %vm191_vm3  ;;  %vm170_vm10 = vweird.f32 %v2485_v58 }
  0x91   :  { %v186_v10 = vmul.f32 %v2358_v57, %v185_v60  ;;  %v183_v11 = vsel %vm182_vm2, %v2356_v38, %v179_v63 }
  0x92   :  { %v93_v13 = vsub.f32 %v77_v61, %v85_v6  ;;  %v92_v15 = vsub.f32 %v76_v8, %v84_v5  ;;  %v2499_v16 = vmul.f32 %v200_v2, %v183_v11  ;;  %v199_v2 = vld [vmem:[%s3042_s1 + $0x28] sm:$0xff] }
  0x93   :  { %v187_v17 = vmul.f32 0.5, %v186_v10 }
  0x94   :  { %v2360_v18 = vpop.eup %2359  ;;  %v101_v20 = vmax.f32 %v93_v13, 0.0  ;;  %v100_v21 = vmax.f32 %v92_v15, 0.0  ;;  %266 = vperm.xlu1 %2352, %v2499_v16  }
  0x95   :  { %v188_v22 = vsub.f32 1.5, %v187_v17  ;;  %v155_v23 = vmul.f32 %v2360_v18, %v2480_v51  ;;  %v27_v24 = vpop.xlane.xlu0 %26  ;;  %v51_v25 = vpop.xlane.xlu2 %50  ;;  %vm161_vm6 = vweird.f32 %v2360_v18 }
  0x96   :  { %v2362_v26 = vpop.eup %2361  ;;  %v2503_v27 = vadd.f32 1e-05, %v101_v20  ;;  %v2505_v29 = vadd.f32 1e-05, %v100_v21  ;;  %v2507_v30 = vmul.f32 0.02, %v27_v24  ;;  %vm162_vm9 = vmor %vm160_vm7, %vm161_vm6 }
  0x97   :  { %v156_v31 = vmul.f32 %v2360_v18, %v155_v23  ;;  %v165_v33 = vmul.f32 %v2362_v26, %v2485_v58  ;;  %v74_v34 = vmul.f32 0.02, %v51_v25  ;;  %v29_v36 = vpop.xlane.xlu1 %28  ;;  %v189_v37 = vmul.f32 %v2358_v57, %v188_v22 }
  0x98   :  { %2363 = vrsqrt.f32 %v2503_v27  ;;  %v82_v38 = vmul.f32 %v2507_v30, %v2507_v30  ;;  %v2518_v43 = vmul.f32 0.02, %v29_v36  ;;  %vm171_vm8 = vweird.f32 %v2362_v26 }
  0x99   :  { %v157_v41 = vmul.f32 0.5, %v156_v31  ;;  %v166_v42 = vmul.f32 %v2362_v26, %v165_v33  ;;  %2365 = vrsqrt.f32 %v2505_v29  ;;  %v193_v45 = vsel %vm192_vm5, %v2358_v57, %v189_v37  ;;  %v198_v57 = vld [vmem:[%s3042_s1 + $0x20] sm:$0xff]  ;;  %vm172_vm11 = vmor %vm170_vm10, %vm171_vm8 }
  0x9a   :  { %v90_v44 = vsub.f32 %v74_v34, %v82_v38  ;;  %v209_v47 = vmul.f32 %v201_v39, %v193_v45  ;;  %v83_v49 = vmul.f32 %v2518_v43, %v2518_v43  ;;  %vm150_vm14 = vweird.f32 %v2503_v27  ;;  %v196_v34 = vld [vmem:[%s3042_s1 + $0x10] sm:$0xff] }
  0x9b   :  { %v158_v46 = vsub.f32 1.5, %v157_v41  ;;  %v167_v40 = vmul.f32 0.5, %v166_v42  ;;  %vm140_vm15 = vweird.f32 %v2505_v29  ;;  %v224_v45 = vmul.f32 %v2499_v16, %v2461_v19 }
  0x9c   :  { %v98_v48 = vmax.f32 %v90_v44, 0.0  ;;  %271 = vperm.xlu2 %2353, %v209_v47   ;;  %v225_v31 = vmul.f32 %v209_v47, %v2465_v28  ;;  %vm790_vm8 = vcmask 523264  }
  0x9d   :  { %v168_v50 = vsub.f32 1.5, %v167_v40  ;;  %v53_v52 = vpop.xlane.xlu0 %52  ;;  %v159_v54 = vmul.f32 %v2360_v18, %v158_v46  ;;  %v216_v40 = vld [vmem:[%s3043_s2 + $0x30] sm:$0xff] }
  0x9e   :  { %v2364_v55 = vpop.eup %2363  ;;  %v2523_v56 = vadd.f32 1e-05, %v98_v48  ;;  %v75_v60 = vmul.f32 0.02, %v53_v52  ;;  %v215_v52 = vld [vmem:[%s3043_s2 + $0x28] sm:$0xff]  ;;  %v232_v19 = vsub.f32 %v216_v40, %v224_v45 }
  0x9f   :  { %v2366_v61 = vpop.eup %2365  ;;  %v145_v62 = vmul.f32 %v2364_v55, %v2503_v27  ;;  %v163_v51 = vsel %vm162_vm9, %v2360_v18, %v159_v54  ;;  %v169_v63 = vmul.f32 %v2362_v26, %v168_v50  ;;  %vm151_vm12 = vweird.f32 %v2364_v55  ;;  %v217_v27 = vld [vmem:[%s3043_s2 + $0x38] sm:$0xff] }
  0xa0   :  { %v135_v5 = vmul.f32 %v2366_v61, %v2505_v29  ;;  %2367 = vrsqrt.f32 %v2523_v56  ;;  %v91_v6 = vsub.f32 %v75_v60, %v83_v49  ;;  %v206_v10 = vmul.f32 %v198_v57, %v163_v51  ;;  %vm152_vm0 = vmor %vm150_vm14, %vm151_vm12  ;;  %v214_v49 = vld [vmem:[%s3043_s2 + $0x20] sm:$0xff] }
  0xa1   :  { %v146_v8 = vmul.f32 %v2364_v55, %v145_v62  ;;  %v173_v11 = vsel %vm172_vm11, %v2362_v26, %v169_v63  ;;  %vm141_vm13 = vweird.f32 %v2366_v61  ;;  %v197_v26 = vld [vmem:[%s3042_s1 + $0x18] sm:$0xff]  ;;  %v233_v28 = vsub.f32 %v217_v27, %v225_v31  ;;  %v195_v63 = vld [vmem:[%s3042_s1 + $0x8] sm:$0xff] }
  0xa2   :  { %v136_v13 = vmul.f32 %v2366_v61, %v135_v5  ;;  %v99_v58 = vmax.f32 %v91_v6, 0.0  ;;  %v207_v15 = vmul.f32 %v199_v2, %v173_v11  ;;  %256 = vperm.xlu1 %2352, %v206_v10   ;;  %vm142_vm1 = vmor %vm140_vm15, %vm141_vm13  ;;  %v222_v46 = vmul.f32 %v206_v10, %v2469_v32  ;;  %v213_v2 = vld [vmem:[%s3043_s2 + $0x18] sm:$0xff]  ;;  %v211_v11 = vld [vmem:[%s3043_s2 + $0x8] sm:$0xff] }
  0xa3   :  { %v147_v17 = vmul.f32 0.5, %v146_v8  ;;  %vm120_vm2 = vweird.f32 %v2523_v56 }
  0xa4   :  { %v137_v18 = vmul.f32 0.5, %v136_v13  ;;  %v107_v20 = vadd.f32 1e-05, %v99_v58  ;;  %261 = vperm.xlu2 %2353, %v207_v15   ;;  %v223_v50 = vmul.f32 %v207_v15, %v2471_v35  ;;  %v230_v32 = vsub.f32 %v214_v49, %v222_v46  ;;  %v210_v58 = vld [vmem:[%s3043_s2] sm:$0xff] }
  0xa5   :  { %v148_v21 = vsub.f32 1.5, %v147_v17 }
  0xa6   :  { %v2368_v22 = vpop.eup %2367  ;;  %v138_v23 = vsub.f32 1.5, %v137_v18  ;;  %2369 = vrsqrt.f32 %v107_v20  ;;  %vm130_vm3 = vweird.f32 %v107_v20 }
  0xa7   :  { %v115_v24 = vmul.f32 %v2368_v22, %v2523_v56  ;;  %v149_v25 = vmul.f32 %v2364_v55, %v148_v21  ;;  %vm121_vm4 = vweird.f32 %v2368_v22  ;;  %v194_v56 = vld [vmem:[%s3042_s1] sm:$0xff] }
  0xa8   :  { %v139_v33 = vmul.f32 %v2366_v61, %v138_v23  ;;  %vm122_vm6 = vmor %vm120_vm2, %vm121_vm4 }
  0xa9   :  { %v116_v36 = vmul.f32 %v2368_v22, %v115_v24  ;;  %v153_v37 = vsel %vm152_vm0, %v2364_v55, %v149_v25  ;;  %v231_v55 = vsub.f32 %v215_v52, %v223_v50 }
  0xaa   :  { %v143_v38 = vsel %vm142_vm1, %v2366_v61, %v139_v33  ;;  %v205_v39 = vmul.f32 %v197_v26, %v153_v37 }
  0xab   :  { %v117_v41 = vmul.f32 0.5, %v116_v36  ;;  %v204_v42 = vmul.f32 %v196_v34, %v143_v38 }
  0xac   :  { %v2370_v44 = vpop.eup %2369  ;;  %251 = vperm.xlu0 %2354, %v205_v39   ;;  %319 = vperm.xlu2 %2353, %v233_v28   ;;  %v221_v57 = vmul.f32 %v205_v39, %v2487_v59  ;;  %v212_v59 = vld [vmem:[%s3043_s2 + $0x10] sm:$0xff] }
  0xad   :  { %v125_v29 = vmul.f32 %v2370_v44, %v107_v20  ;;  %246 = vperm.xlu1 %2352, %v204_v42   ;;  %v118_v47 = vsub.f32 1.5, %v117_v41  ;;  %vm131_vm5 = vweird.f32 %v2370_v44  ;;  %v220_v61 = vmul.f32 %v204_v42, %v2482_v53 }
  0xae   :  { %vm132_vm7 = vmor %vm130_vm3, %vm131_vm5  ;;  %v229_v6 = vsub.f32 %v213_v2, %v221_v57  ;;  %v1892_v57 = vld [vmem:[%s3044_s3] sm:$0xff]  ;;  %v1894_v2 = vld [vmem:[%s3044_s3 + $0x10] sm:$0xff] }
  0xaf   :  { %v126_v48 = vmul.f32 %v2370_v44, %v125_v29  ;;  %v119_v60 = vmul.f32 %v2368_v22, %v118_v47  ;;  %v228_v8 = vsub.f32 %v212_v59, %v220_v61  ;;  %v1940_v61 = vld [vmem:[%s3044_s3 + $0x180] sm:$0xff]  ;;  %v1910_v59 = vld [vmem:[%s3044_s3 + $0x90] sm:$0xff] }
  0xb1   :  { %v127_v54 = vmul.f32 0.5, %v126_v48  ;;  %v123_v62 = vsel %vm122_vm6, %v2368_v22, %v119_v60 }
  0xb2   :  { %v202_v5 = vmul.f32 %v194_v56, %v123_v62  ;;  %v1893_v62 = vld [vmem:[%s3044_s3 + $0x8] sm:$0xff] }
  0xb3   :  { %v128_v16 = vsub.f32 1.5, %v127_v54  ;;  %v1909_v56 = vld [vmem:[%s3044_s3 + $0x88] sm:$0xff] }
  0xb4   :  { %314 = vperm.xlu0 %2354, %v232_v19   ;;  %309 = vperm.xlu2 %2353, %v231_v55   ;;  %v218_v13 = vmul.f32 %v202_v5, %v2507_v30 }
  0xb5   :  { %304 = vperm.xlu1 %2352, %v230_v32   ;;  %v129_v35 = vmul.f32 %v2370_v44, %v128_v16 }
  0xb6   :  { %v226_v17 = vsub.f32 %v210_v58, %v218_v13  ;;  %v1896_v13 = vld [vmem:[%s3044_s3 + $0x20] sm:$0xff] }
  0xb7   :  { %v133_v51 = vsel %vm132_vm7, %v2370_v44, %v129_v35  ;;  %v1912_v58 = vld [vmem:[%s3044_s3 + $0xa0] sm:$0xff] }
  0xb8   :  { %v203_v53 = vmul.f32 %v195_v63, %v133_v51  ;;  %v1925_v51 = vld [vmem:[%s3044_s3 + $0x108] sm:$0xff] }
  0xb9   :  { %v1941_v63 = vld [vmem:[%s3044_s3 + $0x188] sm:$0xff] }
  0xba   :  { %v219_v10 = vmul.f32 %v203_v53, %v2518_v43 }
  0xbc   :  { %236 = vperm.xlu0 %2354, %v202_v5   ;;  %294 = vperm.xlu2 %2353, %v228_v8   ;;  %v227_v15 = vsub.f32 %v211_v11, %v219_v10  ;;  %v1926_v5 = vld [vmem:[%s3044_s3 + $0x110] sm:$0xff]  ;;  %v1911_v8 = vld [vmem:[%s3044_s3 + $0x98] sm:$0xff] }
  0xbd   :  { %299 = vperm.xlu1 %2352, %v229_v6   ;;  %v1895_v6 = vld [vmem:[%s3044_s3 + $0x18] sm:$0xff] }
  0xbe   :  { %v1927_v10 = vld [vmem:[%s3044_s3 + $0x118] sm:$0xff] }
  0xbf   :  { %v1943_v11 = vld [vmem:[%s3044_s3 + $0x198] sm:$0xff] }
  0xc4   :  { %289 = vperm.xlu0 %2354, %v227_v15   ;;  %241 = vperm.xlu2 %2353, %v203_v53   ;;  %v1942_v53 = vld [vmem:[%s3044_s3 + $0x190] sm:$0xff]  ;;  %v1928_v15 = vld [vmem:[%s3044_s3 + $0x120] sm:$0xff] }
  0xc5   :  { %284 = vperm.xlu1 %2352, %v226_v17   ;;  %v1944_v17 = vld [vmem:[%s3044_s3 + $0x1a0] sm:$0xff] }
  0xf6   :  { %v272_v18 = vpop.permute.xlu2 %271 }
  0xf7   :  { %v281_v26 = vmul.f32 %v272_v18, %v2414_v3  ;;  %v1897_v18 = vld [vmem:[%s3044_s3 + $0x28] sm:$0xff] }
  0xfe   :  { %v262_v20 = vpop.permute.xlu2 %261 }
  0xff   :  { %v279_v27 = vmul.f32 %v262_v20, %v2419_v4  ;;  %v1913_v20 = vld [vmem:[%s3044_s3 + $0xa8] sm:$0xff] }
 0x106   :  { %v267_v21 = vpop.permute.xlu1 %266  ;;  %v320_v22 = vpop.permute.xlu2 %319 }
 0x107   :  { %v280_v30 = vmul.f32 %v267_v21, %v2400_v0  ;;  %v329_v31 = vadd.f32 %v320_v22, %v281_v26  ;;  %v1929_v21 = vld [vmem:[%s3044_s3 + $0x128] sm:$0xff]  ;;  %v1899_v26 = vld [vmem:[%s3044_s3 + $0x38] sm:$0xff] }
 0x108   :  { %v1945_v22 = vld [vmem:[%s3044_s3 + $0x1a8] sm:$0xff] }
 0x109   :  { %v337_v41 = vmax.f32 %v329_v31, 0.0  ;;  %v1931_v31 = vld [vmem:[%s3044_s3 + $0x138] sm:$0xff] }
 0x10e   :  { %v310_v23 = vpop.permute.xlu2 %309 }
 0x10f   :  { %v327_v42 = vadd.f32 %v310_v23, %v279_v27  ;;  %v1914_v23 = vld [vmem:[%s3044_s3 + $0xb0] sm:$0xff]  ;;  %v1916_v27 = vld [vmem:[%s3044_s3 + $0xc0] sm:$0xff] }
 0x111   :  { %v335_v3 = vmax.f32 %v327_v42, 0.0 }
 0x114   :  { %v257_v43 = vpop.permute.xlu1 %256 }
 0x115   :  { %v278_v33 = vmul.f32 %v257_v43, %v2405_v1  ;;  %v1898_v43 = vld [vmem:[%s3044_s3 + $0x30] sm:$0xff] }
 0x116   :  { %v295_v38 = vpop.permute.xlu2 %294 }
 0x11e   :  { %v252_v24 = vpop.permute.xlu0 %251  ;;  %v242_v49 = vpop.permute.xlu2 %241 }
 0x11f   :  { %v247_v25 = vpop.permute.xlu1 %246  ;;  %v277_v1 = vmul.f32 %v252_v24, %v2438_v9  ;;  %v275_v52 = vmul.f32 %v242_v49, %v2455_v14  ;;  %v1908_v14 = vld [vmem:[%s3044_s3 + $0x80] sm:$0xff]  ;;  %v1930_v24 = vld [vmem:[%s3044_s3 + $0x130] sm:$0xff]  ;;  %v1933_v49 = vld [vmem:[%s3044_s3 + $0x148] sm:$0xff] }
 0x120   :  { %v276_v44 = vmul.f32 %v247_v25, %v2430_v7  ;;  %v1946_v25 = vld [vmem:[%s3044_s3 + $0x1b0] sm:$0xff] }
 0x122   :  { %v324_v0 = vadd.f32 %v295_v38, %v276_v44  ;;  %v1932_v38 = vld [vmem:[%s3044_s3 + $0x140] sm:$0xff] }
 0x124   :  { %v332_v48 = vmax.f32 %v324_v0, 0.0 }
 0x126   :  { %v315_v34 = vpop.permute.xlu0 %314 }
 0x127   :  { %v305_v36 = vpop.permute.xlu1 %304  ;;  %v328_v37 = vadd.f32 %v315_v34, %v280_v30  ;;  %v1915_v30 = vld [vmem:[%s3044_s3 + $0xb8] sm:$0xff]  ;;  %v1900_v34 = vld [vmem:[%s3044_s3 + $0x40] sm:$0xff] }
 0x128   :  { %v326_v39 = vadd.f32 %v305_v36, %v278_v33  ;;  %v1947_v33 = vld [vmem:[%s3044_s3 + $0x1b8] sm:$0xff] }
 0x129   :  { %v336_v28 = vmax.f32 %v328_v37, 0.0 }
 0x12a   :  { %v334_v29 = vmax.f32 %v326_v39, 0.0  ;;  %v1948_v39 = vld [vmem:[%s3044_s3 + $0x1c0] sm:$0xff] }
 0x12b   :  { %v341_v45 = vpack.c.bf16 %v337_v41, %v336_v28 }
 0x12c   :  { %v340_v46 = vpack.c.bf16 %v335_v3, %v334_v29 }
 0x12d   :  { %987 = vmatpush.bf16.msra.mxu0 %v341_v45  ;;  %2339 = vmatpush.bf16.msra.mxu1 %v341_v45 }
 0x12e   :  { %2340 = vmatpush.bf16.msra.mxu2 %v341_v45  ;;  %2341 = vmatpush.bf16.msra.mxu3 %v341_v45  ;;  %v237_v4 = vpop.permute.xlu0 %236 }
 0x12f   :  { %v300_v40 = vpop.permute.xlu1 %299  ;;  %v274_v54 = vmul.f32 %v237_v4, %v2448_v12  ;;  %v1924_v12 = vld [vmem:[%s3044_s3 + $0x100] sm:$0xff]  ;;  %v1917_v4 = vld [vmem:[%s3044_s3 + $0xc8] sm:$0xff] }
 0x130   :  { %v325_v47 = vadd.f32 %v300_v40, %v277_v1  ;;  %v1901_v1 = vld [vmem:[%s3044_s3 + $0x48] sm:$0xff] }
 0x131   :  { %988 = vmatpush.bf16.msra.mxu0 %v340_v46  ;;  %2342 = vmatpush.bf16.msra.mxu1 %v340_v46 }
 0x132   :  { %v333_v50 = vmax.f32 %v325_v47, 0.0  ;;  %2343 = vmatpush.bf16.msra.mxu2 %v340_v46  ;;  %2344 = vmatpush.bf16.msra.mxu3 %v340_v46 }
 0x134   :  { %v339_v7 = vpack.c.bf16 %v333_v50, %v332_v48  ;;  %v1949_v50 = vld [vmem:[%s3044_s3 + $0x1c8] sm:$0xff] }
 0x136   :  { %989 = vmatpush.bf16.msra.mxu0 %v339_v7  ;;  %2345 = vmatpush.bf16.msra.mxu1 %v339_v7  ;;  %v290_v9 = vpop.permute.xlu0 %289 }
 0x137   :  { %2346 = vmatpush.bf16.msra.mxu2 %v339_v7  ;;  %2347 = vmatpush.bf16.msra.mxu3 %v339_v7  ;;  %v323_v19 = vadd.f32 %v290_v9, %v275_v52  ;;  %v285_v32 = vpop.permute.xlu1 %284 }
 0x138   :  { %v322_v16 = vadd.f32 %v285_v32, %v274_v54 }
 0x139   :  { %v331_v55 = vmax.f32 %v323_v19, 0.0 }
 0x13a   :  { %v330_v60 = vmax.f32 %v322_v16, 0.0 }
 0x13c   :  { %v338_v35 = vpack.c.bf16 %v331_v55, %v330_v60  ;;  %v1902_v60 = vld [vmem:[%s3044_s3 + $0x50] sm:$0xff] }
 0x13e   :  { %990 = vmatpush.bf16.msra.mxu0 %v338_v35  ;;  %2348 = vmatpush.bf16.msra.mxu1 %v338_v35 }
 0x13f   :  { %2349 = vmatpush.bf16.msra.mxu2 %v338_v35  ;;  %2350 = vmatpush.bf16.msra.mxu3 %v338_v35  ;;  %v1918_v35 = vld [vmem:[%s3044_s3 + $0xd0] sm:$0xff] }
 0x141   :  { %1828 = vmatmul.msk.bf16.vlgmr.msra.gmra.mxu0 %vm790_vm8, %v1892_v57  ;;  %1844 = vmatmul.msk.bf16.vlgmr.msra.gmra.mxu1 %vm790_vm8, %v1908_v14 }
 0x142   :  { %1860 = vmatmul.msk.bf16.vlgmr.msra.gmra.mxu2 %vm790_vm8, %v1924_v12  ;;  %1876 = vmatmul.msk.bf16.vlgmr.msra.gmra.mxu3 %vm790_vm8, %v1940_v61 }
 0x151   :  { %1829 = vmatmul.msk.bf16.gmra.mxu0 %vm790_vm8, %v1893_v62  ;;  %1845 = vmatmul.msk.bf16.gmra.mxu1 %vm790_vm8, %v1909_v56  ;;  %v1934_v62 = vld [vmem:[%s3044_s3 + $0x150] sm:$0xff] }
 0x152   :  { %1861 = vmatmul.msk.bf16.gmra.mxu2 %vm790_vm8, %v1925_v51  ;;  %1877 = vmatmul.msk.bf16.gmra.mxu3 %vm790_vm8, %v1941_v63  ;;  %v1950_v56 = vld [vmem:[%s3044_s3 + $0x1d0] sm:$0xff] }
 0x161   :  { %1830 = vmatmul.msk.bf16.gmra.mxu0 %vm790_vm8, %v1894_v2  ;;  %1846 = vmatmul.msk.bf16.gmra.mxu1 %vm790_vm8, %v1910_v59 }
 0x162   :  { %1862 = vmatmul.msk.bf16.gmra.mxu2 %vm790_vm8, %v1926_v5  ;;  %1878 = vmatmul.msk.bf16.gmra.mxu3 %vm790_vm8, %v1942_v53 }
 0x171   :  { %1831 = vmatmul.msk.bf16.gmra.mxu0 %vm790_vm8, %v1895_v6  ;;  %1847 = vmatmul.msk.bf16.gmra.mxu1 %vm790_vm8, %v1911_v8 }
 0x172   :  { %1863 = vmatmul.msk.bf16.gmra.mxu2 %vm790_vm8, %v1927_v10  ;;  %1879 = vmatmul.msk.bf16.gmra.mxu3 %vm790_vm8, %v1943_v11  ;;  %v1903_v10 = vld [vmem:[%s3044_s3 + $0x58] sm:$0xff] }
 0x173   :  { %v1919_v11 = vld [vmem:[%s3044_s3 + $0xd8] sm:$0xff] }
 0x181   :  { %1832 = vmatmul.msk.bf16.gmra.mxu0 %vm790_vm8, %v1896_v13  ;;  %1848 = vmatmul.msk.bf16.gmra.mxu1 %vm790_vm8, %v1912_v58 }
 0x182   :  { %1864 = vmatmul.msk.bf16.gmra.mxu2 %vm790_vm8, %v1928_v15  ;;  %1880 = vmatmul.msk.bf16.gmra.mxu3 %vm790_vm8, %v1944_v17 }
 0x191   :  { %1833 = vmatmul.msk.bf16.gmra.mxu0 %vm790_vm8, %v1897_v18  ;;  %1849 = vmatmul.msk.bf16.gmra.mxu1 %vm790_vm8, %v1913_v20  ;;  %v1935_v18 = vld [vmem:[%s3044_s3 + $0x158] sm:$0xff] }
 0x192   :  { %1865 = vmatmul.msk.bf16.gmra.mxu2 %vm790_vm8, %v1929_v21  ;;  %1881 = vmatmul.msk.bf16.gmra.mxu3 %vm790_vm8, %v1945_v22  ;;  %v1951_v20 = vld [vmem:[%s3044_s3 + $0x1d8] sm:$0xff] }
 0x1a1   :  { %1834 = vmatmul.msk.bf16.gmra.mxu0 %vm790_vm8, %v1898_v43  ;;  %1850 = vmatmul.msk.bf16.gmra.mxu1 %vm790_vm8, %v1914_v23 }
 0x1a2   :  { %1866 = vmatmul.msk.bf16.gmra.mxu2 %vm790_vm8, %v1930_v24  ;;  %1882 = vmatmul.msk.bf16.gmra.mxu3 %vm790_vm8, %v1946_v25 }
 0x1b1   :  { %1835 = vmatmul.msk.bf16.gmra.mxu0 %vm790_vm8, %v1899_v26  ;;  %1851 = vmatmul.msk.bf16.gmra.mxu1 %vm790_vm8, %v1915_v30 }
 0x1b2   :  { %1867 = vmatmul.msk.bf16.gmra.mxu2 %vm790_vm8, %v1931_v31  ;;  %1883 = vmatmul.msk.bf16.gmra.mxu3 %vm790_vm8, %v1947_v33  ;;  %v1904_v31 = vld [vmem:[%s3044_s3 + $0x60] sm:$0xff] }
 0x1b3   :  { %v1920_v33 = vld [vmem:[%s3044_s3 + $0xe0] sm:$0xff] }
 0x1be   :  { %v992_v36 = vpop.f32.mrf.mxu0  ;;  %v1072_v37 = vpop.f32.mrf.mxu1 }
 0x1c1   :  { %1836 = vmatmul.msk.bf16.gmra.mxu0 %vm790_vm8, %v1900_v34  ;;  %1852 = vmatmul.msk.bf16.gmra.mxu1 %vm790_vm8, %v1916_v27 }
 0x1c2   :  { %1868 = vmatmul.msk.bf16.gmra.mxu2 %vm790_vm8, %v1932_v38  ;;  %1884 = vmatmul.msk.bf16.gmra.mxu3 %vm790_vm8, %v1948_v39  ;;  %v1936_v38 = vld [vmem:[%s3044_s3 + $0x160] sm:$0xff] }
 0x1c3   :  { %v1952_v39 = vld [vmem:[%s3044_s3 + $0x1e0] sm:$0xff] }
 0x1c5   :  { %v1152_v41 = vpop.f32.mrf.mxu2  ;;  %v1232_v42 = vpop.f32.mrf.mxu3 }
 0x1c6   :  { %v994_v28 = vpop.f32.mrf.mxu0  ;;  %v1074_v44 = vpop.f32.mrf.mxu1 }
 0x1c7   :  { %v1959_v29 = vpack.c.bf16 %v994_v28, %v992_v36  ;;  %v2039_v45 = vpack.c.bf16 %v1074_v44, %v1072_v37 }
 0x1c9   :  { %1960 = vst [vmem:[%s3045_s4] sm:$0xff] %v1959_v29  }
 0x1ca   :  { %2291 = vst [vmem:[%s3045_s4 + $0x80] sm:$0xff] %v2039_v45  }
 0x1cd   :  { %v1154_v3 = vpop.f32.mrf.mxu2  ;;  %v1234_v0 = vpop.f32.mrf.mxu3 }
 0x1ce   :  { %v2119_v46 = vpack.c.bf16 %v1154_v3, %v1152_v41  ;;  %v2199_v40 = vpack.c.bf16 %v1234_v0, %v1232_v42  ;;  %v997_v47 = vpop.f32.mrf.mxu0  ;;  %v1077_v48 = vpop.f32.mrf.mxu1 }
 0x1d0   :  { %2307 = vst [vmem:[%s3045_s4 + $0x100] sm:$0xff] %v2119_v46  }
 0x1d1   :  { %2323 = vst [vmem:[%s3045_s4 + $0x180] sm:$0xff] %v2199_v40   ;;  %1837 = vmatmul.msk.bf16.gmra.mxu0 %vm790_vm8, %v1901_v1  ;;  %1853 = vmatmul.msk.bf16.gmra.mxu1 %vm790_vm8, %v1917_v4  ;;  %v1905_v1 = vld [vmem:[%s3044_s3 + $0x68] sm:$0xff] }
 0x1d2   :  { %1869 = vmatmul.msk.bf16.gmra.mxu2 %vm790_vm8, %v1933_v49  ;;  %1885 = vmatmul.msk.bf16.gmra.mxu3 %vm790_vm8, %v1949_v50  ;;  %v1921_v4 = vld [vmem:[%s3044_s3 + $0xe8] sm:$0xff] }
 0x1d3   :  { %v1937_v49 = vld [vmem:[%s3044_s3 + $0x168] sm:$0xff] }
 0x1d4   :  { %v1953_v50 = vld [vmem:[%s3044_s3 + $0x1e8] sm:$0xff] }
 0x1d5   :  { %v1157_v7 = vpop.f32.mrf.mxu2  ;;  %v1237_v52 = vpop.f32.mrf.mxu3 }
 0x1d6   :  { %v999_v54 = vpop.f32.mrf.mxu0  ;;  %v1079_v9 = vpop.f32.mrf.mxu1 }
 0x1d7   :  { %v1964_v19 = vpack.c.bf16 %v999_v54, %v997_v47  ;;  %v2044_v32 = vpack.c.bf16 %v1079_v9, %v1077_v48 }
 0x1d9   :  { %2276 = vst [vmem:[%s3045_s4 + $0x8] sm:$0xff] %v1964_v19  }
 0x1da   :  { %2292 = vst [vmem:[%s3045_s4 + $0x88] sm:$0xff] %v2044_v32  }
 0x1dd   :  { %v1159_v16 = vpop.f32.mrf.mxu2  ;;  %v1239_v55 = vpop.f32.mrf.mxu3 }
 0x1de   :  { %v2124_v57 = vpack.c.bf16 %v1159_v16, %v1157_v7  ;;  %v2204_v14 = vpack.c.bf16 %v1239_v55, %v1237_v52  ;;  %v1002_v12 = vpop.f32.mrf.mxu0  ;;  %v1082_v61 = vpop.f32.mrf.mxu1 }
 0x1e0   :  { %2308 = vst [vmem:[%s3045_s4 + $0x108] sm:$0xff] %v2124_v57  }
 0x1e1   :  { %2324 = vst [vmem:[%s3045_s4 + $0x188] sm:$0xff] %v2204_v14   ;;  %1838 = vmatmul.msk.bf16.gmra.mxu0 %vm790_vm8, %v1902_v60  ;;  %1854 = vmatmul.msk.bf16.gmra.mxu1 %vm790_vm8, %v1918_v35  ;;  %v1906_v60 = vld [vmem:[%s3044_s3 + $0x70] sm:$0xff] }
 0x1e2   :  { %1870 = vmatmul.msk.bf16.gmra.mxu2 %vm790_vm8, %v1934_v62  ;;  %1886 = vmatmul.msk.bf16.gmra.mxu3 %vm790_vm8, %v1950_v56  ;;  %v1922_v35 = vld [vmem:[%s3044_s3 + $0xf0] sm:$0xff] }
 0x1e3   :  { %v1938_v62 = vld [vmem:[%s3044_s3 + $0x170] sm:$0xff] }
 0x1e4   :  { %v1954_v56 = vld [vmem:[%s3044_s3 + $0x1f0] sm:$0xff] }
 0x1e5   :  { %v1162_v51 = vpop.f32.mrf.mxu2  ;;  %v1242_v63 = vpop.f32.mrf.mxu3 }
 0x1e6   :  { %v1004_v2 = vpop.f32.mrf.mxu0  ;;  %v1084_v59 = vpop.f32.mrf.mxu1 }
 0x1e7   :  { %v1969_v5 = vpack.c.bf16 %v1004_v2, %v1002_v12  ;;  %v2049_v53 = vpack.c.bf16 %v1084_v59, %v1082_v61 }
 0x1e9   :  { %2277 = vst [vmem:[%s3045_s4 + $0x10] sm:$0xff] %v1969_v5  }
 0x1ea   :  { %2293 = vst [vmem:[%s3045_s4 + $0x90] sm:$0xff] %v2049_v53  }
 0x1ed   :  { %v1164_v6 = vpop.f32.mrf.mxu2  ;;  %v1244_v8 = vpop.f32.mrf.mxu3 }
 0x1ee   :  { %v2129_v13 = vpack.c.bf16 %v1164_v6, %v1162_v51  ;;  %v2209_v58 = vpack.c.bf16 %v1244_v8, %v1242_v63  ;;  %v1007_v15 = vpop.f32.mrf.mxu0  ;;  %v1087_v17 = vpop.f32.mrf.mxu1 }
 0x1f0   :  { %2309 = vst [vmem:[%s3045_s4 + $0x110] sm:$0xff] %v2129_v13  }
 0x1f1   :  { %2325 = vst [vmem:[%s3045_s4 + $0x190] sm:$0xff] %v2209_v58   ;;  %1839 = vmatmul.msk.bf16.gmra.mxu0 %vm790_vm8, %v1903_v10  ;;  %1855 = vmatmul.msk.bf16.gmra.mxu1 %vm790_vm8, %v1919_v11  ;;  %v1907_v10 = vld [vmem:[%s3044_s3 + $0x78] sm:$0xff] }
 0x1f2   :  { %1871 = vmatmul.msk.bf16.gmra.mxu2 %vm790_vm8, %v1935_v18  ;;  %1887 = vmatmul.msk.bf16.gmra.mxu3 %vm790_vm8, %v1951_v20  ;;  %v1923_v11 = vld [vmem:[%s3044_s3 + $0xf8] sm:$0xff] }
 0x1f3   :  { %v1939_v18 = vld [vmem:[%s3044_s3 + $0x178] sm:$0xff] }
 0x1f4   :  { %v1955_v20 = vld [vmem:[%s3044_s3 + $0x1f8] sm:$0xff] }
 0x1f5   :  { %v1167_v21 = vpop.f32.mrf.mxu2  ;;  %v1247_v22 = vpop.f32.mrf.mxu3 }
 0x1f6   :  { %v1009_v43 = vpop.f32.mrf.mxu0  ;;  %v1089_v23 = vpop.f32.mrf.mxu1 }
 0x1f7   :  { %v1974_v24 = vpack.c.bf16 %v1009_v43, %v1007_v15  ;;  %v2054_v25 = vpack.c.bf16 %v1089_v23, %v1087_v17 }
 0x1f9   :  { %2278 = vst [vmem:[%s3045_s4 + $0x18] sm:$0xff] %v1974_v24  }
 0x1fa   :  { %2294 = vst [vmem:[%s3045_s4 + $0x98] sm:$0xff] %v2054_v25  }
 0x1fd   :  { %v1169_v26 = vpop.f32.mrf.mxu2  ;;  %v1249_v30 = vpop.f32.mrf.mxu3 }
 0x1fe   :  { %v2134_v34 = vpack.c.bf16 %v1169_v26, %v1167_v21  ;;  %v2214_v27 = vpack.c.bf16 %v1249_v30, %v1247_v22  ;;  %v1012_v36 = vpop.f32.mrf.mxu0  ;;  %v1092_v37 = vpop.f32.mrf.mxu1 }
 0x200   :  { %2310 = vst [vmem:[%s3045_s4 + $0x118] sm:$0xff] %v2134_v34  }
 0x201   :  { %2326 = vst [vmem:[%s3045_s4 + $0x198] sm:$0xff] %v2214_v27   ;;  %1840 = vmatmul.msk.bf16.gmra.mxu0 %vm790_vm8, %v1904_v31  ;;  %1856 = vmatmul.msk.bf16.gmra.mxu1 %vm790_vm8, %v1920_v33 }
 0x202   :  { %1872 = vmatmul.msk.bf16.gmra.mxu2 %vm790_vm8, %v1936_v38  ;;  %1888 = vmatmul.msk.bf16.gmra.mxu3 %vm790_vm8, %v1952_v39 }
 0x205   :  { %v1172_v41 = vpop.f32.mrf.mxu2  ;;  %v1252_v42 = vpop.f32.mrf.mxu3 }
 0x206   :  { %v1014_v28 = vpop.f32.mrf.mxu0  ;;  %v1094_v44 = vpop.f32.mrf.mxu1 }
 0x207   :  { %v1979_v29 = vpack.c.bf16 %v1014_v28, %v1012_v36  ;;  %v2059_v45 = vpack.c.bf16 %v1094_v44, %v1092_v37 }
 0x209   :  { %2279 = vst [vmem:[%s3045_s4 + $0x20] sm:$0xff] %v1979_v29  }
 0x20a   :  { %2295 = vst [vmem:[%s3045_s4 + $0xa0] sm:$0xff] %v2059_v45  }
 0x20d   :  { %v1174_v3 = vpop.f32.mrf.mxu2  ;;  %v1254_v0 = vpop.f32.mrf.mxu3 }
 0x20e   :  { %v2139_v46 = vpack.c.bf16 %v1174_v3, %v1172_v41  ;;  %v2219_v40 = vpack.c.bf16 %v1254_v0, %v1252_v42  ;;  %v1017_v47 = vpop.f32.mrf.mxu0  ;;  %v1097_v48 = vpop.f32.mrf.mxu1 }
 0x210   :  { %2311 = vst [vmem:[%s3045_s4 + $0x120] sm:$0xff] %v2139_v46  }
 0x211   :  { %2327 = vst [vmem:[%s3045_s4 + $0x1a0] sm:$0xff] %v2219_v40   ;;  %1841 = vmatmul.msk.bf16.gmra.mxu0 %vm790_vm8, %v1905_v1  ;;  %1857 = vmatmul.msk.bf16.gmra.mxu1 %vm790_vm8, %v1921_v4 }
 0x212   :  { %1873 = vmatmul.msk.bf16.gmra.mxu2 %vm790_vm8, %v1937_v49  ;;  %1889 = vmatmul.msk.bf16.gmra.mxu3 %vm790_vm8, %v1953_v50 }
 0x215   :  { %v1177_v7 = vpop.f32.mrf.mxu2  ;;  %v1257_v52 = vpop.f32.mrf.mxu3 }
 0x216   :  { %v1019_v54 = vpop.f32.mrf.mxu0  ;;  %v1099_v9 = vpop.f32.mrf.mxu1 }
 0x217   :  { %v1984_v19 = vpack.c.bf16 %v1019_v54, %v1017_v47  ;;  %v2064_v32 = vpack.c.bf16 %v1099_v9, %v1097_v48 }
 0x219   :  { %2280 = vst [vmem:[%s3045_s4 + $0x28] sm:$0xff] %v1984_v19  }
 0x21a   :  { %2296 = vst [vmem:[%s3045_s4 + $0xa8] sm:$0xff] %v2064_v32  }
 0x21d   :  { %v1179_v16 = vpop.f32.mrf.mxu2  ;;  %v1259_v55 = vpop.f32.mrf.mxu3 }
 0x21e   :  { %v2144_v57 = vpack.c.bf16 %v1179_v16, %v1177_v7  ;;  %v2224_v14 = vpack.c.bf16 %v1259_v55, %v1257_v52  ;;  %v1022_v12 = vpop.f32.mrf.mxu0  ;;  %v1102_v61 = vpop.f32.mrf.mxu1 }
 0x220   :  { %2312 = vst [vmem:[%s3045_s4 + $0x128] sm:$0xff] %v2144_v57  }
 0x221   :  { %2328 = vst [vmem:[%s3045_s4 + $0x1a8] sm:$0xff] %v2224_v14   ;;  %1842 = vmatmul.msk.bf16.gmra.mxu0 %vm790_vm8, %v1906_v60  ;;  %1858 = vmatmul.msk.bf16.gmra.mxu1 %vm790_vm8, %v1922_v35 }
 0x222   :  { %1874 = vmatmul.msk.bf16.gmra.mxu2 %vm790_vm8, %v1938_v62  ;;  %1890 = vmatmul.msk.bf16.gmra.mxu3 %vm790_vm8, %v1954_v56 }
 0x225   :  { %v1182_v51 = vpop.f32.mrf.mxu2  ;;  %v1262_v63 = vpop.f32.mrf.mxu3 }
 0x226   :  { %v1024_v2 = vpop.f32.mrf.mxu0  ;;  %v1104_v59 = vpop.f32.mrf.mxu1 }
 0x227   :  { %v1989_v5 = vpack.c.bf16 %v1024_v2, %v1022_v12  ;;  %v2069_v53 = vpack.c.bf16 %v1104_v59, %v1102_v61 }
 0x229   :  { %2281 = vst [vmem:[%s3045_s4 + $0x30] sm:$0xff] %v1989_v5  }
 0x22a   :  { %2297 = vst [vmem:[%s3045_s4 + $0xb0] sm:$0xff] %v2069_v53  }
 0x22d   :  { %v1184_v6 = vpop.f32.mrf.mxu2  ;;  %v1264_v8 = vpop.f32.mrf.mxu3 }
 0x22e   :  { %v2149_v13 = vpack.c.bf16 %v1184_v6, %v1182_v51  ;;  %v2229_v58 = vpack.c.bf16 %v1264_v8, %v1262_v63  ;;  %v1027_v15 = vpop.f32.mrf.mxu0  ;;  %v1107_v17 = vpop.f32.mrf.mxu1 }
 0x230   :  { %2313 = vst [vmem:[%s3045_s4 + $0x130] sm:$0xff] %v2149_v13  }
 0x231   :  { %2329 = vst [vmem:[%s3045_s4 + $0x1b0] sm:$0xff] %v2229_v58   ;;  %1843 = vmatmul.msk.bf16.gmra.mxu0 %vm790_vm8, %v1907_v10  ;;  %1859 = vmatmul.msk.bf16.gmra.mxu1 %vm790_vm8, %v1923_v11 }
 0x232   :  { %1875 = vmatmul.msk.bf16.gmra.mxu2 %vm790_vm8, %v1939_v18  ;;  %1891 = vmatmul.msk.bf16.gmra.mxu3 %vm790_vm8, %v1955_v20 }
 0x235   :  { %v1187_v21 = vpop.f32.mrf.mxu2  ;;  %v1267_v22 = vpop.f32.mrf.mxu3 }
 0x236   :  { %v1029_v43 = vpop.f32.mrf.mxu0  ;;  %v1109_v23 = vpop.f32.mrf.mxu1 }
 0x237   :  { %v1994_v24 = vpack.c.bf16 %v1029_v43, %v1027_v15  ;;  %v2074_v25 = vpack.c.bf16 %v1109_v23, %v1107_v17 }
 0x239   :  { %2282 = vst [vmem:[%s3045_s4 + $0x38] sm:$0xff] %v1994_v24  }
 0x23a   :  { %2298 = vst [vmem:[%s3045_s4 + $0xb8] sm:$0xff] %v2074_v25  }
 0x23d   :  { %v1189_v26 = vpop.f32.mrf.mxu2  ;;  %v1269_v30 = vpop.f32.mrf.mxu3 }
 0x23e   :  { %v2154_v31 = vpack.c.bf16 %v1189_v26, %v1187_v21  ;;  %v2234_v33 = vpack.c.bf16 %v1269_v30, %v1267_v22  ;;  %v1032_v34 = vpop.f32.mrf.mxu0  ;;  %v1112_v27 = vpop.f32.mrf.mxu1 }
 0x240   :  { %2314 = vst [vmem:[%s3045_s4 + $0x138] sm:$0xff] %v2154_v31  }
 0x241   :  { %2330 = vst [vmem:[%s3045_s4 + $0x1b8] sm:$0xff] %v2234_v33  }
 0x245   :  { %v1192_v36 = vpop.f32.mrf.mxu2  ;;  %v1272_v37 = vpop.f32.mrf.mxu3 }
 0x246   :  { %v1034_v38 = vpop.f32.mrf.mxu0  ;;  %v1114_v39 = vpop.f32.mrf.mxu1 }
 0x247   :  { %v1999_v41 = vpack.c.bf16 %v1034_v38, %v1032_v34  ;;  %v2079_v42 = vpack.c.bf16 %v1114_v39, %v1112_v27 }
 0x249   :  { %2283 = vst [vmem:[%s3045_s4 + $0x40] sm:$0xff] %v1999_v41  }
 0x24a   :  { %2299 = vst [vmem:[%s3045_s4 + $0xc0] sm:$0xff] %v2079_v42  }
 0x24d   :  { %v1194_v28 = vpop.f32.mrf.mxu2  ;;  %v1274_v44 = vpop.f32.mrf.mxu3 }
 0x24e   :  { %v2159_v29 = vpack.c.bf16 %v1194_v28, %v1192_v36  ;;  %v2239_v45 = vpack.c.bf16 %v1274_v44, %v1272_v37  ;;  %v1037_v3 = vpop.f32.mrf.mxu0  ;;  %v1117_v0 = vpop.f32.mrf.mxu1 }
 0x250   :  { %2315 = vst [vmem:[%s3045_s4 + $0x140] sm:$0xff] %v2159_v29  }
 0x251   :  { %2331 = vst [vmem:[%s3045_s4 + $0x1c0] sm:$0xff] %v2239_v45  }
 0x255   :  { %v1197_v1 = vpop.f32.mrf.mxu2  ;;  %v1277_v4 = vpop.f32.mrf.mxu3 }
 0x256   :  { %v1039_v46 = vpop.f32.mrf.mxu0  ;;  %v1119_v40 = vpop.f32.mrf.mxu1 }
 0x257   :  { %v2004_v47 = vpack.c.bf16 %v1039_v46, %v1037_v3  ;;  %v2084_v48 = vpack.c.bf16 %v1119_v40, %v1117_v0 }
 0x259   :  { %2284 = vst [vmem:[%s3045_s4 + $0x48] sm:$0xff] %v2004_v47  }
 0x25a   :  { %2300 = vst [vmem:[%s3045_s4 + $0xc8] sm:$0xff] %v2084_v48  }
 0x25d   :  { %v1199_v49 = vpop.f32.mrf.mxu2  ;;  %v1279_v50 = vpop.f32.mrf.mxu3 }
 0x25e   :  { %v2164_v7 = vpack.c.bf16 %v1199_v49, %v1197_v1  ;;  %v2244_v52 = vpack.c.bf16 %v1279_v50, %v1277_v4  ;;  %v1042_v54 = vpop.f32.mrf.mxu0  ;;  %v1122_v9 = vpop.f32.mrf.mxu1 }
 0x260   :  { %2316 = vst [vmem:[%s3045_s4 + $0x148] sm:$0xff] %v2164_v7  }
 0x261   :  { %2332 = vst [vmem:[%s3045_s4 + $0x1c8] sm:$0xff] %v2244_v52  }
 0x265   :  { %v1202_v19 = vpop.f32.mrf.mxu2  ;;  %v1282_v32 = vpop.f32.mrf.mxu3 }
 0x266   :  { %v1044_v16 = vpop.f32.mrf.mxu0  ;;  %v1124_v55 = vpop.f32.mrf.mxu1 }
 0x267   :  { %v2009_v60 = vpack.c.bf16 %v1044_v16, %v1042_v54  ;;  %v2089_v35 = vpack.c.bf16 %v1124_v55, %v1122_v9 }
 0x269   :  { %2285 = vst [vmem:[%s3045_s4 + $0x50] sm:$0xff] %v2009_v60  }
 0x26a   :  { %2301 = vst [vmem:[%s3045_s4 + $0xd0] sm:$0xff] %v2089_v35  }
 0x26d   :  { %v1204_v57 = vpop.f32.mrf.mxu2  ;;  %v1284_v14 = vpop.f32.mrf.mxu3 }
 0x26e   :  { %v2169_v12 = vpack.c.bf16 %v1204_v57, %v1202_v19  ;;  %v2249_v61 = vpack.c.bf16 %v1284_v14, %v1282_v32  ;;  %v1047_v62 = vpop.f32.mrf.mxu0  ;;  %v1127_v56 = vpop.f32.mrf.mxu1 }
 0x270   :  { %2317 = vst [vmem:[%s3045_s4 + $0x150] sm:$0xff] %v2169_v12  }
 0x271   :  { %2333 = vst [vmem:[%s3045_s4 + $0x1d0] sm:$0xff] %v2249_v61  }
 0x275   :  { %v1207_v51 = vpop.f32.mrf.mxu2  ;;  %v1287_v63 = vpop.f32.mrf.mxu3 }
 0x276   :  { %v1049_v2 = vpop.f32.mrf.mxu0  ;;  %v1129_v59 = vpop.f32.mrf.mxu1 }
 0x277   :  { %v2014_v5 = vpack.c.bf16 %v1049_v2, %v1047_v62  ;;  %v2094_v53 = vpack.c.bf16 %v1129_v59, %v1127_v56 }
 0x279   :  { %2286 = vst [vmem:[%s3045_s4 + $0x58] sm:$0xff] %v2014_v5  }
 0x27a   :  { %2302 = vst [vmem:[%s3045_s4 + $0xd8] sm:$0xff] %v2094_v53  }
 0x27d   :  { %v1209_v6 = vpop.f32.mrf.mxu2  ;;  %v1289_v8 = vpop.f32.mrf.mxu3 }
 0x27e   :  { %v2174_v10 = vpack.c.bf16 %v1209_v6, %v1207_v51  ;;  %v2254_v11 = vpack.c.bf16 %v1289_v8, %v1287_v63  ;;  %v1052_v13 = vpop.f32.mrf.mxu0  ;;  %v1132_v58 = vpop.f32.mrf.mxu1 }
 0x280   :  { %2318 = vst [vmem:[%s3045_s4 + $0x158] sm:$0xff] %v2174_v10  }
 0x281   :  { %2334 = vst [vmem:[%s3045_s4 + $0x1d8] sm:$0xff] %v2254_v11  }
 0x285   :  { %v1212_v15 = vpop.f32.mrf.mxu2  ;;  %v1292_v17 = vpop.f32.mrf.mxu3 }
 0x286   :  { %v1054_v18 = vpop.f32.mrf.mxu0  ;;  %v1134_v20 = vpop.f32.mrf.mxu1 }
 0x287   :  { %v2019_v21 = vpack.c.bf16 %v1054_v18, %v1052_v13  ;;  %v2099_v22 = vpack.c.bf16 %v1134_v20, %v1132_v58 }
 0x289   :  { %2287 = vst [vmem:[%s3045_s4 + $0x60] sm:$0xff] %v2019_v21  }
 0x28a   :  { %2303 = vst [vmem:[%s3045_s4 + $0xe0] sm:$0xff] %v2099_v22  }
 0x28d   :  { %v1214_v43 = vpop.f32.mrf.mxu2  ;;  %v1294_v23 = vpop.f32.mrf.mxu3 }
 0x28e   :  { %v2179_v24 = vpack.c.bf16 %v1214_v43, %v1212_v15  ;;  %v2259_v25 = vpack.c.bf16 %v1294_v23, %v1292_v17  ;;  %v1057_v26 = vpop.f32.mrf.mxu0  ;;  %v1137_v30 = vpop.f32.mrf.mxu1 }
 0x290   :  { %2319 = vst [vmem:[%s3045_s4 + $0x160] sm:$0xff] %v2179_v24  }
 0x291   :  { %2335 = vst [vmem:[%s3045_s4 + $0x1e0] sm:$0xff] %v2259_v25  }
 0x295   :  { %v1217_v31 = vpop.f32.mrf.mxu2  ;;  %v1297_v33 = vpop.f32.mrf.mxu3 }
 0x296   :  { %v1059_v34 = vpop.f32.mrf.mxu0  ;;  %v1139_v27 = vpop.f32.mrf.mxu1 }
 0x297   :  { %v2024_v36 = vpack.c.bf16 %v1059_v34, %v1057_v26  ;;  %v2104_v37 = vpack.c.bf16 %v1139_v27, %v1137_v30 }
 0x299   :  { %2288 = vst [vmem:[%s3045_s4 + $0x68] sm:$0xff] %v2024_v36  }
 0x29a   :  { %2304 = vst [vmem:[%s3045_s4 + $0xe8] sm:$0xff] %v2104_v37  }
 0x29d   :  { %v1219_v38 = vpop.f32.mrf.mxu2  ;;  %v1299_v39 = vpop.f32.mrf.mxu3 }
 0x29e   :  { %v2184_v41 = vpack.c.bf16 %v1219_v38, %v1217_v31  ;;  %v2264_v42 = vpack.c.bf16 %v1299_v39, %v1297_v33  ;;  %v1062_v28 = vpop.f32.mrf.mxu0  ;;  %v1142_v44 = vpop.f32.mrf.mxu1 }
 0x2a0   :  { %2320 = vst [vmem:[%s3045_s4 + $0x168] sm:$0xff] %v2184_v41  }
 0x2a1   :  { %2336 = vst [vmem:[%s3045_s4 + $0x1e8] sm:$0xff] %v2264_v42  }
 0x2a5   :  { %v1222_v29 = vpop.f32.mrf.mxu2  ;;  %v1302_v45 = vpop.f32.mrf.mxu3 }
 0x2a6   :  { %v1064_v3 = vpop.f32.mrf.mxu0  ;;  %v1144_v0 = vpop.f32.mrf.mxu1 }
 0x2a7   :  { %v2029_v1 = vpack.c.bf16 %v1064_v3, %v1062_v28  ;;  %v2109_v4 = vpack.c.bf16 %v1144_v0, %v1142_v44 }
 0x2a9   :  { %2289 = vst [vmem:[%s3045_s4 + $0x70] sm:$0xff] %v2029_v1  }
 0x2aa   :  { %2305 = vst [vmem:[%s3045_s4 + $0xf0] sm:$0xff] %v2109_v4  }
 0x2ad   :  { %v1224_v46 = vpop.f32.mrf.mxu2  ;;  %v1304_v40 = vpop.f32.mrf.mxu3 }
 0x2ae   :  { %v2189_v47 = vpack.c.bf16 %v1224_v46, %v1222_v29  ;;  %v2269_v48 = vpack.c.bf16 %v1304_v40, %v1302_v45  ;;  %v1067_v49 = vpop.f32.mrf.mxu0  ;;  %v1147_v50 = vpop.f32.mrf.mxu1 }
 0x2b0   :  { %2321 = vst [vmem:[%s3045_s4 + $0x170] sm:$0xff] %v2189_v47  }
 0x2b1   :  { %2337 = vst [vmem:[%s3045_s4 + $0x1f0] sm:$0xff] %v2269_v48  }
 0x2b5   :  { %v1227_v7 = vpop.f32.mrf.mxu2  ;;  %v1307_v52 = vpop.f32.mrf.mxu3 }
 0x2b6   :  { %v1069_v54 = vpop.f32.mrf.mxu0  ;;  %v1149_v9 = vpop.f32.mrf.mxu1 }
 0x2b7   :  { %v2034_v19 = vpack.c.bf16 %v1069_v54, %v1067_v49  ;;  %v2114_v32 = vpack.c.bf16 %v1149_v9, %v1147_v50 }
 0x2b9   :  { %2290 = vst [vmem:[%s3045_s4 + $0x78] sm:$0xff] %v2034_v19  }
 0x2ba   :  { %2306 = vst [vmem:[%s3045_s4 + $0xf8] sm:$0xff] %v2114_v32  }
 0x2bd   :  { %v1229_v16 = vpop.f32.mrf.mxu2  ;;  %v1309_v55 = vpop.f32.mrf.mxu3 }
 0x2be   :  { %v2194_v60 = vpack.c.bf16 %v1229_v16, %v1227_v7  ;;  %v2274_v35 = vpack.c.bf16 %v1309_v55, %v1307_v52 }
 0x2c0   :  { %2322 = vst [vmem:[%s3045_s4 + $0x178] sm:$0xff] %v2194_v60  }
 0x2c1   :  { %2338 = vst [vmem:[%s3045_s4 + $0x1f8] sm:$0xff] %v2274_v35  }

// kernel: omniglot_decoder.9
= control target key start
LH: loop header
LB: loop body
LE: loop exit
PB: predicated region body
PF: predicated region fallthrough
CT: control target
= control target key end

     0   :  { %s2006_s0 = inlined_call_operand.vmem [shape: f32[64,384], index: 0, kind: input, shape index: {}]   ;;  %s2007_s1 = inlined_call_operand.vmem [shape: f32[64,1], index: 1, kind: input, shape index: {}]   ;;  %s2008_s2 = inlined_call_operand.vmem [shape: f32[64,1], index: 2, kind: input, shape index: {}]   ;;  %s2009_s3 = inlined_call_operand.vmem [shape: bf16[288,64], index: 3, kind: input, shape index: {}]   ;;  %s2010_s4 = inlined_call_operand.vmem [shape: bf16[288,384], index: 4, kind: output, shape index: {}]  }
   0x1   :  { %v1293_v0 = vld [vmem:[%s2006_s0 + $0x90] sm:$0xff]  ;;  %v1298_v1 = vld [vmem:[%s2006_s0 + $0x98] sm:$0xff]  ;;  %v1303_v2 = vld [vmem:[%s2006_s0 + $0xa0] sm:$0xff] }
   0x2   :  { %v66_v3 = vadd.f32 %v1298_v1, %v1293_v0  ;;  %v92_v4 = vmul.f32 %v1293_v0, %v1293_v0  ;;  %v93_v5 = vmul.f32 %v1298_v1, %v1298_v1  ;;  %v94_v6 = vmul.f32 %v1303_v2, %v1303_v2  ;;  %v1316_v7 = vld [vmem:[%s2006_s0 + $0x60] sm:$0xff]  ;;  %v1321_v8 = vld [vmem:[%s2006_s0 + $0x68] sm:$0xff]  ;;  %v1326_v9 = vld [vmem:[%s2006_s0 + $0x70] sm:$0xff] }
   0x3   :  { %v58_v10 = vadd.f32 %v1321_v8, %v1316_v7  ;;  %v1333_v11 = vld [vmem:[%s2006_s0 + $0xa8] sm:$0xff]  ;;  %v1338_v12 = vld [vmem:[%s2006_s0 + $0xb0] sm:$0xff]  ;;  %v1346_v16 = vld [vmem:[%s2006_s0 + $0x78] sm:$0xff]  ;;  %v86_v28 = vmul.f32 %v1316_v7, %v1316_v7  ;;  %v87_v29 = vmul.f32 %v1321_v8, %v1321_v8  ;;  %v88_v36 = vmul.f32 %v1326_v9, %v1326_v9 }
   0x4   :  { %v67_v13 = vadd.f32 %v66_v3, %v1303_v2  ;;  %v122_v14 = vadd.f32 %v93_v5, %v92_v4  ;;  %v95_v15 = vmul.f32 %v1333_v11, %v1333_v11  ;;  %v1351_v17 = vld [vmem:[%s2006_s0 + $0x80] sm:$0xff]  ;;  %v1357_v19 = vld [vmem:[%s2006_s0 + $0xb8] sm:$0xff]  ;;  %v96_v20 = vmul.f32 %v1338_v12, %v1338_v12  ;;  %v1370_v26 = vld [vmem:[%s2006_s0 + $0x88] sm:$0xff] }
   0x5   :  { %v59_v18 = vadd.f32 %v58_v10, %v1326_v9  ;;  %v70_v22 = vadd.f32 %v1338_v12, %v1333_v11  ;;  %v62_v23 = vadd.f32 %v1351_v17, %v1346_v16  ;;  %v97_v24 = vmul.f32 %v1357_v19, %v1357_v19  ;;  %v1385_v34 = vld [vmem:[%s2006_s0 + $0x30] sm:$0xff]  ;;  %v1390_v35 = vld [vmem:[%s2006_s0 + $0x38] sm:$0xff]  ;;  %v1401_v41 = vld [vmem:[%s2006_s0 + $0x40] sm:$0xff] }
   0x6   :  { %68 = vadd.xlane.f32.xlu0 %v67_v13  ;;  %v123_v21 = vadd.f32 %v122_v14, %v94_v6  ;;  %v126_v25 = vadd.f32 %v96_v20, %v95_v15  ;;  %v89_v32 = vmul.f32 %v1346_v16, %v1346_v16  ;;  %v90_v33 = vmul.f32 %v1351_v17, %v1351_v17  ;;  %v1406_v42 = vld [vmem:[%s2006_s0 + $0x48] sm:$0xff]  ;;  %v1411_v43 = vld [vmem:[%s2006_s0 + $0x50] sm:$0xff]  ;;  %v1421_v49 = vld [vmem:[%s2006_s0 + $0x58] sm:$0xff] }
   0x7   :  { %60 = vadd.xlane.f32.xlu2 %v59_v18  ;;  %v71_v27 = vadd.f32 %v70_v22, %v1357_v19  ;;  %v63_v30 = vadd.f32 %v62_v23, %v1370_v26  ;;  %v114_v37 = vadd.f32 %v87_v29, %v86_v28  ;;  %v50_v38 = vadd.f32 %v1390_v35, %v1385_v34  ;;  %v1436_v57 = vld [vmem:[%s2006_s0] sm:$0xff]  ;;  %v1441_v58 = vld [vmem:[%s2006_s0 + $0x8] sm:$0xff]  ;;  %v1451_v3 = vld [vmem:[%s2006_s0 + $0x10] sm:$0xff] }
   0x8   :  { %124 = vadd.xlane.f32.xlu1 %v123_v21  ;;  %v127_v31 = vadd.f32 %v126_v25, %v97_v24  ;;  %v91_v39 = vmul.f32 %v1370_v26, %v1370_v26  ;;  %v118_v40 = vadd.f32 %v90_v33, %v89_v32  ;;  %v83_v46 = vmul.f32 %v1406_v42, %v1406_v42  ;;  %v1456_v4 = vld [vmem:[%s2006_s0 + $0x18] sm:$0xff]  ;;  %v1461_v5 = vld [vmem:[%s2006_s0 + $0x20] sm:$0xff]  ;;  %v1472_v15 = vld [vmem:[%s2006_s0 + $0x28] sm:$0xff] }
   0x9   :  { %v115_v44 = vadd.f32 %v114_v37, %v88_v36  ;;  %v51_v45 = vadd.f32 %v50_v38, %v1401_v41  ;;  %v84_v47 = vmul.f32 %v1411_v43, %v1411_v43  ;;  %v80_v50 = vmul.f32 %v1385_v34, %v1385_v34 }
   0xa   :  { %v119_v48 = vadd.f32 %v118_v40, %v91_v39  ;;  %v81_v51 = vmul.f32 %v1390_v35, %v1390_v35  ;;  %v54_v52 = vadd.f32 %v1411_v43, %v1406_v42  ;;  %v85_v53 = vmul.f32 %v1421_v49, %v1421_v49 }
   0xb   :  { %v110_v54 = vadd.f32 %v84_v47, %v83_v46  ;;  %v82_v55 = vmul.f32 %v1401_v41, %v1401_v41  ;;  %v74_v61 = vmul.f32 %v1436_v57, %v1436_v57  ;;  %v75_v62 = vmul.f32 %v1441_v58, %v1441_v58 }
   0xc   :  { %v106_v56 = vadd.f32 %v81_v51, %v80_v50  ;;  %v55_v59 = vadd.f32 %v54_v52, %v1421_v49  ;;  %v42_v6 = vadd.f32 %v1441_v58, %v1436_v57  ;;  %v76_v10 = vmul.f32 %v1451_v3, %v1451_v3 }
   0xd   :  { %v111_v60 = vadd.f32 %v110_v54, %v85_v53  ;;  %v98_v13 = vadd.f32 %v75_v62, %v74_v61  ;;  %v46_v14 = vadd.f32 %v1461_v5, %v1456_v4  ;;  %v77_v20 = vmul.f32 %v1456_v4, %v1456_v4 }
   0xe   :  { %72 = vadd.xlane.f32.xlu0 %v71_v27  ;;  %v107_v63 = vadd.f32 %v106_v56, %v82_v55  ;;  %v43_v18 = vadd.f32 %v42_v6, %v1451_v3  ;;  %v78_v21 = vmul.f32 %v1461_v5, %v1461_v5  ;;  %v79_v24 = vmul.f32 %v1472_v15, %v1472_v15 }
   0xf   :  { %64 = vadd.xlane.f32.xlu2 %v63_v30  ;;  %v99_v22 = vadd.f32 %v98_v13, %v76_v10  ;;  %v47_v23 = vadd.f32 %v46_v14, %v1472_v15  ;;  %v1264_v28 = vmov 0  }
  0x10   :  { %128 = vadd.xlane.f32.xlu1 %v127_v31  ;;  %v102_v25 = vadd.f32 %v78_v21, %v77_v20  ;;  %1246 = vset.pattern.permute.xlu2 %v1264_v28 }
  0x11   :  { %1245 = vset.pattern.permute.xlu1 %v1264_v28  ;;  %1247 = vset.pattern.permute.xlu0 %v1264_v28 }
  0x12   :  { %v103_v27 = vadd.f32 %v102_v25, %v79_v24 }
  0x16   :  { %116 = vadd.xlane.f32.xlu0 %v115_v44 }
  0x17   :  { %52 = vadd.xlane.f32.xlu2 %v51_v45 }
  0x18   :  { %120 = vadd.xlane.f32.xlu1 %v119_v48 }
  0x1e   :  { %56 = vadd.xlane.f32.xlu0 %v55_v59 }
  0x1f   :  { %112 = vadd.xlane.f32.xlu2 %v111_v60 }
  0x20   :  { %108 = vadd.xlane.f32.xlu1 %v107_v63 }
  0x26   :  { %44 = vadd.xlane.f32.xlu0 %v43_v18 }
  0x27   :  { %100 = vadd.xlane.f32.xlu2 %v99_v22 }
  0x28   :  { %48 = vadd.xlane.f32.xlu1 %v47_v23 }
  0x2e   :  { %104 = vadd.xlane.f32.xlu0 %v103_v27 }
  0x79   :  { %v69_v29 = vpop.xlane.xlu0 %68 }
  0x7a   :  { %v1482_v30 = vmul.f32 0.00295858, %v69_v29  ;;  %v61_v31 = vpop.xlane.xlu2 %60 }
  0x7b   :  { %v125_v32 = vpop.xlane.xlu1 %124  ;;  %v1490_v50 = vmul.f32 0.00295858, %v61_v31 }
  0x7c   :  { %v152_v33 = vmul.f32 %v1482_v30, %v1482_v30  ;;  %v144_v36 = vmul.f32 0.00295858, %v125_v32 }
  0x7d   :  { %v150_v56 = vmul.f32 %v1490_v50, %v1490_v50 }
  0x7e   :  { %v160_v37 = vsub.f32 %v144_v36, %v152_v33 }
  0x80   :  { %v168_v38 = vmax.f32 %v160_v37, 0.0 }
  0x81   :  { %v73_v39 = vpop.xlane.xlu0 %72 }
  0x82   :  { %v176_v40 = vadd.f32 1e-05, %v168_v38  ;;  %v1486_v44 = vmul.f32 0.00295858, %v73_v39  ;;  %v65_v45 = vpop.xlane.xlu2 %64  ;;  %v264_v39 = vld [vmem:[%s2007_s1 + $0x30] sm:$0xff] }
  0x83   :  { %v129_v46 = vpop.xlane.xlu1 %128  ;;  %v1492_v53 = vmul.f32 0.00295858, %v65_v45 }
  0x84   :  { %1248 = vrsqrt.f32 %v176_v40  ;;  %v153_v47 = vmul.f32 %v1486_v44, %v1486_v44  ;;  %v145_v48 = vmul.f32 0.00295858, %v129_v46  ;;  %vm244_vm1 = vweird.f32 %v176_v40 }
  0x85   :  { %v151_v6 = vmul.f32 %v1492_v53, %v1492_v53 }
  0x86   :  { %v161_v51 = vsub.f32 %v145_v48, %v153_v47 }
  0x88   :  { %v169_v52 = vmax.f32 %v161_v51, 0.0 }
  0x89   :  { %v117_v54 = vpop.xlane.xlu0 %116 }
  0x8a   :  { %v1249_v55 = vpop.eup %1248  ;;  %v1496_v59 = vadd.f32 1e-05, %v169_v52  ;;  %v142_v60 = vmul.f32 0.00295858, %v117_v54  ;;  %v53_v61 = vpop.xlane.xlu2 %52 }
  0x8b   :  { %v239_v62 = vmul.f32 %v1249_v55, %v176_v40  ;;  %v121_v63 = vpop.xlane.xlu1 %120  ;;  %v1503_v24 = vmul.f32 0.00295858, %v53_v61  ;;  %vm245_vm0 = vweird.f32 %v1249_v55 }
  0x8c   :  { %1250 = vrsqrt.f32 %v1496_v59  ;;  %v158_v10 = vsub.f32 %v142_v60, %v150_v56  ;;  %v143_v13 = vmul.f32 0.00295858, %v121_v63  ;;  %vm246_vm2 = vmor %vm244_vm1, %vm245_vm0  ;;  %vm254_vm4 = vweird.f32 %v1496_v59 }
  0x8d   :  { %v240_v14 = vmul.f32 %v1249_v55, %v239_v62  ;;  %v148_v45 = vmul.f32 %v1503_v24, %v1503_v24 }
  0x8e   :  { %v166_v18 = vmax.f32 %v158_v10, 0.0  ;;  %v159_v20 = vsub.f32 %v143_v13, %v151_v6 }
  0x8f   :  { %v241_v21 = vmul.f32 0.5, %v240_v14 }
  0x90   :  { %v1501_v22 = vadd.f32 1e-05, %v166_v18  ;;  %v167_v23 = vmax.f32 %v159_v20, 0.0 }
  0x91   :  { %v242_v25 = vsub.f32 1.5, %v241_v21  ;;  %v57_v27 = vpop.xlane.xlu0 %56 }
  0x92   :  { %v1251_v28 = vpop.eup %1250  ;;  %1252 = vrsqrt.f32 %v1501_v22  ;;  %v1506_v29 = vadd.f32 1e-05, %v167_v23  ;;  %v1508_v31 = vmul.f32 0.00295858, %v57_v27  ;;  %v113_v32 = vpop.xlane.xlu2 %112  ;;  %vm224_vm7 = vweird.f32 %v1501_v22 }
  0x93   :  { %v249_v33 = vmul.f32 %v1251_v28, %v1496_v59  ;;  %v109_v36 = vpop.xlane.xlu1 %108  ;;  %v141_v37 = vmul.f32 0.00295858, %v113_v32  ;;  %v243_v38 = vmul.f32 %v1249_v55, %v242_v25  ;;  %vm255_vm3 = vweird.f32 %v1251_v28 }
  0x94   :  { %1254 = vrsqrt.f32 %v1506_v29  ;;  %v149_v46 = vmul.f32 %v1508_v31, %v1508_v31  ;;  %v140_v47 = vmul.f32 0.00295858, %v109_v36  ;;  %v265_v36 = vld [vmem:[%s2007_s1 + $0x38] sm:$0xff]  ;;  %vm256_vm5 = vmor %vm254_vm4, %vm255_vm3  ;;  %vm234_vm10 = vweird.f32 %v1506_v29 }
  0x95   :  { %v250_v40 = vmul.f32 %v1251_v28, %v249_v33  ;;  %v247_v48 = vsel %vm246_vm2, %v1249_v55, %v243_v38 }
  0x96   :  { %v156_v51 = vsub.f32 %v140_v47, %v148_v45  ;;  %v157_v52 = vsub.f32 %v141_v37, %v149_v46  ;;  %v1520_v54 = vmul.f32 %v264_v39, %v247_v48 }
  0x97   :  { %v251_v56 = vmul.f32 0.5, %v250_v40 }
  0x98   :  { %v1253_v60 = vpop.eup %1252  ;;  %v164_v61 = vmax.f32 %v156_v51, 0.0  ;;  %v165_v62 = vmax.f32 %v157_v52, 0.0  ;;  %330 = vperm.xlu1 %1245, %v1520_v54  }
  0x99   :  { %v252_v63 = vsub.f32 1.5, %v251_v56  ;;  %v219_v6 = vmul.f32 %v1253_v60, %v1501_v22  ;;  %v45_v10 = vpop.xlane.xlu0 %44  ;;  %vm225_vm6 = vweird.f32 %v1253_v60 }
  0x9a   :  { %v1255_v13 = vpop.eup %1254  ;;  %v1524_v14 = vadd.f32 1e-05, %v164_v61  ;;  %v1526_v18 = vadd.f32 1e-05, %v165_v62  ;;  %v1528_v55 = vmul.f32 0.00295858, %v45_v10  ;;  %v101_v20 = vpop.xlane.xlu2 %100  ;;  %vm226_vm9 = vmor %vm224_vm7, %vm225_vm6 }
  0x9b   :  { %v220_v21 = vmul.f32 %v1253_v60, %v219_v6  ;;  %v229_v23 = vmul.f32 %v1255_v13, %v1506_v29  ;;  %v138_v25 = vmul.f32 0.00295858, %v101_v20  ;;  %v49_v27 = vpop.xlane.xlu1 %48  ;;  %v253_v32 = vmul.f32 %v1251_v28, %v252_v63 }
  0x9c   :  { %1256 = vrsqrt.f32 %v1524_v14  ;;  %v146_v33 = vmul.f32 %v1528_v55, %v1528_v55  ;;  %v1539_v39 = vmul.f32 0.00295858, %v49_v27  ;;  %vm235_vm8 = vweird.f32 %v1255_v13 }
  0x9d   :  { %v221_v37 = vmul.f32 0.5, %v220_v21  ;;  %v230_v38 = vmul.f32 %v1255_v13, %v229_v23  ;;  %1258 = vrsqrt.f32 %v1526_v18  ;;  %v257_v46 = vsel %vm256_vm5, %v1251_v28, %v253_v32  ;;  %v262_v28 = vld [vmem:[%s2007_s1 + $0x20] sm:$0xff]  ;;  %v263_v23 = vld [vmem:[%s2007_s1 + $0x28] sm:$0xff]  ;;  %vm236_vm11 = vmor %vm234_vm10, %vm235_vm8 }
  0x9e   :  { %v154_v45 = vsub.f32 %v138_v25, %v146_v33  ;;  %v273_v40 = vmul.f32 %v265_v36, %v257_v46  ;;  %v147_v51 = vmul.f32 %v1539_v39, %v1539_v39  ;;  %vm204_vm14 = vweird.f32 %v1524_v14 }
  0x9f   :  { %v222_v47 = vsub.f32 1.5, %v221_v37  ;;  %v231_v59 = vmul.f32 0.5, %v230_v38  ;;  %vm214_vm15 = vweird.f32 %v1526_v18  ;;  %vm588_vm8 = vcmask 523264  }
  0xa0   :  { %v162_v48 = vmax.f32 %v154_v45, 0.0  ;;  %335 = vperm.xlu2 %1246, %v273_v40  }
  0xa1   :  { %v232_v52 = vsub.f32 1.5, %v231_v59  ;;  %v105_v56 = vpop.xlane.xlu0 %104  ;;  %v223_v61 = vmul.f32 %v1253_v60, %v222_v47 }
  0xa2   :  { %v1257_v62 = vpop.eup %1256  ;;  %v1544_v63 = vadd.f32 1e-05, %v162_v48  ;;  %v139_v6 = vmul.f32 0.00295858, %v105_v56  ;;  %v289_v56 = vmul.f32 %v273_v40, %v1486_v44 }
  0xa3   :  { %v1259_v10 = vpop.eup %1258  ;;  %v199_v20 = vmul.f32 %v1257_v62, %v1524_v14  ;;  %v227_v22 = vsel %vm226_vm9, %v1253_v60, %v223_v61  ;;  %v233_v21 = vmul.f32 %v1255_v13, %v232_v52  ;;  %vm205_vm12 = vweird.f32 %v1257_v62  ;;  %v281_v61 = vld [vmem:[%s2008_s2 + $0x38] sm:$0xff] }
  0xa4   :  { %v209_v25 = vmul.f32 %v1259_v10, %v1526_v18  ;;  %1260 = vrsqrt.f32 %v1544_v63  ;;  %v155_v27 = vsub.f32 %v139_v6, %v147_v51  ;;  %v270_v33 = vmul.f32 %v262_v28, %v227_v22  ;;  %vm206_vm0 = vmor %vm204_vm14, %vm205_vm12  ;;  %v261_v14 = vld [vmem:[%s2007_s1 + $0x18] sm:$0xff] }
  0xa5   :  { %v200_v32 = vmul.f32 %v1257_v62, %v199_v20  ;;  %v237_v36 = vsel %vm236_vm11, %v1255_v13, %v233_v21  ;;  %vm215_vm13 = vweird.f32 %v1259_v10  ;;  %v260_v13 = vld [vmem:[%s2007_s1 + $0x10] sm:$0xff]  ;;  %vm184_vm2 = vweird.f32 %v1544_v63 }
  0xa6   :  { %v210_v37 = vmul.f32 %v1259_v10, %v209_v25  ;;  %v163_v29 = vmax.f32 %v155_v27, 0.0  ;;  %v271_v38 = vmul.f32 %v263_v23, %v237_v36  ;;  %320 = vperm.xlu1 %1245, %v270_v33   ;;  %vm216_vm1 = vmor %vm214_vm15, %vm215_vm13  ;;  %v297_v25 = vsub.f32 %v281_v61, %v289_v56 }
  0xa7   :  { %v201_v45 = vmul.f32 0.5, %v200_v32  ;;  %v286_v27 = vmul.f32 %v270_v33, %v1490_v50  ;;  %v288_v32 = vmul.f32 %v1520_v54, %v1482_v30 }
  0xa8   :  { %v211_v60 = vmul.f32 0.5, %v210_v37  ;;  %v171_v46 = vadd.f32 1e-05, %v163_v29  ;;  %325 = vperm.xlu2 %1246, %v271_v38   ;;  %v280_v29 = vld [vmem:[%s2008_s2 + $0x30] sm:$0xff] }
  0xa9   :  { %v202_v47 = vsub.f32 1.5, %v201_v45  ;;  %v279_v45 = vld [vmem:[%s2008_s2 + $0x28] sm:$0xff]  ;;  %v296_v54 = vsub.f32 %v280_v29, %v288_v32 }
  0xaa   :  { %v1261_v59 = vpop.eup %1260  ;;  %v212_v48 = vsub.f32 1.5, %v211_v60  ;;  %1262 = vrsqrt.f32 %v171_v46  ;;  %vm194_vm4 = vweird.f32 %v171_v46 }
  0xab   :  { %v179_v51 = vmul.f32 %v1261_v59, %v1544_v63  ;;  %v203_v52 = vmul.f32 %v1257_v62, %v202_v47  ;;  %vm185_vm3 = vweird.f32 %v1261_v59 }
  0xac   :  { %v213_v6 = vmul.f32 %v1259_v10, %v212_v48  ;;  %vm186_vm6 = vmor %vm184_vm2, %vm185_vm3  ;;  %v277_v48 = vld [vmem:[%s2008_s2 + $0x18] sm:$0xff] }
  0xad   :  { %v180_v28 = vmul.f32 %v1261_v59, %v179_v51  ;;  %v207_v20 = vsel %vm206_vm0, %v1257_v62, %v203_v52  ;;  %v278_v62 = vld [vmem:[%s2008_s2 + $0x20] sm:$0xff] }
  0xae   :  { %v268_v22 = vmul.f32 %v260_v13, %v207_v20  ;;  %v217_v21 = vsel %vm216_vm1, %v1259_v10, %v213_v6  ;;  %v287_v10 = vmul.f32 %v271_v38, %v1492_v53  ;;  %v294_v30 = vsub.f32 %v278_v62, %v286_v27  ;;  %v258_v52 = vld [vmem:[%s2007_s1] sm:$0xff]  ;;  %v275_v20 = vld [vmem:[%s2008_s2 + $0x8] sm:$0xff] }
  0xaf   :  { %v181_v23 = vmul.f32 0.5, %v180_v28  ;;  %v269_v44 = vmul.f32 %v261_v14, %v217_v21 }
  0xb0   :  { %v1263_v40 = vpop.eup %1262  ;;  %310 = vperm.xlu1 %1245, %v268_v22   ;;  %399 = vperm.xlu2 %1246, %v297_v25   ;;  %v295_v60 = vsub.f32 %v279_v45, %v287_v10  ;;  %v284_v63 = vmul.f32 %v268_v22, %v1503_v24 }
  0xb1   :  { %v189_v18 = vmul.f32 %v1263_v40, %v171_v46  ;;  %315 = vperm.xlu0 %1247, %v269_v44   ;;  %v182_v36 = vsub.f32 1.5, %v181_v23  ;;  %vm195_vm5 = vweird.f32 %v1263_v40  ;;  %v285_v38 = vmul.f32 %v269_v44, %v1508_v31  ;;  %v276_v46 = vld [vmem:[%s2008_s2 + $0x10] sm:$0xff]  ;;  %v259_v31 = vld [vmem:[%s2007_s1 + $0x8] sm:$0xff] }
  0xb2   :  { %vm196_vm7 = vmor %vm194_vm4, %vm195_vm5  ;;  %v292_v6 = vsub.f32 %v276_v46, %v284_v63 }
  0xb3   :  { %v190_v37 = vmul.f32 %v1263_v40, %v189_v18  ;;  %v183_v47 = vmul.f32 %v1261_v59, %v182_v36  ;;  %v293_v56 = vsub.f32 %v277_v48, %v285_v38 }
  0xb5   :  { %v191_v50 = vmul.f32 0.5, %v190_v37  ;;  %v187_v51 = vsel %vm186_vm6, %v1261_v59, %v183_v47  ;;  %v274_v59 = vld [vmem:[%s2008_s2] sm:$0xff] }
  0xb6   :  { %v266_v61 = vmul.f32 %v258_v52, %v187_v51 }
  0xb7   :  { %v192_v33 = vsub.f32 1.5, %v191_v50 }
  0xb8   :  { %384 = vperm.xlu1 %1245, %v294_v30   ;;  %389 = vperm.xlu2 %1246, %v295_v60   ;;  %v282_v24 = vmul.f32 %v266_v61, %v1528_v55 }
  0xb9   :  { %394 = vperm.xlu0 %1247, %v296_v54   ;;  %v193_v53 = vmul.f32 %v1263_v40, %v192_v33 }
  0xba   :  { %v290_v22 = vsub.f32 %v274_v59, %v282_v24 }
  0xbb   :  { %v197_v13 = vsel %vm196_vm7, %v1263_v40, %v193_v53 }
  0xbc   :  { %v267_v14 = vmul.f32 %v259_v31, %v197_v13 }
  0xbe   :  { %v283_v28 = vmul.f32 %v267_v14, %v1539_v39 }
  0xc0   :  { %379 = vperm.xlu1 %1245, %v293_v56   ;;  %374 = vperm.xlu2 %1246, %v292_v6   ;;  %v291_v21 = vsub.f32 %v275_v20, %v283_v28 }
  0xc1   :  { %300 = vperm.xlu0 %1247, %v266_v61  }
  0xc8   :  { %364 = vperm.xlu1 %1245, %v290_v22   ;;  %305 = vperm.xlu2 %1246, %v267_v14  }
  0xc9   :  { %369 = vperm.xlu0 %1247, %v291_v21  }
  0xfa   :  { %v336_v23 = vpop.permute.xlu2 %335 }
  0xfb   :  { %v359_v36 = vmul.f32 %v336_v23, %v1333_v11  ;;  %v360_v39 = vmul.f32 %v336_v23, %v1338_v12  ;;  %v361_v10 = vmul.f32 %v336_v23, %v1357_v19 }
 0x102   :  { %v326_v25 = vpop.permute.xlu2 %325 }
 0x103   :  { %v353_v29 = vmul.f32 %v326_v25, %v1346_v16  ;;  %v354_v45 = vmul.f32 %v326_v25, %v1351_v17  ;;  %v355_v50 = vmul.f32 %v326_v25, %v1370_v26 }
 0x10a   :  { %v331_v44 = vpop.permute.xlu1 %330  ;;  %v400_v40 = vpop.permute.xlu2 %399 }
 0x10b   :  { %v423_v37 = vadd.f32 %v400_v40, %v359_v36  ;;  %v424_v62 = vadd.f32 %v400_v40, %v360_v39  ;;  %v356_v30 = vmul.f32 %v331_v44, %v1293_v0  ;;  %v357_v54 = vmul.f32 %v331_v44, %v1298_v1 }
 0x10c   :  { %v358_v33 = vmul.f32 %v331_v44, %v1303_v2  ;;  %v425_v60 = vadd.f32 %v400_v40, %v361_v10 }
 0x10d   :  { %v447_v53 = vmax.f32 %v423_v37, 0.0  ;;  %v448_v16 = vmax.f32 %v424_v62, 0.0 }
 0x112   :  { %v390_v27 = vpop.permute.xlu2 %389 }
 0x113   :  { %v418_v52 = vadd.f32 %v390_v27, %v354_v45  ;;  %v419_v13 = vadd.f32 %v390_v27, %v355_v50 }
 0x115   :  { %v442_v40 = vmax.f32 %v418_v52, 0.0  ;;  %v1214_v52 = vld [vmem:[%s2009_s3] sm:$0xff] }
 0x118   :  { %v321_v55 = vpop.permute.xlu1 %320 }
 0x119   :  { %v350_v11 = vmul.f32 %v321_v55, %v1316_v7  ;;  %v351_v12 = vmul.f32 %v321_v55, %v1321_v8  ;;  %v352_v47 = vmul.f32 %v321_v55, %v1326_v9  ;;  %v417_v7 = vadd.f32 %v390_v27, %v353_v29 }
 0x11a   :  { %v375_v8 = vpop.permute.xlu2 %374  ;;  %v449_v9 = vmax.f32 %v425_v60, 0.0  ;;  %v443_v55 = vmax.f32 %v419_v13, 0.0  ;;  %v1216_v13 = vld [vmem:[%s2009_s3 + $0x10] sm:$0xff] }
 0x11b   :  { %v441_v44 = vmax.f32 %v417_v7, 0.0 }
 0x122   :  { %v311_v18 = vpop.permute.xlu1 %310  ;;  %v306_v50 = vpop.permute.xlu2 %305 }
 0x123   :  { %v316_v32 = vpop.permute.xlu0 %315  ;;  %v344_v17 = vmul.f32 %v311_v18, %v1385_v34  ;;  %v345_v26 = vmul.f32 %v311_v18, %v1390_v35  ;;  %v346_v0 = vmul.f32 %v311_v18, %v1401_v41 }
 0x124   :  { %v347_v20 = vmul.f32 %v316_v32, %v1406_v42  ;;  %v348_v22 = vmul.f32 %v316_v32, %v1411_v43  ;;  %v349_v21 = vmul.f32 %v316_v32, %v1421_v49 }
 0x125   :  { %v408_v6 = vadd.f32 %v375_v8, %v344_v17  ;;  %v409_v35 = vadd.f32 %v375_v8, %v345_v26  ;;  %v410_v14 = vadd.f32 %v375_v8, %v346_v0  ;;  %v1642_v8 = vld [vmem:[%s2009_s3 + $0x70] sm:$0xff] }
 0x127   :  { %v432_v42 = vmax.f32 %v408_v6, 0.0  ;;  %v433_v62 = vmax.f32 %v409_v35, 0.0  ;;  %v434_v49 = vmax.f32 %v410_v14, 0.0  ;;  %v1219_v6 = vld [vmem:[%s2009_s3 + $0x28] sm:$0xff]  ;;  %v1220_v35 = vld [vmem:[%s2009_s3 + $0x30] sm:$0xff]  ;;  %v1221_v14 = vld [vmem:[%s2009_s3 + $0x38] sm:$0xff] }
 0x12a   :  { %v385_v19 = vpop.permute.xlu1 %384 }
 0x12b   :  { %v414_v38 = vadd.f32 %v385_v19, %v350_v11  ;;  %v395_v1 = vpop.permute.xlu0 %394  ;;  %v415_v48 = vadd.f32 %v385_v19, %v351_v12  ;;  %v416_v46 = vadd.f32 %v385_v19, %v352_v47  ;;  %v341_v47 = vmul.f32 %v306_v50, %v1456_v4 }
 0x12c   :  { %v420_v2 = vadd.f32 %v395_v1, %v356_v30  ;;  %v421_v63 = vadd.f32 %v395_v1, %v357_v54  ;;  %v422_v51 = vadd.f32 %v395_v1, %v358_v33  ;;  %v342_v19 = vmul.f32 %v306_v50, %v1461_v5 }
 0x12d   :  { %v438_v34 = vmax.f32 %v414_v38, 0.0  ;;  %v439_v28 = vmax.f32 %v415_v48, 0.0  ;;  %v440_v23 = vmax.f32 %v416_v46, 0.0  ;;  %v1215_v46 = vld [vmem:[%s2009_s3 + $0x8] sm:$0xff] }
 0x12e   :  { %v444_v31 = vmax.f32 %v420_v2, 0.0  ;;  %v445_v56 = vmax.f32 %v421_v63, 0.0  ;;  %v446_v61 = vmax.f32 %v422_v51, 0.0 }
 0x12f   :  { %v456_v37 = vpack.c.bf16 %v441_v44, %v438_v34  ;;  %v457_v43 = vpack.c.bf16 %v442_v40, %v439_v28  ;;  %v458_v32 = vpack.c.bf16 %v443_v55, %v440_v23  ;;  %v1218_v34 = vld [vmem:[%s2009_s3 + $0x20] sm:$0xff] }
 0x130   :  { %v459_v41 = vpack.c.bf16 %v447_v53, %v444_v31  ;;  %v1621_v24 = vpack.c.bf16 %v448_v16, %v445_v56  ;;  %v1623_v59 = vpack.c.bf16 %v449_v9, %v446_v61  ;;  %v343_v53 = vmul.f32 %v306_v50, %v1472_v15  ;;  %v1657_v9 = vld [vmem:[%s2009_s3 + $0x78] sm:$0xff]  ;;  %v1670_v31 = vld [vmem:[%s2009_s3 + $0x80] sm:$0xff]  ;;  %v1683_v61 = vld [vmem:[%s2009_s3 + $0x88] sm:$0xff] }
 0x131   :  { %v1217_v56 = vld [vmem:[%s2009_s3 + $0x18] sm:$0xff] }
 0x132   :  { %647 = vmatpush.bf16.msra.mxu0 %v459_v41  ;;  %1232 = vmatpush.bf16.msra.mxu3 %v459_v41  ;;  %v380_v25 = vpop.permute.xlu1 %379  ;;  %v1222_v41 = vld [vmem:[%s2009_s3 + $0x40] sm:$0xff] }
 0x133   :  { %746 = vmatpush.bf16.msra.mxu1 %v1621_v24  ;;  %845 = vmatpush.bf16.msra.mxu2 %v1623_v59  ;;  %v411_v18 = vadd.f32 %v380_v25, %v347_v20  ;;  %v412_v27 = vadd.f32 %v380_v25, %v348_v22  ;;  %v413_v36 = vadd.f32 %v380_v25, %v349_v21  ;;  %v301_v39 = vpop.permute.xlu0 %300 }
 0x134   :  { %v338_v60 = vmul.f32 %v301_v39, %v1436_v57  ;;  %v339_v11 = vmul.f32 %v301_v39, %v1441_v58  ;;  %v340_v12 = vmul.f32 %v301_v39, %v1451_v3 }
 0x135   :  { %v435_v10 = vmax.f32 %v411_v18, 0.0  ;;  %v436_v29 = vmax.f32 %v412_v27, 0.0  ;;  %v437_v45 = vmax.f32 %v413_v36, 0.0  ;;  %v1223_v18 = vld [vmem:[%s2009_s3 + $0x48] sm:$0xff] }
 0x136   :  { %648 = vmatpush.bf16.msra.mxu0 %v456_v37  ;;  %1233 = vmatpush.bf16.msra.mxu3 %v456_v37 }
 0x137   :  { %747 = vmatpush.bf16.msra.mxu1 %v457_v43  ;;  %846 = vmatpush.bf16.msra.mxu2 %v458_v32  ;;  %v453_v30 = vpack.c.bf16 %v435_v10, %v432_v42  ;;  %v454_v54 = vpack.c.bf16 %v436_v29, %v433_v62  ;;  %v455_v33 = vpack.c.bf16 %v437_v45, %v434_v49  ;;  %v1224_v45 = vld [vmem:[%s2009_s3 + $0x50] sm:$0xff] }
 0x13a   :  { %649 = vmatpush.bf16.msra.mxu0 %v453_v30  ;;  %1234 = vmatpush.bf16.msra.mxu3 %v453_v30  ;;  %v365_v16 = vpop.permute.xlu1 %364 }
 0x13b   :  { %748 = vmatpush.bf16.msra.mxu1 %v454_v54  ;;  %847 = vmatpush.bf16.msra.mxu2 %v455_v33  ;;  %v402_v17 = vadd.f32 %v365_v16, %v338_v60  ;;  %v403_v26 = vadd.f32 %v365_v16, %v339_v11  ;;  %v404_v0 = vadd.f32 %v365_v16, %v340_v12  ;;  %v370_v38 = vpop.permute.xlu0 %369 }
 0x13c   :  { %v405_v57 = vadd.f32 %v370_v38, %v341_v47  ;;  %v406_v1 = vadd.f32 %v370_v38, %v342_v19  ;;  %v407_v58 = vadd.f32 %v370_v38, %v343_v53 }
 0x13d   :  { %v426_v48 = vmax.f32 %v402_v17, 0.0  ;;  %v427_v3 = vmax.f32 %v403_v26, 0.0  ;;  %v428_v2 = vmax.f32 %v404_v0, 0.0  ;;  %v1225_v26 = vld [vmem:[%s2009_s3 + $0x58] sm:$0xff] }
 0x13e   :  { %v429_v4 = vmax.f32 %v405_v57, 0.0  ;;  %v430_v63 = vmax.f32 %v406_v1, 0.0  ;;  %v431_v5 = vmax.f32 %v407_v58, 0.0 }
 0x140   :  { %v450_v51 = vpack.c.bf16 %v429_v4, %v426_v48  ;;  %v451_v15 = vpack.c.bf16 %v430_v63, %v427_v3  ;;  %v452_v7 = vpack.c.bf16 %v431_v5, %v428_v2 }
 0x142   :  { %650 = vmatpush.bf16.msra.mxu0 %v450_v51  ;;  %1235 = vmatpush.bf16.msra.mxu3 %v450_v51 }
 0x143   :  { %749 = vmatpush.bf16.msra.mxu1 %v451_v15  ;;  %848 = vmatpush.bf16.msra.mxu2 %v452_v7 }
 0x145   :  { %1160 = vmatmul.msk.bf16.vlgmr.msra.gmra.mxu0 %vm588_vm8, %v1214_v52  ;;  %1174 = vmatmul.msk.bf16.vlgmr.msra.gmra.mxu3 %vm588_vm8, %v1642_v8 }
 0x146   :  { %1236 = vmatpush.bf16.msrb.mxu3 %v1621_v24  ;;  %1178 = vmatmul.msk.bf16.vlgmr.msra.gmra.mxu1 %vm588_vm8, %v1214_v52 }
 0x147   :  { %1196 = vmatmul.msk.bf16.vlgmr.msra.gmra.mxu2 %vm588_vm8, %v1214_v52 }
 0x14a   :  { %1237 = vmatpush.bf16.msrb.mxu3 %v457_v43 }
 0x14e   :  { %1238 = vmatpush.bf16.msrb.mxu3 %v454_v54 }
 0x152   :  { %1239 = vmatpush.bf16.msrb.mxu3 %v451_v15  ;;  %v1226_v15 = vld [vmem:[%s2009_s3 + $0x60] sm:$0xff] }
 0x155   :  { %1161 = vmatmul.msk.bf16.gmra.mxu0 %vm588_vm8, %v1215_v46  ;;  %1175 = vmatmul.msk.bf16.gmra.mxu3 %vm588_vm8, %v1657_v9 }
 0x156   :  { %1240 = vmatpush.bf16.msra.mxu3 %v1623_v59  ;;  %1179 = vmatmul.msk.bf16.gmra.mxu1 %vm588_vm8, %v1215_v46 }
 0x157   :  { %1197 = vmatmul.msk.bf16.gmra.mxu2 %vm588_vm8, %v1215_v46 }
 0x15a   :  { %1241 = vmatpush.bf16.msra.mxu3 %v458_v32 }
 0x15e   :  { %1242 = vmatpush.bf16.msra.mxu3 %v455_v33 }
 0x162   :  { %1243 = vmatpush.bf16.msra.mxu3 %v452_v7 }
 0x165   :  { %1162 = vmatmul.msk.bf16.gmra.mxu0 %vm588_vm8, %v1216_v13  ;;  %1176 = vmatmul.msk.bf16.gmra.mxu3 %vm588_vm8, %v1670_v31 }
 0x166   :  { %1180 = vmatmul.msk.bf16.gmra.mxu1 %vm588_vm8, %v1216_v13 }
 0x167   :  { %1198 = vmatmul.msk.bf16.gmra.mxu2 %vm588_vm8, %v1216_v13 }
 0x175   :  { %1163 = vmatmul.msk.bf16.gmra.mxu0 %vm588_vm8, %v1217_v56  ;;  %1177 = vmatmul.msk.bf16.gmra.mxu3 %vm588_vm8, %v1683_v61 }
 0x176   :  { %1181 = vmatmul.msk.bf16.gmra.mxu1 %vm588_vm8, %v1217_v56 }
 0x177   :  { %1199 = vmatmul.msk.bf16.gmra.mxu2 %vm588_vm8, %v1217_v56 }
 0x185   :  { %1164 = vmatmul.msk.bf16.gmra.mxu0 %vm588_vm8, %v1218_v34  ;;  %1192 = vmatmul.msk.bf16.vlgmr.msrb.gmra.mxu3 %vm588_vm8, %v1642_v8 }
 0x186   :  { %1182 = vmatmul.msk.bf16.gmra.mxu1 %vm588_vm8, %v1218_v34 }
 0x187   :  { %1200 = vmatmul.msk.bf16.gmra.mxu2 %vm588_vm8, %v1218_v34 }
 0x195   :  { %1165 = vmatmul.msk.bf16.gmra.mxu0 %vm588_vm8, %v1219_v6  ;;  %1193 = vmatmul.msk.bf16.gmra.mxu3 %vm588_vm8, %v1657_v9 }
 0x196   :  { %1183 = vmatmul.msk.bf16.gmra.mxu1 %vm588_vm8, %v1219_v6 }
 0x197   :  { %1201 = vmatmul.msk.bf16.gmra.mxu2 %vm588_vm8, %v1219_v6 }
 0x1a5   :  { %1166 = vmatmul.msk.bf16.gmra.mxu0 %vm588_vm8, %v1220_v35  ;;  %1194 = vmatmul.msk.bf16.gmra.mxu3 %vm588_vm8, %v1670_v31 }
 0x1a6   :  { %1184 = vmatmul.msk.bf16.gmra.mxu1 %vm588_vm8, %v1220_v35 }
 0x1a7   :  { %1202 = vmatmul.msk.bf16.gmra.mxu2 %vm588_vm8, %v1220_v35 }
 0x1b5   :  { %1167 = vmatmul.msk.bf16.gmra.mxu0 %vm588_vm8, %v1221_v14  ;;  %1195 = vmatmul.msk.bf16.gmra.mxu3 %vm588_vm8, %v1683_v61 }
 0x1b6   :  { %1185 = vmatmul.msk.bf16.gmra.mxu1 %vm588_vm8, %v1221_v14 }
 0x1b7   :  { %1203 = vmatmul.msk.bf16.gmra.mxu2 %vm588_vm8, %v1221_v14 }
 0x1c2   :  { %v652_v24 = vpop.f32.mrf.mxu0 }
 0x1c3   :  { %v751_v59 = vpop.f32.mrf.mxu1 }
 0x1c4   :  { %v940_v28 = vpack.c.bf16 %v751_v59, %v652_v24 }
 0x1c5   :  { %1168 = vmatmul.msk.bf16.gmra.mxu0 %vm588_vm8, %v1222_v41  ;;  %1210 = vmatmul.msk.bf16.vlgmr.msra.gmra.mxu3 %vm588_vm8, %v1642_v8 }
 0x1c6   :  { %1012 = vst [vmem:[%s2010_s4] sm:$0xff] %v940_v28  ;;  %1186 = vmatmul.msk.bf16.gmra.mxu1 %vm588_vm8, %v1222_v41 }
 0x1c7   :  { %1204 = vmatmul.msk.bf16.gmra.mxu2 %vm588_vm8, %v1222_v41  ;;  %v1227_v41 = vld [vmem:[%s2009_s3 + $0x68] sm:$0xff] }
 0x1c8   :  { %v1733_v20 = vpop.f32.mrf.mxu3 }
 0x1ca   :  { %v850_v22 = vpop.f32.mrf.mxu2  ;;  %v654_v23 = vpop.f32.mrf.mxu0 }
 0x1cb   :  { %v941_v21 = vpack.c.bf16 %v850_v22, %v850_v22  ;;  %v753_v25 = vpop.f32.mrf.mxu1 }
 0x1cc   :  { %v942_v44 = vpack.c.bf16 %v753_v25, %v654_v23 }
 0x1cd   :  { %1013 = vst [vmem:[%s2010_s4 + $0x8] sm:$0xf] %v941_v21 }
 0x1ce   :  { %1014 = vst [vmem:[%s2010_s4 + $0xc] sm:$0xff] %v942_v44 }
 0x1d0   :  { %v1741_v40 = vpop.f32.mrf.mxu3 }
 0x1d2   :  { %v852_v55 = vpop.f32.mrf.mxu2  ;;  %v657_v36 = vpop.f32.mrf.mxu0 }
 0x1d3   :  { %v943_v27 = vpack.c.bf16 %v852_v55, %v852_v55  ;;  %v756_v39 = vpop.f32.mrf.mxu1 }
 0x1d4   :  { %v944_v42 = vpack.c.bf16 %v756_v39, %v657_v36 }
 0x1d5   :  { %1015 = vst [vmem:[%s2010_s4 + $0x14] sm:$0xf] %v943_v27  ;;  %1169 = vmatmul.msk.bf16.gmra.mxu0 %vm588_vm8, %v1223_v18  ;;  %1211 = vmatmul.msk.bf16.gmra.mxu3 %vm588_vm8, %v1657_v9 }
 0x1d6   :  { %1016 = vst [vmem:[%s2010_s4 + $0x18] sm:$0xff] %v944_v42  ;;  %1187 = vmatmul.msk.bf16.gmra.mxu1 %vm588_vm8, %v1223_v18 }
 0x1d7   :  { %1205 = vmatmul.msk.bf16.gmra.mxu2 %vm588_vm8, %v1223_v18 }
 0x1d8   :  { %v1757_v37 = vpop.f32.mrf.mxu3 }
 0x1da   :  { %v855_v43 = vpop.f32.mrf.mxu2  ;;  %v659_v62 = vpop.f32.mrf.mxu0 }
 0x1db   :  { %v945_v49 = vpack.c.bf16 %v855_v43, %v855_v43  ;;  %v758_v32 = vpop.f32.mrf.mxu1 }
 0x1dc   :  { %v946_v10 = vpack.c.bf16 %v758_v32, %v659_v62 }
 0x1dd   :  { %1017 = vst [vmem:[%s2010_s4 + $0x20] sm:$0xf] %v945_v49 }
 0x1de   :  { %1018 = vst [vmem:[%s2010_s4 + $0x24] sm:$0xff] %v946_v10 }
 0x1e0   :  { %v1765_v29 = vpop.f32.mrf.mxu3 }
 0x1e2   :  { %v857_v50 = vpop.f32.mrf.mxu2  ;;  %v662_v30 = vpop.f32.mrf.mxu0 }
 0x1e3   :  { %v947_v54 = vpack.c.bf16 %v857_v50, %v857_v50  ;;  %v761_v33 = vpop.f32.mrf.mxu1 }
 0x1e4   :  { %v948_v60 = vpack.c.bf16 %v761_v33, %v662_v30 }
 0x1e5   :  { %1019 = vst [vmem:[%s2010_s4 + $0x2c] sm:$0xf] %v947_v54  ;;  %1170 = vmatmul.msk.bf16.gmra.mxu0 %vm588_vm8, %v1224_v45  ;;  %1212 = vmatmul.msk.bf16.gmra.mxu3 %vm588_vm8, %v1670_v31 }
 0x1e6   :  { %1020 = vst [vmem:[%s2010_s4 + $0x30] sm:$0xff] %v948_v60  ;;  %1188 = vmatmul.msk.bf16.gmra.mxu1 %vm588_vm8, %v1224_v45 }
 0x1e7   :  { %1206 = vmatmul.msk.bf16.gmra.mxu2 %vm588_vm8, %v1224_v45 }
 0x1e8   :  { %v1781_v11 = vpop.f32.mrf.mxu3 }
 0x1ea   :  { %v860_v12 = vpop.f32.mrf.mxu2  ;;  %v664_v47 = vpop.f32.mrf.mxu0 }
 0x1eb   :  { %v949_v19 = vpack.c.bf16 %v860_v12, %v860_v12  ;;  %v763_v53 = vpop.f32.mrf.mxu1 }
 0x1ec   :  { %v950_v16 = vpack.c.bf16 %v763_v53, %v664_v47 }
 0x1ed   :  { %1021 = vst [vmem:[%s2010_s4 + $0x38] sm:$0xf] %v949_v19 }
 0x1ee   :  { %1022 = vst [vmem:[%s2010_s4 + $0x3c] sm:$0xff] %v950_v16 }
 0x1f0   :  { %v1789_v17 = vpop.f32.mrf.mxu3 }
 0x1f2   :  { %v862_v0 = vpop.f32.mrf.mxu2  ;;  %v667_v38 = vpop.f32.mrf.mxu0 }
 0x1f3   :  { %v951_v57 = vpack.c.bf16 %v862_v0, %v862_v0  ;;  %v766_v1 = vpop.f32.mrf.mxu1 }
 0x1f4   :  { %v952_v58 = vpack.c.bf16 %v766_v1, %v667_v38 }
 0x1f5   :  { %1023 = vst [vmem:[%s2010_s4 + $0x44] sm:$0xf] %v951_v57  ;;  %1171 = vmatmul.msk.bf16.gmra.mxu0 %vm588_vm8, %v1225_v26  ;;  %1213 = vmatmul.msk.bf16.gmra.mxu3 %vm588_vm8, %v1683_v61 }
 0x1f6   :  { %1024 = vst [vmem:[%s2010_s4 + $0x48] sm:$0xff] %v952_v58  ;;  %1189 = vmatmul.msk.bf16.gmra.mxu1 %vm588_vm8, %v1225_v26 }
 0x1f7   :  { %1207 = vmatmul.msk.bf16.gmra.mxu2 %vm588_vm8, %v1225_v26 }
 0x1f8   :  { %v1805_v48 = vpop.f32.mrf.mxu3 }
 0x1fa   :  { %v865_v3 = vpop.f32.mrf.mxu2  ;;  %v669_v2 = vpop.f32.mrf.mxu0 }
 0x1fb   :  { %v953_v4 = vpack.c.bf16 %v865_v3, %v865_v3  ;;  %v768_v63 = vpop.f32.mrf.mxu1 }
 0x1fc   :  { %v954_v5 = vpack.c.bf16 %v768_v63, %v669_v2 }
 0x1fd   :  { %1025 = vst [vmem:[%s2010_s4 + $0x50] sm:$0xf] %v953_v4 }
 0x1fe   :  { %1026 = vst [vmem:[%s2010_s4 + $0x54] sm:$0xff] %v954_v5 }
 0x200   :  { %v1813_v51 = vpop.f32.mrf.mxu3 }
 0x202   :  { %v867_v7 = vpop.f32.mrf.mxu2  ;;  %v672_v52 = vpop.f32.mrf.mxu0 }
 0x203   :  { %v955_v8 = vpack.c.bf16 %v867_v7, %v867_v7  ;;  %v771_v46 = vpop.f32.mrf.mxu1 }
 0x204   :  { %v956_v9 = vpack.c.bf16 %v771_v46, %v672_v52 }
 0x205   :  { %1027 = vst [vmem:[%s2010_s4 + $0x5c] sm:$0xf] %v955_v8  ;;  %1172 = vmatmul.msk.bf16.gmra.mxu0 %vm588_vm8, %v1226_v15 }
 0x206   :  { %1028 = vst [vmem:[%s2010_s4 + $0x60] sm:$0xff] %v956_v9  ;;  %1190 = vmatmul.msk.bf16.gmra.mxu1 %vm588_vm8, %v1226_v15 }
 0x207   :  { %1208 = vmatmul.msk.bf16.gmra.mxu2 %vm588_vm8, %v1226_v15 }
 0x208   :  { %v821_v13 = vpop.f32.mrf.mxu3 }
 0x209   :  { %v996_v31 = vpack.c.bf16 %v821_v13, %v1733_v20 }
 0x20a   :  { %v870_v56 = vpop.f32.mrf.mxu2  ;;  %v674_v61 = vpop.f32.mrf.mxu0 }
 0x20b   :  { %v957_v34 = vpack.c.bf16 %v870_v56, %v870_v56  ;;  %v773_v6 = vpop.f32.mrf.mxu1  ;;  %1068 = vst [vmem:[%s2010_s4 + $0x150] sm:$0xff] %v996_v31 }
 0x20c   :  { %v958_v35 = vpack.c.bf16 %v773_v6, %v674_v61 }
 0x20d   :  { %1029 = vst [vmem:[%s2010_s4 + $0x68] sm:$0xf] %v957_v34 }
 0x20e   :  { %1030 = vst [vmem:[%s2010_s4 + $0x6c] sm:$0xff] %v958_v35 }
 0x210   :  { %v823_v14 = vpop.f32.mrf.mxu3 }
 0x211   :  { %v998_v24 = vpack.c.bf16 %v823_v14, %v1741_v40 }
 0x212   :  { %v872_v59 = vpop.f32.mrf.mxu2  ;;  %v677_v28 = vpop.f32.mrf.mxu0 }
 0x213   :  { %v959_v20 = vpack.c.bf16 %v872_v59, %v872_v59  ;;  %v776_v22 = vpop.f32.mrf.mxu1  ;;  %1070 = vst [vmem:[%s2010_s4 + $0x15c] sm:$0xff] %v998_v24 }
 0x214   :  { %v960_v21 = vpack.c.bf16 %v776_v22, %v677_v28 }
 0x215   :  { %1031 = vst [vmem:[%s2010_s4 + $0x74] sm:$0xf] %v959_v20  ;;  %1173 = vmatmul.msk.bf16.gmra.mxu0 %vm588_vm8, %v1227_v41 }
 0x216   :  { %1032 = vst [vmem:[%s2010_s4 + $0x78] sm:$0xff] %v960_v21  ;;  %1191 = vmatmul.msk.bf16.gmra.mxu1 %vm588_vm8, %v1227_v41 }
 0x217   :  { %1209 = vmatmul.msk.bf16.gmra.mxu2 %vm588_vm8, %v1227_v41 }
 0x218   :  { %v826_v23 = vpop.f32.mrf.mxu3 }
 0x219   :  { %v1000_v25 = vpack.c.bf16 %v826_v23, %v1757_v37 }
 0x21a   :  { %v875_v44 = vpop.f32.mrf.mxu2  ;;  %v679_v40 = vpop.f32.mrf.mxu0 }
 0x21b   :  { %v961_v55 = vpack.c.bf16 %v875_v44, %v875_v44  ;;  %v778_v18 = vpop.f32.mrf.mxu1  ;;  %1072 = vst [vmem:[%s2010_s4 + $0x168] sm:$0xff] %v1000_v25 }
 0x21c   :  { %v962_v27 = vpack.c.bf16 %v778_v18, %v679_v40 }
 0x21d   :  { %1033 = vst [vmem:[%s2010_s4 + $0x80] sm:$0xf] %v961_v55 }
 0x21e   :  { %1034 = vst [vmem:[%s2010_s4 + $0x84] sm:$0xff] %v962_v27 }
 0x220   :  { %v828_v36 = vpop.f32.mrf.mxu3 }
 0x221   :  { %v1002_v39 = vpack.c.bf16 %v828_v36, %v1765_v29 }
 0x222   :  { %v877_v42 = vpop.f32.mrf.mxu2  ;;  %v682_v37 = vpop.f32.mrf.mxu0 }
 0x223   :  { %v963_v43 = vpack.c.bf16 %v877_v42, %v877_v42  ;;  %v781_v62 = vpop.f32.mrf.mxu1  ;;  %1074 = vst [vmem:[%s2010_s4 + $0x174] sm:$0xff] %v1002_v39 }
 0x224   :  { %v964_v49 = vpack.c.bf16 %v781_v62, %v682_v37 }
 0x225   :  { %1035 = vst [vmem:[%s2010_s4 + $0x8c] sm:$0xf] %v963_v43 }
 0x226   :  { %1036 = vst [vmem:[%s2010_s4 + $0x90] sm:$0xff] %v964_v49 }
 0x228   :  { %v831_v32 = vpop.f32.mrf.mxu3 }
 0x229   :  { %v1004_v10 = vpack.c.bf16 %v831_v32, %v1781_v11 }
 0x22a   :  { %v880_v29 = vpop.f32.mrf.mxu2  ;;  %v684_v45 = vpop.f32.mrf.mxu0 }
 0x22b   :  { %v965_v50 = vpack.c.bf16 %v880_v29, %v880_v29  ;;  %v783_v30 = vpop.f32.mrf.mxu1  ;;  %1076 = vst [vmem:[%s2010_s4 + $0x180] sm:$0xff] %v1004_v10 }
 0x22c   :  { %v966_v54 = vpack.c.bf16 %v783_v30, %v684_v45 }
 0x22d   :  { %1037 = vst [vmem:[%s2010_s4 + $0x98] sm:$0xf] %v965_v50 }
 0x22e   :  { %1038 = vst [vmem:[%s2010_s4 + $0x9c] sm:$0xff] %v966_v54 }
 0x230   :  { %v833_v33 = vpop.f32.mrf.mxu3 }
 0x231   :  { %v1006_v60 = vpack.c.bf16 %v833_v33, %v1789_v17 }
 0x232   :  { %v882_v11 = vpop.f32.mrf.mxu2  ;;  %v687_v12 = vpop.f32.mrf.mxu0 }
 0x233   :  { %v967_v47 = vpack.c.bf16 %v882_v11, %v882_v11  ;;  %v786_v19 = vpop.f32.mrf.mxu1  ;;  %1078 = vst [vmem:[%s2010_s4 + $0x18c] sm:$0xff] %v1006_v60 }
 0x234   :  { %v968_v53 = vpack.c.bf16 %v786_v19, %v687_v12 }
 0x235   :  { %1039 = vst [vmem:[%s2010_s4 + $0xa4] sm:$0xf] %v967_v47 }
 0x236   :  { %1040 = vst [vmem:[%s2010_s4 + $0xa8] sm:$0xff] %v968_v53 }
 0x238   :  { %v836_v16 = vpop.f32.mrf.mxu3 }
 0x239   :  { %v1008_v17 = vpack.c.bf16 %v836_v16, %v1805_v48 }
 0x23a   :  { %v885_v26 = vpop.f32.mrf.mxu2  ;;  %v689_v0 = vpop.f32.mrf.mxu0 }
 0x23b   :  { %v969_v38 = vpack.c.bf16 %v885_v26, %v885_v26  ;;  %v788_v57 = vpop.f32.mrf.mxu1  ;;  %1080 = vst [vmem:[%s2010_s4 + $0x198] sm:$0xff] %v1008_v17 }
 0x23c   :  { %v970_v1 = vpack.c.bf16 %v788_v57, %v689_v0 }
 0x23d   :  { %1041 = vst [vmem:[%s2010_s4 + $0xb0] sm:$0xf] %v969_v38 }
 0x23e   :  { %1042 = vst [vmem:[%s2010_s4 + $0xb4] sm:$0xff] %v970_v1 }
 0x240   :  { %v838_v58 = vpop.f32.mrf.mxu3 }
 0x241   :  { %v1010_v48 = vpack.c.bf16 %v838_v58, %v1813_v51 }
 0x242   :  { %v887_v3 = vpop.f32.mrf.mxu2  ;;  %v692_v2 = vpop.f32.mrf.mxu0 }
 0x243   :  { %v971_v4 = vpack.c.bf16 %v887_v3, %v887_v3  ;;  %v791_v63 = vpop.f32.mrf.mxu1  ;;  %1082 = vst [vmem:[%s2010_s4 + $0x1a4] sm:$0xff] %v1010_v48 }
 0x244   :  { %v972_v5 = vpack.c.bf16 %v791_v63, %v692_v2 }
 0x245   :  { %1043 = vst [vmem:[%s2010_s4 + $0xbc] sm:$0xf] %v971_v4 }
 0x246   :  { %1044 = vst [vmem:[%s2010_s4 + $0xc0] sm:$0xff] %v972_v5 }
 0x248   :  { %v920_v15 = vpop.f32.mrf.mxu3 }
 0x249   :  { %v997_v52 = vpack.c.bf16 %v920_v15, %v920_v15 }
 0x24a   :  { %v890_v7 = vpop.f32.mrf.mxu2  ;;  %v694_v51 = vpop.f32.mrf.mxu0 }
 0x24b   :  { %v973_v8 = vpack.c.bf16 %v890_v7, %v890_v7  ;;  %v793_v46 = vpop.f32.mrf.mxu1  ;;  %1069 = vst [vmem:[%s2010_s4 + $0x158] sm:$0xf] %v997_v52 }
 0x24c   :  { %v974_v9 = vpack.c.bf16 %v793_v46, %v694_v51 }
 0x24d   :  { %1045 = vst [vmem:[%s2010_s4 + $0xc8] sm:$0xf] %v973_v8 }
 0x24e   :  { %1046 = vst [vmem:[%s2010_s4 + $0xcc] sm:$0xff] %v974_v9 }
 0x250   :  { %v922_v13 = vpop.f32.mrf.mxu3 }
 0x251   :  { %v999_v61 = vpack.c.bf16 %v922_v13, %v922_v13 }
 0x252   :  { %v892_v31 = vpop.f32.mrf.mxu2  ;;  %v697_v56 = vpop.f32.mrf.mxu0 }
 0x253   :  { %v975_v34 = vpack.c.bf16 %v892_v31, %v892_v31  ;;  %v796_v6 = vpop.f32.mrf.mxu1  ;;  %1071 = vst [vmem:[%s2010_s4 + $0x164] sm:$0xf] %v999_v61 }
 0x254   :  { %v976_v35 = vpack.c.bf16 %v796_v6, %v697_v56 }
 0x255   :  { %1047 = vst [vmem:[%s2010_s4 + $0xd4] sm:$0xf] %v975_v34 }
 0x256   :  { %1048 = vst [vmem:[%s2010_s4 + $0xd8] sm:$0xff] %v976_v35 }
 0x258   :  { %v925_v14 = vpop.f32.mrf.mxu3 }
 0x259   :  { %v1001_v59 = vpack.c.bf16 %v925_v14, %v925_v14 }
 0x25a   :  { %v895_v41 = vpop.f32.mrf.mxu2  ;;  %v699_v24 = vpop.f32.mrf.mxu0 }
 0x25b   :  { %v977_v28 = vpack.c.bf16 %v895_v41, %v895_v41  ;;  %v798_v20 = vpop.f32.mrf.mxu1  ;;  %1073 = vst [vmem:[%s2010_s4 + $0x170] sm:$0xf] %v1001_v59 }
 0x25c   :  { %v978_v22 = vpack.c.bf16 %v798_v20, %v699_v24 }
 0x25d   :  { %1049 = vst [vmem:[%s2010_s4 + $0xe0] sm:$0xf] %v977_v28 }
 0x25e   :  { %1050 = vst [vmem:[%s2010_s4 + $0xe4] sm:$0xff] %v978_v22 }
 0x260   :  { %v927_v21 = vpop.f32.mrf.mxu3 }
 0x261   :  { %v1003_v44 = vpack.c.bf16 %v927_v21, %v927_v21 }
 0x262   :  { %v897_v23 = vpop.f32.mrf.mxu2  ;;  %v702_v25 = vpop.f32.mrf.mxu0 }
 0x263   :  { %v979_v40 = vpack.c.bf16 %v897_v23, %v897_v23  ;;  %v801_v55 = vpop.f32.mrf.mxu1  ;;  %1075 = vst [vmem:[%s2010_s4 + $0x17c] sm:$0xf] %v1003_v44 }
 0x264   :  { %v980_v18 = vpack.c.bf16 %v801_v55, %v702_v25 }
 0x265   :  { %1051 = vst [vmem:[%s2010_s4 + $0xec] sm:$0xf] %v979_v40 }
 0x266   :  { %1052 = vst [vmem:[%s2010_s4 + $0xf0] sm:$0xff] %v980_v18 }
 0x268   :  { %v930_v27 = vpop.f32.mrf.mxu3 }
 0x269   :  { %v1005_v42 = vpack.c.bf16 %v930_v27, %v930_v27 }
 0x26a   :  { %v900_v36 = vpop.f32.mrf.mxu2  ;;  %v704_v39 = vpop.f32.mrf.mxu0 }
 0x26b   :  { %v981_v37 = vpack.c.bf16 %v900_v36, %v900_v36  ;;  %v803_v43 = vpop.f32.mrf.mxu1  ;;  %1077 = vst [vmem:[%s2010_s4 + $0x188] sm:$0xf] %v1005_v42 }
 0x26c   :  { %v982_v62 = vpack.c.bf16 %v803_v43, %v704_v39 }
 0x26d   :  { %1053 = vst [vmem:[%s2010_s4 + $0xf8] sm:$0xf] %v981_v37 }
 0x26e   :  { %1054 = vst [vmem:[%s2010_s4 + $0xfc] sm:$0xff] %v982_v62 }
 0x270   :  { %v932_v49 = vpop.f32.mrf.mxu3 }
 0x271   :  { %v1007_v29 = vpack.c.bf16 %v932_v49, %v932_v49 }
 0x272   :  { %v902_v32 = vpop.f32.mrf.mxu2  ;;  %v707_v10 = vpop.f32.mrf.mxu0 }
 0x273   :  { %v983_v45 = vpack.c.bf16 %v902_v32, %v902_v32  ;;  %v806_v50 = vpop.f32.mrf.mxu1  ;;  %1079 = vst [vmem:[%s2010_s4 + $0x194] sm:$0xf] %v1007_v29 }
 0x274   :  { %v984_v30 = vpack.c.bf16 %v806_v50, %v707_v10 }
 0x275   :  { %1055 = vst [vmem:[%s2010_s4 + $0x104] sm:$0xf] %v983_v45 }
 0x276   :  { %1056 = vst [vmem:[%s2010_s4 + $0x108] sm:$0xff] %v984_v30 }
 0x278   :  { %v935_v54 = vpop.f32.mrf.mxu3 }
 0x279   :  { %v1009_v11 = vpack.c.bf16 %v935_v54, %v935_v54 }
 0x27a   :  { %v905_v33 = vpop.f32.mrf.mxu2  ;;  %v709_v60 = vpop.f32.mrf.mxu0 }
 0x27b   :  { %v985_v12 = vpack.c.bf16 %v905_v33, %v905_v33  ;;  %v808_v47 = vpop.f32.mrf.mxu1  ;;  %1081 = vst [vmem:[%s2010_s4 + $0x1a0] sm:$0xf] %v1009_v11 }
 0x27c   :  { %v986_v19 = vpack.c.bf16 %v808_v47, %v709_v60 }
 0x27d   :  { %1057 = vst [vmem:[%s2010_s4 + $0x110] sm:$0xf] %v985_v12 }
 0x27e   :  { %1058 = vst [vmem:[%s2010_s4 + $0x114] sm:$0xff] %v986_v19 }
 0x280   :  { %v937_v53 = vpop.f32.mrf.mxu3 }
 0x281   :  { %v1011_v26 = vpack.c.bf16 %v937_v53, %v937_v53 }
 0x282   :  { %v907_v16 = vpop.f32.mrf.mxu2  ;;  %v712_v17 = vpop.f32.mrf.mxu0 }
 0x283   :  { %v987_v0 = vpack.c.bf16 %v907_v16, %v907_v16  ;;  %v811_v38 = vpop.f32.mrf.mxu1  ;;  %1083 = vst [vmem:[%s2010_s4 + $0x1ac] sm:$0xf] %v1011_v26 }
 0x284   :  { %v988_v57 = vpack.c.bf16 %v811_v38, %v712_v17 }
 0x285   :  { %1059 = vst [vmem:[%s2010_s4 + $0x11c] sm:$0xf] %v987_v0 }
 0x286   :  { %1060 = vst [vmem:[%s2010_s4 + $0x120] sm:$0xff] %v988_v57 }
 0x28a   :  { %v910_v1 = vpop.f32.mrf.mxu2  ;;  %v714_v58 = vpop.f32.mrf.mxu0 }
 0x28b   :  { %v989_v48 = vpack.c.bf16 %v910_v1, %v910_v1  ;;  %v813_v3 = vpop.f32.mrf.mxu1 }
 0x28c   :  { %v990_v2 = vpack.c.bf16 %v813_v3, %v714_v58 }
 0x28d   :  { %1061 = vst [vmem:[%s2010_s4 + $0x128] sm:$0xf] %v989_v48 }
 0x28e   :  { %1062 = vst [vmem:[%s2010_s4 + $0x12c] sm:$0xff] %v990_v2 }
 0x292   :  { %v912_v4 = vpop.f32.mrf.mxu2  ;;  %v717_v63 = vpop.f32.mrf.mxu0 }
 0x293   :  { %v991_v5 = vpack.c.bf16 %v912_v4, %v912_v4  ;;  %v816_v15 = vpop.f32.mrf.mxu1 }
 0x294   :  { %v992_v7 = vpack.c.bf16 %v816_v15, %v717_v63 }
 0x295   :  { %1063 = vst [vmem:[%s2010_s4 + $0x134] sm:$0xf] %v991_v5 }
 0x296   :  { %1064 = vst [vmem:[%s2010_s4 + $0x138] sm:$0xff] %v992_v7 }
 0x29a   :  { %v915_v51 = vpop.f32.mrf.mxu2  ;;  %v719_v52 = vpop.f32.mrf.mxu0 }
 0x29b   :  { %v993_v8 = vpack.c.bf16 %v915_v51, %v915_v51  ;;  %v818_v46 = vpop.f32.mrf.mxu1 }
 0x29c   :  { %v994_v9 = vpack.c.bf16 %v818_v46, %v719_v52 }
 0x29d   :  { %1065 = vst [vmem:[%s2010_s4 + $0x140] sm:$0xf] %v993_v8 }
 0x29e   :  { %1066 = vst [vmem:[%s2010_s4 + $0x144] sm:$0xff] %v994_v9 }
 0x2a2   :  { %v917_v13 = vpop.f32.mrf.mxu2 }
 0x2a3   :  { %v995_v31 = vpack.c.bf16 %v917_v13, %v917_v13 }
 0x2a5   :  { %1067 = vst [vmem:[%s2010_s4 + $0x14c] sm:$0xf] %v995_v31 }

// kernel: omniglot_decoder.10
= control target key start
LH: loop header
LB: loop body
LE: loop exit
PB: predicated region body
PF: predicated region fallthrough
CT: control target
= control target key end

     0   :  { %v1602_v40 = vmov 0   ;;  %vm464_vm12 = vcmask 261120   ;;  %s2444_s0 = inlined_call_operand.vmem [shape: f32[32,384], index: 0, kind: input, shape index: {}]   ;;  %s2445_s1 = inlined_call_operand.vmem [shape: f32[32,1], index: 1, kind: input, shape index: {}]   ;;  %s2446_s2 = inlined_call_operand.vmem [shape: f32[32,1], index: 2, kind: input, shape index: {}]   ;;  %s2447_s3 = inlined_call_operand.vmem [shape: bf16[512,32], index: 3, kind: input, shape index: {}]   ;;  %s2448_s4 = inlined_call_operand.vmem [shape: bf16[512,384], index: 4, kind: output, shape index: {}]  }
   0x1   :  { %v1631_v0 = vld [vmem:[%s2444_s0 + $0x30] sm:$0xff]  ;;  %v1636_v1 = vld [vmem:[%s2444_s0 + $0x38] sm:$0xff]  ;;  %v1641_v2 = vld [vmem:[%s2444_s0 + $0x40] sm:$0xff]  ;;  %1591 = vset.pattern.permute.xlu2 %v1602_v40  ;;  %1592 = vset.pattern.permute.xlu0 %v1602_v40 }
   0x2   :  { %v38_v3 = vadd.f32 %v1636_v1, %v1631_v0  ;;  %v52_v4 = vmul.f32 %v1631_v0, %v1631_v0  ;;  %v53_v5 = vmul.f32 %v1636_v1, %v1636_v1  ;;  %v54_v6 = vmul.f32 %v1641_v2, %v1641_v2  ;;  %v1654_v7 = vld [vmem:[%s2444_s0 + $0x48] sm:$0xff]  ;;  %v1659_v8 = vld [vmem:[%s2444_s0 + $0x50] sm:$0xff]  ;;  %v1664_v9 = vld [vmem:[%s2444_s0] sm:$0xff]  ;;  %1593 = vset.pattern.permute.xlu1 %v1602_v40 }
   0x3   :  { %v1669_v10 = vld [vmem:[%s2444_s0 + $0x8] sm:$0xff]  ;;  %v1674_v11 = vld [vmem:[%s2444_s0 + $0x10] sm:$0xff]  ;;  %v55_v12 = vmul.f32 %v1654_v7, %v1654_v7  ;;  %v56_v16 = vmul.f32 %v1659_v8, %v1659_v8  ;;  %v1686_v17 = vld [vmem:[%s2444_s0 + $0x58] sm:$0xff]  ;;  %v42_v21 = vadd.f32 %v1659_v8, %v1654_v7  ;;  %v46_v28 = vmul.f32 %v1664_v9, %v1664_v9 }
   0x4   :  { %v39_v13 = vadd.f32 %v38_v3, %v1641_v2  ;;  %v66_v14 = vadd.f32 %v53_v5, %v52_v4  ;;  %v30_v15 = vadd.f32 %v1669_v10, %v1664_v9  ;;  %v1691_v18 = vld [vmem:[%s2444_s0 + $0x18] sm:$0xff]  ;;  %v1696_v19 = vld [vmem:[%s2444_s0 + $0x20] sm:$0xff]  ;;  %v57_v23 = vmul.f32 %v1686_v17, %v1686_v17  ;;  %v1708_v26 = vld [vmem:[%s2444_s0 + $0x28] sm:$0xff] }
   0x5   :  { %v70_v24 = vadd.f32 %v56_v16, %v55_v12  ;;  %v34_v25 = vadd.f32 %v1696_v19, %v1691_v18  ;;  %v43_v27 = vadd.f32 %v42_v21, %v1686_v17  ;;  %v47_v29 = vmul.f32 %v1669_v10, %v1669_v10 }
   0x6   :  { %40 = vadd.xlane.f32.xlu0 %v39_v13  ;;  %v67_v20 = vadd.f32 %v66_v14, %v54_v6  ;;  %v31_v22 = vadd.f32 %v30_v15, %v1674_v11  ;;  %v49_v32 = vmul.f32 %v1691_v18, %v1691_v18  ;;  %v50_v33 = vmul.f32 %v1696_v19, %v1696_v19 }
   0x7   :  { %v71_v30 = vadd.f32 %v70_v24, %v57_v23  ;;  %v35_v31 = vadd.f32 %v34_v25, %v1708_v26  ;;  %v48_v34 = vmul.f32 %v1674_v11, %v1674_v11  ;;  %v58_v35 = vadd.f32 %v47_v29, %v46_v28  ;;  %v140_v29 = vld [vmem:[%s2445_s1 + $0x10] sm:$0xff] }
   0x8   :  { %68 = vadd.xlane.f32.xlu1 %v67_v20  ;;  %32 = vadd.xlane.f32.xlu2 %v31_v22  ;;  %v51_v36 = vmul.f32 %v1708_v26, %v1708_v26  ;;  %v62_v37 = vadd.f32 %v50_v33, %v49_v32 }
   0x9   :  { %v59_v38 = vadd.f32 %v58_v35, %v48_v34 }
   0xa   :  { %v63_v39 = vadd.f32 %v62_v37, %v51_v36 }
   0xe   :  { %44 = vadd.xlane.f32.xlu0 %v43_v27 }
  0x10   :  { %72 = vadd.xlane.f32.xlu1 %v71_v30  ;;  %36 = vadd.xlane.f32.xlu2 %v35_v31 }
  0x16   :  { %60 = vadd.xlane.f32.xlu0 %v59_v38 }
  0x18   :  { %64 = vadd.xlane.f32.xlu1 %v63_v39 }
  0x79   :  { %v41_v41 = vpop.xlane.xlu0 %40 }
  0x7a   :  { %v1724_v42 = vmul.f32 0.00295858, %v41_v41  ;;  %v141_v41 = vld [vmem:[%s2445_s1 + $0x18] sm:$0xff] }
  0x7b   :  { %v69_v43 = vpop.xlane.xlu1 %68  ;;  %v33_v44 = vpop.xlane.xlu2 %32 }
  0x7c   :  { %v84_v45 = vmul.f32 %v1724_v42, %v1724_v42  ;;  %v80_v46 = vmul.f32 0.00295858, %v69_v43  ;;  %v1732_v56 = vmul.f32 0.00295858, %v33_v44 }
  0x7e   :  { %v88_v47 = vsub.f32 %v80_v46, %v84_v45  ;;  %v82_v62 = vmul.f32 %v1732_v56, %v1732_v56 }
  0x80   :  { %v92_v48 = vmax.f32 %v88_v47, 0.0 }
  0x81   :  { %v45_v49 = vpop.xlane.xlu0 %44 }
  0x82   :  { %v96_v50 = vadd.f32 1e-05, %v92_v48  ;;  %v1728_v51 = vmul.f32 0.00295858, %v45_v49 }
  0x83   :  { %v73_v52 = vpop.xlane.xlu1 %72  ;;  %v37_v53 = vpop.xlane.xlu2 %36 }
  0x84   :  { %1594 = vrsqrt.f32 %v96_v50  ;;  %v85_v54 = vmul.f32 %v1728_v51, %v1728_v51  ;;  %v81_v55 = vmul.f32 0.00295858, %v73_v52  ;;  %v1734_v58 = vmul.f32 0.00295858, %v37_v53  ;;  %v138_v52 = vld [vmem:[%s2445_s1] sm:$0xff] }
  0x85   :  { %vm124_vm1 = vweird.f32 %v96_v50 }
  0x86   :  { %v89_v57 = vsub.f32 %v81_v55, %v85_v54  ;;  %v83_v4 = vmul.f32 %v1734_v58, %v1734_v58  ;;  %v139_v55 = vld [vmem:[%s2445_s1 + $0x8] sm:$0xff] }
  0x88   :  { %v93_v59 = vmax.f32 %v89_v57, 0.0 }
  0x89   :  { %v61_v60 = vpop.xlane.xlu0 %60 }
  0x8a   :  { %v1595_v61 = vpop.eup %1594  ;;  %v97_v63 = vadd.f32 1e-05, %v93_v59  ;;  %v78_v3 = vmul.f32 0.00295858, %v61_v60 }
  0x8b   :  { %v119_v5 = vmul.f32 %v1595_v61, %v96_v50  ;;  %v65_v6 = vpop.xlane.xlu1 %64  ;;  %vm125_vm0 = vweird.f32 %v1595_v61 }
  0x8c   :  { %1596 = vrsqrt.f32 %v97_v63  ;;  %v86_v12 = vsub.f32 %v78_v3, %v82_v62  ;;  %v79_v13 = vmul.f32 0.00295858, %v65_v6  ;;  %vm126_vm2 = vmor %vm124_vm1, %vm125_vm0  ;;  %vm134_vm4 = vweird.f32 %v97_v63  ;;  %v149_v62 = vld [vmem:[%s2446_s2 + $0x18] sm:$0xff]  ;;  %v148_v3 = vld [vmem:[%s2446_s2 + $0x10] sm:$0xff] }
  0x8d   :  { %v120_v14 = vmul.f32 %v1595_v61, %v119_v5 }
  0x8e   :  { %v90_v15 = vmax.f32 %v86_v12, 0.0  ;;  %v87_v16 = vsub.f32 %v79_v13, %v83_v4 }
  0x8f   :  { %v121_v20 = vmul.f32 0.5, %v120_v14 }
  0x90   :  { %v94_v21 = vadd.f32 1e-05, %v90_v15  ;;  %v91_v22 = vmax.f32 %v87_v16, 0.0 }
  0x91   :  { %v122_v23 = vsub.f32 1.5, %v121_v20 }
  0x92   :  { %v1597_v24 = vpop.eup %1596  ;;  %1598 = vrsqrt.f32 %v94_v21  ;;  %v95_v25 = vadd.f32 1e-05, %v91_v22  ;;  %vm104_vm7 = vweird.f32 %v94_v21 }
  0x93   :  { %v129_v27 = vmul.f32 %v1597_v24, %v97_v63  ;;  %v123_v28 = vmul.f32 %v1595_v61, %v122_v23  ;;  %vm135_vm3 = vweird.f32 %v1597_v24 }
  0x94   :  { %1600 = vrsqrt.f32 %v95_v25  ;;  %vm136_vm5 = vmor %vm134_vm4, %vm135_vm3  ;;  %vm114_vm10 = vweird.f32 %v95_v25 }
  0x95   :  { %v130_v30 = vmul.f32 %v1597_v24, %v129_v27  ;;  %v127_v31 = vsel %vm126_vm2, %v1595_v61, %v123_v28 }
  0x96   :  { %v144_v32 = vmul.f32 %v140_v29, %v127_v31 }
  0x97   :  { %v131_v33 = vmul.f32 0.5, %v130_v30 }
  0x98   :  { %v1599_v34 = vpop.eup %1598  ;;  %170 = vperm.xlu2 %1591, %v144_v32   ;;  %v152_v63 = vmul.f32 %v144_v32, %v1724_v42  ;;  %v147_v42 = vld [vmem:[%s2446_s2 + $0x8] sm:$0xff] }
  0x99   :  { %v132_v35 = vsub.f32 1.5, %v131_v33  ;;  %v99_v36 = vmul.f32 %v1599_v34, %v94_v21  ;;  %vm105_vm6 = vweird.f32 %v1599_v34 }
  0x9a   :  { %v1601_v37 = vpop.eup %1600  ;;  %vm106_vm9 = vmor %vm104_vm7, %vm105_vm6  ;;  %v156_v5 = vsub.f32 %v148_v3, %v152_v63  ;;  %v1554_v63 = vld [vmem:[%s2447_s3 + $0x10] sm:$0xff] }
  0x9b   :  { %v100_v38 = vmul.f32 %v1599_v34, %v99_v36  ;;  %v109_v39 = vmul.f32 %v1601_v37, %v95_v25  ;;  %v133_v40 = vmul.f32 %v1597_v24, %v132_v35  ;;  %vm115_vm8 = vweird.f32 %v1601_v37  ;;  %v1812_v3 = vld [vmem:[%s2447_s3 + $0xd0] sm:$0xff] }
  0x9c   :  { %vm116_vm11 = vmor %vm114_vm10, %vm115_vm8 }
  0x9d   :  { %v101_v43 = vmul.f32 0.5, %v100_v38  ;;  %v110_v44 = vmul.f32 %v1601_v37, %v109_v39  ;;  %v137_v45 = vsel %vm136_vm5, %v1597_v24, %v133_v40 }
  0x9e   :  { %v145_v46 = vmul.f32 %v141_v41, %v137_v45 }
  0x9f   :  { %v102_v47 = vsub.f32 1.5, %v101_v43  ;;  %v111_v48 = vmul.f32 0.5, %v110_v44 }
  0xa0   :  { %175 = vperm.xlu0 %1592, %v145_v46   ;;  %v153_v61 = vmul.f32 %v145_v46, %v1728_v51  ;;  %v146_v51 = vld [vmem:[%s2446_s2] sm:$0xff] }
  0xa1   :  { %v112_v49 = vsub.f32 1.5, %v111_v48  ;;  %v103_v50 = vmul.f32 %v1599_v34, %v102_v47 }
  0xa2   :  { %v157_v4 = vsub.f32 %v149_v62, %v153_v61  ;;  %v1553_v61 = vld [vmem:[%s2447_s3 + $0x8] sm:$0xff] }
  0xa3   :  { %v107_v53 = vsel %vm106_vm9, %v1599_v34, %v103_v50  ;;  %v113_v54 = vmul.f32 %v1601_v37, %v112_v49  ;;  %v1799_v62 = vld [vmem:[%s2447_s3 + $0xc8] sm:$0xff] }
  0xa4   :  { %v142_v57 = vmul.f32 %v138_v52, %v107_v53 }
  0xa5   :  { %v117_v59 = vsel %vm116_vm11, %v1601_v37, %v113_v54 }
  0xa6   :  { %160 = vperm.xlu2 %1591, %v142_v57   ;;  %v143_v60 = vmul.f32 %v139_v55, %v117_v59  ;;  %v150_v6 = vmul.f32 %v142_v57, %v1732_v56 }
  0xa8   :  { %165 = vperm.xlu1 %1593, %v143_v60   ;;  %v151_v12 = vmul.f32 %v143_v60, %v1734_v58  ;;  %v154_v13 = vsub.f32 %v146_v51, %v150_v6  ;;  %v1556_v6 = vld [vmem:[%s2447_s3 + $0x20] sm:$0xff] }
  0xa9   :  { %v1838_v51 = vld [vmem:[%s2447_s3 + $0xe0] sm:$0xff] }
  0xaa   :  { %v155_v14 = vsub.f32 %v147_v42, %v151_v12  ;;  %v1557_v12 = vld [vmem:[%s2447_s3 + $0x28] sm:$0xff] }
  0xab   :  { %v1851_v42 = vld [vmem:[%s2447_s3 + $0xe8] sm:$0xff] }
  0xae   :  { %207 = vperm.xlu2 %1591, %v157_v4   ;;  %v1555_v4 = vld [vmem:[%s2447_s3 + $0x18] sm:$0xff] }
  0xb0   :  { %202 = vperm.xlu1 %1593, %v156_v5   ;;  %v1825_v5 = vld [vmem:[%s2447_s3 + $0xd8] sm:$0xff] }
  0xb6   :  { %192 = vperm.xlu2 %1591, %v154_v13   ;;  %v1558_v13 = vld [vmem:[%s2447_s3 + $0x30] sm:$0xff] }
  0xb8   :  { %197 = vperm.xlu1 %1593, %v155_v14   ;;  %v1864_v14 = vld [vmem:[%s2447_s3 + $0xf0] sm:$0xff] }
  0xf2   :  { %v171_v15 = vpop.permute.xlu2 %170 }
  0xf3   :  { %v184_v27 = vmul.f32 %v171_v15, %v1631_v0  ;;  %v185_v28 = vmul.f32 %v171_v15, %v1636_v1  ;;  %v186_v29 = vmul.f32 %v171_v15, %v1641_v2  ;;  %v1559_v15 = vld [vmem:[%s2447_s3 + $0x38] sm:$0xff] }
 0x100   :  { %v161_v16 = vpop.permute.xlu2 %160 }
 0x101   :  { %v178_v39 = vmul.f32 %v161_v16, %v1664_v9  ;;  %v179_v0 = vmul.f32 %v161_v16, %v1669_v10  ;;  %v180_v1 = vmul.f32 %v161_v16, %v1674_v11  ;;  %v1877_v16 = vld [vmem:[%s2447_s3 + $0xf8] sm:$0xff] }
 0x108   :  { %v208_v22 = vpop.permute.xlu2 %207 }
 0x112   :  { %v176_v20 = vpop.permute.xlu0 %175 }
 0x113   :  { %v187_v56 = vmul.f32 %v176_v20, %v1654_v7  ;;  %v188_v23 = vmul.f32 %v176_v20, %v1659_v8  ;;  %v189_v24 = vmul.f32 %v176_v20, %v1686_v17  ;;  %v193_v7 = vpop.permute.xlu2 %192  ;;  %v1560_v20 = vld [vmem:[%s2447_s3 + $0x40] sm:$0xff] }
 0x114   :  { %v210_v43 = vadd.f32 %v193_v7, %v178_v39  ;;  %v211_v44 = vadd.f32 %v193_v7, %v179_v0  ;;  %v212_v45 = vadd.f32 %v193_v7, %v180_v1  ;;  %v1562_v1 = vld [vmem:[%s2447_s3 + $0x50] sm:$0xff] }
 0x115   :  { %v219_v58 = vadd.f32 %v208_v22, %v187_v56  ;;  %v220_v25 = vadd.f32 %v208_v22, %v188_v23  ;;  %v221_v30 = vadd.f32 %v208_v22, %v189_v24 }
 0x116   :  { %v222_v50 = vmax.f32 %v210_v43, 0.0  ;;  %v223_v52 = vmax.f32 %v211_v44, 0.0  ;;  %v224_v53 = vmax.f32 %v212_v45, 0.0 }
 0x117   :  { %v231_v35 = vmax.f32 %v219_v58, 0.0  ;;  %v232_v36 = vmax.f32 %v220_v25, 0.0  ;;  %v233_v17 = vmax.f32 %v221_v30, 0.0 }
 0x11a   :  { %v166_v21 = vpop.permute.xlu1 %165 }
 0x11b   :  { %v181_v46 = vmul.f32 %v166_v21, %v1691_v18  ;;  %v182_v47 = vmul.f32 %v166_v21, %v1696_v19  ;;  %v183_v48 = vmul.f32 %v166_v21, %v1708_v26  ;;  %v1552_v19 = vld [vmem:[%s2447_s3] sm:$0xff] }
 0x11c   :  { %v1786_v26 = vld [vmem:[%s2447_s3 + $0xc0] sm:$0xff] }
 0x122   :  { %v203_v31 = vpop.permute.xlu1 %202 }
 0x123   :  { %v216_v32 = vadd.f32 %v203_v31, %v184_v27  ;;  %v217_v33 = vadd.f32 %v203_v31, %v185_v28  ;;  %v218_v34 = vadd.f32 %v203_v31, %v186_v29  ;;  %v1561_v31 = vld [vmem:[%s2447_s3 + $0x48] sm:$0xff] }
 0x125   :  { %v228_v37 = vmax.f32 %v216_v32, 0.0  ;;  %v229_v8 = vmax.f32 %v217_v33, 0.0  ;;  %v230_v38 = vmax.f32 %v218_v34, 0.0 }
 0x127   :  { %v237_v40 = vpack.c.bf16 %v231_v35, %v228_v37  ;;  %v238_v2 = vpack.c.bf16 %v232_v36, %v229_v8  ;;  %v239_v41 = vpack.c.bf16 %v233_v17, %v230_v38 }
 0x129   :  { %567 = vmatpush.bf16.msra.mxu0 %v237_v40  ;;  %1584 = vmatpush.bf16.msra.mxu3 %v237_v40 }
 0x12a   :  { %736 = vmatpush.bf16.msra.mxu1 %v238_v2  ;;  %905 = vmatpush.bf16.msra.mxu2 %v239_v41  ;;  %v198_v9 = vpop.permute.xlu1 %197 }
 0x12b   :  { %v213_v10 = vadd.f32 %v198_v9, %v181_v46  ;;  %v214_v49 = vadd.f32 %v198_v9, %v182_v47  ;;  %v215_v11 = vadd.f32 %v198_v9, %v183_v48 }
 0x12d   :  { %v225_v54 = vmax.f32 %v213_v10, 0.0  ;;  %v226_v55 = vmax.f32 %v214_v49, 0.0  ;;  %v227_v57 = vmax.f32 %v215_v11, 0.0  ;;  %v1563_v11 = vld [vmem:[%s2447_s3 + $0x58] sm:$0xff] }
 0x12f   :  { %v234_v59 = vpack.c.bf16 %v225_v54, %v222_v50  ;;  %v235_v18 = vpack.c.bf16 %v226_v55, %v223_v52  ;;  %v236_v60 = vpack.c.bf16 %v227_v57, %v224_v53 }
 0x131   :  { %568 = vmatpush.bf16.msra.mxu0 %v234_v59  ;;  %1585 = vmatpush.bf16.msra.mxu3 %v234_v59 }
 0x132   :  { %737 = vmatpush.bf16.msra.mxu1 %v235_v18  ;;  %906 = vmatpush.bf16.msra.mxu2 %v236_v60 }
 0x134   :  { %1456 = vmatmul.msk.bf16.vlgmr.msra.gmra.mxu0 %vm464_vm12, %v1552_v19  ;;  %1480 = vmatmul.msk.bf16.vlgmr.msra.gmra.mxu3 %vm464_vm12, %v1786_v26 }
 0x135   :  { %1586 = vmatpush.bf16.msrb.mxu3 %v238_v2  ;;  %1488 = vmatmul.msk.bf16.vlgmr.msra.gmra.mxu1 %vm464_vm12, %v1552_v19 }
 0x136   :  { %1520 = vmatmul.msk.bf16.vlgmr.msra.gmra.mxu2 %vm464_vm12, %v1552_v19 }
 0x139   :  { %1587 = vmatpush.bf16.msrb.mxu3 %v235_v18 }
 0x13d   :  { %1588 = vmatpush.bf16.msra.mxu3 %v239_v41 }
 0x141   :  { %1589 = vmatpush.bf16.msra.mxu3 %v236_v60 }
 0x144   :  { %1457 = vmatmul.msk.bf16.gmra.mxu0 %vm464_vm12, %v1553_v61  ;;  %1481 = vmatmul.msk.bf16.gmra.mxu3 %vm464_vm12, %v1799_v62 }
 0x145   :  { %1489 = vmatmul.msk.bf16.gmra.mxu1 %vm464_vm12, %v1553_v61 }
 0x146   :  { %1521 = vmatmul.msk.bf16.gmra.mxu2 %vm464_vm12, %v1553_v61 }
 0x154   :  { %1458 = vmatmul.msk.bf16.gmra.mxu0 %vm464_vm12, %v1554_v63  ;;  %1482 = vmatmul.msk.bf16.gmra.mxu3 %vm464_vm12, %v1812_v3 }
 0x155   :  { %1490 = vmatmul.msk.bf16.gmra.mxu1 %vm464_vm12, %v1554_v63 }
 0x156   :  { %1522 = vmatmul.msk.bf16.gmra.mxu2 %vm464_vm12, %v1554_v63 }
 0x164   :  { %1459 = vmatmul.msk.bf16.gmra.mxu0 %vm464_vm12, %v1555_v4  ;;  %1483 = vmatmul.msk.bf16.gmra.mxu3 %vm464_vm12, %v1825_v5 }
 0x165   :  { %1491 = vmatmul.msk.bf16.gmra.mxu1 %vm464_vm12, %v1555_v4 }
 0x166   :  { %1523 = vmatmul.msk.bf16.gmra.mxu2 %vm464_vm12, %v1555_v4  ;;  %v1564_v4 = vld [vmem:[%s2447_s3 + $0x60] sm:$0xff] }
 0x174   :  { %1460 = vmatmul.msk.bf16.gmra.mxu0 %vm464_vm12, %v1556_v6  ;;  %1484 = vmatmul.msk.bf16.gmra.mxu3 %vm464_vm12, %v1838_v51 }
 0x175   :  { %1492 = vmatmul.msk.bf16.gmra.mxu1 %vm464_vm12, %v1556_v6 }
 0x176   :  { %1524 = vmatmul.msk.bf16.gmra.mxu2 %vm464_vm12, %v1556_v6 }
 0x184   :  { %1461 = vmatmul.msk.bf16.gmra.mxu0 %vm464_vm12, %v1557_v12  ;;  %1485 = vmatmul.msk.bf16.gmra.mxu3 %vm464_vm12, %v1851_v42 }
 0x185   :  { %1493 = vmatmul.msk.bf16.gmra.mxu1 %vm464_vm12, %v1557_v12 }
 0x186   :  { %1525 = vmatmul.msk.bf16.gmra.mxu2 %vm464_vm12, %v1557_v12 }
 0x194   :  { %1462 = vmatmul.msk.bf16.gmra.mxu0 %vm464_vm12, %v1558_v13  ;;  %1486 = vmatmul.msk.bf16.gmra.mxu3 %vm464_vm12, %v1864_v14 }
 0x195   :  { %1494 = vmatmul.msk.bf16.gmra.mxu1 %vm464_vm12, %v1558_v13 }
 0x196   :  { %1526 = vmatmul.msk.bf16.gmra.mxu2 %vm464_vm12, %v1558_v13 }
 0x1a4   :  { %1463 = vmatmul.msk.bf16.gmra.mxu0 %vm464_vm12, %v1559_v15  ;;  %1487 = vmatmul.msk.bf16.gmra.mxu3 %vm464_vm12, %v1877_v16 }
 0x1a5   :  { %1495 = vmatmul.msk.bf16.gmra.mxu1 %vm464_vm12, %v1559_v15 }
 0x1a6   :  { %1527 = vmatmul.msk.bf16.gmra.mxu2 %vm464_vm12, %v1559_v15 }
 0x1b1   :  { %v570_v21 = vpop.f32.mrf.mxu0 }
 0x1b2   :  { %v739_v22 = vpop.f32.mrf.mxu1 }
 0x1b3   :  { %v1068_v56 = vpack.c.bf16 %v739_v22, %v570_v21 }
 0x1b4   :  { %1464 = vmatmul.msk.bf16.gmra.mxu0 %vm464_vm12, %v1560_v20  ;;  %1512 = vmatmul.msk.bf16.vlgmr.msrb.gmra.mxu3 %vm464_vm12, %v1786_v26 }
 0x1b5   :  { %1196 = vst [vmem:[%s2448_s4] sm:$0xff] %v1068_v56  ;;  %1496 = vmatmul.msk.bf16.gmra.mxu1 %vm464_vm12, %v1560_v20 }
 0x1b6   :  { %1528 = vmatmul.msk.bf16.gmra.mxu2 %vm464_vm12, %v1560_v20 }
 0x1b7   :  { %v1895_v23 = vpop.f32.mrf.mxu3 }
 0x1b9   :  { %v908_v24 = vpop.f32.mrf.mxu2  ;;  %v572_v25 = vpop.f32.mrf.mxu0 }
 0x1ba   :  { %v1069_v58 = vpack.c.bf16 %v908_v24, %v908_v24  ;;  %v741_v27 = vpop.f32.mrf.mxu1 }
 0x1bb   :  { %v1070_v28 = vpack.c.bf16 %v741_v27, %v572_v25 }
 0x1bc   :  { %1197 = vst [vmem:[%s2448_s4 + $0x8] sm:$0xf] %v1069_v58 }
 0x1bd   :  { %1198 = vst [vmem:[%s2448_s4 + $0xc] sm:$0xff] %v1070_v28  ;;  %v1565_v28 = vld [vmem:[%s2447_s3 + $0x68] sm:$0xff] }
 0x1bf   :  { %v1903_v29 = vpop.f32.mrf.mxu3 }
 0x1c1   :  { %v910_v30 = vpop.f32.mrf.mxu2  ;;  %v575_v33 = vpop.f32.mrf.mxu0 }
 0x1c2   :  { %v1071_v32 = vpack.c.bf16 %v910_v30, %v910_v30  ;;  %v744_v34 = vpop.f32.mrf.mxu1 }
 0x1c3   :  { %v1072_v35 = vpack.c.bf16 %v744_v34, %v575_v33 }
 0x1c4   :  { %1199 = vst [vmem:[%s2448_s4 + $0x14] sm:$0xf] %v1071_v32  ;;  %1465 = vmatmul.msk.bf16.gmra.mxu0 %vm464_vm12, %v1561_v31  ;;  %1513 = vmatmul.msk.bf16.gmra.mxu3 %vm464_vm12, %v1799_v62 }
 0x1c5   :  { %1200 = vst [vmem:[%s2448_s4 + $0x18] sm:$0xff] %v1072_v35  ;;  %1497 = vmatmul.msk.bf16.gmra.mxu1 %vm464_vm12, %v1561_v31 }
 0x1c6   :  { %1529 = vmatmul.msk.bf16.gmra.mxu2 %vm464_vm12, %v1561_v31 }
 0x1c7   :  { %v1919_v36 = vpop.f32.mrf.mxu3 }
 0x1c9   :  { %v913_v7 = vpop.f32.mrf.mxu2  ;;  %v577_v8 = vpop.f32.mrf.mxu0 }
 0x1ca   :  { %v1073_v37 = vpack.c.bf16 %v913_v7, %v913_v7  ;;  %v746_v38 = vpop.f32.mrf.mxu1 }
 0x1cb   :  { %v1074_v17 = vpack.c.bf16 %v746_v38, %v577_v8 }
 0x1cc   :  { %1201 = vst [vmem:[%s2448_s4 + $0x20] sm:$0xf] %v1073_v37 }
 0x1cd   :  { %1202 = vst [vmem:[%s2448_s4 + $0x24] sm:$0xff] %v1074_v17 }
 0x1cf   :  { %v1927_v39 = vpop.f32.mrf.mxu3 }
 0x1d1   :  { %v915_v0 = vpop.f32.mrf.mxu2  ;;  %v580_v2 = vpop.f32.mrf.mxu0 }
 0x1d2   :  { %v1075_v40 = vpack.c.bf16 %v915_v0, %v915_v0  ;;  %v749_v41 = vpop.f32.mrf.mxu1 }
 0x1d3   :  { %v1076_v43 = vpack.c.bf16 %v749_v41, %v580_v2 }
 0x1d4   :  { %1203 = vst [vmem:[%s2448_s4 + $0x2c] sm:$0xf] %v1075_v40  ;;  %1466 = vmatmul.msk.bf16.gmra.mxu0 %vm464_vm12, %v1562_v1  ;;  %1514 = vmatmul.msk.bf16.gmra.mxu3 %vm464_vm12, %v1812_v3 }
 0x1d5   :  { %1204 = vst [vmem:[%s2448_s4 + $0x30] sm:$0xff] %v1076_v43  ;;  %1498 = vmatmul.msk.bf16.gmra.mxu1 %vm464_vm12, %v1562_v1 }
 0x1d6   :  { %1530 = vmatmul.msk.bf16.gmra.mxu2 %vm464_vm12, %v1562_v1  ;;  %v1566_v1 = vld [vmem:[%s2447_s3 + $0x70] sm:$0xff] }
 0x1d7   :  { %v1943_v44 = vpop.f32.mrf.mxu3 }
 0x1d9   :  { %v918_v45 = vpop.f32.mrf.mxu2  ;;  %v582_v47 = vpop.f32.mrf.mxu0 }
 0x1da   :  { %v1077_v46 = vpack.c.bf16 %v918_v45, %v918_v45  ;;  %v751_v48 = vpop.f32.mrf.mxu1 }
 0x1db   :  { %v1078_v9 = vpack.c.bf16 %v751_v48, %v582_v47 }
 0x1dc   :  { %1205 = vst [vmem:[%s2448_s4 + $0x38] sm:$0xf] %v1077_v46 }
 0x1dd   :  { %1206 = vst [vmem:[%s2448_s4 + $0x3c] sm:$0xff] %v1078_v9 }
 0x1df   :  { %v1951_v10 = vpop.f32.mrf.mxu3 }
 0x1e1   :  { %v920_v49 = vpop.f32.mrf.mxu2  ;;  %v585_v52 = vpop.f32.mrf.mxu0 }
 0x1e2   :  { %v1079_v50 = vpack.c.bf16 %v920_v49, %v920_v49  ;;  %v754_v53 = vpop.f32.mrf.mxu1 }
 0x1e3   :  { %v1080_v54 = vpack.c.bf16 %v754_v53, %v585_v52  ;;  %v1567_v52 = vld [vmem:[%s2447_s3 + $0x78] sm:$0xff] }
 0x1e4   :  { %1207 = vst [vmem:[%s2448_s4 + $0x44] sm:$0xf] %v1079_v50  ;;  %1467 = vmatmul.msk.bf16.gmra.mxu0 %vm464_vm12, %v1563_v11  ;;  %1515 = vmatmul.msk.bf16.gmra.mxu3 %vm464_vm12, %v1825_v5 }
 0x1e5   :  { %1208 = vst [vmem:[%s2448_s4 + $0x48] sm:$0xff] %v1080_v54  ;;  %1499 = vmatmul.msk.bf16.gmra.mxu1 %vm464_vm12, %v1563_v11 }
 0x1e6   :  { %1531 = vmatmul.msk.bf16.gmra.mxu2 %vm464_vm12, %v1563_v11 }
 0x1e7   :  { %v1967_v55 = vpop.f32.mrf.mxu3 }
 0x1e9   :  { %v923_v57 = vpop.f32.mrf.mxu2  ;;  %v587_v18 = vpop.f32.mrf.mxu0 }
 0x1ea   :  { %v1081_v59 = vpack.c.bf16 %v923_v57, %v923_v57  ;;  %v756_v60 = vpop.f32.mrf.mxu1 }
 0x1eb   :  { %v1082_v19 = vpack.c.bf16 %v756_v60, %v587_v18 }
 0x1ec   :  { %1209 = vst [vmem:[%s2448_s4 + $0x50] sm:$0xf] %v1081_v59 }
 0x1ed   :  { %1210 = vst [vmem:[%s2448_s4 + $0x54] sm:$0xff] %v1082_v19 }
 0x1ef   :  { %v1975_v61 = vpop.f32.mrf.mxu3 }
 0x1f1   :  { %v925_v63 = vpop.f32.mrf.mxu2  ;;  %v590_v12 = vpop.f32.mrf.mxu0 }
 0x1f2   :  { %v1083_v6 = vpack.c.bf16 %v925_v63, %v925_v63  ;;  %v759_v13 = vpop.f32.mrf.mxu1 }
 0x1f3   :  { %v1084_v15 = vpack.c.bf16 %v759_v13, %v590_v12 }
 0x1f4   :  { %1211 = vst [vmem:[%s2448_s4 + $0x5c] sm:$0xf] %v1083_v6  ;;  %1468 = vmatmul.msk.bf16.gmra.mxu0 %vm464_vm12, %v1564_v4  ;;  %1516 = vmatmul.msk.bf16.gmra.mxu3 %vm464_vm12, %v1838_v51 }
 0x1f5   :  { %1212 = vst [vmem:[%s2448_s4 + $0x60] sm:$0xff] %v1084_v15  ;;  %1500 = vmatmul.msk.bf16.gmra.mxu1 %vm464_vm12, %v1564_v4  ;;  %v1568_v15 = vld [vmem:[%s2447_s3 + $0x80] sm:$0xff] }
 0x1f6   :  { %1532 = vmatmul.msk.bf16.gmra.mxu2 %vm464_vm12, %v1564_v4 }
 0x1f7   :  { %v1991_v20 = vpop.f32.mrf.mxu3 }
 0x1f9   :  { %v928_v21 = vpop.f32.mrf.mxu2  ;;  %v592_v56 = vpop.f32.mrf.mxu0 }
 0x1fa   :  { %v1085_v22 = vpack.c.bf16 %v928_v21, %v928_v21  ;;  %v761_v24 = vpop.f32.mrf.mxu1 }
 0x1fb   :  { %v1086_v58 = vpack.c.bf16 %v761_v24, %v592_v56 }
 0x1fc   :  { %1213 = vst [vmem:[%s2448_s4 + $0x68] sm:$0xf] %v1085_v22 }
 0x1fd   :  { %1214 = vst [vmem:[%s2448_s4 + $0x6c] sm:$0xff] %v1086_v58 }
 0x1ff   :  { %v1999_v25 = vpop.f32.mrf.mxu3 }
 0x201   :  { %v930_v27 = vpop.f32.mrf.mxu2  ;;  %v595_v31 = vpop.f32.mrf.mxu0 }
 0x202   :  { %v1087_v30 = vpack.c.bf16 %v930_v27, %v930_v27  ;;  %v764_v32 = vpop.f32.mrf.mxu1 }
 0x203   :  { %v1088_v33 = vpack.c.bf16 %v764_v32, %v595_v31 }
 0x204   :  { %1215 = vst [vmem:[%s2448_s4 + $0x74] sm:$0xf] %v1087_v30  ;;  %1469 = vmatmul.msk.bf16.gmra.mxu0 %vm464_vm12, %v1565_v28  ;;  %1517 = vmatmul.msk.bf16.gmra.mxu3 %vm464_vm12, %v1851_v42 }
 0x205   :  { %1216 = vst [vmem:[%s2448_s4 + $0x78] sm:$0xff] %v1088_v33  ;;  %1501 = vmatmul.msk.bf16.gmra.mxu1 %vm464_vm12, %v1565_v28 }
 0x206   :  { %1533 = vmatmul.msk.bf16.gmra.mxu2 %vm464_vm12, %v1565_v28 }
 0x207   :  { %v2015_v34 = vpop.f32.mrf.mxu3 }
 0x209   :  { %v933_v35 = vpop.f32.mrf.mxu2  ;;  %v597_v37 = vpop.f32.mrf.mxu0 }
 0x20a   :  { %v1089_v7 = vpack.c.bf16 %v933_v35, %v933_v35  ;;  %v766_v8 = vpop.f32.mrf.mxu1 }
 0x20b   :  { %v1090_v38 = vpack.c.bf16 %v766_v8, %v597_v37 }
 0x20c   :  { %1217 = vst [vmem:[%s2448_s4 + $0x80] sm:$0xf] %v1089_v7  ;;  %v1569_v7 = vld [vmem:[%s2447_s3 + $0x88] sm:$0xff] }
 0x20d   :  { %1218 = vst [vmem:[%s2448_s4 + $0x84] sm:$0xff] %v1090_v38 }
 0x20f   :  { %v2023_v17 = vpop.f32.mrf.mxu3 }
 0x211   :  { %v935_v0 = vpop.f32.mrf.mxu2  ;;  %v600_v2 = vpop.f32.mrf.mxu0 }
 0x212   :  { %v1091_v40 = vpack.c.bf16 %v935_v0, %v935_v0  ;;  %v769_v41 = vpop.f32.mrf.mxu1 }
 0x213   :  { %v1092_v43 = vpack.c.bf16 %v769_v41, %v600_v2 }
 0x214   :  { %1219 = vst [vmem:[%s2448_s4 + $0x8c] sm:$0xf] %v1091_v40  ;;  %1470 = vmatmul.msk.bf16.gmra.mxu0 %vm464_vm12, %v1566_v1  ;;  %1518 = vmatmul.msk.bf16.gmra.mxu3 %vm464_vm12, %v1864_v14 }
 0x215   :  { %1220 = vst [vmem:[%s2448_s4 + $0x90] sm:$0xff] %v1092_v43  ;;  %1502 = vmatmul.msk.bf16.gmra.mxu1 %vm464_vm12, %v1566_v1 }
 0x216   :  { %1534 = vmatmul.msk.bf16.gmra.mxu2 %vm464_vm12, %v1566_v1 }
 0x217   :  { %v2039_v45 = vpop.f32.mrf.mxu3 }
 0x219   :  { %v938_v46 = vpop.f32.mrf.mxu2  ;;  %v602_v48 = vpop.f32.mrf.mxu0 }
 0x21a   :  { %v1093_v47 = vpack.c.bf16 %v938_v46, %v938_v46  ;;  %v771_v9 = vpop.f32.mrf.mxu1 }
 0x21b   :  { %v1094_v49 = vpack.c.bf16 %v771_v9, %v602_v48  ;;  %v1570_v48 = vld [vmem:[%s2447_s3 + $0x90] sm:$0xff] }
 0x21c   :  { %1221 = vst [vmem:[%s2448_s4 + $0x98] sm:$0xf] %v1093_v47 }
 0x21d   :  { %1222 = vst [vmem:[%s2448_s4 + $0x9c] sm:$0xff] %v1094_v49 }
 0x21f   :  { %v2047_v11 = vpop.f32.mrf.mxu3 }
 0x221   :  { %v940_v50 = vpop.f32.mrf.mxu2  ;;  %v605_v54 = vpop.f32.mrf.mxu0 }
 0x222   :  { %v1095_v53 = vpack.c.bf16 %v940_v50, %v940_v50  ;;  %v774_v57 = vpop.f32.mrf.mxu1 }
 0x223   :  { %v1096_v59 = vpack.c.bf16 %v774_v57, %v605_v54 }
 0x224   :  { %1223 = vst [vmem:[%s2448_s4 + $0xa4] sm:$0xf] %v1095_v53  ;;  %1471 = vmatmul.msk.bf16.gmra.mxu0 %vm464_vm12, %v1567_v52  ;;  %1519 = vmatmul.msk.bf16.gmra.mxu3 %vm464_vm12, %v1877_v16 }
 0x225   :  { %1224 = vst [vmem:[%s2448_s4 + $0xa8] sm:$0xff] %v1096_v59  ;;  %1503 = vmatmul.msk.bf16.gmra.mxu1 %vm464_vm12, %v1567_v52 }
 0x226   :  { %1535 = vmatmul.msk.bf16.gmra.mxu2 %vm464_vm12, %v1567_v52 }
 0x227   :  { %v2063_v18 = vpop.f32.mrf.mxu3 }
 0x229   :  { %v943_v60 = vpop.f32.mrf.mxu2  ;;  %v607_v63 = vpop.f32.mrf.mxu0 }
 0x22a   :  { %v1097_v19 = vpack.c.bf16 %v943_v60, %v943_v60  ;;  %v776_v4 = vpop.f32.mrf.mxu1 }
 0x22b   :  { %v1098_v6 = vpack.c.bf16 %v776_v4, %v607_v63  ;;  %v1571_v4 = vld [vmem:[%s2447_s3 + $0x98] sm:$0xff] }
 0x22c   :  { %1225 = vst [vmem:[%s2448_s4 + $0xb0] sm:$0xf] %v1097_v19 }
 0x22d   :  { %1226 = vst [vmem:[%s2448_s4 + $0xb4] sm:$0xff] %v1098_v6 }
 0x22f   :  { %v2071_v12 = vpop.f32.mrf.mxu3 }
 0x231   :  { %v945_v13 = vpop.f32.mrf.mxu2  ;;  %v610_v22 = vpop.f32.mrf.mxu0 }
 0x232   :  { %v1099_v21 = vpack.c.bf16 %v945_v13, %v945_v13  ;;  %v779_v56 = vpop.f32.mrf.mxu1 }
 0x233   :  { %v1100_v24 = vpack.c.bf16 %v779_v56, %v610_v22 }
 0x234   :  { %1227 = vst [vmem:[%s2448_s4 + $0xbc] sm:$0xf] %v1099_v21  ;;  %1472 = vmatmul.msk.bf16.gmra.mxu0 %vm464_vm12, %v1568_v15  ;;  %1544 = vmatmul.msk.bf16.vlgmr.msra.gmra.mxu3 %vm464_vm12, %v1786_v26 }
 0x235   :  { %1228 = vst [vmem:[%s2448_s4 + $0xc0] sm:$0xff] %v1100_v24  ;;  %1504 = vmatmul.msk.bf16.gmra.mxu1 %vm464_vm12, %v1568_v15 }
 0x236   :  { %1536 = vmatmul.msk.bf16.gmra.mxu2 %vm464_vm12, %v1568_v15 }
 0x237   :  { %v859_v58 = vpop.f32.mrf.mxu3 }
 0x238   :  { %v1164_v27 = vpack.c.bf16 %v859_v58, %v1895_v23 }
 0x239   :  { %v948_v28 = vpop.f32.mrf.mxu2  ;;  %v612_v31 = vpop.f32.mrf.mxu0 }
 0x23a   :  { %v1101_v30 = vpack.c.bf16 %v948_v28, %v948_v28  ;;  %1292 = vst [vmem:[%s2448_s4 + $0x240] sm:$0xff] %v1164_v27  ;;  %v781_v32 = vpop.f32.mrf.mxu1 }
 0x23b   :  { %v1102_v26 = vpack.c.bf16 %v781_v32, %v612_v31  ;;  %v1572_v31 = vld [vmem:[%s2447_s3 + $0xa0] sm:$0xff] }
 0x23c   :  { %1229 = vst [vmem:[%s2448_s4 + $0xc8] sm:$0xf] %v1101_v30 }
 0x23d   :  { %1230 = vst [vmem:[%s2448_s4 + $0xcc] sm:$0xff] %v1102_v26 }
 0x23f   :  { %v861_v33 = vpop.f32.mrf.mxu3 }
 0x240   :  { %v1166_v23 = vpack.c.bf16 %v861_v33, %v1903_v29 }
 0x241   :  { %v950_v35 = vpop.f32.mrf.mxu2  ;;  %v615_v8 = vpop.f32.mrf.mxu0 }
 0x242   :  { %v1103_v37 = vpack.c.bf16 %v950_v35, %v950_v35  ;;  %1294 = vst [vmem:[%s2448_s4 + $0x24c] sm:$0xff] %v1166_v23  ;;  %v784_v38 = vpop.f32.mrf.mxu1 }
 0x243   :  { %v1104_v0 = vpack.c.bf16 %v784_v38, %v615_v8 }
 0x244   :  { %1231 = vst [vmem:[%s2448_s4 + $0xd4] sm:$0xf] %v1103_v37  ;;  %1473 = vmatmul.msk.bf16.gmra.mxu0 %vm464_vm12, %v1569_v7  ;;  %1545 = vmatmul.msk.bf16.gmra.mxu3 %vm464_vm12, %v1799_v62 }
 0x245   :  { %1232 = vst [vmem:[%s2448_s4 + $0xd8] sm:$0xff] %v1104_v0  ;;  %1505 = vmatmul.msk.bf16.gmra.mxu1 %vm464_vm12, %v1569_v7 }
 0x246   :  { %1537 = vmatmul.msk.bf16.gmra.mxu2 %vm464_vm12, %v1569_v7 }
 0x247   :  { %v864_v29 = vpop.f32.mrf.mxu3 }
 0x248   :  { %v1168_v1 = vpack.c.bf16 %v864_v29, %v1919_v36 }
 0x249   :  { %v953_v40 = vpop.f32.mrf.mxu2  ;;  %v617_v41 = vpop.f32.mrf.mxu0 }
 0x24a   :  { %v1105_v2 = vpack.c.bf16 %v953_v40, %v953_v40  ;;  %1296 = vst [vmem:[%s2448_s4 + $0x258] sm:$0xff] %v1168_v1  ;;  %v786_v43 = vpop.f32.mrf.mxu1  ;;  %v1573_v1 = vld [vmem:[%s2447_s3 + $0xa8] sm:$0xff] }
 0x24b   :  { %v1106_v62 = vpack.c.bf16 %v786_v43, %v617_v41 }
 0x24c   :  { %1233 = vst [vmem:[%s2448_s4 + $0xe0] sm:$0xf] %v1105_v2 }
 0x24d   :  { %1234 = vst [vmem:[%s2448_s4 + $0xe4] sm:$0xff] %v1106_v62 }
 0x24f   :  { %v866_v46 = vpop.f32.mrf.mxu3 }
 0x250   :  { %v1170_v36 = vpack.c.bf16 %v866_v46, %v1927_v39 }
 0x251   :  { %v955_v47 = vpop.f32.mrf.mxu2  ;;  %v620_v49 = vpop.f32.mrf.mxu0 }
 0x252   :  { %v1107_v9 = vpack.c.bf16 %v955_v47, %v955_v47  ;;  %1298 = vst [vmem:[%s2448_s4 + $0x264] sm:$0xff] %v1170_v36  ;;  %v789_v50 = vpop.f32.mrf.mxu1 }
 0x253   :  { %v1108_v52 = vpack.c.bf16 %v789_v50, %v620_v49  ;;  %v1574_v50 = vld [vmem:[%s2447_s3 + $0xb0] sm:$0xff] }
 0x254   :  { %1235 = vst [vmem:[%s2448_s4 + $0xec] sm:$0xf] %v1107_v9  ;;  %1474 = vmatmul.msk.bf16.gmra.mxu0 %vm464_vm12, %v1570_v48  ;;  %1546 = vmatmul.msk.bf16.gmra.mxu3 %vm464_vm12, %v1812_v3 }
 0x255   :  { %1236 = vst [vmem:[%s2448_s4 + $0xf0] sm:$0xff] %v1108_v52  ;;  %1506 = vmatmul.msk.bf16.gmra.mxu1 %vm464_vm12, %v1570_v48 }
 0x256   :  { %1538 = vmatmul.msk.bf16.gmra.mxu2 %vm464_vm12, %v1570_v48 }
 0x257   :  { %v869_v39 = vpop.f32.mrf.mxu3 }
 0x258   :  { %v1172_v53 = vpack.c.bf16 %v869_v39, %v1943_v44 }
 0x259   :  { %v958_v54 = vpop.f32.mrf.mxu2  ;;  %v622_v59 = vpop.f32.mrf.mxu0 }
 0x25a   :  { %v1109_v57 = vpack.c.bf16 %v958_v54, %v958_v54  ;;  %1300 = vst [vmem:[%s2448_s4 + $0x270] sm:$0xff] %v1172_v53  ;;  %v791_v60 = vpop.f32.mrf.mxu1 }
 0x25b   :  { %v1110_v3 = vpack.c.bf16 %v791_v60, %v622_v59 }
 0x25c   :  { %1237 = vst [vmem:[%s2448_s4 + $0xf8] sm:$0xf] %v1109_v57 }
 0x25d   :  { %1238 = vst [vmem:[%s2448_s4 + $0xfc] sm:$0xff] %v1110_v3 }
 0x25f   :  { %v871_v19 = vpop.f32.mrf.mxu3 }
 0x260   :  { %v1174_v44 = vpack.c.bf16 %v871_v19, %v1951_v10 }
 0x261   :  { %v960_v63 = vpop.f32.mrf.mxu2  ;;  %v625_v13 = vpop.f32.mrf.mxu0 }
 0x262   :  { %v1111_v6 = vpack.c.bf16 %v960_v63, %v960_v63  ;;  %1302 = vst [vmem:[%s2448_s4 + $0x27c] sm:$0xff] %v1174_v44  ;;  %v794_v15 = vpop.f32.mrf.mxu1 }
 0x263   :  { %v1112_v21 = vpack.c.bf16 %v794_v15, %v625_v13 }
 0x264   :  { %1239 = vst [vmem:[%s2448_s4 + $0x104] sm:$0xf] %v1111_v6  ;;  %1475 = vmatmul.msk.bf16.gmra.mxu0 %vm464_vm12, %v1571_v4  ;;  %1547 = vmatmul.msk.bf16.gmra.mxu3 %vm464_vm12, %v1825_v5 }
 0x265   :  { %1240 = vst [vmem:[%s2448_s4 + $0x108] sm:$0xff] %v1112_v21  ;;  %1507 = vmatmul.msk.bf16.gmra.mxu1 %vm464_vm12, %v1571_v4 }
 0x266   :  { %1539 = vmatmul.msk.bf16.gmra.mxu2 %vm464_vm12, %v1571_v4  ;;  %v1575_v4 = vld [vmem:[%s2447_s3 + $0xb8] sm:$0xff] }
 0x267   :  { %v874_v10 = vpop.f32.mrf.mxu3 }
 0x268   :  { %v1176_v22 = vpack.c.bf16 %v874_v10, %v1967_v55 }
 0x269   :  { %v963_v56 = vpop.f32.mrf.mxu2  ;;  %v627_v58 = vpop.f32.mrf.mxu0 }
 0x26a   :  { %v1113_v24 = vpack.c.bf16 %v963_v56, %v963_v56  ;;  %1304 = vst [vmem:[%s2448_s4 + $0x288] sm:$0xff] %v1176_v22  ;;  %v796_v27 = vpop.f32.mrf.mxu1 }
 0x26b   :  { %v1114_v5 = vpack.c.bf16 %v796_v27, %v627_v58 }
 0x26c   :  { %1241 = vst [vmem:[%s2448_s4 + $0x110] sm:$0xf] %v1113_v24 }
 0x26d   :  { %1242 = vst [vmem:[%s2448_s4 + $0x114] sm:$0xff] %v1114_v5 }
 0x26f   :  { %v876_v28 = vpop.f32.mrf.mxu3 }
 0x270   :  { %v1178_v55 = vpack.c.bf16 %v876_v28, %v1975_v61 }
 0x271   :  { %v965_v30 = vpop.f32.mrf.mxu2  ;;  %v630_v26 = vpop.f32.mrf.mxu0 }
 0x272   :  { %v1115_v32 = vpack.c.bf16 %v965_v30, %v965_v30  ;;  %1306 = vst [vmem:[%s2448_s4 + $0x294] sm:$0xff] %v1178_v55  ;;  %v799_v33 = vpop.f32.mrf.mxu1 }
 0x273   :  { %v1116_v23 = vpack.c.bf16 %v799_v33, %v630_v26 }
 0x274   :  { %1243 = vst [vmem:[%s2448_s4 + $0x11c] sm:$0xf] %v1115_v32  ;;  %1476 = vmatmul.msk.bf16.gmra.mxu0 %vm464_vm12, %v1572_v31  ;;  %1548 = vmatmul.msk.bf16.gmra.mxu3 %vm464_vm12, %v1838_v51 }
 0x275   :  { %1244 = vst [vmem:[%s2448_s4 + $0x120] sm:$0xff] %v1116_v23  ;;  %1508 = vmatmul.msk.bf16.gmra.mxu1 %vm464_vm12, %v1572_v31 }
 0x276   :  { %1540 = vmatmul.msk.bf16.gmra.mxu2 %vm464_vm12, %v1572_v31 }
 0x277   :  { %v879_v61 = vpop.f32.mrf.mxu3 }
 0x278   :  { %v1180_v35 = vpack.c.bf16 %v879_v61, %v1991_v20 }
 0x279   :  { %v968_v7 = vpop.f32.mrf.mxu2  ;;  %v632_v8 = vpop.f32.mrf.mxu0 }
 0x27a   :  { %v1117_v37 = vpack.c.bf16 %v968_v7, %v968_v7  ;;  %1308 = vst [vmem:[%s2448_s4 + $0x2a0] sm:$0xff] %v1180_v35  ;;  %v801_v38 = vpop.f32.mrf.mxu1 }
 0x27b   :  { %v1118_v51 = vpack.c.bf16 %v801_v38, %v632_v8 }
 0x27c   :  { %1245 = vst [vmem:[%s2448_s4 + $0x128] sm:$0xf] %v1117_v37 }
 0x27d   :  { %1246 = vst [vmem:[%s2448_s4 + $0x12c] sm:$0xff] %v1118_v51 }
 0x27f   :  { %v881_v0 = vpop.f32.mrf.mxu3 }
 0x280   :  { %v1182_v20 = vpack.c.bf16 %v881_v0, %v1999_v25 }
 0x281   :  { %v970_v29 = vpop.f32.mrf.mxu2  ;;  %v635_v2 = vpop.f32.mrf.mxu0 }
 0x282   :  { %v1119_v40 = vpack.c.bf16 %v970_v29, %v970_v29  ;;  %1310 = vst [vmem:[%s2448_s4 + $0x2ac] sm:$0xff] %v1182_v20  ;;  %v804_v41 = vpop.f32.mrf.mxu1 }
 0x283   :  { %v1120_v43 = vpack.c.bf16 %v804_v41, %v635_v2 }
 0x284   :  { %1247 = vst [vmem:[%s2448_s4 + $0x134] sm:$0xf] %v1119_v40  ;;  %1477 = vmatmul.msk.bf16.gmra.mxu0 %vm464_vm12, %v1573_v1  ;;  %1549 = vmatmul.msk.bf16.gmra.mxu3 %vm464_vm12, %v1851_v42 }
 0x285   :  { %1248 = vst [vmem:[%s2448_s4 + $0x138] sm:$0xff] %v1120_v43  ;;  %1509 = vmatmul.msk.bf16.gmra.mxu1 %vm464_vm12, %v1573_v1 }
 0x286   :  { %1541 = vmatmul.msk.bf16.gmra.mxu2 %vm464_vm12, %v1573_v1 }
 0x287   :  { %v884_v25 = vpop.f32.mrf.mxu3 }
 0x288   :  { %v1184_v62 = vpack.c.bf16 %v884_v25, %v2015_v34 }
 0x289   :  { %v973_v46 = vpop.f32.mrf.mxu2  ;;  %v637_v47 = vpop.f32.mrf.mxu0 }
 0x28a   :  { %v1121_v36 = vpack.c.bf16 %v973_v46, %v973_v46  ;;  %1312 = vst [vmem:[%s2448_s4 + $0x2b8] sm:$0xff] %v1184_v62  ;;  %v806_v48 = vpop.f32.mrf.mxu1 }
 0x28b   :  { %v1122_v42 = vpack.c.bf16 %v806_v48, %v637_v47 }
 0x28c   :  { %1249 = vst [vmem:[%s2448_s4 + $0x140] sm:$0xf] %v1121_v36 }
 0x28d   :  { %1250 = vst [vmem:[%s2448_s4 + $0x144] sm:$0xff] %v1122_v42 }
 0x28f   :  { %v886_v9 = vpop.f32.mrf.mxu3 }
 0x290   :  { %v1186_v34 = vpack.c.bf16 %v886_v9, %v2023_v17 }
 0x291   :  { %v975_v49 = vpop.f32.mrf.mxu2  ;;  %v640_v39 = vpop.f32.mrf.mxu0 }
 0x292   :  { %v1123_v52 = vpack.c.bf16 %v975_v49, %v975_v49  ;;  %1314 = vst [vmem:[%s2448_s4 + $0x2c4] sm:$0xff] %v1186_v34  ;;  %v809_v53 = vpop.f32.mrf.mxu1 }
 0x293   :  { %v1124_v54 = vpack.c.bf16 %v809_v53, %v640_v39 }
 0x294   :  { %1251 = vst [vmem:[%s2448_s4 + $0x14c] sm:$0xf] %v1123_v52  ;;  %1478 = vmatmul.msk.bf16.gmra.mxu0 %vm464_vm12, %v1574_v50  ;;  %1550 = vmatmul.msk.bf16.gmra.mxu3 %vm464_vm12, %v1864_v14 }
 0x295   :  { %1252 = vst [vmem:[%s2448_s4 + $0x150] sm:$0xff] %v1124_v54  ;;  %1510 = vmatmul.msk.bf16.gmra.mxu1 %vm464_vm12, %v1574_v50 }
 0x296   :  { %1542 = vmatmul.msk.bf16.gmra.mxu2 %vm464_vm12, %v1574_v50 }
 0x297   :  { %v889_v17 = vpop.f32.mrf.mxu3 }
 0x298   :  { %v1188_v57 = vpack.c.bf16 %v889_v17, %v2039_v45 }
 0x299   :  { %v978_v59 = vpop.f32.mrf.mxu2  ;;  %v642_v3 = vpop.f32.mrf.mxu0 }
 0x29a   :  { %v1125_v60 = vpack.c.bf16 %v978_v59, %v978_v59  ;;  %1316 = vst [vmem:[%s2448_s4 + $0x2d0] sm:$0xff] %v1188_v57  ;;  %v811_v19 = vpop.f32.mrf.mxu1 }
 0x29b   :  { %v1126_v14 = vpack.c.bf16 %v811_v19, %v642_v3 }
 0x29c   :  { %1253 = vst [vmem:[%s2448_s4 + $0x158] sm:$0xf] %v1125_v60 }
 0x29d   :  { %1254 = vst [vmem:[%s2448_s4 + $0x15c] sm:$0xff] %v1126_v14 }
 0x29f   :  { %v891_v44 = vpop.f32.mrf.mxu3 }
 0x2a0   :  { %v1190_v45 = vpack.c.bf16 %v891_v44, %v2047_v11 }
 0x2a1   :  { %v980_v63 = vpop.f32.mrf.mxu2  ;;  %v645_v13 = vpop.f32.mrf.mxu0 }
 0x2a2   :  { %v1127_v6 = vpack.c.bf16 %v980_v63, %v980_v63  ;;  %1318 = vst [vmem:[%s2448_s4 + $0x2dc] sm:$0xff] %v1190_v45  ;;  %v814_v15 = vpop.f32.mrf.mxu1 }
 0x2a3   :  { %v1128_v21 = vpack.c.bf16 %v814_v15, %v645_v13 }
 0x2a4   :  { %1255 = vst [vmem:[%s2448_s4 + $0x164] sm:$0xf] %v1127_v6  ;;  %1479 = vmatmul.msk.bf16.gmra.mxu0 %vm464_vm12, %v1575_v4  ;;  %1551 = vmatmul.msk.bf16.gmra.mxu3 %vm464_vm12, %v1877_v16 }
 0x2a5   :  { %1256 = vst [vmem:[%s2448_s4 + $0x168] sm:$0xff] %v1128_v21  ;;  %1511 = vmatmul.msk.bf16.gmra.mxu1 %vm464_vm12, %v1575_v4 }
 0x2a6   :  { %1543 = vmatmul.msk.bf16.gmra.mxu2 %vm464_vm12, %v1575_v4 }
 0x2a7   :  { %v894_v11 = vpop.f32.mrf.mxu3 }
 0x2a8   :  { %v1192_v10 = vpack.c.bf16 %v894_v11, %v2063_v18 }
 0x2a9   :  { %v983_v22 = vpop.f32.mrf.mxu2  ;;  %v647_v24 = vpop.f32.mrf.mxu0 }
 0x2aa   :  { %v1129_v56 = vpack.c.bf16 %v983_v22, %v983_v22  ;;  %1320 = vst [vmem:[%s2448_s4 + $0x2e8] sm:$0xff] %v1192_v10  ;;  %v816_v58 = vpop.f32.mrf.mxu1 }
 0x2ab   :  { %v1130_v16 = vpack.c.bf16 %v816_v58, %v647_v24 }
 0x2ac   :  { %1257 = vst [vmem:[%s2448_s4 + $0x170] sm:$0xf] %v1129_v56 }
 0x2ad   :  { %1258 = vst [vmem:[%s2448_s4 + $0x174] sm:$0xff] %v1130_v16 }
 0x2af   :  { %v896_v27 = vpop.f32.mrf.mxu3 }
 0x2b0   :  { %v1194_v18 = vpack.c.bf16 %v896_v27, %v2071_v12 }
 0x2b1   :  { %v985_v5 = vpop.f32.mrf.mxu2  ;;  %v650_v55 = vpop.f32.mrf.mxu0 }
 0x2b2   :  { %v1131_v28 = vpack.c.bf16 %v985_v5, %v985_v5  ;;  %1322 = vst [vmem:[%s2448_s4 + $0x2f4] sm:$0xff] %v1194_v18  ;;  %v819_v30 = vpop.f32.mrf.mxu1 }
 0x2b3   :  { %v1132_v31 = vpack.c.bf16 %v819_v30, %v650_v55 }
 0x2b4   :  { %1259 = vst [vmem:[%s2448_s4 + $0x17c] sm:$0xf] %v1131_v28 }
 0x2b5   :  { %1260 = vst [vmem:[%s2448_s4 + $0x180] sm:$0xff] %v1132_v31 }
 0x2b7   :  { %v1028_v32 = vpop.f32.mrf.mxu3 }
 0x2b8   :  { %v1165_v12 = vpack.c.bf16 %v1028_v32, %v1028_v32 }
 0x2b9   :  { %v988_v26 = vpop.f32.mrf.mxu2  ;;  %v652_v23 = vpop.f32.mrf.mxu0 }
 0x2ba   :  { %v1133_v33 = vpack.c.bf16 %v988_v26, %v988_v26  ;;  %1293 = vst [vmem:[%s2448_s4 + $0x248] sm:$0xf] %v1165_v12  ;;  %v821_v61 = vpop.f32.mrf.mxu1 }
 0x2bb   :  { %v1134_v35 = vpack.c.bf16 %v821_v61, %v652_v23 }
 0x2bc   :  { %1261 = vst [vmem:[%s2448_s4 + $0x188] sm:$0xf] %v1133_v33 }
 0x2bd   :  { %1262 = vst [vmem:[%s2448_s4 + $0x18c] sm:$0xff] %v1134_v35 }
 0x2bf   :  { %v1030_v7 = vpop.f32.mrf.mxu3 }
 0x2c0   :  { %v1167_v8 = vpack.c.bf16 %v1030_v7, %v1030_v7 }
 0x2c1   :  { %v990_v37 = vpop.f32.mrf.mxu2  ;;  %v655_v51 = vpop.f32.mrf.mxu0 }
 0x2c2   :  { %v1135_v38 = vpack.c.bf16 %v990_v37, %v990_v37  ;;  %1295 = vst [vmem:[%s2448_s4 + $0x254] sm:$0xf] %v1167_v8  ;;  %v824_v0 = vpop.f32.mrf.mxu1 }
 0x2c3   :  { %v1136_v20 = vpack.c.bf16 %v824_v0, %v655_v51 }
 0x2c4   :  { %1263 = vst [vmem:[%s2448_s4 + $0x194] sm:$0xf] %v1135_v38 }
 0x2c5   :  { %1264 = vst [vmem:[%s2448_s4 + $0x198] sm:$0xff] %v1136_v20 }
 0x2c7   :  { %v1033_v29 = vpop.f32.mrf.mxu3 }
 0x2c8   :  { %v1169_v40 = vpack.c.bf16 %v1033_v29, %v1033_v29 }
 0x2c9   :  { %v993_v1 = vpop.f32.mrf.mxu2  ;;  %v657_v41 = vpop.f32.mrf.mxu0 }
 0x2ca   :  { %v1137_v2 = vpack.c.bf16 %v993_v1, %v993_v1  ;;  %1297 = vst [vmem:[%s2448_s4 + $0x260] sm:$0xf] %v1169_v40  ;;  %v826_v43 = vpop.f32.mrf.mxu1 }
 0x2cb   :  { %v1138_v25 = vpack.c.bf16 %v826_v43, %v657_v41 }
 0x2cc   :  { %1265 = vst [vmem:[%s2448_s4 + $0x1a0] sm:$0xf] %v1137_v2 }
 0x2cd   :  { %1266 = vst [vmem:[%s2448_s4 + $0x1a4] sm:$0xff] %v1138_v25 }
 0x2cf   :  { %v1035_v62 = vpop.f32.mrf.mxu3 }
 0x2d0   :  { %v1171_v36 = vpack.c.bf16 %v1035_v62, %v1035_v62 }
 0x2d1   :  { %v995_v46 = vpop.f32.mrf.mxu2  ;;  %v660_v48 = vpop.f32.mrf.mxu0 }
 0x2d2   :  { %v1139_v47 = vpack.c.bf16 %v995_v46, %v995_v46  ;;  %1299 = vst [vmem:[%s2448_s4 + $0x26c] sm:$0xf] %v1171_v36  ;;  %v829_v42 = vpop.f32.mrf.mxu1 }
 0x2d3   :  { %v1140_v9 = vpack.c.bf16 %v829_v42, %v660_v48 }
 0x2d4   :  { %1267 = vst [vmem:[%s2448_s4 + $0x1ac] sm:$0xf] %v1139_v47 }
 0x2d5   :  { %1268 = vst [vmem:[%s2448_s4 + $0x1b0] sm:$0xff] %v1140_v9 }
 0x2d7   :  { %v1038_v34 = vpop.f32.mrf.mxu3 }
 0x2d8   :  { %v1173_v50 = vpack.c.bf16 %v1038_v34, %v1038_v34 }
 0x2d9   :  { %v998_v49 = vpop.f32.mrf.mxu2  ;;  %v662_v39 = vpop.f32.mrf.mxu0 }
 0x2da   :  { %v1141_v52 = vpack.c.bf16 %v998_v49, %v998_v49  ;;  %1301 = vst [vmem:[%s2448_s4 + $0x278] sm:$0xf] %v1173_v50  ;;  %v831_v53 = vpop.f32.mrf.mxu1 }
 0x2db   :  { %v1142_v54 = vpack.c.bf16 %v831_v53, %v662_v39 }
 0x2dc   :  { %1269 = vst [vmem:[%s2448_s4 + $0x1b8] sm:$0xf] %v1141_v52 }
 0x2dd   :  { %1270 = vst [vmem:[%s2448_s4 + $0x1bc] sm:$0xff] %v1142_v54 }
 0x2df   :  { %v1040_v17 = vpop.f32.mrf.mxu3 }
 0x2e0   :  { %v1175_v59 = vpack.c.bf16 %v1040_v17, %v1040_v17 }
 0x2e1   :  { %v1000_v57 = vpop.f32.mrf.mxu2  ;;  %v665_v3 = vpop.f32.mrf.mxu0 }
 0x2e2   :  { %v1143_v60 = vpack.c.bf16 %v1000_v57, %v1000_v57  ;;  %1303 = vst [vmem:[%s2448_s4 + $0x284] sm:$0xf] %v1175_v59  ;;  %v834_v19 = vpop.f32.mrf.mxu1 }
 0x2e3   :  { %v1144_v14 = vpack.c.bf16 %v834_v19, %v665_v3 }
 0x2e4   :  { %1271 = vst [vmem:[%s2448_s4 + $0x1c4] sm:$0xf] %v1143_v60 }
 0x2e5   :  { %1272 = vst [vmem:[%s2448_s4 + $0x1c8] sm:$0xff] %v1144_v14 }
 0x2e7   :  { %v1043_v44 = vpop.f32.mrf.mxu3 }
 0x2e8   :  { %v1177_v63 = vpack.c.bf16 %v1043_v44, %v1043_v44 }
 0x2e9   :  { %v1003_v45 = vpop.f32.mrf.mxu2  ;;  %v667_v6 = vpop.f32.mrf.mxu0 }
 0x2ea   :  { %v1145_v4 = vpack.c.bf16 %v1003_v45, %v1003_v45  ;;  %1305 = vst [vmem:[%s2448_s4 + $0x290] sm:$0xf] %v1177_v63  ;;  %v836_v13 = vpop.f32.mrf.mxu1 }
 0x2eb   :  { %v1146_v15 = vpack.c.bf16 %v836_v13, %v667_v6 }
 0x2ec   :  { %1273 = vst [vmem:[%s2448_s4 + $0x1d0] sm:$0xf] %v1145_v4 }
 0x2ed   :  { %1274 = vst [vmem:[%s2448_s4 + $0x1d4] sm:$0xff] %v1146_v15 }
 0x2ef   :  { %v1045_v21 = vpop.f32.mrf.mxu3 }
 0x2f0   :  { %v1179_v10 = vpack.c.bf16 %v1045_v21, %v1045_v21 }
 0x2f1   :  { %v1005_v11 = vpop.f32.mrf.mxu2  ;;  %v670_v56 = vpop.f32.mrf.mxu0 }
 0x2f2   :  { %v1147_v22 = vpack.c.bf16 %v1005_v11, %v1005_v11  ;;  %1307 = vst [vmem:[%s2448_s4 + $0x29c] sm:$0xf] %v1179_v10  ;;  %v839_v24 = vpop.f32.mrf.mxu1 }
 0x2f3   :  { %v1148_v58 = vpack.c.bf16 %v839_v24, %v670_v56 }
 0x2f4   :  { %1275 = vst [vmem:[%s2448_s4 + $0x1dc] sm:$0xf] %v1147_v22 }
 0x2f5   :  { %1276 = vst [vmem:[%s2448_s4 + $0x1e0] sm:$0xff] %v1148_v58 }
 0x2f7   :  { %v1048_v16 = vpop.f32.mrf.mxu3 }
 0x2f8   :  { %v1181_v18 = vpack.c.bf16 %v1048_v16, %v1048_v16 }
 0x2f9   :  { %v1008_v27 = vpop.f32.mrf.mxu2  ;;  %v672_v28 = vpop.f32.mrf.mxu0 }
 0x2fa   :  { %v1149_v5 = vpack.c.bf16 %v1008_v27, %v1008_v27  ;;  %1309 = vst [vmem:[%s2448_s4 + $0x2a8] sm:$0xf] %v1181_v18  ;;  %v841_v55 = vpop.f32.mrf.mxu1 }
 0x2fb   :  { %v1150_v30 = vpack.c.bf16 %v841_v55, %v672_v28 }
 0x2fc   :  { %1277 = vst [vmem:[%s2448_s4 + $0x1e8] sm:$0xf] %v1149_v5 }
 0x2fd   :  { %1278 = vst [vmem:[%s2448_s4 + $0x1ec] sm:$0xff] %v1150_v30 }
 0x2ff   :  { %v1050_v31 = vpop.f32.mrf.mxu3 }
 0x300   :  { %v1183_v26 = vpack.c.bf16 %v1050_v31, %v1050_v31 }
 0x301   :  { %v1010_v32 = vpop.f32.mrf.mxu2  ;;  %v675_v33 = vpop.f32.mrf.mxu0 }
 0x302   :  { %v1151_v12 = vpack.c.bf16 %v1010_v32, %v1010_v32  ;;  %1311 = vst [vmem:[%s2448_s4 + $0x2b4] sm:$0xf] %v1183_v26  ;;  %v844_v23 = vpop.f32.mrf.mxu1 }
 0x303   :  { %v1152_v61 = vpack.c.bf16 %v844_v23, %v675_v33 }
 0x304   :  { %1279 = vst [vmem:[%s2448_s4 + $0x1f4] sm:$0xf] %v1151_v12 }
 0x305   :  { %1280 = vst [vmem:[%s2448_s4 + $0x1f8] sm:$0xff] %v1152_v61 }
 0x307   :  { %v1053_v35 = vpop.f32.mrf.mxu3 }
 0x308   :  { %v1185_v37 = vpack.c.bf16 %v1053_v35, %v1053_v35 }
 0x309   :  { %v1013_v7 = vpop.f32.mrf.mxu2  ;;  %v677_v38 = vpop.f32.mrf.mxu0 }
 0x30a   :  { %v1153_v8 = vpack.c.bf16 %v1013_v7, %v1013_v7  ;;  %1313 = vst [vmem:[%s2448_s4 + $0x2c0] sm:$0xf] %v1185_v37  ;;  %v846_v51 = vpop.f32.mrf.mxu1 }
 0x30b   :  { %v1154_v0 = vpack.c.bf16 %v846_v51, %v677_v38 }
 0x30c   :  { %1281 = vst [vmem:[%s2448_s4 + $0x200] sm:$0xf] %v1153_v8 }
 0x30d   :  { %1282 = vst [vmem:[%s2448_s4 + $0x204] sm:$0xff] %v1154_v0 }
 0x30f   :  { %v1055_v20 = vpop.f32.mrf.mxu3 }
 0x310   :  { %v1187_v1 = vpack.c.bf16 %v1055_v20, %v1055_v20 }
 0x311   :  { %v1015_v29 = vpop.f32.mrf.mxu2  ;;  %v680_v2 = vpop.f32.mrf.mxu0 }
 0x312   :  { %v1155_v40 = vpack.c.bf16 %v1015_v29, %v1015_v29  ;;  %1315 = vst [vmem:[%s2448_s4 + $0x2cc] sm:$0xf] %v1187_v1  ;;  %v849_v41 = vpop.f32.mrf.mxu1 }
 0x313   :  { %v1156_v43 = vpack.c.bf16 %v849_v41, %v680_v2 }
 0x314   :  { %1283 = vst [vmem:[%s2448_s4 + $0x20c] sm:$0xf] %v1155_v40 }
 0x315   :  { %1284 = vst [vmem:[%s2448_s4 + $0x210] sm:$0xff] %v1156_v43 }
 0x317   :  { %v1058_v25 = vpop.f32.mrf.mxu3 }
 0x318   :  { %v1189_v46 = vpack.c.bf16 %v1058_v25, %v1058_v25 }
 0x319   :  { %v1018_v62 = vpop.f32.mrf.mxu2  ;;  %v682_v47 = vpop.f32.mrf.mxu0 }
 0x31a   :  { %v1157_v36 = vpack.c.bf16 %v1018_v62, %v1018_v62  ;;  %1317 = vst [vmem:[%s2448_s4 + $0x2d8] sm:$0xf] %v1189_v46  ;;  %v851_v48 = vpop.f32.mrf.mxu1 }
 0x31b   :  { %v1158_v42 = vpack.c.bf16 %v851_v48, %v682_v47 }
 0x31c   :  { %1285 = vst [vmem:[%s2448_s4 + $0x218] sm:$0xf] %v1157_v36 }
 0x31d   :  { %1286 = vst [vmem:[%s2448_s4 + $0x21c] sm:$0xff] %v1158_v42 }
 0x31f   :  { %v1060_v9 = vpop.f32.mrf.mxu3 }
 0x320   :  { %v1191_v49 = vpack.c.bf16 %v1060_v9, %v1060_v9 }
 0x321   :  { %v1020_v34 = vpop.f32.mrf.mxu2  ;;  %v685_v52 = vpop.f32.mrf.mxu0 }
 0x322   :  { %v1159_v50 = vpack.c.bf16 %v1020_v34, %v1020_v34  ;;  %1319 = vst [vmem:[%s2448_s4 + $0x2e4] sm:$0xf] %v1191_v49  ;;  %v854_v39 = vpop.f32.mrf.mxu1 }
 0x323   :  { %v1160_v53 = vpack.c.bf16 %v854_v39, %v685_v52 }
 0x324   :  { %1287 = vst [vmem:[%s2448_s4 + $0x224] sm:$0xf] %v1159_v50 }
 0x325   :  { %1288 = vst [vmem:[%s2448_s4 + $0x228] sm:$0xff] %v1160_v53 }
 0x327   :  { %v1063_v54 = vpop.f32.mrf.mxu3 }
 0x328   :  { %v1193_v57 = vpack.c.bf16 %v1063_v54, %v1063_v54 }
 0x329   :  { %v1023_v17 = vpop.f32.mrf.mxu2  ;;  %v687_v60 = vpop.f32.mrf.mxu0 }
 0x32a   :  { %v1161_v59 = vpack.c.bf16 %v1023_v17, %v1023_v17  ;;  %1321 = vst [vmem:[%s2448_s4 + $0x2f0] sm:$0xf] %v1193_v57  ;;  %v856_v3 = vpop.f32.mrf.mxu1 }
 0x32b   :  { %v1162_v19 = vpack.c.bf16 %v856_v3, %v687_v60 }
 0x32c   :  { %1289 = vst [vmem:[%s2448_s4 + $0x230] sm:$0xf] %v1161_v59 }
 0x32d   :  { %1290 = vst [vmem:[%s2448_s4 + $0x234] sm:$0xff] %v1162_v19 }
 0x32f   :  { %v1065_v14 = vpop.f32.mrf.mxu3 }
 0x330   :  { %v1195_v45 = vpack.c.bf16 %v1065_v14, %v1065_v14 }
 0x331   :  { %v1025_v44 = vpop.f32.mrf.mxu2 }
 0x332   :  { %v1163_v63 = vpack.c.bf16 %v1025_v44, %v1025_v44  ;;  %1323 = vst [vmem:[%s2448_s4 + $0x2fc] sm:$0xf] %v1195_v45 }
 0x334   :  { %1291 = vst [vmem:[%s2448_s4 + $0x23c] sm:$0xf] %v1163_v63 }

// kernel: omniglot_decoder.11
= control target key start
LH: loop header
LB: loop body
LE: loop exit
PB: predicated region body
PF: predicated region fallthrough
CT: control target
= control target key end

     0   :  { %vm547_vm12 = vcmask 261120   ;;  %s1699_s0 = inlined_call_operand.vmem [shape: f32[32,1664], index: 0, kind: input, shape index: {}]   ;;  %s1700_s1 = inlined_call_operand.vmem [shape: f32[32,1], index: 1, kind: input, shape index: {}]   ;;  %s1701_s2 = inlined_call_operand.vmem [shape: f32[32,1], index: 2, kind: input, shape index: {}]   ;;  %s1702_s3 = inlined_call_operand.vmem [shape: bf16[9,32], index: 3, kind: input, shape index: {}]   ;;  %s1703_s4 = inlined_call_operand.vmem [shape: f32[9,1664], index: 4, kind: output, shape index: {}]  }
   0x1   :  { %v822_v0 = vld [vmem:[%s1699_s0 + $0xd0] sm:$0xff]  ;;  %v827_v1 = vld [vmem:[%s1699_s0 + $0xd8] sm:$0xff]  ;;  %v832_v2 = vld [vmem:[%s1699_s0 + $0xe0] sm:$0xff] }
   0x2   :  { %v837_v3 = vld [vmem:[%s1699_s0 + $0xe8] sm:$0xff]  ;;  %v98_v4 = vadd.f32 %v827_v1, %v822_v0  ;;  %v152_v5 = vmul.f32 %v822_v0, %v822_v0  ;;  %v153_v6 = vmul.f32 %v827_v1, %v827_v1  ;;  %v154_v7 = vmul.f32 %v832_v2, %v832_v2  ;;  %v850_v8 = vld [vmem:[%s1699_s0 + $0xf0] sm:$0xff]  ;;  %v856_v10 = vld [vmem:[%s1699_s0 + $0xf8] sm:$0xff] }
   0x3   :  { %v155_v11 = vmul.f32 %v837_v3, %v837_v3  ;;  %v863_v13 = vld [vmem:[%s1699_s0 + $0x138] sm:$0xff]  ;;  %v868_v14 = vld [vmem:[%s1699_s0 + $0x140] sm:$0xff]  ;;  %v878_v16 = vld [vmem:[%s1699_s0 + $0x108] sm:$0xff]  ;;  %v156_v21 = vmul.f32 %v850_v8, %v850_v8  ;;  %v157_v31 = vmul.f32 %v856_v10, %v856_v10 }
   0x4   :  { %v99_v9 = vadd.f32 %v98_v4, %v832_v2  ;;  %v206_v12 = vadd.f32 %v153_v6, %v152_v5  ;;  %v873_v15 = vld [vmem:[%s1699_s0 + $0x100] sm:$0xff]  ;;  %v884_v18 = vld [vmem:[%s1699_s0 + $0x148] sm:$0xff]  ;;  %v112_v19 = vadd.f32 %v868_v14, %v863_v13  ;;  %v891_v20 = vld [vmem:[%s1699_s0 + $0x110] sm:$0xff]  ;;  %v165_v28 = vmul.f32 %v863_v13, %v863_v13 }
   0x5   :  { %v898_v23 = vld [vmem:[%s1699_s0 + $0x150] sm:$0xff]  ;;  %v903_v24 = vld [vmem:[%s1699_s0 + $0x118] sm:$0xff]  ;;  %v908_v25 = vld [vmem:[%s1699_s0 + $0x120] sm:$0xff]  ;;  %v166_v29 = vmul.f32 %v868_v14, %v868_v14  ;;  %v158_v32 = vmul.f32 %v873_v15, %v873_v15  ;;  %v159_v33 = vmul.f32 %v878_v16, %v878_v16  ;;  %v160_v39 = vmul.f32 %v891_v20, %v891_v20 }
   0x6   :  { %v100_v17 = vadd.f32 %v99_v9, %v837_v3  ;;  %v207_v22 = vadd.f32 %v206_v12, %v154_v7  ;;  %v113_v27 = vadd.f32 %v112_v19, %v884_v18  ;;  %v919_v30 = vld [vmem:[%s1699_s0 + $0x128] sm:$0xff]  ;;  %v930_v35 = vld [vmem:[%s1699_s0 + $0x158] sm:$0xff]  ;;  %v935_v36 = vld [vmem:[%s1699_s0] sm:$0xff]  ;;  %v167_v43 = vmul.f32 %v884_v18, %v884_v18 }
   0x7   :  { %v940_v37 = vld [vmem:[%s1699_s0 + $0x130] sm:$0xff]  ;;  %v949_v41 = vld [vmem:[%s1699_s0 + $0x8] sm:$0xff]  ;;  %v161_v44 = vmul.f32 %v903_v24, %v903_v24  ;;  %v962_v45 = vmul.f32 %v908_v25, %v908_v25  ;;  %v967_v47 = vld [vmem:[%s1699_s0 + $0x160] sm:$0xff]  ;;  %v168_v53 = vmul.f32 %v898_v23, %v898_v23  ;;  %v220_v54 = vadd.f32 %v166_v29, %v165_v28 }
   0x8   :  { %v101_v26 = vadd.f32 %v100_v17, %v850_v8  ;;  %v208_v34 = vadd.f32 %v207_v22, %v155_v11  ;;  %1717 = vst [vmem:[#allocation2_spill] sm:$0xff] %v940_v37  ;;  %v114_v40 = vadd.f32 %v113_v27, %v898_v23  ;;  %v954_v42 = vld [vmem:[%s1699_s0 + $0x10] sm:$0xff]  ;;  %v70_v48 = vadd.f32 %v949_v41, %v935_v36  ;;  %v975_v50 = vld [vmem:[%s1699_s0 + $0x168] sm:$0xff]  ;;  %v981_v52 = vld [vmem:[%s1699_s0 + $0x18] sm:$0xff] }
   0x9   :  { %v987_v55 = vmul.f32 %v919_v30, %v919_v30  ;;  %v991_v56 = vmul.f32 %v940_v37, %v940_v37  ;;  %v996_v58 = vld [vmem:[%s1699_s0 + $0x170] sm:$0xff]  ;;  %v1004_v62 = vld [vmem:[%s1699_s0 + $0x20] sm:$0xff]  ;;  %v169_v63 = vmul.f32 %v930_v35, %v930_v35  ;;  %v221_v4 = vadd.f32 %v220_v54, %v167_v43  ;;  %v1011_v6 = vld [vmem:[%s1699_s0 + $0x178] sm:$0xff] }
   0xa   :  { %v102_v38 = vadd.f32 %v101_v26, %v856_v10  ;;  %v209_v46 = vadd.f32 %v208_v34, %v156_v21  ;;  %v115_v51 = vadd.f32 %v114_v40, %v930_v35  ;;  %v71_v59 = vadd.f32 %v70_v48, %v954_v42  ;;  %v1022_v17 = vld [vmem:[%s1699_s0 + $0x180] sm:$0xff]  ;;  %v1028_v21 = vld [vmem:[%s1699_s0 + $0x28] sm:$0xff] }
   0xb   :  { %v170_v9 = vmul.f32 %v967_v47, %v967_v47  ;;  %v171_v11 = vmul.f32 %v975_v50, %v975_v50  ;;  %v172_v22 = vmul.f32 %v996_v58, %v996_v58  ;;  %v222_v26 = vadd.f32 %v221_v4, %v168_v53  ;;  %v1049_v43 = vld [vmem:[%s1699_s0 + $0x68] sm:$0xff] }
   0xc   :  { %v103_v49 = vadd.f32 %v102_v38, %v873_v15  ;;  %v210_v57 = vadd.f32 %v209_v46, %v157_v31  ;;  %v116_v61 = vadd.f32 %v115_v51, %v967_v47  ;;  %v72_v7 = vadd.f32 %v71_v59, %v981_v52  ;;  %v1042_v38 = vld [vmem:[%s1699_s0 + $0x30] sm:$0xff]  ;;  %1718 = vst [vmem:[#allocation3_spill] sm:$0xff] %v1049_v43  ;;  %v1066_v59 = vld [vmem:[%s1699_s0 + $0x38] sm:$0xff]  ;;  %v1078_v4 = vld [vmem:[%s1699_s0 + $0x188] sm:$0xff] }
   0xd   :  { %v126_v29 = vmul.f32 %v935_v36, %v935_v36  ;;  %v127_v31 = vmul.f32 %v949_v41, %v949_v41  ;;  %v223_v40 = vadd.f32 %v222_v26, %v169_v63  ;;  %v1054_v46 = vld [vmem:[%s1699_s0 + $0x70] sm:$0xff]  ;;  %v174_v51 = vmul.f32 %v1022_v17, %v1022_v17  ;;  %v1088_v26 = vld [vmem:[%s1699_s0 + $0x40] sm:$0xff] }
   0xe   :  { %v104_v60 = vadd.f32 %v103_v49, %v878_v16  ;;  %v211_v5 = vadd.f32 %v210_v57, %v158_v32  ;;  %v117_v19 = vadd.f32 %v116_v61, %v975_v50  ;;  %v73_v28 = vadd.f32 %v72_v7, %v1004_v62  ;;  %1719 = vst [vmem:[#allocation4_spill] sm:$0xff] %v1054_v46  ;;  %v1073_v61 = vld [vmem:[%s1699_s0 + $0x78] sm:$0xff] }
   0xf   :  { %v128_v53 = vmul.f32 %v954_v42, %v954_v42  ;;  %1720 = vst [vmem:[#allocation5_spill] sm:$0xff] %v1073_v61  ;;  %v178_v7 = vadd.f32 %v127_v31, %v126_v29  ;;  %v1101_v31 = vld [vmem:[%s1699_s0 + $0x190] sm:$0xff] }
  0x10   :  { %v105_v12 = vadd.f32 %v104_v60, %v891_v20  ;;  %v212_v27 = vadd.f32 %v211_v5, %v159_v33  ;;  %v118_v34 = vadd.f32 %v117_v19, %v996_v58  ;;  %v173_v33 = vmul.f32 %v1011_v6, %v1011_v6 }
  0x11   :  { %v74_v49 = vadd.f32 %v73_v28, %v1028_v21  ;;  %v224_v60 = vadd.f32 %v223_v40, %v170_v9  ;;  %v84_v9 = vadd.f32 %v1054_v46, %v1049_v43  ;;  %v1095_v28 = vld [vmem:[%s1699_s0 + $0x80] sm:$0xff] }
  0x12   :  { %v106_v32 = vadd.f32 %v105_v12, %v903_v24  ;;  %v213_v48 = vadd.f32 %v212_v27, %v160_v39  ;;  %v119_v57 = vadd.f32 %v118_v34, %v1011_v6  ;;  %v129_v39 = vmul.f32 %v981_v52, %v981_v52 }
  0x13   :  { %v75_v5 = vadd.f32 %v74_v49, %v1042_v38  ;;  %v130_v27 = vmul.f32 %v1004_v62, %v1004_v62  ;;  %v179_v34 = vadd.f32 %v178_v7, %v128_v53  ;;  %v1110_v49 = vld [vmem:[%s1699_s0 + $0x48] sm:$0xff] }
  0x14   :  { %v107_v54 = vadd.f32 %v106_v32, %v908_v25  ;;  %v214_v63 = vadd.f32 %v213_v48, %v161_v44  ;;  %v120_v19 = vadd.f32 %v119_v57, %v1022_v17  ;;  %v225_v44 = vadd.f32 %v224_v60, %v171_v11  ;;  %v1117_v57 = vld [vmem:[%s1699_s0 + $0x88] sm:$0xff] }
  0x15   :  { %v76_v32 = vadd.f32 %v75_v5, %v1066_v59  ;;  %v85_v11 = vadd.f32 %v84_v9, %v1073_v61  ;;  %v175_v9 = vmul.f32 %v1078_v4, %v1078_v4 }
  0x16   :  { %v108_v12 = vadd.f32 %v107_v54, %v919_v30  ;;  %v215_v29 = vadd.f32 %v214_v63, %v962_v45  ;;  %v121_v48 = vadd.f32 %v120_v19, %v1078_v4  ;;  %v226_v45 = vadd.f32 %v225_v44, %v172_v22  ;;  %v1126_v22 = vld [vmem:[%s1699_s0 + $0x50] sm:$0xff]  ;;  %v1141_v44 = vld [vmem:[%s1699_s0 + $0x198] sm:$0xff] }
  0x17   :  { %v131_v54 = vmul.f32 %v1028_v21, %v1028_v21  ;;  %v77_v60 = vadd.f32 %v76_v32, %v1088_v26  ;;  %v180_v63 = vadd.f32 %v179_v34, %v129_v39  ;;  %v86_v5 = vadd.f32 %v85_v11, %v1095_v28  ;;  %v1135_v39 = vld [vmem:[%s1699_s0 + $0x90] sm:$0xff]  ;;  %1721 = vst [vmem:[#allocation6_spill] sm:$0xff] %v1141_v44  ;;  %v1148_v34 = vld [vmem:[%s1699_s0 + $0x58] sm:$0xff] }
  0x18   :  { %v109_v40 = vadd.f32 %v108_v12, %v940_v37  ;;  %v216_v53 = vadd.f32 %v215_v29, %v987_v55  ;;  %v122_v7 = vadd.f32 %v121_v48, %v1101_v31  ;;  %v227_v12 = vadd.f32 %v226_v45, %v173_v33 }
  0x19   :  { %v132_v55 = vmul.f32 %v1042_v38, %v1042_v38  ;;  %v78_v29 = vadd.f32 %v77_v60, %v1110_v49  ;;  %v181_v32 = vadd.f32 %v180_v63, %v130_v27  ;;  %v87_v33 = vadd.f32 %v86_v5, %v1117_v57  ;;  %v1169_v5 = vld [vmem:[%s1699_s0 + $0x60] sm:$0xff] }
  0x1a   :  { %110 = vadd.xlane.f32.xlu0 %v109_v40  ;;  %v217_v19 = vadd.f32 %v216_v53, %v991_v56  ;;  %v176_v11 = vmul.f32 %v1101_v31, %v1101_v31  ;;  %v228_v40 = vadd.f32 %v227_v12, %v174_v51  ;;  %v1155_v56 = vld [vmem:[%s1699_s0 + $0x98] sm:$0xff]  ;;  %v139_v48 = vmul.f32 %v1049_v43, %v1049_v43 }
  0x1b   :  { %1722 = vst [vmem:[#allocation7_spill] sm:$0xff] %v1155_v56  ;;  %v140_v27 = vmul.f32 %v1054_v46, %v1054_v46  ;;  %v79_v45 = vadd.f32 %v78_v29, %v1126_v22  ;;  %v133_v53 = vmul.f32 %v1066_v59, %v1066_v59  ;;  %v182_v60 = vadd.f32 %v181_v32, %v131_v54 }
  0x1c   :  { %218 = vadd.xlane.f32.xlu1 %v217_v19  ;;  %v88_v51 = vadd.f32 %v87_v33, %v1135_v39  ;;  %v123_v63 = vadd.f32 %v122_v7, %v1141_v44  ;;  %1723 = vst [vmem:[#allocation8_spill] sm:$0xff] %v1169_v5  ;;  %v177_v12 = vmul.f32 %v1141_v44, %v1141_v44  ;;  %v1176_v19 = vld [vmem:[%s1699_s0 + $0xa0] sm:$0xff] }
  0x1d   :  { %v229_v37 = vadd.f32 %v228_v40, %v175_v9  ;;  %1724 = vst [vmem:[#allocation9_spill] sm:$0xff] %v1176_v19  ;;  %v141_v54 = vmul.f32 %v1073_v61, %v1073_v61  ;;  %v80_v29 = vadd.f32 %v79_v45, %v1148_v34  ;;  %v134_v7 = vmul.f32 %v1088_v26, %v1088_v26  ;;  %v1187_v9 = vld [vmem:[%s1699_s0 + $0xa8] sm:$0xff] }
  0x1e   :  { %v183_v32 = vadd.f32 %v182_v60, %v132_v55  ;;  %v89_v33 = vadd.f32 %v88_v51, %v1155_v56  ;;  %1725 = vst [vmem:[#allocation10_spill] sm:$0xff] %v1187_v9  ;;  %v142_v40 = vmul.f32 %v1095_v28, %v1095_v28  ;;  %v192_v44 = vadd.f32 %v140_v27, %v139_v48 }
  0x1f   :  { %v230_v46 = vadd.f32 %v229_v37, %v176_v11  ;;  %v81_v61 = vadd.f32 %v80_v29, %v1169_v5  ;;  %v135_v45 = vmul.f32 %v1110_v49, %v1110_v49  ;;  %v1198_v37 = vld [vmem:[%s1699_s0 + $0xb0] sm:$0xff]  ;;  %v143_v11 = vmul.f32 %v1117_v57, %v1117_v57 }
  0x20   :  { %v184_v43 = vadd.f32 %v183_v32, %v133_v53  ;;  %v90_v55 = vadd.f32 %v89_v33, %v1176_v19  ;;  %1726 = vst [vmem:[#allocation11_spill] sm:$0xff] %v1198_v37  ;;  %v193_v51 = vadd.f32 %v192_v44, %v141_v54  ;;  %v136_v48 = vmul.f32 %v1126_v22, %v1126_v22 }
  0x21   :  { %v231_v60 = vadd.f32 %v230_v46, %v177_v12  ;;  %82 = vadd.xlane.f32.xlu2 %v81_v61  ;;  %v1208_v46 = vld [vmem:[%s1699_s0 + $0xb8] sm:$0xff]  ;;  %v137_v44 = vmul.f32 %v1148_v34, %v1148_v34  ;;  %v145_v29 = vmul.f32 %v1155_v56, %v1155_v56  ;;  %v138_v32 = vmul.f32 %v1169_v5, %v1169_v5 }
  0x22   :  { %124 = vadd.xlane.f32.xlu0 %v123_v63  ;;  %v185_v27 = vadd.f32 %v184_v43, %v134_v7  ;;  %v91_v53 = vadd.f32 %v90_v55, %v1187_v9  ;;  %1727 = vst [vmem:[#allocation12_spill] sm:$0xff] %v1208_v46  ;;  %v144_v63 = vmul.f32 %v1135_v39, %v1135_v39  ;;  %v1218_v43 = vld [vmem:[%s1699_s0 + $0xc0] sm:$0xff] }
  0x23   :  { %v194_v12 = vadd.f32 %v193_v51, %v142_v40  ;;  %1728 = vst [vmem:[#allocation13_spill] sm:$0xff] %v1218_v43  ;;  %v146_v55 = vmul.f32 %v1176_v19, %v1176_v19  ;;  %v149_v5 = vmul.f32 %v1208_v46, %v1208_v46 }
  0x24   :  { %232 = vadd.xlane.f32.xlu1 %v231_v60  ;;  %v186_v61 = vadd.f32 %v185_v27, %v135_v45  ;;  %v92_v54 = vadd.f32 %v91_v53, %v1198_v37  ;;  %v1228_v45 = vld [vmem:[%s1699_s0 + $0xc8] sm:$0xff] }
  0x25   :  { %v195_v7 = vadd.f32 %v194_v12, %v143_v11  ;;  %1729 = vst [vmem:[#allocation14_spill] sm:$0xff] %v1228_v45  ;;  %v147_v11 = vmul.f32 %v1187_v9, %v1187_v9 }
  0x26   :  { %v187_v33 = vadd.f32 %v186_v61, %v136_v48  ;;  %v93_v40 = vadd.f32 %v92_v54, %v1208_v46  ;;  %v148_v61 = vmul.f32 %v1198_v37, %v1198_v37 }
  0x27   :  { %v196_v60 = vadd.f32 %v195_v7, %v144_v63 }
  0x28   :  { %v188_v51 = vadd.f32 %v187_v33, %v137_v44  ;;  %v94_v27 = vadd.f32 %v93_v40, %v1218_v43  ;;  %v150_v44 = vmul.f32 %v1218_v43, %v1218_v43 }
  0x29   :  { %v197_v53 = vadd.f32 %v196_v60, %v145_v29  ;;  %v151_v29 = vmul.f32 %v1228_v45, %v1228_v45 }
  0x2a   :  { %v189_v12 = vadd.f32 %v188_v51, %v138_v32  ;;  %v95_v48 = vadd.f32 %v94_v27, %v1228_v45 }
  0x2b   :  { %v198_v54 = vadd.f32 %v197_v53, %v146_v55 }
  0x2c   :  { %190 = vadd.xlane.f32.xlu0 %v189_v12  ;;  %96 = vadd.xlane.f32.xlu2 %v95_v48 }
  0x2d   :  { %v199_v63 = vadd.f32 %v198_v54, %v147_v11 }
  0x2f   :  { %v200_v7 = vadd.f32 %v199_v63, %v148_v61  ;;  %v793_v63 = vmov 0  }
  0x30   :  { %782 = vset.pattern.permute.xlu2 %v793_v63  ;;  %783 = vset.pattern.permute.xlu0 %v793_v63 }
  0x31   :  { %v201_v32 = vadd.f32 %v200_v7, %v149_v5  ;;  %784 = vset.pattern.permute.xlu1 %v793_v63 }
  0x33   :  { %v202_v33 = vadd.f32 %v201_v32, %v150_v44 }
  0x35   :  { %v203_v40 = vadd.f32 %v202_v33, %v151_v29 }
  0x37   :  { %204 = vadd.xlane.f32.xlu1 %v203_v40 }
  0x8d   :  { %v111_v60 = vpop.xlane.xlu0 %110 }
  0x8e   :  { %v1244_v51 = vmul.f32 0.0006377551, %v111_v60 }
  0x8f   :  { %v219_v27 = vpop.xlane.xlu1 %218 }
  0x90   :  { %v244_v55 = vmul.f32 %v1244_v51, %v1244_v51  ;;  %v240_v53 = vmul.f32 0.0006377551, %v219_v27 }
  0x92   :  { %v248_v11 = vsub.f32 %v240_v53, %v244_v55 }
  0x94   :  { %v252_v12 = vmax.f32 %v248_v11, 0.0  ;;  %v83_v7 = vpop.xlane.xlu2 %82 }
  0x95   :  { %v125_v48 = vpop.xlane.xlu0 %124  ;;  %v1252_v33 = vmul.f32 0.0006377551, %v83_v7 }
  0x96   :  { %v1248_v54 = vmul.f32 0.0006377551, %v125_v48  ;;  %v256_v61 = vadd.f32 1e-05, %v252_v12 }
  0x97   :  { %v233_v44 = vpop.xlane.xlu1 %232  ;;  %v242_v11 = vmul.f32 %v1252_v33, %v1252_v33 }
  0x98   :  { %v245_v5 = vmul.f32 %v1248_v54, %v1248_v54  ;;  %785 = vrsqrt.f32 %v256_v61  ;;  %v241_v29 = vmul.f32 0.0006377551, %v233_v44  ;;  %vm284_vm1 = vweird.f32 %v256_v61 }
  0x9a   :  { %v249_v32 = vsub.f32 %v241_v29, %v245_v5 }
  0x9c   :  { %v253_v40 = vmax.f32 %v249_v32, 0.0 }
  0x9e   :  { %v786_v60 = vpop.eup %785  ;;  %v257_v55 = vadd.f32 1e-05, %v253_v40  ;;  %v300_v40 = vld [vmem:[%s1700_s1 + $0x10] sm:$0xff] }
  0x9f   :  { %v279_v27 = vmul.f32 %v786_v60, %v256_v61  ;;  %v191_v53 = vpop.xlane.xlu0 %190  ;;  %v97_v43 = vpop.xlane.xlu2 %96  ;;  %vm285_vm0 = vweird.f32 %v786_v60 }
  0xa0   :  { %787 = vrsqrt.f32 %v257_v55  ;;  %v238_v12 = vmul.f32 0.0006377551, %v191_v53  ;;  %v1256_v44 = vmul.f32 0.0006377551, %v97_v43  ;;  %vm286_vm2 = vmor %vm284_vm1, %vm285_vm0  ;;  %vm294_vm4 = vweird.f32 %v257_v55 }
  0xa1   :  { %v280_v48 = vmul.f32 %v786_v60, %v279_v27 }
  0xa2   :  { %v246_v45 = vsub.f32 %v238_v12, %v242_v11  ;;  %v243_v53 = vmul.f32 %v1256_v44, %v1256_v44 }
  0xa3   :  { %v281_v63 = vmul.f32 0.5, %v280_v48 }
  0xa4   :  { %v250_v46 = vmax.f32 %v246_v45, 0.0 }
  0xa5   :  { %v282_v37 = vsub.f32 1.5, %v281_v63 }
  0xa6   :  { %v788_v5 = vpop.eup %787  ;;  %v254_v7 = vadd.f32 1e-05, %v250_v46 }
  0xa7   :  { %v289_v29 = vmul.f32 %v788_v5, %v257_v55  ;;  %v283_v32 = vmul.f32 %v786_v60, %v282_v37  ;;  %vm295_vm3 = vweird.f32 %v788_v5  ;;  %v298_v55 = vld [vmem:[%s1700_s1] sm:$0xff] }
  0xa8   :  { %789 = vrsqrt.f32 %v254_v7  ;;  %vm296_vm5 = vmor %vm294_vm4, %vm295_vm3  ;;  %vm264_vm7 = vweird.f32 %v254_v7 }
  0xa9   :  { %v290_v27 = vmul.f32 %v788_v5, %v289_v29  ;;  %v287_v45 = vsel %vm286_vm2, %v786_v60, %v283_v32  ;;  %v301_v29 = vld [vmem:[%s1700_s1 + $0x18] sm:$0xff] }
  0xaa   :  { %v205_v11 = vpop.xlane.xlu1 %204  ;;  %v304_v43 = vmul.f32 %v300_v40, %v287_v45 }
  0xab   :  { %v291_v12 = vmul.f32 0.5, %v290_v27  ;;  %v239_v48 = vmul.f32 0.0006377551, %v205_v11 }
  0xac   :  { %330 = vperm.xlu2 %782, %v304_v43  }
  0xad   :  { %v292_v46 = vsub.f32 1.5, %v291_v12  ;;  %v247_v61 = vsub.f32 %v239_v48, %v243_v53 }
  0xae   :  { %v790_v37 = vpop.eup %789 }
  0xaf   :  { %v259_v63 = vmul.f32 %v790_v37, %v254_v7  ;;  %v251_v9 = vmax.f32 %v247_v61, 0.0  ;;  %v293_v19 = vmul.f32 %v788_v5, %v292_v46  ;;  %vm265_vm6 = vweird.f32 %v790_v37 }
  0xb0   :  { %vm266_vm8 = vmor %vm264_vm7, %vm265_vm6 }
  0xb1   :  { %v260_v56 = vmul.f32 %v790_v37, %v259_v63  ;;  %v255_v60 = vadd.f32 1e-05, %v251_v9  ;;  %v297_v32 = vsel %vm296_vm5, %v788_v5, %v293_v19  ;;  %v309_v9 = vld [vmem:[%s1701_s2 + $0x18] sm:$0xff]  ;;  %v299_v63 = vld [vmem:[%s1700_s1 + $0x8] sm:$0xff] }
  0xb2   :  { %v305_v40 = vmul.f32 %v301_v29, %v297_v32 }
  0xb3   :  { %v261_v27 = vmul.f32 0.5, %v260_v56  ;;  %791 = vrsqrt.f32 %v255_v60  ;;  %vm274_vm10 = vweird.f32 %v255_v60 }
  0xb4   :  { %335 = vperm.xlu0 %783, %v305_v40   ;;  %v313_v56 = vmul.f32 %v305_v40, %v1248_v54  ;;  %v306_v54 = vld [vmem:[%s1701_s2] sm:$0xff]  ;;  %v312_v40 = vmul.f32 %v304_v43, %v1244_v51 }
  0xb5   :  { %v262_v45 = vsub.f32 1.5, %v261_v27 }
  0xb7   :  { %v263_v53 = vmul.f32 %v790_v37, %v262_v45 }
  0xb9   :  { %v792_v11 = vpop.eup %791  ;;  %v267_v12 = vsel %vm266_vm8, %v790_v37, %v263_v53  ;;  %v317_v37 = vsub.f32 %v309_v9, %v313_v56 }
  0xba   :  { %v269_v48 = vmul.f32 %v792_v11, %v255_v60  ;;  %v302_v46 = vmul.f32 %v298_v55, %v267_v12  ;;  %vm275_vm9 = vweird.f32 %v792_v11  ;;  %v308_v60 = vld [vmem:[%s1701_s2 + $0x10] sm:$0xff] }
  0xbb   :  { %vm276_vm11 = vmor %vm274_vm10, %vm275_vm9  ;;  %v316_v53 = vsub.f32 %v308_v60, %v312_v40 }
  0xbc   :  { %v270_v61 = vmul.f32 %v792_v11, %v269_v48  ;;  %320 = vperm.xlu2 %782, %v302_v46   ;;  %v310_v27 = vmul.f32 %v302_v46, %v1252_v33  ;;  %v307_v33 = vld [vmem:[%s1701_s2 + $0x8] sm:$0xff] }
  0xbe   :  { %v271_v19 = vmul.f32 0.5, %v270_v61  ;;  %v314_v45 = vsub.f32 %v306_v54, %v310_v27 }
  0xc0   :  { %v272_v5 = vsub.f32 1.5, %v271_v19 }
  0xc2   :  { %v273_v7 = vmul.f32 %v792_v11, %v272_v5 }
  0xc4   :  { %v277_v29 = vsel %vm276_vm11, %v792_v11, %v273_v7  ;;  %407 = vperm.xlu2 %782, %v317_v37  }
  0xc5   :  { %v303_v32 = vmul.f32 %v299_v63, %v277_v29 }
  0xc7   :  { %325 = vperm.xlu1 %784, %v303_v32   ;;  %v311_v55 = vmul.f32 %v303_v32, %v1256_v44 }
  0xc9   :  { %v315_v11 = vsub.f32 %v307_v33, %v311_v55 }
  0xcc   :  { %392 = vperm.xlu2 %782, %v314_v45  }
  0xcf   :  { %402 = vperm.xlu1 %784, %v316_v53  }
  0xd7   :  { %397 = vperm.xlu1 %784, %v315_v11  }
 0x106   :  { %v1288_v12 = vpop.permute.xlu2 %330 }
 0x107   :  { %v1296_v43 = vmul.f32 %v1288_v12, %v822_v0  ;;  %v1302_v44 = vmul.f32 %v1288_v12, %v827_v1  ;;  %v1306_v61 = vmul.f32 %v1288_v12, %v832_v2  ;;  %v1310_v19 = vmul.f32 %v1288_v12, %v837_v3 }
 0x108   :  { %v1314_v56 = vmul.f32 %v1288_v12, %v850_v8  ;;  %v1318_v0 = vmul.f32 %v1288_v12, %v856_v10  ;;  %v1322_v1 = vmul.f32 %v1288_v12, %v873_v15  ;;  %v1326_v2 = vmul.f32 %v1288_v12, %v878_v16 }
 0x109   :  { %v1330_v3 = vmul.f32 %v1288_v12, %v891_v20  ;;  %v1338_v10 = vmul.f32 %v1288_v12, %v903_v24  ;;  %v1342_v15 = vmul.f32 %v1288_v12, %v908_v25  ;;  %v1346_v16 = vmul.f32 %v1288_v12, %v919_v30 }
 0x116   :  { %v1290_v48 = vpop.permute.xlu2 %320 }
 0x117   :  { %v338_v8 = vmul.f32 %v1290_v48, %v935_v36  ;;  %v339_v5 = vmul.f32 %v1290_v48, %v949_v41  ;;  %v340_v36 = vmul.f32 %v1290_v48, %v954_v42  ;;  %v341_v24 = vmul.f32 %v1290_v48, %v981_v52 }
 0x118   :  { %v342_v30 = vmul.f32 %v1290_v48, %v1004_v62  ;;  %v344_v52 = vmul.f32 %v1290_v48, %v1042_v38  ;;  %v346_v62 = vmul.f32 %v1290_v48, %v1088_v26 }
 0x11e   :  { %v1292_v51 = vpop.permute.xlu2 %407 }
 0x126   :  { %v1298_v46 = vpop.permute.xlu0 %335  ;;  %v1332_v9 = vpop.permute.xlu2 %392 }
 0x127   :  { %v377_v20 = vmul.f32 %v1298_v46, %v863_v13  ;;  %v378_v25 = vmul.f32 %v1298_v46, %v868_v14  ;;  %v379_v7 = vmul.f32 %v1298_v46, %v884_v18  ;;  %v343_v13 = vmul.f32 %v1290_v48, %v1028_v21 }
 0x128   :  { %v380_v41 = vmul.f32 %v1298_v46, %v898_v23  ;;  %v1367_v42 = vadd.f32 %v1332_v9, %v338_v8  ;;  %v345_v14 = vmul.f32 %v1290_v48, %v1066_v59  ;;  %v1374_v18 = vadd.f32 %v1332_v9, %v339_v5 }
 0x129   :  { %v347_v21 = vmul.f32 %v1290_v48, %v1110_v49  ;;  %v348_v23 = vmul.f32 %v1290_v48, %v1126_v22  ;;  %v1383_v63 = vadd.f32 %v1292_v51, %v377_v20  ;;  %v1386_v38 = vadd.f32 %v1332_v9, %v340_v36 }
 0x12a   :  { %v1389_v59 = vadd.f32 %v1332_v9, %v341_v24  ;;  %v381_v37 = vmul.f32 %v1298_v46, %v930_v35  ;;  %v1394_v26 = vadd.f32 %v1292_v51, %v378_v25  ;;  %v1397_v49 = vadd.f32 %v1292_v51, %v379_v7 }
 0x12b   :  { %v382_v22 = vmul.f32 %v1298_v46, %v967_v47  ;;  %v383_v29 = vmul.f32 %v1298_v46, %v975_v50  ;;  %v452_v27 = vadd.f32 %v1292_v51, %v380_v41  ;;  %v462_v54 = vmax.f32 %v1367_v42, 0.0  ;;  %v780_v41 = vld [vmem:[%s1702_s3] sm:$0x10]  ;;  %v1740_v42 = vld [vmem:[#allocation13_spill] sm:$0xff] }
 0x12c   :  { %v1408_v35 = vadd.f32 %v1332_v9, %v342_v30  ;;  %v1411_v40 = vadd.f32 %v1332_v9, %v343_v13  ;;  %v463_v60 = vmax.f32 %v1374_v18, 0.0  ;;  %v384_v47 = vmul.f32 %v1298_v46, %v996_v58  ;;  %v765_v13 = vld [vmem:[%s1702_s3] sm:$0xf] }
 0x12d   :  { %v1417_v45 = vadd.f32 %v1332_v9, %v344_v52  ;;  %v1420_v50 = vadd.f32 %v1332_v9, %v345_v14  ;;  %v501_v53 = vmax.f32 %v1383_v63, 0.0  ;;  %v1426_v11 = vadd.f32 %v1292_v51, %v381_v37 }
 0x12e   :  { %v502_v8 = vmax.f32 %v1394_v26, 0.0  ;;  %v503_v20 = vmax.f32 %v1397_v49, 0.0  ;;  %v1431_v58 = vadd.f32 %v1292_v51, %v382_v22  ;;  %v1434_v5 = vadd.f32 %v1292_v51, %v383_v29 }
 0x12f   :  { %v504_v36 = vmax.f32 %v452_v27, 0.0  ;;  %v385_v7 = vmul.f32 %v1298_v46, %v1011_v6  ;;  %v1441_v30 = vadd.f32 %v1292_v51, %v384_v47  ;;  %v349_v63 = vmul.f32 %v1290_v48, %v1148_v34 }
 0x130   :  { %v386_v37 = vmul.f32 %v1298_v46, %v1022_v17  ;;  %v387_v26 = vmul.f32 %v1298_v46, %v1078_v4  ;;  %v388_v49 = vmul.f32 %v1298_v46, %v1101_v31  ;;  %v1463_v27 = vadd.f32 %v1332_v9, %v346_v62 }
 0x131   :  { %v1466_v34 = vadd.f32 %v1332_v9, %v347_v21  ;;  %v1470_v14 = vor.u32 %v780_v41, %v765_v13  ;;  %v1473_v17 = vadd.f32 %v1292_v51, %v385_v7  ;;  %v1476_v4 = vadd.f32 %v1332_v9, %v348_v23  ;;  %v1730_v7 = vld [vmem:[#allocation3_spill] sm:$0xff] }
 0x132   :  { %v1479_v31 = vadd.f32 %v1332_v9, %v349_v63  ;;  %v1492_v23 = vadd.f32 %v1292_v51, %v386_v37  ;;  %v1495_v63 = vadd.f32 %v1292_v51, %v387_v26  ;;  %v1741_v18 = vmax.f32 %v1426_v11, 0.0 }
 0x139   :  { %v1403_v32 = vpop.permute.xlu1 %325 }
 0x13a   :  { %v351_v41 = vmul.f32 %v1403_v32, %v1730_v7 }
 0x141   :  { %v1468_v47 = vpop.permute.xlu1 %402 }
 0x142   :  { %v436_v62 = vadd.f32 %v1468_v47, %v1296_v43  ;;  %v437_v21 = vadd.f32 %v1468_v47, %v1302_v44  ;;  %v438_v52 = vadd.f32 %v1468_v47, %v1306_v61  ;;  %v439_v13 = vadd.f32 %v1468_v47, %v1310_v19  ;;  %v1731_v61 = vld [vmem:[#allocation4_spill] sm:$0xff]  ;;  %v1732_v19 = vld [vmem:[#allocation5_spill] sm:$0xff] }
 0x143   :  { %v1498_v43 = vadd.f32 %v1292_v51, %v388_v49  ;;  %v352_v22 = vmul.f32 %v1403_v32, %v1731_v61  ;;  %v353_v6 = vmul.f32 %v1403_v32, %v1732_v19  ;;  %v440_v37 = vadd.f32 %v1468_v47, %v1314_v56 }
 0x144   :  { %v488_v25 = vmax.f32 %v436_v62, 0.0  ;;  %v489_v44 = vmax.f32 %v437_v21, 0.0  ;;  %v490_v24 = vmax.f32 %v438_v52, 0.0  ;;  %v491_v29 = vmax.f32 %v439_v13, 0.0 }
 0x145   :  { %v441_v26 = vadd.f32 %v1468_v47, %v1318_v0  ;;  %v354_v52 = vmul.f32 %v1403_v32, %v1095_v28  ;;  %v442_v62 = vadd.f32 %v1468_v47, %v1322_v1  ;;  %v443_v21 = vadd.f32 %v1468_v47, %v1326_v2  ;;  %v1734_v28 = vld [vmem:[#allocation9_spill] sm:$0xff] }
 0x146   :  { %v527_v7 = vpack.c.bf16 %v501_v53, %v488_v25  ;;  %v528_v33 = vpack.c.bf16 %v502_v8, %v489_v44  ;;  %v529_v49 = vpack.c.bf16 %v503_v20, %v490_v24  ;;  %v530_v55 = vpack.c.bf16 %v504_v36, %v491_v29  ;;  %v1733_v53 = vld [vmem:[#allocation7_spill] sm:$0xff] }
 0x147   :  { %v355_v13 = vmul.f32 %v1403_v32, %v1117_v57  ;;  %v508_v56 = vmax.f32 %v1441_v30, 0.0  ;;  %v356_v0 = vmul.f32 %v1403_v32, %v1135_v39  ;;  %v357_v8 = vmul.f32 %v1403_v32, %v1733_v53  ;;  %v1735_v57 = vld [vmem:[#allocation10_spill] sm:$0xff]  ;;  %v1736_v24 = vld [vmem:[#allocation11_spill] sm:$0xff] }
 0x148   :  { %557 = vmatpush.bf16.msra.mxu0 %v527_v7  ;;  %571 = vmatpush.bf16.msra.mxu1 %v528_v33  ;;  %v358_v20 = vmul.f32 %v1403_v32, %v1734_v28  ;;  %v492_v2 = vmax.f32 %v440_v37, 0.0  ;;  %v493_v36 = vmax.f32 %v441_v26, 0.0  ;;  %v359_v33 = vmul.f32 %v1403_v32, %v1735_v57  ;;  %v1739_v57 = vld [vmem:[#allocation12_spill] sm:$0xff] }
 0x149   :  { %585 = vmatpush.bf16.msra.mxu2 %v529_v49  ;;  %599 = vmatpush.bf16.msra.mxu3 %v530_v55  ;;  %v1523_v1 = vpop.permute.xlu1 %397  ;;  %v360_v25 = vmul.f32 %v1403_v32, %v1736_v24  ;;  %v494_v55 = vmax.f32 %v442_v62, 0.0  ;;  %v495_v61 = vmax.f32 %v443_v21, 0.0  ;;  %v1737_v21 = vmax.f32 %v1386_v38, 0.0 }
 0x14a   :  { %v423_v39 = vadd.f32 %v1523_v1, %v351_v41  ;;  %v424_v30 = vadd.f32 %v1523_v1, %v352_v22  ;;  %v425_v29 = vadd.f32 %v1523_v1, %v353_v6  ;;  %v426_v44 = vadd.f32 %v1523_v1, %v354_v52 }
 0x14b   :  { %v427_v19 = vadd.f32 %v1523_v1, %v355_v13  ;;  %v428_v37 = vadd.f32 %v1523_v1, %v356_v0  ;;  %v429_v28 = vadd.f32 %v1523_v1, %v357_v8  ;;  %v430_v41 = vadd.f32 %v1523_v1, %v358_v20 }
 0x14c   :  { %v475_v26 = vmax.f32 %v423_v39, 0.0  ;;  %v476_v7 = vmax.f32 %v424_v30, 0.0  ;;  %v477_v49 = vmax.f32 %v425_v29, 0.0  ;;  %v478_v53 = vmax.f32 %v426_v44, 0.0 }
 0x14d   :  { %v444_v22 = vadd.f32 %v1468_v47, %v1330_v3  ;;  %v445_v6 = vadd.f32 %v1468_v47, %v1338_v10  ;;  %v1738_v0 = vmax.f32 %v1389_v59, 0.0  ;;  %v446_v20 = vadd.f32 %v1468_v47, %v1342_v15 }
 0x14e   :  { %v514_v52 = vpack.c.bf16 %v475_v26, %v462_v54  ;;  %v515_v62 = vpack.c.bf16 %v476_v7, %v463_v60  ;;  %v516_v13 = vpack.c.bf16 %v477_v49, %v1737_v21  ;;  %v447_v3 = vadd.f32 %v1468_v47, %v1346_v16 }
 0x14f   :  { %v517_v8 = vpack.c.bf16 %v478_v53, %v1738_v0  ;;  %v361_v10 = vmul.f32 %v1403_v32, %v1739_v57  ;;  %v362_v54 = vmul.f32 %v1403_v32, %v1740_v42  ;;  %v531_v38 = vpack.c.bf16 %v1741_v18, %v492_v2  ;;  %v1748_v0 = vld [vmem:[#allocation2_spill] sm:$0xff] }
 0x150   :  { %558 = vmatpush.bf16.msra.mxu0 %v514_v52  ;;  %572 = vmatpush.bf16.msra.mxu1 %v515_v62  ;;  %v1742_v59 = vmax.f32 %v1431_v58, 0.0  ;;  %v479_v24 = vmax.f32 %v427_v19, 0.0  ;;  %v480_v39 = vmax.f32 %v428_v37, 0.0  ;;  %v1743_v15 = vmax.f32 %v1434_v5, 0.0 }
 0x151   :  { %586 = vmatpush.bf16.msra.mxu2 %v516_v13  ;;  %600 = vmatpush.bf16.msra.mxu3 %v517_v8  ;;  %v534_v30 = vpack.c.bf16 %v508_v56, %v495_v61  ;;  %v481_v29 = vmax.f32 %v429_v28, 0.0  ;;  %v482_v44 = vmax.f32 %v430_v41, 0.0  ;;  %v496_v26 = vmax.f32 %v444_v22, 0.0 }
 0x152   :  { %v532_v60 = vpack.c.bf16 %v1742_v59, %v493_v36  ;;  %v533_v16 = vpack.c.bf16 %v1743_v15, %v494_v55  ;;  %v497_v7 = vmax.f32 %v445_v6, 0.0  ;;  %v431_v11 = vadd.f32 %v1523_v1, %v359_v33 }
 0x153   :  { %v432_v2 = vadd.f32 %v1523_v1, %v360_v25  ;;  %v509_v58 = vmax.f32 %v1473_v17, 0.0  ;;  %v498_v36 = vmax.f32 %v446_v20, 0.0  ;;  %v499_v19 = vmax.f32 %v447_v3, 0.0  ;;  %767 = vmatmul.msk.bf16.vlgmr.msra.gmra.mxu0 %vm547_vm12, %v1470_v14  ;;  %768 = vmatmul.msk.bf16.vlgmr.msra.gmra.mxu1 %vm547_vm12, %v1470_v14  ;;  %v1749_v20 = vld [vmem:[#allocation6_spill] sm:$0xff] }
 0x154   :  { %613 = vmatpush.bf16.msrb.mxu0 %v531_v38  ;;  %627 = vmatpush.bf16.msrb.mxu1 %v532_v60  ;;  %v433_v5 = vadd.f32 %v1523_v1, %v361_v10  ;;  %v1744_v56 = vmax.f32 %v1408_v35, 0.0  ;;  %v1745_v33 = vmax.f32 %v1411_v40, 0.0  ;;  %v510_v61 = vmax.f32 %v1492_v23, 0.0 }
 0x155   :  { %641 = vmatpush.bf16.msrb.mxu2 %v533_v16  ;;  %655 = vmatpush.bf16.msrb.mxu3 %v534_v30  ;;  %v434_v17 = vadd.f32 %v1523_v1, %v362_v54  ;;  %v1746_v37 = vmax.f32 %v1417_v45, 0.0  ;;  %v1747_v53 = vmax.f32 %v1420_v50, 0.0  ;;  %v511_v35 = vmax.f32 %v1495_v63, 0.0 }
 0x156   :  { %769 = vmatmul.msk.bf16.vlgmr.msra.gmra.mxu2 %vm547_vm12, %v1470_v14  ;;  %v518_v55 = vpack.c.bf16 %v479_v24, %v1744_v56  ;;  %v519_v25 = vpack.c.bf16 %v480_v39, %v1745_v33  ;;  %770 = vmatmul.msk.bf16.vlgmr.msra.gmra.mxu3 %vm547_vm12, %v1470_v14  ;;  %v512_v40 = vmax.f32 %v1498_v43, 0.0  ;;  %v535_v23 = vpack.c.bf16 %v509_v58, %v496_v26 }
 0x157   :  { %v520_v49 = vpack.c.bf16 %v481_v29, %v1746_v37  ;;  %v521_v28 = vpack.c.bf16 %v482_v44, %v1747_v53  ;;  %v536_v41 = vpack.c.bf16 %v510_v61, %v497_v7  ;;  %v483_v22 = vmax.f32 %v431_v11, 0.0 }
 0x158   :  { %614 = vmatpush.bf16.msrb.mxu0 %v518_v55  ;;  %628 = vmatpush.bf16.msrb.mxu1 %v519_v25  ;;  %v484_v6 = vmax.f32 %v432_v2, 0.0  ;;  %v537_v45 = vpack.c.bf16 %v511_v35, %v498_v36  ;;  %v538_v52 = vpack.c.bf16 %v512_v40, %v499_v19  ;;  %v485_v62 = vmax.f32 %v433_v5, 0.0 }
 0x159   :  { %642 = vmatpush.bf16.msrb.mxu2 %v520_v49  ;;  %656 = vmatpush.bf16.msrb.mxu3 %v521_v28  ;;  %v486_v50 = vmax.f32 %v434_v17, 0.0  ;;  %v470_v21 = vmax.f32 %v1463_v27, 0.0  ;;  %v471_v63 = vmax.f32 %v1466_v34, 0.0  ;;  %v472_v43 = vmax.f32 %v1476_v4, 0.0  ;;  %v1750_v4 = vld [vmem:[#allocation14_spill] sm:$0xff] }
 0x15a   :  { %v473_v13 = vmax.f32 %v1479_v31, 0.0  ;;  %v376_v8 = vmul.f32 %v1288_v12, %v1748_v0  ;;  %v389_v3 = vmul.f32 %v1298_v46, %v1749_v20  ;;  %v363_v31 = vmul.f32 %v1403_v32, %v1750_v4  ;;  %v1751_v12 = vld [vmem:[#allocation8_spill] sm:$0xff] }
 0x15b   :  { %v522_v57 = vpack.c.bf16 %v483_v22, %v470_v21  ;;  %v523_v10 = vpack.c.bf16 %v484_v6, %v471_v63  ;;  %v524_v42 = vpack.c.bf16 %v485_v62, %v472_v43  ;;  %v350_v38 = vmul.f32 %v1290_v48, %v1751_v12 }
 0x15c   :  { %669 = vmatpush.bf16.msra.mxu0 %v535_v23  ;;  %683 = vmatpush.bf16.msra.mxu1 %v536_v41  ;;  %v525_v54 = vpack.c.bf16 %v486_v50, %v473_v13  ;;  %v448_v27 = vadd.f32 %v1468_v47, %v376_v8  ;;  %v461_v34 = vadd.f32 %v1292_v51, %v389_v3 }
 0x15d   :  { %697 = vmatpush.bf16.msra.mxu2 %v537_v45  ;;  %711 = vmatpush.bf16.msra.mxu3 %v538_v52  ;;  %v435_v46 = vadd.f32 %v1523_v1, %v363_v31  ;;  %v422_v60 = vadd.f32 %v1332_v9, %v350_v38 }
 0x15e   :  { %v500_v18 = vmax.f32 %v448_v27, 0.0  ;;  %v513_v59 = vmax.f32 %v461_v34, 0.0 }
 0x15f   :  { %v487_v47 = vmax.f32 %v435_v46, 0.0  ;;  %v474_v51 = vmax.f32 %v422_v60, 0.0 }
 0x160   :  { %670 = vmatpush.bf16.msra.mxu0 %v522_v57  ;;  %684 = vmatpush.bf16.msra.mxu1 %v523_v10  ;;  %v539_v24 = vpack.c.bf16 %v513_v59, %v500_v18 }
 0x161   :  { %698 = vmatpush.bf16.msra.mxu2 %v524_v42  ;;  %712 = vmatpush.bf16.msra.mxu3 %v525_v54  ;;  %v526_v48 = vpack.c.bf16 %v487_v47, %v474_v51 }
 0x163   :  { %771 = vmatmul.msk.bf16.vlgmr.msrb.gmra.mxu0 %vm547_vm12, %v1470_v14  ;;  %772 = vmatmul.msk.bf16.vlgmr.msrb.gmra.mxu1 %vm547_vm12, %v1470_v14 }
 0x164   :  { %725 = vmatpush.bf16.msrb.mxu0 %v539_v24 }
 0x166   :  { %773 = vmatmul.msk.bf16.vlgmr.msrb.gmra.mxu2 %vm547_vm12, %v1470_v14  ;;  %774 = vmatmul.msk.bf16.vlgmr.msrb.gmra.mxu3 %vm547_vm12, %v1470_v14 }
 0x168   :  { %726 = vmatpush.bf16.msrb.mxu0 %v526_v48 }
 0x173   :  { %775 = vmatmul.msk.bf16.vlgmr.msra.gmra.mxu0 %vm547_vm12, %v1470_v14  ;;  %776 = vmatmul.msk.bf16.vlgmr.msra.gmra.mxu1 %vm547_vm12, %v1470_v14 }
 0x176   :  { %777 = vmatmul.msk.bf16.vlgmr.msra.gmra.mxu2 %vm547_vm12, %v1470_v14  ;;  %778 = vmatmul.msk.bf16.vlgmr.msra.gmra.mxu3 %vm547_vm12, %v1470_v14 }
 0x183   :  { %779 = vmatmul.msk.bf16.vlgmr.msrb.gmra.mxu0 %vm547_vm12, %v1470_v14 }
 0x1d0   :  { %v560_v9 = vpop.f32.mrf.mxu0  ;;  %v574_v32 = vpop.f32.mrf.mxu1 }
 0x1d1   :  { %733 = vst [vmem:[%s1703_s4] sm:$0xff] %v560_v9 }
 0x1d2   :  { %734 = vst [vmem:[%s1703_s4 + $0x8] sm:$0xff] %v574_v32 }
 0x1d8   :  { %v562_v15 = vpop.f32.mrf.mxu0  ;;  %v576_v14 = vpop.f32.mrf.mxu1 }
 0x1d9   :  { %v588_v1 = vpop.f32.mrf.mxu2  ;;  %v602_v39 = vpop.f32.mrf.mxu3  ;;  %746 = vst [vmem:[%s1703_s4 + $0x68] sm:$0x1] %v562_v15 }
 0x1da   :  { %735 = vst [vmem:[%s1703_s4 + $0x10] sm:$0xff] %v588_v1 }
 0x1db   :  { %736 = vst [vmem:[%s1703_s4 + $0x18] sm:$0xff] %v602_v39 }
 0x1dc   :  { %747 = vst [vmem:[%s1703_s4 + $0x70] sm:$0x1] %v576_v14 }
 0x1e0   :  { %v616_v29 = vpop.f32.mrf.mxu0  ;;  %v630_v44 = vpop.f32.mrf.mxu1 }
 0x1e1   :  { %v590_v16 = vpop.f32.mrf.mxu2  ;;  %v604_v30 = vpop.f32.mrf.mxu3  ;;  %737 = vst [vmem:[%s1703_s4 + $0x20] sm:$0xff] %v616_v29 }
 0x1e2   :  { %748 = vst [vmem:[%s1703_s4 + $0x78] sm:$0x1] %v590_v16 }
 0x1e3   :  { %749 = vst [vmem:[%s1703_s4 + $0x80] sm:$0x1] %v604_v30 }
 0x1e4   :  { %738 = vst [vmem:[%s1703_s4 + $0x28] sm:$0xff] %v630_v44 }
 0x1e8   :  { %v618_v11 = vpop.f32.mrf.mxu0  ;;  %v632_v2 = vpop.f32.mrf.mxu1 }
 0x1e9   :  { %v644_v26 = vpop.f32.mrf.mxu2  ;;  %v658_v7 = vpop.f32.mrf.mxu3  ;;  %750 = vst [vmem:[%s1703_s4 + $0x88] sm:$0x1] %v618_v11 }
 0x1ea   :  { %739 = vst [vmem:[%s1703_s4 + $0x30] sm:$0xff] %v644_v26 }
 0x1eb   :  { %740 = vst [vmem:[%s1703_s4 + $0x38] sm:$0xff] %v658_v7 }
 0x1ec   :  { %751 = vst [vmem:[%s1703_s4 + $0x90] sm:$0x1] %v632_v2 }
 0x1f0   :  { %v672_v19 = vpop.f32.mrf.mxu0  ;;  %v686_v5 = vpop.f32.mrf.mxu1 }
 0x1f1   :  { %v646_v58 = vpop.f32.mrf.mxu2  ;;  %v660_v36 = vpop.f32.mrf.mxu3  ;;  %741 = vst [vmem:[%s1703_s4 + $0x40] sm:$0xff] %v672_v19 }
 0x1f2   :  { %752 = vst [vmem:[%s1703_s4 + $0x98] sm:$0x1] %v646_v58 }
 0x1f3   :  { %753 = vst [vmem:[%s1703_s4 + $0xa0] sm:$0x1] %v660_v36 }
 0x1f4   :  { %742 = vst [vmem:[%s1703_s4 + $0x48] sm:$0xff] %v686_v5 }
 0x1f8   :  { %v674_v33 = vpop.f32.mrf.mxu0  ;;  %v688_v25 = vpop.f32.mrf.mxu1 }
 0x1f9   :  { %v700_v56 = vpop.f32.mrf.mxu2  ;;  %v714_v55 = vpop.f32.mrf.mxu3  ;;  %754 = vst [vmem:[%s1703_s4 + $0xa8] sm:$0x1] %v674_v33 }
 0x1fa   :  { %743 = vst [vmem:[%s1703_s4 + $0x50] sm:$0xff] %v700_v56 }
 0x1fb   :  { %744 = vst [vmem:[%s1703_s4 + $0x58] sm:$0xff] %v714_v55 }
 0x1fc   :  { %755 = vst [vmem:[%s1703_s4 + $0xb0] sm:$0x1] %v688_v25 }
 0x200   :  { %v728_v37 = vpop.f32.mrf.mxu0 }
 0x201   :  { %v702_v61 = vpop.f32.mrf.mxu2  ;;  %v716_v17 = vpop.f32.mrf.mxu3  ;;  %745 = vst [vmem:[%s1703_s4 + $0x60] sm:$0xff] %v728_v37 }
 0x202   :  { %756 = vst [vmem:[%s1703_s4 + $0xb8] sm:$0x1] %v702_v61 }
 0x203   :  { %757 = vst [vmem:[%s1703_s4 + $0xc0] sm:$0x1] %v716_v17 }
 0x208   :  { %v730_v49 = vpop.f32.mrf.mxu0 }
 0x209   :  { %758 = vst [vmem:[%s1703_s4 + $0xc8] sm:$0x1] %v730_v49 }

</bundles_post_ra>
